<compile_context>
chip_gen: v5e
topology: v5e:2x2
jax: 0.10.0
libtpu: 0.0.40
codegen_flags: <defaults>
</compile_context>

<pallas_src>
import functools

import jax
import jax.numpy as jnp
import numpy as np
from jax.experimental import pallas as pl
from jax.experimental.pallas import tpu as pltpu


def _round_up(x, m):
    return ((x + m - 1) // m) * m


def _block_siren_kernel(x_ref, w_ref, b_ref, o_ref, *, scale):
    # MXU matmul with f32 accumulation; bias add + sin on the VPU in f32.
    y = jnp.dot(x_ref[...], w_ref[...], preferred_element_type=jnp.float32)
    y = y + b_ref[...]                       # (tile_n, tile_c) + (1, tile_c)
    if scale != 1.0:                         # static; folded params skip this
        y = y * scale
    o_ref[...] = jnp.sin(y).astype(o_ref.dtype)


def block_siren(x, w_t, bias, *, scale=1.0, tile_n=512, tile_c=512,
                matmul_dtype=None, out_dtype=None, vmem_limit_bytes=None):
    """sin(scale * (x @ w_t + bias)).

    x: [N, C_in]; w_t: [C_in, C_out] (transposed Linear weight); bias: [C_out]
    or [1, C_out].  `matmul_dtype=jnp.bfloat16` casts x/W for the MXU (f32
    accumulation is kept).  N and C_out are padded internally; output is
    [N, C_out] in `out_dtype` (default: x's original dtype).
    """
    N, C_in = x.shape
    C_in2, C_out = w_t.shape
    assert C_in == C_in2
    bias = jnp.reshape(bias, (1, C_out)).astype(jnp.float32)

    if out_dtype is None:
        out_dtype = x.dtype
    if matmul_dtype is not None:
        x = x.astype(matmul_dtype)
        w_t = w_t.astype(matmul_dtype)

    # Row (sublane) tile: multiple of 8, no bigger than the padded N.
    tile_n = _round_up(min(tile_n, _round_up(N, 8)), 8)
    n_pad = _round_up(N, tile_n)
    # Output-column (lane) tile: multiple of 128 -> unmasked stores.
    tile_c = _round_up(min(tile_c, _round_up(C_out, 128)), 128)
    c_out_pad = _round_up(C_out, tile_c)

    if n_pad != N:
        x = jnp.pad(x, ((0, n_pad - N), (0, 0)))
    if c_out_pad != C_out:
        w_t = jnp.pad(w_t, ((0, 0), (0, c_out_pad - C_out)))
        bias = jnp.pad(bias, ((0, 0), (0, c_out_pad - C_out)))

    in_bytes = jnp.dtype(x.dtype).itemsize
    out_bytes = jnp.dtype(out_dtype).itemsize
    if vmem_limit_bytes is None:
        # Double-buffered x / out tiles + weight & bias blocks, plus headroom.
        need = (2 * tile_n * C_in * in_bytes
                + 2 * C_in * tile_c * in_bytes
                + 2 * tile_c * 4
                + 2 * tile_n * tile_c * out_bytes)
        vmem_limit_bytes = int(min(max(need + (16 << 20), 32 << 20), 120 << 20))

    cost = pl.CostEstimate(
        flops=2 * n_pad * C_in * c_out_pad,
        transcendentals=n_pad * c_out_pad,
        bytes_accessed=(n_pad * C_in * in_bytes
                        + C_in * c_out_pad * in_bytes
                        + c_out_pad * 4
                        + n_pad * c_out_pad * out_bytes))

    kernel = functools.partial(_block_siren_kernel, scale=float(scale))

    out = pl.pallas_call(
        kernel,
        out_shape=jax.ShapeDtypeStruct((n_pad, c_out_pad), out_dtype),
        grid_spec=pltpu.PrefetchScalarGridSpec(
            num_scalar_prefetch=0,
            # C_out tiles outer, row tiles inner -> weight block stays resident
            # across all row tiles of a given column block.
            grid=(c_out_pad // tile_c, n_pad // tile_n),
            in_specs=[
                pl.BlockSpec((tile_n, C_in), lambda j, i: (i, 0)),   # x rows
                pl.BlockSpec((C_in, tile_c), lambda j, i: (0, j)),   # W columns
                pl.BlockSpec((1, tile_c), lambda j, i: (0, j)),      # bias
            ],
            out_specs=pl.BlockSpec((tile_n, tile_c), lambda j, i: (i, j)),
        ),
        compiler_params=pltpu.CompilerParams(
            dimension_semantics=("parallel", "parallel"),
            vmem_limit_bytes=vmem_limit_bytes),
        cost_estimate=cost,
    )(x, w_t, bias)

    return out[:N, :C_out]


def init_block_siren_params(key, in_channels, out_channels):
    """SIREN init matching the module: weight ~ U(-sqrt(6/in), sqrt(6/in)),
    bias ~ U(-1/sqrt(in), 1/sqrt(in)) (PyTorch Linear default bias init)."""
    kw, kb = jax.random.split(key)
    bound_w = np.sqrt(6.0 / in_channels)
    w = jax.random.uniform(kw, (out_channels, in_channels), jnp.float32,
                           -bound_w, bound_w)
    bound_b = 1.0 / np.sqrt(in_channels)
    b = jax.random.uniform(kb, (1, out_channels), jnp.float32,
                           -bound_b, bound_b)
    return w.T, b


def fold_siren_scale(w_t, bias, *, scale_init=90.0, is_first_layer=False):
    """One-time parameter transform: sin(s*(xW+b)) == sin(x(sW) + sb)."""
    scale = float(scale_init) if is_first_layer else 1.0
    return w_t * scale, bias * scale


if __name__ == "__main__":
    key = jax.random.PRNGKey(0)
    k_x, k_p1, k_p2 = jax.random.split(key, 3)

    # Small, module-consistent shapes; N deliberately NOT a tile multiple and
    # C_out NOT a multiple of 128 to exercise the padding paths.
    batch = 300
    c_in1, c_out1 = 32, 64          # first layer (scale_init = 90)
    c_in2, c_out2 = 64, 128         # second layer (scale = 1)
    scale_init = 90.0

    x = jax.random.normal(k_x, (batch, c_in1), jnp.float32)

    # --- Layer 1: first layer, f32 matmul, scale folded into the params. ---
    w1, b1 = init_block_siren_params(k_p1, c_in1, c_out1)
    w1_f, b1_f = fold_siren_scale(w1, b1, scale_init=scale_init,
                                  is_first_layer=True)
    y1 = block_siren(x, w1_f, b1_f, scale=1.0)
    y1 = jax.block_until_ready(y1)

    ref1 = jnp.sin(scale_init * (x @ w1 + b1))      # module semantics
    np.testing.assert_allclose(np.asarray(y1), np.asarray(ref1),
                               rtol=5e-3, atol=5e-3)

    # --- Layer 2: hidden layer (scale = 1), bf16 MXU inputs, f32 accumulate. ---
    # Inputs come from a f32 reference so the check isolates this layer.
    h = jnp.pad(ref1, ((0, 0), (0, c_in2 - c_out1)))   # widen to c_in2
    w2, b2 = init_block_siren_params(k_p2, c_in2, c_out2)
    y2 = block_siren(h, w2, b2, scale=1.0, matmul_dtype=jnp.bfloat16)
    y2 = jax.block_until_ready(y2)

    ref2 = jnp.sin(h @ w2 + b2)
    np.testing.assert_allclose(np.asarray(y2), np.asarray(ref2),
                               rtol=2e-2, atol=2e-2)

    print("KERNEL_OK")
</pallas_src>

<mosaic_0001>
module attributes {stable_mosaic.version = 11 : i64} {
  func.func @_block_siren_kernel(%arg0: i32, %arg1: i32, %arg2: memref<304x32xf32, #tpu.memory_space<vmem>>, %arg3: memref<32x128xf32, #tpu.memory_space<vmem>>, %arg4: memref<1x128xf32, #tpu.memory_space<vmem>>, %arg5: memref<304x128xf32, #tpu.memory_space<vmem>>) attributes {dimension_semantics = [#tpu.dimension_semantics<parallel>, #tpu.dimension_semantics<parallel>], iteration_bounds = array<i64: 1, 1>, scalar_prefetch = 0 : i64, scratch_operands = 0 : i64, tpu.core_type = #tpu.core_type<tc>, window_params = [{transform_indices = @transform_0, window_bounds = array<i64: 304, 32>}, {transform_indices = @transform_1, window_bounds = array<i64: 32, 128>}, {transform_indices = @transform_2, window_bounds = array<i64: 1, 128>}, {transform_indices = @transform_3, window_bounds = array<i64: 304, 128>}]} {
    %c0 = arith.constant 0 : index
    %c0_0 = arith.constant 0 : index
    %0 = vector.load %arg2[%c0, %c0_0] : memref<304x32xf32, #tpu.memory_space<vmem>>, vector<304x32xf32>
    %c0_1 = arith.constant 0 : index
    %c0_2 = arith.constant 0 : index
    %1 = vector.load %arg3[%c0_1, %c0_2] : memref<32x128xf32, #tpu.memory_space<vmem>>, vector<32x128xf32>
    %cst = arith.constant dense<0.000000e+00> : vector<304x128xf32>
    %2 = tpu.matmul %0, %1, %cst {dimension_numbers = #tpu.dot_dimension_numbers<[1], [0], [0], [1], [0, 0, 1, 1], [], []>} : vector<304x32xf32>, vector<32x128xf32>, vector<304x128xf32> -> vector<304x128xf32>
    %c0_3 = arith.constant 0 : index
    %c0_4 = arith.constant 0 : index
    %3 = vector.load %arg4[%c0_3, %c0_4] : memref<1x128xf32, #tpu.memory_space<vmem>>, vector<1x128xf32>
    %4 = vector.broadcast %3 : vector<1x128xf32> to vector<304x128xf32>
    %5 = arith.addf %2, %4 : vector<304x128xf32>
    %6 = math.sin %5 : vector<304x128xf32>
    %c0_5 = arith.constant 0 : index
    %c0_6 = arith.constant 0 : index
    %7 = vector.load %arg5[%c0_5, %c0_6] : memref<304x128xf32, #tpu.memory_space<vmem>>, vector<304x128xf32>
    tpu.vector_store %arg5[%c0_5, %c0_6], %6 {strides = array<i32>} : memref<304x128xf32, #tpu.memory_space<vmem>>, vector<304x128xf32>,
    return
  }
  func.func @transform_0(%arg0: i32, %arg1: i32) -> (i32, i32) {
    %c0_i32 = arith.constant 0 : i32
    %c0_i32_0 = arith.constant 0 : i32
    return %arg1, %c0_i32 : i32, i32
  }
  func.func @transform_1(%arg0: i32, %arg1: i32) -> (i32, i32) {
    %c0_i32 = arith.constant 0 : i32
    %c0_i32_0 = arith.constant 0 : i32
    return %c0_i32, %arg0 : i32, i32
  }
  func.func @transform_2(%arg0: i32, %arg1: i32) -> (i32, i32) {
    %c0_i32 = arith.constant 0 : i32
    %c0_i32_0 = arith.constant 0 : i32
    return %c0_i32, %arg0 : i32, i32
  }
  func.func @transform_3(%arg0: i32, %arg1: i32) -> (i32, i32) {
    %c0_i32 = arith.constant 0 : i32
    return %arg1, %arg0 : i32, i32
  }
}

</mosaic_0001>

<bundles_post_ra>
// kernel: tpu_custom_call.1
= control target key start
LH: loop header
LB: loop body
LE: loop exit
PB: predicated region body
PF: predicated region fallthrough
CT: control target
= control target key end

     0   :  { %vm61_vm0 = vcmask 261120   ;;  %s10724_s0 = inlined_call_operand.vmem [shape: f32[304,32], index: 0, kind: input, shape index: {}]   ;;  %s10725_s1 = inlined_call_operand.vmem [shape: f32[32,128], index: 1, kind: input, shape index: {}]   ;;  %s10726_s2 = inlined_call_operand.vmem [shape: f32[1,128], index: 2, kind: input, shape index: {}]   ;;  %s10727_s3 = inlined_call_operand.hbm [shape: f32[304,128], index: 3, kind: output, shape index: {}]  }
   0x1   :  { %v56_v0 = vld [vmem:[%s10725_s1 + $0x18] sm:$0xff]  ;;  %v55_v1 = vld [vmem:[%s10725_s1 + $0x10] sm:$0xff]  ;;  %v54_v2 = vld [vmem:[%s10725_s1 + $0x8] sm:$0xff] }
   0x2   :  { %188 = vmatpush.msra.mxu0 %v56_v0  ;;  %6405 = vmatpush.msra.mxu1 %v56_v0  ;;  %v53_v3 = vld [vmem:[%s10725_s1] sm:$0xff]  ;;  %v24_v5 = vld [vmem:[%s10724_s0 + $0x48] sm:$0xff]  ;;  %v34_v6 = vld [vmem:[%s10724_s0 + $0x98] sm:$0xff] }
   0x3   :  { %6406 = vmatpush.msra.mxu2 %v56_v0  ;;  %6407 = vmatpush.msra.mxu3 %v56_v0  ;;  %v15_v4 = vld [vmem:[%s10724_s0] sm:$0xff]  ;;  %v44_v7 = vld [vmem:[%s10724_s0 + $0xe8] sm:$0xff] }
   0x4   :  { %189 = vmatpush.msra.mxu0 %v55_v1  ;;  %6408 = vmatpush.msra.mxu1 %v55_v1 }
   0x5   :  { %6409 = vmatpush.msra.mxu2 %v55_v1  ;;  %6410 = vmatpush.msra.mxu3 %v55_v1 }
   0x6   :  { %190 = vmatpush.msra.mxu0 %v54_v2  ;;  %6411 = vmatpush.msra.mxu1 %v54_v2 }
   0x7   :  { %6412 = vmatpush.msra.mxu2 %v54_v2  ;;  %6413 = vmatpush.msra.mxu3 %v54_v2 }
   0x8   :  { %191 = vmatpush.msra.mxu0 %v53_v3  ;;  %6414 = vmatpush.msra.mxu1 %v53_v3 }
   0x9   :  { %8 = vsyncpa [#allocation3], 0  ;;  %6415 = vmatpush.msra.mxu2 %v53_v3  ;;  %6416 = vmatpush.msra.mxu3 %v53_v3  ;;  %v16_v8 = vld [vmem:[%s10724_s0 + $0x8] sm:$0xff]  ;;  %v25_v9 = vld [vmem:[%s10724_s0 + $0x50] sm:$0xff]  ;;  %s6241_s6 = sshll.u32 %s10727_s3, 4  ;;  %s6471_s7 = smov 128   ;;  %s6242_s6 = int_to_ptr.hbm [resolvable:$true] %s6241_s6 }
   0xa   :  { %6253 = vmatmul.msk.f32.vlgmr.msra.gmra.mxu0 %vm61_vm0, %v15_v4  ;;  %6262 = vmatmul.msk.f32.vlgmr.msra.gmra.mxu1 %vm61_vm0, %v24_v5  ;;  %v35_v10 = vld [vmem:[%s10724_s0 + $0xa0] sm:$0xff]  ;;  %v45_v11 = vld [vmem:[%s10724_s0 + $0xf0] sm:$0xff]  ;;  %v26_v13 = vld [vmem:[%s10724_s0 + $0x58] sm:$0xff]  ;;  %s6472_s8 = smov 8  }
   0xb   :  { %6272 = vmatmul.msk.f32.vlgmr.msra.gmra.mxu2 %vm61_vm0, %v34_v6  ;;  %6282 = vmatmul.msk.f32.vlgmr.msra.gmra.mxu3 %vm61_vm0, %v44_v7  ;;  %v17_v12 = vld [vmem:[%s10724_s0 + $0x10] sm:$0xff]  ;;  %v36_v14 = vld [vmem:[%s10724_s0 + $0xa8] sm:$0xff]  ;;  %v46_v15 = vld [vmem:[%s10724_s0 + $0xf8] sm:$0xff]  ;;  %v6463_v6 = vmov 683565275  }
   0xc   :  { %v18_v16 = vld [vmem:[%s10724_s0 + $0x18] sm:$0xff]  ;;  %v27_v17 = vld [vmem:[%s10724_s0 + $0x60] sm:$0xff]  ;;  %v37_v18 = vld [vmem:[%s10724_s0 + $0xb0] sm:$0xff] }
   0xd   :  { %v47_v19 = vld [vmem:[%s10724_s0 + $0x100] sm:$0xff]  ;;  %v28_v21 = vld [vmem:[%s10724_s0 + $0x68] sm:$0xff]  ;;  %v38_v22 = vld [vmem:[%s10724_s0 + $0xb8] sm:$0xff] }
   0xe   :  { %v19_v20 = vld [vmem:[%s10724_s0 + $0x20] sm:$0xff]  ;;  %v48_v23 = vld [vmem:[%s10724_s0 + $0x108] sm:$0xff]  ;;  %v29_v25 = vld [vmem:[%s10724_s0 + $0x70] sm:$0xff] }
   0xf   :  { %v20_v24 = vld [vmem:[%s10724_s0 + $0x28] sm:$0xff]  ;;  %v39_v26 = vld [vmem:[%s10724_s0 + $0xc0] sm:$0xff]  ;;  %v49_v27 = vld [vmem:[%s10724_s0 + $0x110] sm:$0xff] }
  0x10   :  { %v21_v28 = vld [vmem:[%s10724_s0 + $0x30] sm:$0xff]  ;;  %v30_v29 = vld [vmem:[%s10724_s0 + $0x78] sm:$0xff]  ;;  %v40_v30 = vld [vmem:[%s10724_s0 + $0xc8] sm:$0xff] }
  0x11   :  { %v50_v31 = vld [vmem:[%s10724_s0 + $0x118] sm:$0xff]  ;;  %v31_v33 = vld [vmem:[%s10724_s0 + $0x80] sm:$0xff]  ;;  %v41_v34 = vld [vmem:[%s10724_s0 + $0xd0] sm:$0xff] }
  0x12   :  { %6254 = vmatmul.msk.f32.gmra.mxu0 %vm61_vm0, %v16_v8  ;;  %6263 = vmatmul.msk.f32.gmra.mxu1 %vm61_vm0, %v25_v9  ;;  %v22_v32 = vld [vmem:[%s10724_s0 + $0x38] sm:$0xff]  ;;  %v51_v35 = vld [vmem:[%s10724_s0 + $0x120] sm:$0xff]  ;;  %v32_v37 = vld [vmem:[%s10724_s0 + $0x88] sm:$0xff]  ;;  %v6464_v8 = vmov 2475754826  }
  0x13   :  { %6273 = vmatmul.msk.f32.gmra.mxu2 %vm61_vm0, %v35_v10  ;;  %6283 = vmatmul.msk.f32.gmra.mxu3 %vm61_vm0, %v45_v11  ;;  %v23_v36 = vld [vmem:[%s10724_s0 + $0x40] sm:$0xff]  ;;  %v42_v38 = vld [vmem:[%s10724_s0 + $0xd8] sm:$0xff]  ;;  %v52_v39 = vld [vmem:[%s10724_s0 + $0x128] sm:$0xff]  ;;  %v6465_v10 = vmov 2131351028  }
  0x14   :  { %v33_v40 = vld [vmem:[%s10724_s0 + $0x90] sm:$0xff]  ;;  %v43_v41 = vld [vmem:[%s10724_s0 + $0xe0] sm:$0xff] }
  0x15   :  { %v6660_v42 = vld [vmem:[%s10726_s2] ss:$0 sm:$0xff] }
  0x1a   :  { %6255 = vmatmul.msk.f32.gmra.mxu0 %vm61_vm0, %v17_v12  ;;  %6264 = vmatmul.msk.f32.gmra.mxu1 %vm61_vm0, %v26_v13  ;;  %v6466_v12 = vmov 2102212464  }
  0x1b   :  { %6274 = vmatmul.msk.f32.gmra.mxu2 %vm61_vm0, %v36_v14  ;;  %6284 = vmatmul.msk.f32.gmra.mxu3 %vm61_vm0, %v46_v15  ;;  %v6467_v14 = vmov 920167782  }
  0x22   :  { %6256 = vmatmul.msk.f32.gmra.mxu0 %vm61_vm0, %v18_v16  ;;  %6265 = vmatmul.msk.f32.gmra.mxu1 %vm61_vm0, %v27_v17 }
  0x23   :  { %6275 = vmatmul.msk.f32.gmra.mxu2 %vm61_vm0, %v37_v18  ;;  %6285 = vmatmul.msk.f32.gmra.mxu3 %vm61_vm0, %v47_v19 }
  0x2a   :  { %6257 = vmatmul.msk.f32.gmra.mxu0 %vm61_vm0, %v19_v20  ;;  %6266 = vmatmul.msk.f32.gmra.mxu1 %vm61_vm0, %v28_v21 }
  0x2b   :  { %6276 = vmatmul.msk.f32.gmra.mxu2 %vm61_vm0, %v38_v22  ;;  %6286 = vmatmul.msk.f32.gmra.mxu3 %vm61_vm0, %v48_v23  ;;  %v6468_v23 = vmov 1326507024  }
  0x32   :  { %6258 = vmatmul.msk.f32.gmra.mxu0 %vm61_vm0, %v20_v24  ;;  %6267 = vmatmul.msk.f32.gmra.mxu1 %vm61_vm0, %v29_v25 }
  0x33   :  { %6277 = vmatmul.msk.f32.gmra.mxu2 %vm61_vm0, %v39_v26  ;;  %6287 = vmatmul.msk.f32.gmra.mxu3 %vm61_vm0, %v49_v27 }
  0x3a   :  { %6259 = vmatmul.msk.f32.gmra.mxu0 %vm61_vm0, %v21_v28  ;;  %6268 = vmatmul.msk.f32.gmra.mxu1 %vm61_vm0, %v30_v29 }
  0x3b   :  { %6278 = vmatmul.msk.f32.gmra.mxu2 %vm61_vm0, %v40_v30  ;;  %6288 = vmatmul.msk.f32.gmra.mxu3 %vm61_vm0, %v50_v31 }
  0x42   :  { %6260 = vmatmul.msk.f32.gmra.mxu0 %vm61_vm0, %v22_v32  ;;  %6269 = vmatmul.msk.f32.gmra.mxu1 %vm61_vm0, %v31_v33 }
  0x43   :  { %6279 = vmatmul.msk.f32.gmra.mxu2 %vm61_vm0, %v41_v34  ;;  %6289 = vmatmul.msk.f32.gmra.mxu3 %vm61_vm0, %v51_v35 }
  0x4a   :  { %6261 = vmatmul.msk.f32.gmra.mxu0 %vm61_vm0, %v23_v36  ;;  %6270 = vmatmul.msk.f32.gmra.mxu1 %vm61_vm0, %v32_v37 }
  0x4b   :  { %6280 = vmatmul.msk.f32.gmra.mxu2 %vm61_vm0, %v42_v38  ;;  %6290 = vmatmul.msk.f32.gmra.mxu3 %vm61_vm0, %v52_v39 }
  0x52   :  { %6271 = vmatmul.msk.f32.gmra.mxu1 %vm61_vm0, %v33_v40 }
  0x53   :  { %6281 = vmatmul.msk.f32.gmra.mxu2 %vm61_vm0, %v43_v41 }
  0x87   :  { %v193_v43 = vpop.f32.mrf.mxu0  ;;  %v220_v44 = vpop.f32.mrf.mxu1 }
  0x88   :  { %v6663_v45 = vadd.f32 %v6660_v42, %v193_v43  ;;  %v6666_v46 = vadd.f32 %v6660_v42, %v220_v44 }
  0x8a   :  { %v307_v47 = vand.u32 2147483647, %v6663_v45  ;;  %v310_v48 = vand.u32 2139095040, %v6663_v45  ;;  %v1702_v49 = vand.u32 2147483647, %v6666_v46  ;;  %v1705_v50 = vand.u32 2139095040, %v6666_v46 }
  0x8c   :  { %v311_v51 = vshrl.u32 %v310_v48, 23  ;;  %v314_v52 = vand.u32 8388607, %v307_v47  ;;  %v1706_v53 = vshrl.u32 %v1705_v50, 23  ;;  %v1709_v57 = vand.u32 8388607, %v1702_v49 }
  0x8e   :  { %v6291_v54 = vadd.s32 4294967169, %v311_v51  ;;  %v315_v55 = vor.u32 8388608, %v314_v52  ;;  %v6318_v56 = vadd.s32 4294967169, %v1706_v53  ;;  %v250_v60 = vpop.f32.mrf.mxu2  ;;  %v1710_v63 = vor.u32 8388608, %v1709_v57 }
  0x8f   :  { %v6683_v4 = vadd.f32 %v6660_v42, %v250_v60 }
  0x90   :  { %v317_v58 = vadd.s32 1, %v6291_v54  ;;  %v1712_v59 = vadd.s32 1, %v6318_v56  ;;  %v6676_v62 = vshll.u32 %v315_v55, 8  ;;  %v6691_v17 = vshll.u32 %v1710_v63, 8 }
  0x91   :  { %v3255_v31 = vand.u32 2139095040, %v6683_v4 }
  0x92   :  { %vm318_vm1 = vcmp.gt.s32.totalorder %v317_v58, 0  ;;  %vm1713_vm2 = vcmp.gt.s32.totalorder %v1712_v59, 0  ;;  %v356_v16 = vand.u32 65535, %v6676_v62  ;;  %v357_v21 = vshrl.u32 %v6676_v62, 16 }
  0x93   :  { %v319_v61 = vsel %vm318_vm1, %v317_v58, 0  ;;  %v1714_v1 = vsel %vm1713_vm2, %v1712_v59, 0  ;;  %v6735_v51 = vand.u32 65535, %v6691_v17 }
  0x94   :  { %v321_v0 = vand.u32 31, %v319_v61  ;;  %v6678_v2 = vshrl.u32 %v319_v61, 5  ;;  %v6680_v3 = vand.u32 31, %v1714_v1  ;;  %v6741_v58 = vshrl.u32 %v1714_v1, 5 }
  0x96   :  { %v322_v5 = vsub.s32 32, %v321_v0  ;;  %v324_v7 = vshll.u32 %v6463_v6, %v321_v0  ;;  %v327_v9 = vshll.u32 %v6464_v8, %v321_v0  ;;  %v330_v11 = vshll.u32 %v6465_v10, %v321_v0 }
  0x97   :  { %v333_v13 = vshll.u32 %v6466_v12, %v321_v0  ;;  %v336_v15 = vshll.u32 %v6467_v14, %v321_v0  ;;  %vm339_vm3 = vcmp.lt.s32.totalorder %v6678_v2, 1  ;;  %vm342_vm4 = vcmp.lt.s32.totalorder %v6678_v2, 4 }
  0x98   :  { %v325_v18 = vshrl.u32 %v6464_v8, %v322_v5  ;;  %v328_v19 = vshrl.u32 %v6465_v10, %v322_v5  ;;  %v331_v20 = vshrl.u32 %v6466_v12, %v322_v5  ;;  %v334_v22 = vshrl.u32 %v6467_v14, %v322_v5 }
  0x99   :  { %v337_v24 = vshrl.u32 %v6468_v23, %v322_v5  ;;  %v6702_v28 = vsub.s32 32, %v6680_v3  ;;  %vm341_vm5 = vcmp.lt.s32.totalorder %v6678_v2, 3  ;;  %v323_v32 = vshrl.u32 %v6463_v6, %v322_v5 }
  0x9a   :  { %v326_v25 = vor.u32 %v325_v18, %v324_v7  ;;  %v329_v26 = vor.u32 %v328_v19, %v327_v9  ;;  %v332_v27 = vor.u32 %v331_v20, %v330_v11  ;;  %v335_v29 = vor.u32 %v334_v22, %v333_v13 }
  0x9b   :  { %v338_v30 = vor.u32 %v337_v24, %v336_v15  ;;  %vm340_vm6 = vcmp.lt.s32.totalorder %v6678_v2, 2  ;;  %v1719_v37 = vshll.u32 %v6463_v6, %v6680_v3  ;;  %v1722_v38 = vshll.u32 %v6464_v8, %v6680_v3 }
  0x9c   :  { %v347_v33 = vsel %vm339_vm3, %v326_v25, %v329_v26  ;;  %v351_v34 = vsel %vm339_vm3, %v329_v26, %v332_v27  ;;  %v348_v35 = vsel %vm342_vm4, %v335_v29, 920167782  ;;  %v344_v39 = vsel %vm342_vm4, %v332_v27, 2102212464 }
  0x9d   :  { %v352_v36 = vsel %vm342_vm4, %v338_v30, 1326507024  ;;  %v349_v40 = vsel %vm341_vm5, %v332_v27, %v348_v35  ;;  %v1720_v43 = vshrl.u32 %v6464_v8, %v6702_v28  ;;  %v1723_v50 = vshrl.u32 %v6465_v10, %v6702_v28 }
  0x9e   :  { %v353_v41 = vsel %vm341_vm5, %v335_v29, %v352_v36  ;;  %v350_v44 = vsel %vm340_vm6, %v347_v33, %v349_v40  ;;  %v343_v56 = vsel %vm339_vm3, %v323_v32, %v326_v25  ;;  %v345_v57 = vsel %vm341_vm5, %v329_v26, %v344_v39 }
  0x9f   :  { %v354_v48 = vsel %vm340_vm6, %v351_v34, %v353_v41  ;;  %v380_v54 = vand.u32 65535, %v350_v44  ;;  %v381_v55 = vshrl.u32 %v350_v44, 16  ;;  %v6743_v59 = vor.u32 %v1720_v43, %v1719_v37 }
  0xa0   :  { %v358_v52 = vand.u32 65535, %v354_v48  ;;  %v359_v53 = vshrl.u32 %v354_v48, 16  ;;  %v6745_v0 = vor.u32 %v1723_v50, %v1722_v38  ;;  %v1725_v11 = vshll.u32 %v6465_v10, %v6680_v3 }
  0xa1   :  { %v382_v5 = vmul.u32 %v380_v54, %v356_v16  ;;  %v383_v7 = vmul.u32 %v381_v55, %v356_v16  ;;  %v384_v9 = vmul.u32 %v380_v54, %v357_v21  ;;  %v1726_v1 = vshrl.u32 %v6466_v12, %v6702_v28 }
  0xa2   :  { %v360_v60 = vmul.u32 %v358_v52, %v356_v16  ;;  %v361_v61 = vmul.u32 %v359_v53, %v356_v16  ;;  %v362_v63 = vmul.u32 %v358_v52, %v357_v21  ;;  %v363_v13 = vmul.u32 %v359_v53, %v357_v21 }
  0xa3   :  { %v385_v20 = vmul.u32 %v381_v55, %v357_v21  ;;  %v386_v22 = vshll.u32 %v383_v7, 16  ;;  %v388_v24 = vshll.u32 %v384_v9, 16  ;;  %v1728_v16 = vshll.u32 %v6466_v12, %v6680_v3 }
  0xa4   :  { %v364_v15 = vshll.u32 %v361_v61, 16  ;;  %v366_v18 = vshll.u32 %v362_v63, 16  ;;  %v365_v19 = vshrl.u32 %v361_v61, 16  ;;  %v367_v25 = vshrl.u32 %v362_v63, 16 }
  0xa5   :  { %v6469_v27 = vmov 0   ;;  %vm390_vm8 = vc.u32 %v382_v5, %v386_v22  ;;  %v392_v30 = vadd.s32 %v386_v22, %v382_v5  ;;  %v1729_v32 = vshrl.u32 %v6467_v14, %v6702_v28 }
  0xa6   :  { %vm368_vm7 = vc.u32 %v360_v60, %v364_v15  ;;  %v370_v26 = vadd.s32 %v364_v15, %v360_v60  ;;  %v391_v21 = vsel %vm390_vm8, 1, %v6469_v27  ;;  %v1731_v34 = vshll.u32 %v6467_v14, %v6680_v3 }
  0xa7   :  { %v369_v29 = vsel %vm368_vm7, 1, %v6469_v27  ;;  %v393_v36 = vadd.s32 %v391_v21, %v385_v20  ;;  %vm394_vm10 = vc.u32 %v392_v30, %v388_v24  ;;  %v1727_v37 = vor.u32 %v1726_v1, %v1725_v11 }
  0xa8   :  { %v371_v33 = vadd.s32 %v369_v29, %v363_v13  ;;  %vm372_vm9 = vc.u32 %v370_v26, %v366_v18  ;;  %v395_v39 = vsel %vm394_vm10, 1, %v6469_v27  ;;  %v1730_v40 = vor.u32 %v1729_v32, %v1728_v16 }
  0xa9   :  { %v373_v35 = vsel %vm372_vm9, 1, %v6469_v27  ;;  %v1732_v41 = vshrl.u32 %v6468_v23, %v6702_v28  ;;  %v387_v43 = vshrl.u32 %v383_v7, 16  ;;  %v397_v44 = vadd.s32 %v395_v39, %v393_v36 }
  0xaa   :  { %v375_v38 = vadd.s32 %v373_v35, %v371_v33  ;;  %vm1734_vm11 = vcmp.lt.s32.totalorder %v6741_v58, 1  ;;  %vm1736_vm12 = vcmp.lt.s32.totalorder %v6741_v58, 3  ;;  %v389_v3 = vshrl.u32 %v384_v9, 16 }
  0xab   :  { %v1733_v50 = vor.u32 %v1732_v41, %v1731_v34  ;;  %vm1737_vm13 = vcmp.lt.s32.totalorder %v6741_v58, 4  ;;  %v6766_v52 = vadd.s32 %v392_v30, %v388_v24  ;;  %v398_v53 = vadd.s32 %v397_v44, %v387_v43 }
  0xac   :  { %v376_v48 = vadd.s32 %v375_v38, %v365_v19  ;;  %v1742_v54 = vsel %vm1734_vm11, %v6743_v59, %v6745_v0  ;;  %v1743_v55 = vsel %vm1737_vm13, %v1730_v40, 920167782  ;;  %vm1735_vm14 = vcmp.lt.s32.totalorder %v6741_v58, 2 }
  0xad   :  { %v1744_v61 = vsel %vm1736_vm12, %v1727_v37, %v1743_v55  ;;  %v1746_v63 = vsel %vm1734_vm11, %v6745_v0, %v1727_v37  ;;  %v346_v5 = vsel %vm340_vm6, %v343_v56, %v345_v57  ;;  %v399_v7 = vadd.s32 %v398_v53, %v389_v3 }
  0xae   :  { %v6774_v60 = vadd.s32 %v376_v48, %v367_v25  ;;  %v1745_v9 = vsel %vm1735_vm14, %v1742_v54, %v1744_v61  ;;  %v1747_v11 = vsel %vm1737_vm13, %v1733_v50, 1326507024  ;;  %v1752_v15 = vshrl.u32 %v6691_v17, 16 }
  0xaf   :  { %v1748_v13 = vsel %vm1736_vm12, %v1730_v40, %v1747_v11  ;;  %v1775_v18 = vand.u32 65535, %v1745_v9  ;;  %v403_v1 = vadd.s32 1, %v399_v7  ;;  %v1776_v56 = vshrl.u32 %v1745_v9, 16 }
  0xb0   :  { %vm402_vm15 = vc.u32 %v6774_v60, %v6766_v52  ;;  %v1749_v2 = vsel %vm1735_vm14, %v1746_v63, %v1748_v13  ;;  %v3256_v57 = vshrl.u32 %v3255_v31, 23  ;;  %v400_v19 = vmul.u32 %v6676_v62, %v346_v5 }
  0xb1   :  { %v1753_v20 = vand.u32 65535, %v1749_v2  ;;  %v1754_v22 = vshrl.u32 %v1749_v2, 16  ;;  %v3252_v24 = vand.u32 2147483647, %v6683_v4  ;;  %v404_v25 = vsel %vm402_vm15, %v403_v1, %v399_v7 }
  0xb2   :  { %v1718_v26 = vshrl.u32 %v6463_v6, %v6702_v28  ;;  %v1778_v16 = vmul.u32 %v1776_v56, %v6735_v51  ;;  %v1779_v29 = vmul.u32 %v1775_v18, %v1752_v15  ;;  %v405_v30 = vadd.s32 %v404_v25, %v400_v19 }
  0xb3   :  { %v1739_v32 = vsel %vm1737_vm13, %v1727_v37, 2102212464  ;;  %v1756_v33 = vmul.u32 %v1754_v22, %v6735_v51  ;;  %v1757_v31 = vmul.u32 %v1753_v20, %v1752_v15  ;;  %v1777_v62 = vmul.u32 %v1775_v18, %v6735_v51 }
  0xb4   :  { %v1780_v21 = vmul.u32 %v1776_v56, %v1752_v15  ;;  %v1781_v34 = vshll.u32 %v1778_v16, 16  ;;  %v6348_v35 = vadd.s32 4294967169, %v3256_v57  ;;  %v406_v36 = vadd.s32 536870912, %v405_v30 }
  0xb5   :  { %v1755_v38 = vmul.u32 %v1753_v20, %v6735_v51  ;;  %v1758_v39 = vmul.u32 %v1754_v22, %v1752_v15  ;;  %v1759_v28 = vshll.u32 %v1756_v33, 16  ;;  %v1761_v40 = vshll.u32 %v1757_v31, 16 }
  0xb6   :  { %v1783_v41 = vshll.u32 %v1779_v29, 16  ;;  %vm1785_vm0 = vc.u32 %v1777_v62, %v1781_v34  ;;  %v1787_v43 = vadd.s32 %v1781_v34, %v1777_v62  ;;  %v407_v44 = vshrl.u32 %v406_v36, 30 }
  0xb7   :  { %vm1763_vm1 = vc.u32 %v1755_v38, %v1759_v28  ;;  %v1765_v37 = vadd.s32 %v1759_v28, %v1755_v38  ;;  %v1786_v48 = vsel %vm1785_vm0, 1, %v6469_v27  ;;  %v3259_v53 = vand.u32 8388607, %v3252_v24 }
  0xb8   :  { %v1764_v3 = vsel %vm1763_vm1, 1, %v6469_v27  ;;  %v1788_v50 = vadd.s32 %v1786_v48, %v1780_v21  ;;  %vm1789_vm2 = vc.u32 %v1787_v43, %v1783_v41  ;;  %v408_v54 = vshll.u32 %v407_v44, 30 }
  0xb9   :  { %v1738_v51 = vsel %vm1734_vm11, %v1718_v26, %v6743_v59  ;;  %v1766_v55 = vadd.s32 %v1764_v3, %v1758_v39  ;;  %vm1767_vm3 = vc.u32 %v1765_v37, %v1761_v40  ;;  %v1740_v61 = vsel %vm1736_vm12, %v6745_v0, %v1739_v32 }
  0xba   :  { %v1768_v63 = vsel %vm1767_vm3, 1, %v6469_v27  ;;  %v1790_v5 = vsel %vm1789_vm2, 1, %v6469_v27  ;;  %v3262_v7 = vadd.s32 1, %v6348_v35  ;;  %v409_v9 = vsub.s32 %v405_v30, %v408_v54 }
  0xbb   :  { %v1760_v11 = vshrl.u32 %v1756_v33, 16  ;;  %v1770_v13 = vadd.s32 %v1768_v63, %v1766_v55  ;;  %v1792_v15 = vadd.s32 %v1790_v5, %v1788_v50  ;;  %vm309_vm4 = vcmp.lt.s32.totalorder %v6663_v45, 0 }
  0xbc   :  { %v431_v18 = vsub.s32 4, %v407_v44  ;;  %v1782_v1 = vshrl.u32 %v1778_v16, 16  ;;  %vm3263_vm5 = vcmp.gt.s32.totalorder %v3262_v7, 0  ;;  %vm410_vm6 = vcmp.lt.s32.totalorder %v409_v9, 0 }
  0xbd   :  { %v411_v59 = vsub.s32 0, %v409_v9  ;;  %v1762_v2 = vshrl.u32 %v1757_v31, 16  ;;  %v1771_v56 = vadd.s32 %v1770_v13, %v1760_v11  ;;  %v1741_v0 = vsel %vm1735_vm14, %v1738_v51, %v1740_v61 }
  0xbe   :  { %v1784_v57 = vshrl.u32 %v1779_v29, 16  ;;  %v1793_v19 = vadd.s32 %v1792_v15, %v1782_v1  ;;  %v3264_v20 = vsel %vm3263_vm5, %v3262_v7, 0  ;;  %v6824_v26 = vadd.s32 %v1787_v43, %v1783_v41 }
  0xbf   :  { %v412_v22 = vsel %vm410_vm6, %v411_v59, %v409_v9  ;;  %v6822_v25 = vadd.s32 %v1771_v56, %v1762_v2  ;;  %v3260_v30 = vor.u32 8388608, %v3259_v53  ;;  %v432_v16 = vsel %vm309_vm4, %v431_v18, %v407_v44 }
  0xc0   :  { %v413_v32 = vclz %v412_v22  ;;  %v1794_v33 = vadd.s32 %v1793_v19, %v1784_v57  ;;  %v3266_v62 = vand.u32 31, %v3264_v20  ;;  %vm6830_vm7 = vcmp.le.f32.partialorder %v307_v47, 0.7853982 }
  0xc1   :  { %v401_v29 = vadd.s32 %v6766_v52, %v6774_v60  ;;  %v1795_v31 = vmul.u32 %v6691_v17, %v1741_v0  ;;  %vm1797_vm8 = vc.u32 %v6822_v25, %v6824_v26  ;;  %v434_v36 = vsel %vm6830_vm7, 0, %v432_v16 }
  0xc2   :  { %v6292_v21 = vadd.s32 4294967294, %v413_v32  ;;  %v1798_v34 = vadd.s32 1, %v1794_v33  ;;  %v3267_v35 = vsub.s32 32, %v3266_v62  ;;  %v6841_v38 = vshrl.u32 %v3264_v20, 5 }
  0xc3   :  { %v3269_v47 = vshll.u32 %v6463_v6, %v3266_v62  ;;  %v6844_v39 = vshll.u32 %v3260_v30, 8  ;;  %v3272_v17 = vshll.u32 %v6464_v8, %v3266_v62  ;;  %v3275_v43 = vshll.u32 %v6465_v10, %v3266_v62 }
  0xc4   :  { %vm6293_vm9 = vcmp.lt.s32.totalorder %v6292_v21, 0  ;;  %v1799_v28 = vsel %vm1797_vm8, %v1798_v34, %v1794_v33  ;;  %v3270_v52 = vshrl.u32 %v6464_v8, %v3267_v35  ;;  %v3273_v41 = vshrl.u32 %v6465_v10, %v3267_v35 }
  0xc5   :  { %v416_v60 = vsel %vm6293_vm9, 0, %v6292_v21  ;;  %v1800_v40 = vadd.s32 %v1799_v28, %v1795_v31  ;;  %v3276_v48 = vshrl.u32 %v6466_v12, %v3267_v35  ;;  %v3278_v3 = vshll.u32 %v6466_v12, %v3266_v62  ;;  %v280_v28 = vpop.f32.mrf.mxu3 }
  0xc6   :  { %v417_v44 = vsub.s32 32, %v416_v60  ;;  %v421_v37 = vsub.s32 4294967266, %v416_v60  ;;  %v418_v50 = vshll.u32 %v409_v9, %v416_v60  ;;  %v3271_v54 = vor.u32 %v3270_v52, %v3269_v47 }
  0xc7   :  { %v1801_v53 = vadd.s32 536870912, %v1800_v40  ;;  %v3279_v51 = vshrl.u32 %v6467_v14, %v3267_v35  ;;  %v3274_v63 = vor.u32 %v3273_v41, %v3272_v17  ;;  %v3282_v5 = vshrl.u32 %v6468_v23, %v3267_v35 }
  0xc8   :  { %v419_v55 = vshrl.u32 %v401_v29, %v417_v44  ;;  %v422_v61 = vadd.s32 127, %v421_v37  ;;  %v451_v7 = vadd.s32 3, %v434_v36  ;;  %v3277_v1 = vor.u32 %v3276_v48, %v3275_v43 }
  0xc9   :  { %v1802_v11 = vshrl.u32 %v1801_v53, 30  ;;  %v3280_v13 = vor.u32 %v3279_v51, %v3278_v3  ;;  %v3281_v59 = vshll.u32 %v6467_v14, %v3266_v62  ;;  %vm1704_vm10 = vcmp.lt.s32.totalorder %v6666_v46, 0 }
  0xca   :  { %v420_v15 = vor.u32 %v419_v55, %v418_v50  ;;  %v423_v18 = vshll.u32 %v422_v61, 23  ;;  %vm3284_vm11 = vcmp.lt.s32.totalorder %v6841_v38, 1  ;;  %v3301_v2 = vand.u32 65535, %v6844_v39 }
  0xcb   :  { %v1803_v9 = vshll.u32 %v1802_v11, 30  ;;  %v3302_v56 = vshrl.u32 %v6844_v39, 16  ;;  %v3283_v57 = vor.u32 %v3282_v5, %v3281_v59  ;;  %vm3287_vm12 = vcmp.lt.s32.totalorder %v6841_v38, 4 }
  0xcc   :  { %v424_v0 = vor.u32 4788187, %v423_v18  ;;  %v3292_v19 = vsel %vm3284_vm11, %v3271_v54, %v3274_v63  ;;  %v6862_v20 = vand.u32 3, %v451_v7  ;;  %vm3286_vm13 = vcmp.lt.s32.totalorder %v6841_v38, 3 }
  0xcd   :  { %v6864_v22 = vsub.s32 %v1800_v40, %v1803_v9  ;;  %v3293_v30 = vsel %vm3287_vm12, %v3280_v13, 920167782  ;;  %v427_v16 = vcvt.s32.f32 %v420_v15  ;;  %vm3285_vm14 = vcmp.lt.s32.totalorder %v6841_v38, 2 }
  0xce   :  { %v425_v32 = vand.u32 2147483647, %v424_v0  ;;  %v3294_v33 = vsel %vm3286_vm13, %v3277_v1, %v3293_v30  ;;  %v3268_v29 = vshrl.u32 %v6463_v6, %v3267_v35  ;;  %v1826_v34 = vsub.s32 4, %v1802_v11 }
  0xcf   :  { %vm1805_vm15 = vcmp.lt.s32.totalorder %v6864_v22, 0  ;;  %v1806_v62 = vsub.s32 0, %v6864_v22  ;;  %v3295_v31 = vsel %vm3285_vm14, %v3292_v19, %v3294_v33  ;;  %v3296_v36 = vsel %vm3284_vm11, %v3274_v63, %v3277_v1 }
  0xd0   :  { %v428_v21 = vmul.f32 %v427_v16, %v425_v32  ;;  %v3297_v47 = vsel %vm3287_vm12, %v3283_v57, 1326507024  ;;  %v3289_v17 = vsel %vm3287_vm12, %v3277_v1, 2102212464  ;;  %v3325_v60 = vand.u32 65535, %v3295_v31 }
  0xd1   :  { %v1807_v52 = vsel %vm1805_vm15, %v1806_v62, %v6864_v22  ;;  %v3298_v35 = vsel %vm3286_vm13, %v3280_v13, %v3297_v47  ;;  %v3326_v44 = vshrl.u32 %v3295_v31, 16  ;;  %v1796_v37 = vadd.s32 %v6824_v26, %v6822_v25 }
  0xd2   :  { %v429_v40 = vxor.u32 2147483648, %v428_v21  ;;  %v1808_v41 = vclz %v1807_v52  ;;  %v3299_v43 = vsel %vm3285_vm14, %v3296_v36, %v3298_v35  ;;  %v6892_v48 = vsel %vm3284_vm11, %v3268_v29, %v3271_v54 }
  0xd3   :  { %v3303_v3 = vand.u32 65535, %v3299_v43  ;;  %v6895_v50 = vadd.f32 %v6660_v42, %v280_v28  ;;  %v6901_v55 = vsel %vm1704_vm10, %v1826_v34, %v1802_v11  ;;  %v3304_v61 = vshrl.u32 %v3299_v43, 16 }
  0xd4   :  { %v430_v53 = vsel %vm309_vm4, %v429_v40, %v428_v21  ;;  %v6319_v51 = vadd.s32 4294967294, %v1808_v41  ;;  %v6910_v26 = vsel %vm3286_vm13, %v3274_v63, %v3289_v17  ;;  %v3327_v5 = vmul.u32 %v3325_v60, %v3301_v2 }
  0xd5   :  { %v6906_v25 = vsel %vm6830_vm7, %v6663_v45, %v430_v53  ;;  %v3307_v54 = vmul.u32 %v3303_v3, %v3302_v56  ;;  %v3306_v13 = vmul.u32 %v3304_v61, %v3301_v2  ;;  %v6914_v15 = vmul.u32 %v3326_v44, %v3301_v2 }
  0xd6   :  { %v435_v7 = vmul.f32 %v6906_v25, %v6906_v25  ;;  %vm6320_vm0 = vcmp.lt.s32.totalorder %v6319_v51, 0  ;;  %v3305_v18 = vmul.u32 %v3303_v3, %v3301_v2  ;;  %v3308_v1 = vmul.u32 %v3304_v61, %v3302_v56 }
  0xd7   :  { %v1811_v11 = vsel %vm6320_vm0, 0, %v6319_v51  ;;  %v6916_v59 = vmul.u32 %v3325_v60, %v3302_v56  ;;  %v3311_v57 = vshll.u32 %v3307_v54, 16  ;;  %v3309_v19 = vshll.u32 %v3306_v13, 16 }
  0xd8   :  { %v436_v58 = vmul.f32 -0.001358992, %v435_v7  ;;  %v443_v9 = vmul.f32 -0.00019511016, %v435_v7  ;;  %v1812_v0 = vsub.s32 32, %v1811_v11  ;;  %v1816_v63 = vsub.s32 4294967266, %v1811_v11 }
  0xd9   :  { %v3312_v30 = vshrl.u32 %v3307_v54, 16  ;;  %v3330_v32 = vmul.u32 %v3326_v44, %v3302_v56  ;;  %v1813_v62 = vshll.u32 %v6864_v22, %v1811_v11  ;;  %vm3313_vm1 = vc.u32 %v3305_v18, %v3309_v19 }
  0xda   :  { %v437_v16 = vadd.f32 0.041655596, %v436_v58  ;;  %v444_v33 = vadd.f32 0.008332121, %v443_v9  ;;  %v1814_v29 = vshrl.u32 %v1796_v37, %v1812_v0  ;;  %v1817_v31 = vadd.s32 127, %v1816_v63 }
  0xdb   :  { %v3315_v21 = vadd.s32 %v3309_v19, %v3305_v18  ;;  %v3331_v2 = vshll.u32 %v6914_v15, 16  ;;  %v3314_v28 = vsel %vm3313_vm1, 1, %v6469_v27  ;;  %vm6923_vm2 = vcmp.le.f32.partialorder %v1702_v49, 0.7853982 }
  0xdc   :  { %v438_v34 = vmul.f32 %v437_v16, %v435_v7  ;;  %v445_v36 = vmul.f32 %v444_v33, %v435_v7  ;;  %v1815_v47 = vor.u32 %v1814_v29, %v1813_v62  ;;  %v1818_v56 = vshll.u32 %v1817_v31, 23 }
  0xdd   :  { %v3310_v17 = vshrl.u32 %v3306_v13, 16  ;;  %v3316_v22 = vadd.s32 %v3314_v28, %v3308_v1  ;;  %vm3317_vm3 = vc.u32 %v3315_v21, %v3311_v57  ;;  %v3333_v41 = vshll.u32 %v6916_v59, 16 }
  0xde   :  { %v439_v35 = vadd.f32 -0.4999988, %v438_v34  ;;  %v446_v60 = vadd.f32 -0.16666654, %v445_v36  ;;  %v3318_v40 = vsel %vm3317_vm3, 1, %v6469_v27  ;;  %vm454_vm4 = vcmp.eq.s32.totalorder %v6862_v20, 0 }
  0xdf   :  { %v1819_v43 = vor.u32 4788187, %v1818_v56  ;;  %v3320_v44 = vadd.s32 %v3318_v40, %v3316_v22  ;;  %vm3335_vm5 = vc.u32 %v3327_v5, %v3331_v2  ;;  %v3337_v37 = vadd.s32 %v3331_v2, %v3327_v5  ;;  %v196_v40 = vpop.f32.mrf.mxu0 }
  0xe0   :  { %v440_v49 = vmul.f32 %v439_v35, %v435_v7  ;;  %v447_v3 = vmul.f32 %v446_v60, %v435_v7  ;;  %vm453_vm6 = vcmp.lt.s32.totalorder %v6862_v20, 2  ;;  %v1822_v53 = vcvt.s32.f32 %v1815_v47 }
  0xe1   :  { %v3336_v51 = vsel %vm3335_vm5, 1, %v6469_v27  ;;  %vm450_vm7 = vweird.f32 %v6663_v45  ;;  %v1820_v61 = vand.u32 2147483647, %v1819_v43  ;;  %v3321_v54 = vadd.s32 %v3320_v44, %v3310_v17 }
  0xe2   :  { %v3338_v13 = vadd.s32 %v3336_v51, %v3330_v32  ;;  %vm3339_vm8 = vc.u32 %v3337_v37, %v3333_v41  ;;  %v441_v11 = vadd.f32 1.0, %v440_v49  ;;  %v448_v18 = vadd.f32 1.0, %v447_v3 }
  0xe3   :  { %v3332_v1 = vshrl.u32 %v6914_v15, 16  ;;  %v3340_v58 = vsel %vm3339_vm8, 1, %v6469_v27  ;;  %v1823_v5 = vmul.f32 %v1822_v53, %v1820_v61  ;;  %v3322_v9 = vadd.s32 %v3321_v54, %v3312_v30 }
  0xe4   :  { %v3342_v7 = vadd.s32 %v3340_v58, %v3338_v13  ;;  %v4802_v0 = vand.u32 2147483647, %v6895_v50  ;;  %v449_v57 = vmul.f32 %v448_v18, %v6906_v25  ;;  %vm457_vm9 = vcmp.eq.s32.totalorder %v6862_v20, 2 }
  0xe5   :  { %v458_v63 = vxor.u32 2147483648, %v441_v11  ;;  %v4805_v19 = vand.u32 2139095040, %v6895_v50  ;;  %v1824_v32 = vxor.u32 2147483648, %v1823_v5  ;;  %v3334_v16 = vshrl.u32 %v6916_v59, 16 }
  0xe6   :  { %v3341_v33 = vadd.s32 %v3337_v37, %v3333_v41  ;;  %v3343_v62 = vadd.s32 %v3342_v7, %v3332_v1  ;;  %v455_v15 = vxor.u32 2147483648, %v449_v57  ;;  %v1829_v30 = vsel %vm6923_vm2, 0, %v6901_v55 }
  0xe7   :  { %v3291_v25 = vsel %vm3285_vm14, %v6892_v48, %v6910_v26  ;;  %v4806_v29 = vshrl.u32 %v4805_v19, 23  ;;  %v1825_v31 = vsel %vm1704_vm10, %v1824_v32, %v1823_v5  ;;  %v4809_v59 = vand.u32 8388607, %v4802_v0 }
  0xe8   :  { %v3344_v21 = vadd.s32 %v3343_v62, %v3334_v16  ;;  %vm3347_vm11 = vc.u32 %v3322_v9, %v3341_v33  ;;  %v456_v2 = vsel %vm454_vm4, %v441_v11, %v455_v15  ;;  %v459_v55 = vsel %vm457_vm9, %v458_v63, %v449_v57 }
  0xe9   :  { %v1828_v38 = vsel %vm6923_vm2, %v6666_v46, %v1825_v31  ;;  %v6378_v48 = vadd.s32 4294967169, %v4806_v29  ;;  %v460_v26 = vsel %vm453_vm6, %v456_v2, %v459_v55  ;;  %v1846_v36 = vadd.s32 3, %v1829_v30 }
  0xea   :  { %v1830_v34 = vmul.f32 %v1828_v38, %v1828_v38  ;;  %v3348_v47 = vadd.s32 1, %v3344_v21  ;;  %v461_v28 = vsel %vm450_vm7, nan, %v460_v26  ;;  %v3345_v56 = vmul.u32 %v6844_v39, %v3291_v25 }
  0xeb   :  { %v4810_v17 = vor.u32 8388608, %v4809_v59  ;;  %v4812_v22 = vadd.s32 1, %v6378_v48  ;;  %6197 = vst [vmem:[#allocation2] sm:$0xff] %v461_v28  ;;  %v1847_v44 = vand.u32 3, %v1846_v36  ;;  %v6967_v39 = vadd.f32 %v6660_v42, %v196_v40 }
  0xec   :  { %v1831_v35 = vmul.f32 -0.001358992, %v1830_v34  ;;  %v1838_v60 = vmul.f32 -0.00019511016, %v1830_v34  ;;  %v3349_v52 = vsel %vm3347_vm11, %v3348_v47, %v3344_v21  ;;  %vm3254_vm12 = vcmp.lt.s32.totalorder %v6683_v4, 0 }
  0xed   :  { %v3350_v41 = vadd.s32 %v3349_v52, %v3345_v56  ;;  %vm4813_vm10 = vcmp.gt.s32.totalorder %v4812_v22, 0  ;;  %v6964_v45 = vshll.u32 %v4810_v17, 8  ;;  %vm1852_vm13 = vcmp.eq.s32.totalorder %v1847_v44, 2 }
  0xee   :  { %v1832_v20 = vadd.f32 0.041655596, %v1831_v35  ;;  %v1839_v43 = vadd.f32 0.008332121, %v1838_v60  ;;  %v4814_v37 = vsel %vm4813_vm10, %v4812_v22, 0  ;;  %v6978_v1 = vadd.s32 %v3341_v33, %v3322_v9 }
  0xef   :  { %v3351_v49 = vadd.s32 536870912, %v3350_v41  ;;  %v4816_v3 = vand.u32 31, %v4814_v37  ;;  %vm6974_vm14 = vcmp.le.f32.partialorder %v3252_v24, 0.7853982  ;;  %v462_v42 = vand.u32 2147483647, %v6967_v39 }
  0xf0   :  { %v1833_v53 = vmul.f32 %v1832_v20, %v1830_v34  ;;  %v1840_v51 = vmul.f32 %v1839_v43, %v1830_v34  ;;  %vm1849_vm15 = vcmp.eq.s32.totalorder %v1847_v44, 0  ;;  %v6983_v7 = vand.u32 65535, %v6964_v45 }
  0xf1   :  { %v3352_v61 = vshrl.u32 %v3351_v49, 30  ;;  %v6970_v54 = vsub.s32 32, %v4816_v3  ;;  %v4819_v5 = vshll.u32 %v6463_v6, %v4816_v3  ;;  %v465_v57 = vand.u32 2139095040, %v6967_v39 }
  0xf2   :  { %v1834_v13 = vadd.f32 -0.4999988, %v1833_v53  ;;  %v1841_v11 = vadd.f32 -0.16666654, %v1840_v51  ;;  %vm1848_vm0 = vcmp.lt.s32.totalorder %v1847_v44, 2  ;;  %vm1845_vm1 = vweird.f32 %v6666_v46 }
  0xf3   :  { %v3353_v58 = vshll.u32 %v3352_v61, 30  ;;  %v3376_v24 = vsub.s32 4, %v3352_v61  ;;  %v4820_v32 = vshrl.u32 %v6464_v8, %v6970_v54  ;;  %v6989_v16 = vshrl.u32 %v4814_v37, 5 }
  0xf4   :  { %v1835_v63 = vmul.f32 %v1834_v13, %v1830_v34  ;;  %v1842_v19 = vmul.f32 %v1841_v11, %v1830_v34  ;;  %v4822_v33 = vshll.u32 %v6464_v8, %v4816_v3  ;;  %v4823_v62 = vshrl.u32 %v6465_v10, %v6970_v54 }
  0xf5   :  { %v3354_v9 = vsub.s32 %v3350_v41, %v3353_v58  ;;  %v4828_v25 = vshll.u32 %v6466_v12, %v4816_v3  ;;  %v4829_v29 = vshrl.u32 %v6467_v14, %v6970_v54  ;;  %v4825_v21 = vshll.u32 %v6465_v10, %v4816_v3 }
  0xf6   :  { %v1836_v15 = vadd.f32 1.0, %v1835_v63  ;;  %v1843_v30 = vadd.f32 1.0, %v1842_v19  ;;  %v4826_v59 = vshrl.u32 %v6466_v12, %v6970_v54  ;;  %v3377_v48 = vsel %vm3254_vm12, %v3376_v24, %v3352_v61 }
  0xf7   :  { %vm3355_vm2 = vcmp.lt.s32.totalorder %v3354_v9, 0  ;;  %v3356_v31 = vsub.s32 0, %v3354_v9  ;;  %v4821_v26 = vor.u32 %v4820_v32, %v4819_v5  ;;  %v4824_v36 = vor.u32 %v4823_v62, %v4822_v33 }
  0xf8   :  { %v1844_v2 = vmul.f32 %v1843_v30, %v1828_v38  ;;  %v1853_v55 = vxor.u32 2147483648, %v1836_v15  ;;  %v4831_v47 = vshll.u32 %v6467_v14, %v4816_v3  ;;  %v4832_v28 = vshrl.u32 %v6468_v23, %v6970_v54 }
  0xf9   :  { %v3357_v34 = vsel %vm3355_vm2, %v3356_v31, %v3354_v9  ;;  %v4830_v22 = vor.u32 %v4829_v29, %v4828_v25  ;;  %vm4834_vm3 = vcmp.lt.s32.totalorder %v6989_v16, 1  ;;  %v3379_v38 = vsel %vm6974_vm14, 0, %v3377_v48 }
  0xfa   :  { %v1850_v56 = vxor.u32 2147483648, %v1844_v2  ;;  %v3358_v17 = vclz %v3357_v34  ;;  %v1854_v35 = vsel %vm1852_vm13, %v1853_v55, %v1844_v2  ;;  %v4827_v60 = vor.u32 %v4826_v59, %v4825_v21 }
  0xfb   :  { %v4852_v52 = vshrl.u32 %v6964_v45, 16  ;;  %vm4836_vm4 = vcmp.lt.s32.totalorder %v6989_v16, 3  ;;  %vm4837_vm5 = vcmp.lt.s32.totalorder %v6989_v16, 4  ;;  %v4833_v43 = vor.u32 %v4832_v28, %v4831_v47 }
  0xfc   :  { %v1851_v40 = vsel %vm1849_vm15, %v1836_v15, %v1850_v56  ;;  %v6349_v41 = vadd.s32 4294967294, %v3358_v17  ;;  %vm4835_vm6 = vcmp.lt.s32.totalorder %v6989_v16, 2  ;;  %v4842_v37 = vsel %vm4834_vm3, %v4821_v26, %v4824_v36 }
  0xfd   :  { %v1855_v20 = vsel %vm1848_vm0, %v1851_v40, %v1854_v35  ;;  %v4843_v3 = vsel %vm4837_vm5, %v4830_v22, 920167782  ;;  %v466_v53 = vshrl.u32 %v465_v57, 23  ;;  %v3396_v61 = vadd.s32 3, %v3379_v38 }
  0xfe   :  { %v1856_v49 = vsel %vm1845_vm1, nan, %v1855_v20  ;;  %vm6350_vm7 = vcmp.lt.s32.totalorder %v6349_v41, 0  ;;  %v4844_v44 = vsel %vm4836_vm4, %v4827_v60, %v4843_v3  ;;  %v7025_v13 = vand.u32 8388607, %v462_v42 }
  0xff   :  { %6206 = vst [vmem:[#allocation2 + $0x48] sm:$0xff] %v1856_v49  ;;  %v3361_v51 = vsel %vm6350_vm7, 0, %v6349_v41  ;;  %v4845_v46 = vsel %vm4835_vm6, %v4842_v37, %v4844_v44  ;;  %v4846_v5 = vsel %vm4834_vm3, %v4824_v36, %v4827_v60  ;;  %v4818_v57 = vshrl.u32 %v6463_v6, %v6970_v54 }
 0x100   :  { %v3362_v11 = vsub.s32 32, %v3361_v51  ;;  %v3366_v58 = vsub.s32 4294967266, %v3361_v51  ;;  %v4847_v63 = vsel %vm4837_vm5, %v4833_v43, 1326507024  ;;  %v4875_v19 = vand.u32 65535, %v4845_v46 }
 0x101   :  { %v4876_v24 = vshrl.u32 %v4845_v46, 16  ;;  %v3363_v32 = vshll.u32 %v3354_v9, %v3361_v51  ;;  %v4848_v15 = vsel %vm4836_vm4, %v4830_v22, %v4847_v63  ;;  %v7038_v30 = vand.u32 3, %v3396_v61 }
 0x102   :  { %v3364_v33 = vshrl.u32 %v6978_v1, %v3362_v11  ;;  %v3367_v62 = vadd.s32 127, %v3366_v58  ;;  %v4839_v25 = vsel %vm4837_vm5, %v4827_v60, 2102212464  ;;  %v4849_v54 = vsel %vm4835_vm6, %v4846_v5, %v4848_v15 }
 0x103   :  { %v4878_v29 = vmul.u32 %v4876_v24, %v6983_v7  ;;  %v4853_v59 = vand.u32 65535, %v4849_v54  ;;  %v4854_v9 = vshrl.u32 %v4849_v54, 16  ;;  %v4838_v1 = vsel %vm4834_vm3, %v4818_v57, %v4821_v26 }
 0x104   :  { %v3365_v31 = vor.u32 %v3364_v33, %v3363_v32  ;;  %v3368_v21 = vshll.u32 %v3367_v62, 23  ;;  %v4877_v2 = vmul.u32 %v4875_v19, %v6983_v7  ;;  %v4879_v55 = vmul.u32 %v4875_v19, %v4852_v52 }
 0x105   :  { %v4881_v48 = vshll.u32 %v4878_v29, 16  ;;  %v4840_v47 = vsel %vm4836_vm4, %v4824_v36, %v4839_v25  ;;  %v4856_v28 = vmul.u32 %v4854_v9, %v6983_v7  ;;  %v6294_v56 = vadd.s32 4294967169, %v466_v53 }
 0x106   :  { %v3369_v34 = vor.u32 4788187, %v3368_v21  ;;  %v3372_v17 = vcvt.s32.f32 %v3365_v31  ;;  %v4857_v22 = vmul.u32 %v4853_v59, %v4852_v52  ;;  %v4880_v35 = vmul.u32 %v4876_v24, %v4852_v52 }
 0x107   :  { %vm4885_vm8 = vc.u32 %v4877_v2, %v4881_v48  ;;  %v4855_v60 = vmul.u32 %v4853_v59, %v6983_v7  ;;  %v4859_v40 = vshll.u32 %v4856_v28, 16  ;;  %v4858_v41 = vmul.u32 %v4854_v9, %v4852_v52 }
 0x108   :  { %v3370_v38 = vand.u32 2147483647, %v3369_v34  ;;  %v4886_v26 = vsel %vm4885_vm8, 1, %v6469_v27  ;;  %v4883_v20 = vshll.u32 %v4879_v55, 16  ;;  %v4887_v43 = vadd.s32 %v4881_v48, %v4877_v2 }
 0x109   :  { %v4888_v37 = vadd.s32 %v4886_v26, %v4880_v35  ;;  %v4861_v3 = vshll.u32 %v4857_v22, 16  ;;  %vm4863_vm9 = vc.u32 %v4855_v60, %v4859_v40  ;;  %v4865_v36 = vadd.s32 %v4859_v40, %v4855_v60 }
 0x10a   :  { %v3373_v49 = vmul.f32 %v3372_v17, %v3370_v38  ;;  %v4841_v53 = vsel %vm4835_vm6, %v4838_v1, %v4840_v47  ;;  %v4864_v51 = vsel %vm4863_vm9, 1, %v6469_v27  ;;  %vm4889_vm11 = vc.u32 %v4887_v43, %v4883_v20 }
 0x10b   :  { %v472_v61 = vadd.s32 1, %v6294_v56  ;;  %v4866_v7 = vadd.s32 %v4864_v51, %v4858_v41  ;;  %vm4867_vm10 = vc.u32 %v4865_v36, %v4861_v3  ;;  %v4890_v11 = vsel %vm4889_vm11, 1, %v6469_v27 }
 0x10c   :  { %v3374_v44 = vxor.u32 2147483648, %v3373_v49  ;;  %v4868_v52 = vsel %vm4867_vm10, 1, %v6469_v27  ;;  %v4882_v58 = vshrl.u32 %v4878_v29, 16  ;;  %v4892_v46 = vadd.s32 %v4890_v11, %v4888_v37 }
 0x10d   :  { %vm473_vm13 = vcmp.gt.s32.totalorder %v472_v61, 0  ;;  %v4860_v57 = vshrl.u32 %v4856_v28, 16  ;;  %v4870_v16 = vadd.s32 %v4868_v52, %v4866_v7  ;;  %v4884_v24 = vshrl.u32 %v4879_v55, 16 }
 0x10e   :  { %v3375_v5 = vsel %vm3254_vm12, %v3374_v44, %v3373_v49  ;;  %v474_v63 = vsel %vm473_vm13, %v472_v61, 0  ;;  %v4893_v32 = vadd.s32 %v4892_v46, %v4882_v58  ;;  %v4862_v15 = vshrl.u32 %v4857_v22, 16 }
 0x10f   :  { %v3378_v19 = vsel %vm6974_vm14, %v6683_v4, %v3375_v5  ;;  %v476_v33 = vand.u32 31, %v474_v63  ;;  %v4871_v25 = vadd.s32 %v4870_v16, %v4860_v57  ;;  %v4895_v54 = vmul.u32 %v6964_v45, %v4841_v53 }
 0x110   :  { %v3380_v62 = vmul.f32 %v3378_v19, %v3378_v19  ;;  %v4894_v29 = vadd.s32 %v4893_v32, %v4884_v24  ;;  %v470_v31 = vor.u32 8388608, %v7025_v13  ;;  %v7070_v18 = vadd.s32 %v4887_v43, %v4883_v20 }
 0x111   :  { %v7065_v21 = vsub.s32 32, %v476_v33  ;;  %v479_v59 = vshll.u32 %v6463_v6, %v476_v33  ;;  %v7068_v2 = vadd.s32 %v4871_v25, %v4862_v15  ;;  %v482_v34 = vshll.u32 %v6464_v8, %v476_v33 }
 0x112   :  { %v3381_v9 = vmul.f32 -0.001358992, %v3380_v62  ;;  %v3388_v1 = vmul.f32 -0.00019511016, %v3380_v62  ;;  %v4898_v55 = vadd.s32 1, %v4894_v29  ;;  %v485_v28 = vshll.u32 %v6465_v10, %v476_v33 }
 0x113   :  { %v480_v48 = vshrl.u32 %v6464_v8, %v7065_v21  ;;  %v483_v45 = vshrl.u32 %v6465_v10, %v7065_v21  ;;  %vm4897_vm12 = vc.u32 %v7068_v2, %v7070_v18  ;;  %v7080_v17 = vshrl.u32 %v474_v63, 5 }
 0x114   :  { %v3382_v13 = vadd.f32 0.041655596, %v3381_v9  ;;  %v3389_v47 = vadd.f32 0.008332121, %v3388_v1  ;;  %v4899_v56 = vsel %vm4897_vm12, %v4898_v55, %v4894_v29  ;;  %v486_v35 = vshrl.u32 %v6466_v12, %v7065_v21 }
 0x115   :  { %v7082_v22 = vor.u32 %v480_v48, %v479_v59  ;;  %v4900_v40 = vadd.s32 %v4899_v56, %v4895_v54  ;;  %v488_v26 = vshll.u32 %v6466_v12, %v476_v33  ;;  %v7087_v41 = vor.u32 %v483_v45, %v482_v34 }
 0x116   :  { %v3383_v38 = vmul.f32 %v3382_v13, %v3380_v62  ;;  %v3390_v60 = vmul.f32 %v3389_v47, %v3380_v62  ;;  %v489_v20 = vshrl.u32 %v6467_v14, %v7065_v21  ;;  %v491_v43 = vshll.u32 %v6467_v14, %v476_v33 }
 0x117   :  { %v492_v37 = vshrl.u32 %v6468_v23, %v7065_v21  ;;  %v4901_v36 = vadd.s32 536870912, %v4900_v40  ;;  %v487_v53 = vor.u32 %v486_v35, %v485_v28  ;;  %vm494_vm14 = vcmp.lt.s32.totalorder %v7080_v17, 1 }
 0x118   :  { %v3384_v49 = vadd.f32 -0.4999988, %v3383_v38  ;;  %v3391_v3 = vadd.f32 -0.16666654, %v3390_v60  ;;  %v490_v51 = vor.u32 %v489_v20, %v488_v26  ;;  %vm496_vm15 = vcmp.lt.s32.totalorder %v7080_v17, 3 }
 0x119   :  { %v493_v61 = vor.u32 %v492_v37, %v491_v43  ;;  %v7096_v11 = vshrl.u32 %v4901_v36, 30  ;;  %vm497_vm0 = vcmp.lt.s32.totalorder %v7080_v17, 4  ;;  %vm3395_vm1 = vweird.f32 %v6683_v4 }
 0x11a   :  { %v3385_v44 = vmul.f32 %v3384_v49, %v3380_v62  ;;  %v3392_v7 = vmul.f32 %v3391_v3, %v3380_v62  ;;  %v503_v52 = vsel %vm497_vm0, %v490_v51, 920167782  ;;  %v7102_v58 = vshll.u32 %v470_v31, 8 }
 0x11b   :  { %vm3398_vm2 = vcmp.lt.s32.totalorder %v7038_v30, 2  ;;  %v4903_v57 = vshll.u32 %v7096_v11, 30  ;;  %vm495_vm3 = vcmp.lt.s32.totalorder %v7080_v17, 2  ;;  %v502_v16 = vsel %vm494_vm14, %v7082_v22, %v7087_v41 }
 0x11c   :  { %v3386_v46 = vadd.f32 1.0, %v3385_v44  ;;  %v3393_v5 = vadd.f32 1.0, %v3392_v7  ;;  %v504_v63 = vsel %vm496_vm15, %v487_v53, %v503_v52  ;;  %v507_v24 = vsel %vm497_vm0, %v493_v61, 1326507024 }
 0x11d   :  { %v4904_v62 = vsub.s32 %v4900_v40, %v4903_v57  ;;  %v506_v15 = vsel %vm494_vm14, %v7087_v41, %v487_v53  ;;  %vm3402_vm4 = vcmp.eq.s32.totalorder %v7038_v30, 2  ;;  %v508_v25 = vsel %vm496_vm15, %v490_v51, %v507_v24 }
 0x11e   :  { %v3394_v32 = vmul.f32 %v3393_v5, %v3378_v19  ;;  %v3403_v33 = vxor.u32 2147483648, %v3386_v46  ;;  %v511_v54 = vand.u32 65535, %v7102_v58  ;;  %v512_v29 = vshrl.u32 %v7102_v58, 16 }
 0x11f   :  { %vm4905_vm5 = vcmp.lt.s32.totalorder %v4904_v62, 0  ;;  %v4906_v59 = vsub.s32 0, %v4904_v62  ;;  %v505_v19 = vsel %vm495_vm3, %v502_v16, %v504_v63  ;;  %vm3399_vm6 = vcmp.eq.s32.totalorder %v7038_v30, 0 }
 0x120   :  { %v3400_v31 = vxor.u32 2147483648, %v3394_v32  ;;  %v3404_v9 = vsel %vm3402_vm4, %v3403_v33, %v3394_v32  ;;  %v478_v1 = vshrl.u32 %v6463_v6, %v7065_v21  ;;  %v509_v55 = vsel %vm495_vm3, %v506_v15, %v508_v25  ;;  %v223_v15 = vpop.f32.mrf.mxu1 }
 0x121   :  { %v4907_v34 = vsel %vm4905_vm5, %v4906_v59, %v4904_v62  ;;  %v513_v45 = vand.u32 65535, %v509_v55  ;;  %v514_v13 = vshrl.u32 %v509_v55, 16  ;;  %v535_v56 = vand.u32 65535, %v505_v19 }
 0x122   :  { %v3401_v48 = vsel %vm3399_vm6, %v3386_v46, %v3400_v31  ;;  %v4908_v28 = vclz %v4907_v34  ;;  %v536_v35 = vshrl.u32 %v505_v19, 16  ;;  %v4896_v21 = vadd.s32 %v7070_v18, %v7068_v2  ;;  %v7153_v34 = vld [vmem:[%s10726_s2] ss:$0 sm:$0xff] }
 0x123   :  { %v3405_v47 = vsel %vm3398_vm2, %v3401_v48, %v3404_v9  ;;  %v515_v60 = vmul.u32 %v513_v45, %v511_v54  ;;  %v516_v40 = vmul.u32 %v514_v13, %v511_v54  ;;  %v517_v26 = vmul.u32 %v513_v45, %v512_v29 }
 0x124   :  { %v3406_v38 = vsel %vm3395_vm1, nan, %v3405_v47  ;;  %v6379_v20 = vadd.s32 4294967294, %v4908_v28  ;;  %v498_v43 = vsel %vm494_vm14, %v478_v1, %v7082_v22  ;;  %v499_v30 = vsel %vm497_vm0, %v487_v53, 2102212464 }
 0x125   :  { %6216 = vst [vmem:[#allocation2 + $0x98] sm:$0xff] %v3406_v38  ;;  %v519_v37 = vshll.u32 %v516_v40, 16  ;;  %v521_v49 = vshll.u32 %v517_v26, 16  ;;  %v537_v4 = vmul.u32 %v535_v56, %v511_v54  ;;  %v538_v3 = vmul.u32 %v536_v35, %v511_v54 }
 0x126   :  { %vm6380_vm7 = vcmp.lt.s32.totalorder %v6379_v20, 0  ;;  %v539_v36 = vmul.u32 %v535_v56, %v512_v29  ;;  %v518_v61 = vmul.u32 %v514_v13, %v512_v29  ;;  %vm4804_vm9 = vcmp.lt.s32.totalorder %v6895_v50, 0 }
 0x127   :  { %v4911_v51 = vsel %vm6380_vm7, 0, %v6379_v20  ;;  %vm523_vm8 = vc.u32 %v515_v60, %v519_v37  ;;  %v525_v44 = vadd.s32 %v519_v37, %v515_v60  ;;  %v520_v7 = vshrl.u32 %v516_v40, 16 }
 0x128   :  { %v4912_v2 = vsub.s32 32, %v4911_v51  ;;  %v4916_v18 = vsub.s32 4294967266, %v4911_v51  ;;  %v524_v22 = vsel %vm523_vm8, 1, %v6469_v27  ;;  %v4913_v52 = vshll.u32 %v4904_v62, %v4911_v51  ;;  %v253_v62 = vpop.f32.mrf.mxu2 }
 0x129   :  { %v526_v46 = vadd.s32 %v524_v22, %v518_v61  ;;  %vm527_vm11 = vc.u32 %v525_v44, %v521_v49  ;;  %v541_v53 = vshll.u32 %v538_v3, 16  ;;  %v543_v63 = vshll.u32 %v539_v36, 16 }
 0x12a   :  { %v4914_v5 = vshrl.u32 %v4896_v21, %v4912_v2  ;;  %v4917_v57 = vadd.s32 127, %v4916_v18  ;;  %v528_v16 = vsel %vm527_vm11, 1, %v6469_v27  ;;  %v540_v32 = vmul.u32 %v536_v35, %v512_v29 }
 0x12b   :  { %v530_v24 = vadd.s32 %v528_v16, %v526_v46  ;;  %vm545_vm10 = vc.u32 %v537_v4, %v541_v53  ;;  %v547_v33 = vadd.s32 %v541_v53, %v537_v4  ;;  %v4926_v31 = vsub.s32 4, %v7096_v11 }
 0x12c   :  { %v4915_v25 = vor.u32 %v4914_v5, %v4913_v52  ;;  %v4918_v54 = vshll.u32 %v4917_v57, 23  ;;  %v546_v59 = vsel %vm545_vm10, 1, %v6469_v27  ;;  %v500_v19 = vsel %vm496_vm15, %v7087_v41, %v499_v30 }
 0x12d   :  { %v531_v9 = vadd.s32 %v530_v24, %v520_v7  ;;  %v548_v1 = vadd.s32 %v546_v59, %v540_v32  ;;  %vm549_vm13 = vc.u32 %v547_v33, %v543_v63  ;;  %v522_v48 = vshrl.u32 %v517_v26, 16 }
 0x12e   :  { %v4919_v55 = vor.u32 4788187, %v4918_v54  ;;  %v550_v29 = vsel %vm549_vm13, 1, %v6469_v27  ;;  %v7156_v45 = vadd.f32 %v7153_v34, %v223_v15  ;;  %v4922_v13 = vcvt.s32.f32 %v4915_v25 }
 0x12f   :  { %v542_v47 = vshrl.u32 %v538_v3, 16  ;;  %v552_v28 = vadd.s32 %v550_v29, %v548_v1  ;;  %v7159_v41 = vadd.f32 %v7153_v34, %v253_v62  ;;  %v532_v35 = vadd.s32 %v531_v9, %v522_v48 }
 0x130   :  { %v4920_v56 = vand.u32 2147483647, %v4919_v55  ;;  %v1857_v38 = vand.u32 2147483647, %v7156_v45  ;;  %v1860_v60 = vand.u32 2139095040, %v7156_v45  ;;  %v4927_v40 = vsel %vm4804_vm9, %v4926_v31, %v7096_v11 }
 0x131   :  { %v544_v26 = vshrl.u32 %v539_v36, 16  ;;  %v553_v21 = vadd.s32 %v552_v28, %v542_v47  ;;  %v551_v30 = vadd.s32 %v547_v33, %v543_v63  ;;  %vm4803_vm12 = vcmp.le.f32.partialorder %v4802_v0, 0.7853982 }
 0x132   :  { %v4923_v20 = vmul.f32 %v4922_v13, %v4920_v56  ;;  %v1861_v37 = vshrl.u32 %v1860_v60, 23  ;;  %v1864_v49 = vand.u32 8388607, %v1857_v38  ;;  %v501_v4 = vsel %vm495_vm3, %v498_v43, %v500_v19 }
 0x133   :  { %v554_v3 = vadd.s32 %v553_v21, %v544_v26  ;;  %v3410_v51 = vand.u32 2139095040, %v7159_v41  ;;  %v4929_v44 = vsel %vm4803_vm12, 0, %v4927_v40  ;;  %vm557_vm14 = vc.u32 %v532_v35, %v551_v30 }
 0x134   :  { %v4924_v61 = vxor.u32 2147483648, %v4923_v20  ;;  %v6321_v11 = vadd.s32 4294967169, %v1861_v37  ;;  %v1865_v2 = vor.u32 8388608, %v1864_v49  ;;  %v555_v7 = vmul.u32 %v7102_v58, %v501_v4 }
 0x135   :  { %v558_v36 = vadd.s32 1, %v554_v3  ;;  %v4946_v52 = vadd.s32 3, %v4929_v44  ;;  %v3411_v43 = vshrl.u32 %v3410_v51, 23  ;;  %v7181_v31 = vadd.s32 %v551_v30, %v532_v35 }
 0x136   :  { %v4925_v18 = vsel %vm4804_vm9, %v4924_v61, %v4923_v20  ;;  %v1867_v22 = vadd.s32 1, %v6321_v11  ;;  %v7177_v57 = vshll.u32 %v1865_v2, 8  ;;  %v3407_v19 = vand.u32 2147483647, %v7159_v41 }
 0x137   :  { %v4928_v0 = vsel %vm4803_vm12, %v6895_v50, %v4925_v18  ;;  %v559_v17 = vsel %vm557_vm14, %v558_v36, %v554_v3  ;;  %v7179_v32 = vand.u32 3, %v4946_v52  ;;  %v6351_v15 = vadd.s32 4294967169, %v3411_v43 }
 0x138   :  { %v4930_v46 = vmul.f32 %v4928_v0, %v4928_v0  ;;  %v560_v53 = vadd.s32 %v559_v17, %v555_v7  ;;  %vm1868_vm15 = vcmp.gt.s32.totalorder %v1867_v22, 0  ;;  %v7184_v62 = vand.u32 65535, %v7177_v57 }
 0x139   :  { %v1869_v5 = vsel %vm1868_vm15, %v1867_v22, 0  ;;  %vm464_vm0 = vcmp.lt.s32.totalorder %v6967_v39, 0  ;;  %v7189_v48 = vshrl.u32 %v7177_v57, 16  ;;  %vm4952_vm1 = vcmp.eq.s32.totalorder %v7179_v32, 2 }
 0x13a   :  { %v4931_v16 = vmul.f32 -0.001358992, %v4930_v46  ;;  %v4938_v63 = vmul.f32 -0.00019511016, %v4930_v46  ;;  %v561_v24 = vadd.s32 536870912, %v560_v53  ;;  %v1871_v33 = vand.u32 31, %v1869_v5 }
 0x13b   :  { %v7192_v29 = vshrl.u32 %v1869_v5, 5  ;;  %v7196_v28 = vadd.s32 1, %v6351_v15  ;;  %vm4949_vm2 = vcmp.eq.s32.totalorder %v7179_v32, 0  ;;  %vm4948_vm3 = vcmp.lt.s32.totalorder %v7179_v32, 2 }
 0x13c   :  { %v4932_v58 = vadd.f32 0.041655596, %v4931_v16  ;;  %v4939_v25 = vadd.f32 0.008332121, %v4938_v63  ;;  %v562_v54 = vshrl.u32 %v561_v24, 30  ;;  %v1872_v59 = vsub.s32 32, %v1871_v33 }
 0x13d   :  { %v1874_v13 = vshll.u32 %v6463_v6, %v1871_v33  ;;  %v1877_v40 = vshll.u32 %v6464_v8, %v1871_v33  ;;  %v1880_v20 = vshll.u32 %v6465_v10, %v1871_v33  ;;  %vm4945_vm5 = vweird.f32 %v6895_v50 }
 0x13e   :  { %v4933_v9 = vmul.f32 %v4932_v58, %v4930_v46  ;;  %v4940_v1 = vmul.f32 %v4939_v25, %v4930_v46  ;;  %v563_v55 = vshll.u32 %v562_v54, 30  ;;  %v1875_v47 = vshrl.u32 %v6464_v8, %v1872_v59 }
 0x13f   :  { %v586_v26 = vsub.s32 4, %v562_v54  ;;  %v1878_v21 = vshrl.u32 %v6465_v10, %v1872_v59  ;;  %v1881_v30 = vshrl.u32 %v6466_v12, %v1872_v59  ;;  %v1883_v51 = vshll.u32 %v6466_v12, %v1871_v33 }
 0x140   :  { %v4934_v56 = vadd.f32 -0.4999988, %v4933_v9  ;;  %v4941_v35 = vadd.f32 -0.16666654, %v4940_v1  ;;  %v7198_v60 = vsub.s32 %v560_v53, %v563_v55  ;;  %v1876_v3 = vor.u32 %v1875_v47, %v1874_v13 }
 0x141   :  { %v1884_v61 = vshrl.u32 %v6467_v14, %v1872_v59  ;;  %v1886_v44 = vshll.u32 %v6467_v14, %v1871_v33  ;;  %v1887_v18 = vshrl.u32 %v6468_v23, %v1872_v59  ;;  %vm7216_vm6 = vcmp.le.f32.partialorder %v462_v42, 0.7853982 }
 0x142   :  { %v4935_v37 = vmul.f32 %v4934_v56, %v4930_v46  ;;  %v4942_v49 = vmul.f32 %v4941_v35, %v4930_v46  ;;  %vm565_vm4 = vcmp.lt.s32.totalorder %v7198_v60, 0  ;;  %v566_v4 = vsub.s32 0, %v7198_v60 }
 0x143   :  { %v1879_v52 = vor.u32 %v1878_v21, %v1877_v40  ;;  %v1882_v17 = vor.u32 %v1881_v30, %v1880_v20  ;;  %v1885_v43 = vor.u32 %v1884_v61, %v1883_v51  ;;  %v1873_v5 = vshrl.u32 %v6463_v6, %v1872_v59 }
 0x144   :  { %v4936_v11 = vadd.f32 1.0, %v4935_v37  ;;  %v4943_v36 = vadd.f32 1.0, %v4942_v49  ;;  %v567_v2 = vsel %vm565_vm4, %v566_v4, %v7198_v60  ;;  %vm1889_vm7 = vcmp.lt.s32.totalorder %v7192_v29, 1 }
 0x145   :  { %v568_v22 = vclz %v567_v2  ;;  %v587_v63 = vsel %vm464_vm0, %v586_v26, %v562_v54  ;;  %vm1890_vm8 = vcmp.lt.s32.totalorder %v7192_v29, 2  ;;  %vm1891_vm9 = vcmp.lt.s32.totalorder %v7192_v29, 3 }
 0x146   :  { %v4944_v46 = vmul.f32 %v4943_v36, %v4928_v0  ;;  %v4953_v53 = vxor.u32 2147483648, %v4936_v11  ;;  %v1888_v33 = vor.u32 %v1887_v18, %v1886_v44  ;;  %vm1892_vm11 = vcmp.lt.s32.totalorder %v7192_v29, 4 }
 0x147   :  { %v6295_v16 = vadd.s32 4294967294, %v568_v22  ;;  %v1894_v0 = vsel %vm1892_vm11, %v1882_v17, 2102212464  ;;  %v1897_v15 = vsel %vm1889_vm7, %v1876_v3, %v1879_v52  ;;  %v1898_v58 = vsel %vm1892_vm11, %v1885_v43, 920167782 }
 0x148   :  { %v4950_v42 = vxor.u32 2147483648, %v4944_v46  ;;  %v4954_v24 = vsel %vm4952_vm1, %v4953_v53, %v4944_v46  ;;  %v1893_v59 = vsel %vm1889_vm7, %v1873_v5, %v1876_v3  ;;  %v1899_v9 = vsel %vm1891_vm9, %v1882_v17, %v1898_v58 }
 0x149   :  { %vm6296_vm10 = vcmp.lt.s32.totalorder %v6295_v16, 0  ;;  %v1895_v47 = vsel %vm1891_vm9, %v1879_v52, %v1894_v0  ;;  %v1900_v40 = vsel %vm1890_vm8, %v1897_v15, %v1899_v9  ;;  %v1901_v26 = vsel %vm1889_vm7, %v1879_v52, %v1882_v17 }
 0x14a   :  { %v4951_v25 = vsel %vm4949_vm2, %v4936_v11, %v4950_v42  ;;  %v571_v54 = vsel %vm6296_vm10, 0, %v6295_v16  ;;  %v1902_v20 = vsel %vm1892_vm11, %v1888_v33, 1326507024  ;;  %v1930_v30 = vand.u32 65535, %v1900_v40 }
 0x14b   :  { %v4955_v1 = vsel %vm4948_vm3, %v4951_v25, %v4954_v24  ;;  %v572_v55 = vsub.s32 32, %v571_v54  ;;  %v576_v13 = vsub.s32 4294967266, %v571_v54  ;;  %v573_v35 = vshll.u32 %v7198_v60, %v571_v54 }
 0x14c   :  { %v4956_v56 = vsel %vm4945_vm5, nan, %v4955_v1  ;;  %v589_v50 = vsel %vm7216_vm6, 0, %v587_v63  ;;  %v7259_v60 = vsel %vm1890_vm8, %v1893_v59, %v1895_v47  ;;  %v1903_v37 = vsel %vm1891_vm9, %v1885_v43, %v1902_v20 }
 0x14d   :  { %6226 = vst [vmem:[#allocation2 + $0xe8] sm:$0xff] %v4956_v56  ;;  %v574_v32 = vshrl.u32 %v7181_v31, %v572_v55  ;;  %v577_v21 = vadd.s32 127, %v576_v13  ;;  %v1931_v49 = vshrl.u32 %v1900_v40, 16  ;;  %v1904_v31 = vsel %vm1890_vm8, %v1901_v26, %v1903_v37 }
 0x14e   :  { %vm3418_vm13 = vcmp.gt.s32.totalorder %v7196_v28, 0  ;;  %v1908_v51 = vand.u32 65535, %v1904_v31  ;;  %v1909_v61 = vshrl.u32 %v1904_v31, 16  ;;  %v1934_v11 = vmul.u32 %v1930_v30, %v7189_v48 }
 0x14f   :  { %v575_v4 = vor.u32 %v574_v32, %v573_v35  ;;  %v578_v3 = vshll.u32 %v577_v21, 23  ;;  %v1933_v44 = vmul.u32 %v1931_v49, %v7184_v62  ;;  %v7268_v2 = vadd.s32 3, %v589_v50 }
 0x150   :  { %v1950_v18 = vmul.u32 %v7177_v57, %v7259_v60  ;;  %v7274_v22 = vand.u32 8388607, %v3407_v19  ;;  %v1911_v29 = vmul.u32 %v1909_v61, %v7184_v62  ;;  %v1912_v52 = vmul.u32 %v1908_v51, %v7189_v48 }
 0x151   :  { %v579_v36 = vor.u32 4788187, %v578_v3  ;;  %v1932_v17 = vmul.u32 %v1930_v30, %v7184_v62  ;;  %v3419_v43 = vsel %vm3418_vm13, %v7196_v28, 0  ;;  %v582_v53 = vcvt.s32.f32 %v575_v4 }
 0x152   :  { %v1935_v5 = vmul.u32 %v1931_v49, %v7189_v48  ;;  %v1936_v16 = vshll.u32 %v1933_v44, 16  ;;  %v1910_v63 = vmul.u32 %v1908_v51, %v7184_v62  ;;  %v1913_v42 = vmul.u32 %v1909_v61, %v7189_v48 }
 0x153   :  { %v580_v46 = vand.u32 2147483647, %v579_v36  ;;  %v1914_v24 = vshll.u32 %v1911_v29, 16  ;;  %v1938_v33 = vshll.u32 %v1934_v11, 16  ;;  %v1916_v15 = vshll.u32 %v1912_v52, 16 }
 0x154   :  { %vm1940_vm12 = vc.u32 %v1932_v17, %v1936_v16  ;;  %v1942_v58 = vadd.s32 %v1936_v16, %v1932_v17  ;;  %v3421_v28 = vand.u32 31, %v3419_v43  ;;  %v1937_v62 = vshrl.u32 %v1933_v44, 16 }
 0x155   :  { %v583_v0 = vmul.f32 %v582_v53, %v580_v46  ;;  %vm1918_vm14 = vc.u32 %v1910_v63, %v1914_v24  ;;  %v1920_v25 = vadd.s32 %v1914_v24, %v1910_v63  ;;  %v1941_v54 = vsel %vm1940_vm12, 1, %v6469_v27 }
 0x156   :  { %v1919_v9 = vsel %vm1918_vm14, 1, %v6469_v27  ;;  %v1943_v1 = vadd.s32 %v1941_v54, %v1935_v5  ;;  %vm1944_vm15 = vc.u32 %v1942_v58, %v1938_v33  ;;  %v7289_v35 = vsub.s32 32, %v3421_v28 }
 0x157   :  { %v584_v59 = vxor.u32 2147483648, %v583_v0  ;;  %v1921_v55 = vadd.s32 %v1919_v9, %v1913_v42  ;;  %vm1922_vm1 = vc.u32 %v1920_v25, %v1916_v15  ;;  %v1945_v48 = vsel %vm1944_vm15, 1, %v6469_v27 }
 0x158   :  { %v1923_v47 = vsel %vm1922_vm1, 1, %v6469_v27  ;;  %v1947_v56 = vadd.s32 %v1945_v48, %v1943_v1  ;;  %v1915_v26 = vshrl.u32 %v1911_v29, 16  ;;  %v7294_v21 = vshrl.u32 %v3419_v43, 5 }
 0x159   :  { %v585_v13 = vsel %vm464_vm0, %v584_v59, %v583_v0  ;;  %v1925_v32 = vadd.s32 %v1923_v47, %v1921_v55  ;;  %v1917_v30 = vshrl.u32 %v1912_v52, 16  ;;  %v1939_v50 = vshrl.u32 %v1934_v11, 16 }
 0x15a   :  { %v588_v40 = vsel %vm7216_vm6, %v6967_v39, %v585_v13  ;;  %v1948_v37 = vadd.s32 %v1947_v56, %v1937_v62  ;;  %v7296_v4 = vadd.s32 %v1942_v58, %v1938_v33  ;;  %v3424_v3 = vshll.u32 %v6463_v6, %v3421_v28 }
 0x15b   :  { %v590_v20 = vmul.f32 %v588_v40, %v588_v40  ;;  %v1926_v49 = vadd.s32 %v1925_v32, %v1915_v26  ;;  %v3427_v31 = vshll.u32 %v6464_v8, %v3421_v28  ;;  %v3425_v7 = vshrl.u32 %v6464_v8, %v7289_v35 }
 0x15c   :  { %v1949_v44 = vadd.s32 %v1948_v37, %v1939_v50  ;;  %v3428_v29 = vshrl.u32 %v6465_v10, %v7289_v35  ;;  %v3431_v11 = vshrl.u32 %v6466_v12, %v7289_v35  ;;  %v3433_v52 = vshll.u32 %v6466_v12, %v3421_v28 }
 0x15d   :  { %v591_v51 = vmul.f32 -0.001358992, %v590_v20  ;;  %v598_v61 = vmul.f32 -0.00019511016, %v590_v20  ;;  %v7302_v36 = vadd.s32 %v1926_v49, %v1917_v30  ;;  %v3434_v53 = vshrl.u32 %v6467_v14, %v7289_v35 }
 0x15e   :  { %v1953_v46 = vadd.s32 1, %v1949_v44  ;;  %v3430_v5 = vshll.u32 %v6465_v10, %v3421_v28  ;;  %v3436_v16 = vshll.u32 %v6467_v14, %v3421_v28  ;;  %v3437_v63 = vshrl.u32 %v6468_v23, %v7289_v35 }
 0x15f   :  { %v592_v17 = vadd.f32 0.041655596, %v591_v51  ;;  %v599_v43 = vadd.f32 0.008332121, %v598_v61  ;;  %vm1952_vm0 = vc.u32 %v7302_v36, %v7296_v4  ;;  %v3435_v0 = vor.u32 %v3434_v53, %v3433_v52 }
 0x160   :  { %v1954_v33 = vsel %vm1952_vm0, %v1953_v46, %v1949_v44  ;;  %v7320_v58 = vor.u32 %v3425_v7, %v3424_v3  ;;  %v7322_v25 = vor.u32 %v3428_v29, %v3427_v31  ;;  %v7324_v54 = vor.u32 %v3431_v11, %v3430_v5 }
 0x161   :  { %v593_v42 = vmul.f32 %v592_v17, %v590_v20  ;;  %v600_v24 = vmul.f32 %v599_v43, %v590_v20  ;;  %v1955_v15 = vadd.s32 %v1954_v33, %v1950_v18  ;;  %v3438_v28 = vor.u32 %v3437_v63, %v3436_v16 }
 0x162   :  { %v607_v1 = vand.u32 3, %v7268_v2  ;;  %v3415_v62 = vor.u32 8388608, %v7274_v22  ;;  %vm3442_vm2 = vcmp.lt.s32.totalorder %v7294_v21, 4  ;;  %vm3439_vm3 = vcmp.lt.s32.totalorder %v7294_v21, 1 }
 0x163   :  { %v594_v59 = vadd.f32 -0.4999988, %v593_v42  ;;  %v601_v9 = vadd.f32 -0.16666654, %v600_v24  ;;  %v1956_v55 = vadd.s32 536870912, %v1955_v15  ;;  %vm3441_vm4 = vcmp.lt.s32.totalorder %v7294_v21, 3 }
 0x164   :  { %v3448_v57 = vsel %vm3442_vm2, %v3435_v0, 920167782  ;;  %v3447_v2 = vsel %vm3439_vm3, %v7320_v58, %v7322_v25  ;;  %v3451_v18 = vsel %vm3439_vm3, %v7322_v25, %v7324_v54  ;;  %v3452_v26 = vsel %vm3442_vm2, %v3438_v28, 1326507024 }
 0x165   :  { %v595_v48 = vmul.f32 %v594_v59, %v590_v20  ;;  %v602_v13 = vmul.f32 %v601_v9, %v590_v20  ;;  %v7332_v60 = vshrl.u32 %v1956_v55, 30  ;;  %v3449_v56 = vsel %vm3441_vm4, %v7324_v54, %v3448_v57 }
 0x166   :  { %vm3440_vm5 = vcmp.lt.s32.totalorder %v7294_v21, 2  ;;  %v3453_v20 = vsel %vm3441_vm4, %v3435_v0, %v3452_v26  ;;  %v7352_v30 = vshll.u32 %v3415_v62, 8  ;;  %vm605_vm6 = vweird.f32 %v6967_v39 }
 0x167   :  { %v596_v22 = vadd.f32 1.0, %v595_v48  ;;  %v603_v47 = vadd.f32 1.0, %v602_v13  ;;  %v1958_v32 = vshll.u32 %v7332_v60, 30  ;;  %v3454_v49 = vsel %vm3440_vm5, %v3451_v18, %v3453_v20 }
 0x168   :  { %vm608_vm7 = vcmp.lt.s32.totalorder %v607_v1, 2  ;;  %vm609_vm8 = vcmp.eq.s32.totalorder %v607_v1, 0  ;;  %v3450_v31 = vsel %vm3440_vm5, %v3447_v2, %v3449_v56  ;;  %vm612_vm9 = vcmp.eq.s32.totalorder %v607_v1, 2  ;;  %v283_v56 = vpop.f32.mrf.mxu3 }
 0x169   :  { %v604_v50 = vmul.f32 %v603_v47, %v588_v40  ;;  %v613_v37 = vxor.u32 2147483648, %v596_v22  ;;  %v1959_v3 = vsub.s32 %v1955_v15, %v1958_v32  ;;  %v3457_v61 = vshrl.u32 %v7352_v30, 16 }
 0x16a   :  { %v3458_v44 = vand.u32 65535, %v3454_v49  ;;  %v3456_v40 = vand.u32 65535, %v7352_v30  ;;  %v3459_v29 = vshrl.u32 %v3454_v49, 16  ;;  %v3480_v43 = vand.u32 65535, %v3450_v31 }
 0x16b   :  { %v610_v51 = vxor.u32 2147483648, %v604_v50  ;;  %vm1960_vm11 = vcmp.lt.s32.totalorder %v1959_v3, 0  ;;  %v1961_v7 = vsub.s32 0, %v1959_v3  ;;  %v614_v52 = vsel %vm612_vm9, %v613_v37, %v604_v50 }
 0x16c   :  { %v3462_v17 = vmul.u32 %v3458_v44, %v3457_v61  ;;  %v3461_v5 = vmul.u32 %v3459_v29, %v3456_v40  ;;  %v3481_v16 = vshrl.u32 %v3450_v31, 16  ;;  %v3460_v24 = vmul.u32 %v3458_v44, %v3456_v40 }
 0x16d   :  { %v611_v11 = vsel %vm609_vm8, %v596_v22, %v610_v51  ;;  %v1962_v53 = vsel %vm1960_vm11, %v1961_v7, %v1959_v3  ;;  %v3423_v15 = vshrl.u32 %v6463_v6, %v7289_v35  ;;  %v3463_v59 = vmul.u32 %v3459_v29, %v3457_v61 }
 0x16e   :  { %v615_v46 = vsel %vm608_vm7, %v611_v11, %v614_v52  ;;  %v1963_v42 = vclz %v1962_v53  ;;  %v3464_v33 = vshll.u32 %v3461_v5, 16  ;;  %v3466_v9 = vshll.u32 %v3462_v17, 16 }
 0x16f   :  { %v616_v63 = vsel %vm605_vm6, nan, %v615_v46  ;;  %v3483_v1 = vmul.u32 %v3481_v16, %v3456_v40  ;;  %v3484_v55 = vmul.u32 %v3480_v43, %v3457_v61  ;;  %v1951_v62 = vadd.s32 %v7296_v4, %v7302_v36 }
 0x170   :  { %6198 = vst [vmem:[#allocation2 + $0x8] sm:$0xff] %v616_v63  ;;  %v6322_v0 = vadd.s32 4294967294, %v1963_v42  ;;  %vm3468_vm10 = vc.u32 %v3460_v24, %v3464_v33  ;;  %v3470_v28 = vadd.s32 %v3464_v33, %v3460_v24  ;;  %v3465_v39 = vshrl.u32 %v3461_v5, 16 }
 0x171   :  { %v3469_v48 = vsel %vm3468_vm10, 1, %v6469_v27  ;;  %v3486_v2 = vshll.u32 %v3483_v1, 16  ;;  %v3482_v47 = vmul.u32 %v3480_v43, %v3456_v40  ;;  %v3485_v20 = vmul.u32 %v3481_v16, %v3457_v61 }
 0x172   :  { %vm6323_vm13 = vcmp.lt.s32.totalorder %v6322_v0, 0  ;;  %v3471_v57 = vadd.s32 %v3469_v48, %v3463_v59  ;;  %vm3472_vm12 = vc.u32 %v3470_v28, %v3466_v9  ;;  %v3488_v50 = vshll.u32 %v3484_v55, 16 }
 0x173   :  { %v1966_v13 = vsel %vm6323_vm13, 0, %v6322_v0  ;;  %v3473_v35 = vsel %vm3472_vm12, 1, %v6469_v27  ;;  %vm3490_vm14 = vc.u32 %v3482_v47, %v3486_v2  ;;  %v3492_v36 = vadd.s32 %v3486_v2, %v3482_v47 }
 0x174   :  { %v1967_v18 = vsub.s32 32, %v1966_v13  ;;  %v1971_v22 = vsub.s32 4294967266, %v1966_v13  ;;  %v1968_v26 = vshll.u32 %v1959_v3, %v1966_v13  ;;  %v3475_v32 = vadd.s32 %v3473_v35, %v3471_v57 }
 0x175   :  { %v3444_v49 = vsel %vm3442_vm2, %v7324_v54, 2102212464  ;;  %v3491_v51 = vsel %vm3490_vm14, 1, %v6469_v27  ;;  %v7375_v44 = vadd.f32 %v7153_v34, %v283_v56  ;;  %vm3494_vm15 = vc.u32 %v3492_v36, %v3488_v50 }
 0x176   :  { %v1969_v37 = vshrl.u32 %v1951_v62, %v1967_v18  ;;  %v1972_v4 = vadd.s32 127, %v1971_v22  ;;  %v3476_v31 = vadd.s32 %v3475_v32, %v3465_v39  ;;  %v3493_v3 = vadd.s32 %v3491_v51, %v3485_v20 }
 0x177   :  { %v1981_v61 = vsub.s32 4, %v7332_v60  ;;  %v3467_v29 = vshrl.u32 %v3462_v17, 16  ;;  %v3495_v11 = vsel %vm3494_vm15, 1, %v6469_v27  ;;  %v4957_v52 = vand.u32 2147483647, %v7375_v44 }
 0x178   :  { %v1970_v7 = vor.u32 %v1969_v37, %v1968_v26  ;;  %v1973_v40 = vshll.u32 %v1972_v4, 23  ;;  %vm1859_vm1 = vcmp.lt.s32.totalorder %v7156_v45, 0  ;;  %v3487_v43 = vshrl.u32 %v3483_v1, 16 }
 0x179   :  { %v3497_v46 = vadd.s32 %v3495_v11, %v3493_v3  ;;  %v3443_v53 = vsel %vm3439_vm3, %v3423_v15, %v7320_v58  ;;  %v3445_v5 = vsel %vm3441_vm4, %v7322_v25, %v3444_v49  ;;  %v3477_v16 = vadd.s32 %v3476_v31, %v3467_v29  ;;  %v199_v15 = vpop.f32.mrf.mxu0 }
 0x17a   :  { %v1974_v54 = vor.u32 4788187, %v1973_v40  ;;  %v4960_v17 = vand.u32 2139095040, %v7375_v44  ;;  %v1977_v42 = vcvt.s32.f32 %v1970_v7  ;;  %v3489_v24 = vshrl.u32 %v3484_v55, 16 }
 0x17b   :  { %v3498_v33 = vadd.s32 %v3497_v46, %v3487_v43  ;;  %v1982_v0 = vsel %vm1859_vm1, %v1981_v61, %v7332_v60  ;;  %v3496_v59 = vadd.s32 %v3492_v36, %v3488_v50  ;;  %v4964_v58 = vand.u32 8388607, %v4957_v52 }
 0x17c   :  { %v1975_v63 = vand.u32 2147483647, %v1974_v54  ;;  %v4961_v9 = vshrl.u32 %v4960_v17, 23  ;;  %v3446_v25 = vsel %vm3440_vm5, %v3443_v53, %v3445_v5  ;;  %vm1858_vm0 = vcmp.le.f32.partialorder %v1857_v38, 0.7853982 }
 0x17d   :  { %v3499_v1 = vadd.s32 %v3498_v33, %v3489_v24  ;;  %vm3502_vm2 = vc.u32 %v3477_v16, %v3496_v59  ;;  %v1984_v39 = vsel %vm1858_vm0, 0, %v1982_v0  ;;  %v7398_v60 = vadd.f32 %v7153_v34, %v199_v15 }
 0x17e   :  { %v1978_v28 = vmul.f32 %v1977_v42, %v1975_v63  ;;  %v6381_v55 = vadd.s32 4294967169, %v4961_v9  ;;  %v3500_v13 = vmul.u32 %v7352_v30, %v3446_v25  ;;  %v4965_v57 = vor.u32 8388608, %v4964_v58 }
 0x17f   :  { %v3503_v48 = vadd.s32 1, %v3499_v1  ;;  %v2001_v35 = vadd.s32 3, %v1984_v39  ;;  %v620_v26 = vand.u32 2139095040, %v7398_v60  ;;  %v617_v49 = vand.u32 2147483647, %v7398_v60 }
 0x180   :  { %v1979_v62 = vxor.u32 2147483648, %v1978_v28  ;;  %v4967_v2 = vadd.s32 1, %v6381_v55  ;;  %v7405_v20 = vshll.u32 %v4965_v57, 8  ;;  %v7410_v7 = vadd.s32 %v3496_v59, %v3477_v16 }
 0x181   :  { %v3504_v18 = vsel %vm3502_vm2, %v3503_v48, %v3499_v1  ;;  %v7407_v37 = vand.u32 3, %v2001_v35  ;;  %v621_v40 = vshrl.u32 %v620_v26, 23  ;;  %vm3409_vm4 = vcmp.lt.s32.totalorder %v7159_v41, 0 }
 0x182   :  { %v1980_v21 = vsel %vm1859_vm1, %v1979_v62, %v1978_v28  ;;  %v3505_v38 = vadd.s32 %v3504_v18, %v3500_v13  ;;  %vm4968_vm3 = vcmp.gt.s32.totalorder %v4967_v2, 0  ;;  %v7417_v11 = vand.u32 65535, %v7405_v20 }
 0x183   :  { %v1983_v22 = vsel %vm1858_vm0, %v7156_v45, %v1980_v21  ;;  %v4969_v56 = vsel %vm4968_vm3, %v4967_v2, 0  ;;  %vm2007_vm5 = vcmp.eq.s32.totalorder %v7407_v37, 2  ;;  %vm2004_vm6 = vcmp.eq.s32.totalorder %v7407_v37, 0 }
 0x184   :  { %v1985_v47 = vmul.f32 %v1983_v22, %v1983_v22  ;;  %v3506_v32 = vadd.s32 536870912, %v3505_v38  ;;  %v4971_v34 = vand.u32 31, %v4969_v56  ;;  %v7413_v61 = vshrl.u32 %v4969_v56, 5 }
 0x185   :  { %vm2003_vm8 = vcmp.lt.s32.totalorder %v7407_v37, 2  ;;  %vm2000_vm9 = vweird.f32 %v7156_v45  ;;  %v5007_v35 = vshrl.u32 %v7405_v20, 16  ;;  %vm7446_vm10 = vcmp.le.f32.partialorder %v3407_v19, 0.7853982 }
 0x186   :  { %v1986_v30 = vmul.f32 -0.001358992, %v1985_v47  ;;  %v1993_v50 = vmul.f32 -0.00019511016, %v1985_v47  ;;  %v3507_v4 = vshrl.u32 %v3506_v32, 30  ;;  %v4972_v36 = vsub.s32 32, %v4971_v34 }
 0x187   :  { %v4974_v29 = vshll.u32 %v6463_v6, %v4971_v34  ;;  %v4977_v53 = vshll.u32 %v6464_v8, %v4971_v34  ;;  %v4980_v17 = vshll.u32 %v6465_v10, %v4971_v34  ;;  %v4983_v0 = vshll.u32 %v6466_v12, %v4971_v34 }
 0x188   :  { %v1987_v31 = vadd.f32 0.041655596, %v1986_v30  ;;  %v1994_v51 = vadd.f32 0.008332121, %v1993_v50  ;;  %v3508_v3 = vshll.u32 %v3507_v4, 30  ;;  %v4975_v46 = vshrl.u32 %v6464_v8, %v4972_v36 }
 0x189   :  { %v4978_v16 = vshrl.u32 %v6465_v10, %v4972_v36  ;;  %v4981_v63 = vshrl.u32 %v6466_v12, %v4972_v36  ;;  %v3531_v33 = vsub.s32 4, %v3507_v4  ;;  %v4973_v9 = vshrl.u32 %v6463_v6, %v4972_v36 }
 0x18a   :  { %v1988_v54 = vmul.f32 %v1987_v31, %v1985_v47  ;;  %v1995_v43 = vmul.f32 %v1994_v51, %v1985_v47  ;;  %v7421_v5 = vsub.s32 %v3505_v38, %v3508_v3  ;;  %v4984_v58 = vshrl.u32 %v6467_v14, %v4972_v36 }
 0x18b   :  { %v4976_v25 = vor.u32 %v4975_v46, %v4974_v29  ;;  %v4986_v1 = vshll.u32 %v6467_v14, %v4971_v34  ;;  %v4979_v62 = vor.u32 %v4978_v16, %v4977_v53  ;;  %v4982_v39 = vor.u32 %v4981_v63, %v4980_v17 }
 0x18c   :  { %v1989_v42 = vadd.f32 -0.4999988, %v1988_v54  ;;  %v1996_v24 = vadd.f32 -0.16666654, %v1995_v43  ;;  %vm3510_vm7 = vcmp.lt.s32.totalorder %v7421_v5, 0  ;;  %v3511_v59 = vsub.s32 0, %v7421_v5 }
 0x18d   :  { %v4987_v48 = vshrl.u32 %v6468_v23, %v4972_v36  ;;  %vm4989_vm11 = vcmp.lt.s32.totalorder %v7413_v61, 1  ;;  %v4985_v21 = vor.u32 %v4984_v58, %v4983_v0  ;;  %v6297_v38 = vadd.s32 4294967169, %v621_v40 }
 0x18e   :  { %v1990_v15 = vmul.f32 %v1989_v42, %v1985_v47  ;;  %v1997_v28 = vmul.f32 %v1996_v24, %v1985_v47  ;;  %v3512_v55 = vsel %vm3510_vm7, %v3511_v59, %v7421_v5  ;;  %v7442_v32 = vsel %vm3409_vm4, %v3531_v33, %v3507_v4 }
 0x18f   :  { %v3513_v2 = vclz %v3512_v55  ;;  %v4988_v18 = vor.u32 %v4987_v48, %v4986_v1  ;;  %vm4990_vm13 = vcmp.lt.s32.totalorder %v7413_v61, 2  ;;  %vm4991_vm12 = vcmp.lt.s32.totalorder %v7413_v61, 3 }
 0x190   :  { %v1991_v13 = vadd.f32 1.0, %v1990_v15  ;;  %v1998_v57 = vadd.f32 1.0, %v1997_v28  ;;  %vm4992_vm14 = vcmp.lt.s32.totalorder %v7413_v61, 4  ;;  %v4997_v50 = vsel %vm4989_vm11, %v4976_v25, %v4979_v62 }
 0x191   :  { %v6352_v26 = vadd.s32 4294967294, %v3513_v2  ;;  %v5001_v19 = vsel %vm4989_vm11, %v4979_v62, %v4982_v39  ;;  %v4998_v31 = vsel %vm4992_vm14, %v4985_v21, 920167782  ;;  %v5002_v51 = vsel %vm4992_vm14, %v4988_v18, 1326507024 }
 0x192   :  { %v1999_v47 = vmul.f32 %v1998_v57, %v1983_v22  ;;  %v2008_v56 = vxor.u32 2147483648, %v1991_v13  ;;  %v4993_v22 = vsel %vm4989_vm11, %v4973_v9, %v4976_v25  ;;  %v4994_v54 = vsel %vm4992_vm14, %v4982_v39, 2102212464 }
 0x193   :  { %vm6353_vm15 = vcmp.lt.s32.totalorder %v6352_v26, 0  ;;  %v4999_v53 = vsel %vm4991_vm12, %v4982_v39, %v4998_v31  ;;  %v5003_v16 = vsel %vm4991_vm12, %v4985_v21, %v5002_v51  ;;  %v4995_v37 = vsel %vm4991_vm12, %v4979_v62, %v4994_v54 }
 0x194   :  { %v2005_v30 = vxor.u32 2147483648, %v1999_v47  ;;  %v2009_v4 = vsel %vm2007_vm5, %v2008_v56, %v1999_v47  ;;  %v3516_v36 = vsel %vm6353_vm15, 0, %v6352_v26  ;;  %v5000_v24 = vsel %vm4990_vm13, %v4997_v50, %v4999_v53 }
 0x195   :  { %v3517_v3 = vsub.s32 32, %v3516_v36  ;;  %v3521_v29 = vsub.s32 4294967266, %v3516_v36  ;;  %v3518_v46 = vshll.u32 %v7421_v5, %v3516_v36  ;;  %v5004_v5 = vsel %vm4990_vm13, %v5001_v19, %v5003_v16 }
 0x196   :  { %v2006_v40 = vsel %vm2004_vm6, %v1991_v13, %v2005_v30  ;;  %v5030_v33 = vand.u32 65535, %v5000_v24  ;;  %v5031_v0 = vshrl.u32 %v5000_v24, 16  ;;  %v5008_v58 = vand.u32 65535, %v5004_v5 }
 0x197   :  { %v2010_v43 = vsel %vm2003_vm8, %v2006_v40, %v2009_v4  ;;  %v3519_v63 = vshrl.u32 %v7410_v7, %v3517_v3  ;;  %v3522_v42 = vadd.s32 127, %v3521_v29  ;;  %v5009_v45 = vshrl.u32 %v5004_v5, 16 }
 0x198   :  { %v2011_v17 = vsel %vm2000_vm9, nan, %v2010_v43  ;;  %v5033_v15 = vmul.u32 %v5031_v0, %v7417_v11  ;;  %v5034_v7 = vmul.u32 %v5030_v33, %v5007_v35  ;;  %v7482_v28 = vand.u32 8388607, %v617_v49 }
 0x199   :  { %6207 = vst [vmem:[#allocation2 + $0x50] sm:$0xff] %v2011_v17  ;;  %v3520_v59 = vor.u32 %v3519_v63, %v3518_v46  ;;  %v3523_v9 = vshll.u32 %v3522_v42, 23  ;;  %v627_v25 = vadd.s32 1, %v6297_v38  ;;  %v3534_v55 = vsel %vm7446_vm10, 0, %v7442_v32 }
 0x19a   :  { %v7489_v62 = vsel %vm4990_vm13, %v4993_v22, %v4995_v37  ;;  %v5011_v39 = vmul.u32 %v5009_v45, %v7417_v11  ;;  %v5012_v48 = vmul.u32 %v5008_v58, %v5007_v35  ;;  %v5032_v13 = vmul.u32 %v5030_v33, %v7417_v11 }
 0x19b   :  { %v3524_v1 = vor.u32 4788187, %v3523_v9  ;;  %v5035_v57 = vmul.u32 %v5031_v0, %v5007_v35  ;;  %v5036_v2 = vshll.u32 %v5033_v15, 16  ;;  %v3527_v18 = vcvt.s32.f32 %v3520_v59 }
 0x19c   :  { %v5010_v38 = vmul.u32 %v5008_v58, %v7417_v11  ;;  %v5014_v47 = vshll.u32 %v5011_v39, 16  ;;  %v5013_v56 = vmul.u32 %v5009_v45, %v5007_v35  ;;  %v5016_v26 = vshll.u32 %v5012_v48, 16 }
 0x19d   :  { %v3525_v21 = vand.u32 2147483647, %v3524_v1  ;;  %v5038_v30 = vshll.u32 %v5034_v7, 16  ;;  %vm5040_vm1 = vc.u32 %v5032_v13, %v5036_v2  ;;  %v5042_v19 = vadd.s32 %v5036_v2, %v5032_v13 }
 0x19e   :  { %vm5018_vm0 = vc.u32 %v5010_v38, %v5014_v47  ;;  %v5020_v61 = vadd.s32 %v5014_v47, %v5010_v38  ;;  %v5041_v22 = vsel %vm5040_vm1, 1, %v6469_v27  ;;  %vm628_vm2 = vcmp.gt.s32.totalorder %v627_v25, 0 }
 0x19f   :  { %v3528_v32 = vmul.f32 %v3527_v18, %v3525_v21  ;;  %v5019_v50 = vsel %vm5018_vm0, 1, %v6469_v27  ;;  %v5043_v4 = vadd.s32 %v5041_v22, %v5035_v57  ;;  %v629_v51 = vsel %vm628_vm2, %v627_v25, 0 }
 0x1a0   :  { %v5021_v31 = vadd.s32 %v5019_v50, %v5013_v56  ;;  %vm5022_vm3 = vc.u32 %v5020_v61, %v5016_v26  ;;  %v3551_v11 = vadd.s32 3, %v3534_v55  ;;  %v5015_v40 = vshrl.u32 %v5011_v39, 16 }
 0x1a1   :  { %v3529_v36 = vxor.u32 2147483648, %v3528_v32  ;;  %v5023_v35 = vsel %vm5022_vm3, 1, %v6469_v27  ;;  %vm5044_vm5 = vc.u32 %v5042_v19, %v5038_v30  ;;  %v631_v43 = vand.u32 31, %v629_v51 }
 0x1a2   :  { %v5025_v29 = vadd.s32 %v5023_v35, %v5021_v31  ;;  %v5045_v54 = vsel %vm5044_vm5, 1, %v6469_v27  ;;  %v5037_v53 = vshrl.u32 %v5033_v15, 16  ;;  %v5050_v17 = vmul.u32 %v7405_v20, %v7489_v62 }
 0x1a3   :  { %v3530_v3 = vsel %vm3409_vm4, %v3529_v36, %v3528_v32  ;;  %v5047_v16 = vadd.s32 %v5045_v54, %v5043_v4  ;;  %v5017_v42 = vshrl.u32 %v5012_v48, 16  ;;  %v7505_v37 = vsub.s32 32, %v631_v43 }
 0x1a4   :  { %v3533_v46 = vsel %vm7446_vm10, %v7159_v41, %v3530_v3  ;;  %v5026_v24 = vadd.s32 %v5025_v29, %v5015_v40  ;;  %v5039_v5 = vshrl.u32 %v5034_v7, 16  ;;  %v7507_v33 = vadd.s32 %v5042_v19, %v5038_v30 }
 0x1a5   :  { %v3535_v63 = vmul.f32 %v3533_v46, %v3533_v46  ;;  %v5048_v0 = vadd.s32 %v5047_v16, %v5037_v53  ;;  %v637_v59 = vshll.u32 %v6464_v8, %v631_v43  ;;  %v7512_v45 = vshrl.u32 %v629_v51, 5 }
 0x1a6   :  { %v7510_v34 = vadd.s32 %v5026_v24, %v5017_v42  ;;  %v638_v20 = vshrl.u32 %v6465_v10, %v7505_v37  ;;  %v640_v25 = vshll.u32 %v6465_v10, %v631_v43  ;;  %v641_v7 = vshrl.u32 %v6466_v12, %v7505_v37 }
 0x1a7   :  { %v3536_v9 = vmul.f32 -0.001358992, %v3535_v63  ;;  %v3543_v58 = vmul.f32 -0.00019511016, %v3535_v63  ;;  %v5049_v15 = vadd.s32 %v5048_v0, %v5039_v5  ;;  %v643_v62 = vshll.u32 %v6466_v12, %v631_v43 }
 0x1a8   :  { %vm5052_vm4 = vc.u32 %v7510_v34, %v7507_v33  ;;  %v634_v48 = vshll.u32 %v6463_v6, %v631_v43  ;;  %v635_v13 = vshrl.u32 %v6464_v8, %v7505_v37  ;;  %v7525_v57 = vor.u32 %v638_v20, %v637_v59 }
 0x1a9   :  { %v3537_v1 = vadd.f32 0.041655596, %v3536_v9  ;;  %v3544_v55 = vadd.f32 0.008332121, %v3543_v58  ;;  %v5053_v39 = vadd.s32 1, %v5049_v15  ;;  %v644_v18 = vshrl.u32 %v6467_v14, %v7505_v37 }
 0x1aa   :  { %v646_v38 = vshll.u32 %v6467_v14, %v631_v43  ;;  %v7530_v56 = vor.u32 %v641_v7, %v640_v25  ;;  %v647_v26 = vshrl.u32 %v6468_v23, %v7505_v37  ;;  %vm652_vm6 = vcmp.lt.s32.totalorder %v7512_v45, 4 }
 0x1ab   :  { %v3538_v2 = vmul.f32 %v3537_v1, %v3535_v63  ;;  %v3545_v21 = vmul.f32 %v3544_v55, %v3535_v63  ;;  %v5054_v47 = vsel %vm5052_vm4, %v5053_v39, %v5049_v15  ;;  %v645_v22 = vor.u32 %v644_v18, %v643_v62 }
 0x1ac   :  { %v5055_v61 = vadd.s32 %v5054_v47, %v5050_v17  ;;  %v625_v50 = vor.u32 8388608, %v7482_v28  ;;  %v636_v19 = vor.u32 %v635_v13, %v634_v48  ;;  %v648_v4 = vor.u32 %v647_v26, %v646_v38 }
 0x1ad   :  { %v3539_v30 = vadd.f32 -0.4999988, %v3538_v2  ;;  %v3546_v32 = vadd.f32 -0.16666654, %v3545_v21  ;;  %vm649_vm7 = vcmp.lt.s32.totalorder %v7512_v45, 1  ;;  %vm651_vm8 = vcmp.lt.s32.totalorder %v7512_v45, 3 }
 0x1ae   :  { %v5056_v51 = vadd.s32 536870912, %v5055_v61  ;;  %v3552_v40 = vand.u32 3, %v3551_v11  ;;  %vm650_vm9 = vcmp.lt.s32.totalorder %v7512_v45, 2  ;;  %v658_v35 = vsel %vm652_vm6, %v645_v22, 920167782 }
 0x1af   :  { %v3540_v36 = vmul.f32 %v3539_v30, %v3535_v63  ;;  %v3547_v31 = vmul.f32 %v3546_v32, %v3535_v63  ;;  %v662_v3 = vsel %vm652_vm6, %v648_v4, 1326507024  ;;  %v661_v43 = vsel %vm649_vm7, %v7525_v57, %v7530_v56 }
 0x1b0   :  { %v7543_v54 = vshrl.u32 %v5056_v51, 30  ;;  %vm3550_vm11 = vweird.f32 %v7159_v41  ;;  %v657_v11 = vsel %vm649_vm7, %v636_v19, %v7525_v57  ;;  %v663_v53 = vsel %vm651_vm8, %v645_v22, %v662_v3 }
 0x1b1   :  { %v3541_v29 = vadd.f32 1.0, %v3540_v36  ;;  %v3548_v28 = vadd.f32 1.0, %v3547_v31  ;;  %v7555_v16 = vshll.u32 %v625_v50, 8  ;;  %v659_v24 = vsel %vm651_vm8, %v7530_v56, %v658_v35 }
 0x1b2   :  { %v5058_v42 = vshll.u32 %v7543_v54, 30  ;;  %vm3553_vm10 = vcmp.lt.s32.totalorder %v3552_v40, 2  ;;  %v664_v5 = vsel %vm650_vm9, %v661_v43, %v663_v53  ;;  %vm3554_vm13 = vcmp.eq.s32.totalorder %v3552_v40, 0 }
 0x1b3   :  { %v3549_v17 = vmul.f32 %v3548_v28, %v3533_v46  ;;  %v3558_v63 = vxor.u32 2147483648, %v3541_v29  ;;  %v666_v0 = vand.u32 65535, %v7555_v16  ;;  %v667_v59 = vshrl.u32 %v7555_v16, 16 }
 0x1b4   :  { %vm3557_vm12 = vcmp.eq.s32.totalorder %v3552_v40, 2  ;;  %v5059_v58 = vsub.s32 %v5055_v61, %v5058_v42  ;;  %v633_v46 = vshrl.u32 %v6463_v6, %v7505_v37  ;;  %v660_v15 = vsel %vm650_vm9, %v657_v11, %v659_v24  ;;  %v226_v11 = vpop.f32.mrf.mxu1 }
 0x1b5   :  { %v3555_v9 = vxor.u32 2147483648, %v3549_v17  ;;  %v668_v20 = vand.u32 65535, %v664_v5  ;;  %v669_v25 = vshrl.u32 %v664_v5, 16  ;;  %v3559_v1 = vsel %vm3557_vm12, %v3558_v63, %v3549_v17 }
 0x1b6   :  { %vm5060_vm14 = vcmp.lt.s32.totalorder %v5059_v58, 0  ;;  %v5061_v55 = vsub.s32 0, %v5059_v58  ;;  %v690_v18 = vand.u32 65535, %v660_v15  ;;  %v691_v37 = vshrl.u32 %v660_v15, 16 }
 0x1b7   :  { %v3556_v7 = vsel %vm3554_vm13, %v3541_v29, %v3555_v9  ;;  %v670_v39 = vmul.u32 %v668_v20, %v666_v0  ;;  %v671_v48 = vmul.u32 %v669_v25, %v666_v0  ;;  %v672_v13 = vmul.u32 %v668_v20, %v667_v59 }
 0x1b8   :  { %v3560_v62 = vsel %vm3553_vm10, %v3556_v7, %v3559_v1  ;;  %v5062_v21 = vsel %vm5060_vm14, %v5061_v55, %v5059_v58  ;;  %v5051_v30 = vadd.s32 %v7507_v33, %v7510_v34  ;;  %v653_v32 = vsel %vm649_vm7, %v633_v46, %v636_v19 }
 0x1b9   :  { %v3561_v2 = vsel %vm3550_vm11, nan, %v3560_v62  ;;  %v5063_v38 = vclz %v5062_v21  ;;  %v674_v47 = vshll.u32 %v671_v48, 16  ;;  %v676_v26 = vshll.u32 %v672_v13, 16 }
 0x1ba   :  { %6217 = vst [vmem:[#allocation2 + $0xa0] sm:$0xff] %v3561_v2  ;;  %v673_v22 = vmul.u32 %v669_v25, %v667_v59  ;;  %vm4959_vm1 = vcmp.lt.s32.totalorder %v7375_v44, 0  ;;  %v692_v4 = vmul.u32 %v690_v18, %v666_v0  ;;  %v693_v36 = vmul.u32 %v691_v37, %v666_v0 }
 0x1bb   :  { %v6382_v61 = vadd.s32 4294967294, %v5063_v38  ;;  %vm678_vm15 = vc.u32 %v670_v39, %v674_v47  ;;  %v680_v50 = vadd.s32 %v674_v47, %v670_v39  ;;  %v694_v31 = vmul.u32 %v690_v18, %v667_v59  ;;  %v256_v47 = vpop.f32.mrf.mxu2 }
 0x1bc   :  { %v679_v41 = vsel %vm678_vm15, 1, %v6469_v27  ;;  %v5081_v51 = vsub.s32 4, %v7543_v54  ;;  %v675_v34 = vshrl.u32 %v671_v48, 16  ;;  %v696_v35 = vshll.u32 %v693_v36, 16 }
 0x1bd   :  { %vm6383_vm0 = vcmp.lt.s32.totalorder %v6382_v61, 0  ;;  %v681_v40 = vadd.s32 %v679_v41, %v673_v22  ;;  %vm682_vm2 = vc.u32 %v680_v50, %v676_v26  ;;  %v695_v43 = vmul.u32 %v691_v37, %v667_v59  ;;  %v7587_v59 = vld [vmem:[%s10726_s2] ss:$0 sm:$0xff] }
 0x1be   :  { %v5066_v33 = vsel %vm6383_vm0, 0, %v6382_v61  ;;  %v683_v19 = vsel %vm682_vm2, 1, %v6469_v27  ;;  %v698_v17 = vshll.u32 %v694_v31, 16  ;;  %vm700_vm3 = vc.u32 %v692_v4, %v696_v35 }
 0x1bf   :  { %v5067_v3 = vsub.s32 32, %v5066_v33  ;;  %v5071_v29 = vsub.s32 4294967266, %v5066_v33  ;;  %v685_v28 = vadd.s32 %v683_v19, %v681_v40  ;;  %v5068_v53 = vshll.u32 %v5059_v58, %v5066_v33 }
 0x1c0   :  { %v702_v63 = vadd.s32 %v696_v35, %v692_v4  ;;  %v701_v0 = vsel %vm700_vm3, 1, %v6469_v27  ;;  %v654_v9 = vsel %vm652_vm6, %v7530_v56, 2102212464  ;;  %v7590_v58 = vadd.f32 %v7587_v59, %v226_v11 }
 0x1c1   :  { %v5069_v42 = vshrl.u32 %v5051_v30, %v5067_v3  ;;  %v5072_v24 = vadd.s32 127, %v5071_v29  ;;  %v686_v5 = vadd.s32 %v685_v28, %v675_v34  ;;  %v703_v46 = vadd.s32 %v701_v0, %v695_v43 }
 0x1c2   :  { %vm704_vm5 = vc.u32 %v702_v63, %v698_v17  ;;  %v677_v25 = vshrl.u32 %v672_v13, 16  ;;  %v697_v1 = vshrl.u32 %v693_v36, 16  ;;  %v2012_v62 = vand.u32 2147483647, %v7590_v58 }
 0x1c3   :  { %v5070_v15 = vor.u32 %v5069_v42, %v5068_v53  ;;  %v5073_v20 = vshll.u32 %v5072_v24, 23  ;;  %v705_v7 = vsel %vm704_vm5, 1, %v6469_v27  ;;  %v2015_v56 = vand.u32 2139095040, %v7590_v58 }
 0x1c4   :  { %v707_v55 = vadd.s32 %v705_v7, %v703_v46  ;;  %v5082_v48 = vsel %vm4959_vm1, %v5081_v51, %v7543_v54  ;;  %v655_v2 = vsel %vm651_vm8, %v7525_v57, %v654_v9  ;;  %v687_v21 = vadd.s32 %v686_v5, %v677_v25 }
 0x1c5   :  { %v5074_v39 = vor.u32 4788187, %v5073_v20  ;;  %v699_v18 = vshrl.u32 %v694_v31, 16  ;;  %v2016_v37 = vshrl.u32 %v2015_v56, 23  ;;  %v2019_v38 = vand.u32 8388607, %v2012_v62 }
 0x1c6   :  { %v708_v13 = vadd.s32 %v707_v55, %v697_v1  ;;  %v5077_v30 = vcvt.s32.f32 %v5070_v15  ;;  %v706_v61 = vadd.s32 %v702_v63, %v698_v17  ;;  %vm7605_vm4 = vcmp.le.f32.partialorder %v4957_v52, 0.7853982 }
 0x1c7   :  { %v5075_v26 = vand.u32 2147483647, %v5074_v39  ;;  %v656_v57 = vsel %vm650_vm9, %v653_v32, %v655_v2  ;;  %v6324_v50 = vadd.s32 4294967169, %v2016_v37  ;;  %v5084_v4 = vsel %vm7605_vm4, 0, %v5082_v48 }
 0x1c8   :  { %v709_v54 = vadd.s32 %v708_v13, %v699_v18  ;;  %vm712_vm6 = vc.u32 %v687_v21, %v706_v61  ;;  %v7614_v36 = vadd.f32 %v7587_v59, %v256_v47  ;;  %v2020_v51 = vor.u32 8388608, %v2019_v38 }
 0x1c9   :  { %v5078_v41 = vmul.f32 %v5077_v30, %v5075_v26  ;;  %v2022_v40 = vadd.s32 1, %v6324_v50  ;;  %v710_v33 = vmul.u32 %v7555_v16, %v656_v57  ;;  %v5101_v34 = vadd.s32 3, %v5084_v4 }
 0x1ca   :  { %v713_v31 = vadd.s32 1, %v709_v54  ;;  %v3565_v3 = vand.u32 2139095040, %v7614_v36  ;;  %v7625_v43 = vshll.u32 %v2020_v51, 8  ;;  %v3562_v16 = vand.u32 2147483647, %v7614_v36 }
 0x1cb   :  { %v5079_v52 = vxor.u32 2147483648, %v5078_v41  ;;  %vm2023_vm7 = vcmp.gt.s32.totalorder %v2022_v40, 0  ;;  %v7630_v17 = vand.u32 3, %v5101_v34  ;;  %v7632_v63 = vadd.s32 %v706_v61, %v687_v21 }
 0x1cc   :  { %v714_v19 = vsel %vm712_vm6, %v713_v31, %v709_v54  ;;  %v2024_v35 = vsel %vm2023_vm7, %v2022_v40, 0  ;;  %v3566_v9 = vshrl.u32 %v3565_v3, 23  ;;  %v7637_v20 = vand.u32 65535, %v7625_v43 }
 0x1cd   :  { %v5080_v45 = vsel %vm4959_vm1, %v5079_v52, %v5078_v41  ;;  %v715_v32 = vadd.s32 %v714_v19, %v710_v33  ;;  %v2026_v28 = vand.u32 31, %v2024_v35  ;;  %v7641_v25 = vand.u32 8388607, %v3562_v16 }
 0x1ce   :  { %v7623_v29 = vsel %vm7605_vm4, %v7375_v44, %v5080_v45  ;;  %v7644_v56 = vshrl.u32 %v7625_v43, 16  ;;  %vm619_vm8 = vcmp.lt.s32.totalorder %v7398_v60, 0  ;;  %v7653_v38 = vshrl.u32 %v2024_v35, 5 }
 0x1cf   :  { %v5085_v11 = vmul.f32 %v7623_v29, %v7623_v29  ;;  %v716_v53 = vadd.s32 536870912, %v715_v32  ;;  %v2027_v42 = vsub.s32 32, %v2026_v28  ;;  %v2029_v46 = vshll.u32 %v6463_v6, %v2026_v28 }
 0x1d0   :  { %v2032_v39 = vshll.u32 %v6464_v8, %v2026_v28  ;;  %v2038_v2 = vshll.u32 %v6466_v12, %v2026_v28  ;;  %vm5107_vm9 = vcmp.eq.s32.totalorder %v7630_v17, 2  ;;  %v2035_v30 = vshll.u32 %v6465_v10, %v2026_v28 }
 0x1d1   :  { %v5086_v24 = vmul.f32 -0.001358992, %v5085_v11  ;;  %v5093_v5 = vmul.f32 -0.00019511016, %v5085_v11  ;;  %v717_v0 = vshrl.u32 %v716_v53, 30  ;;  %v2030_v15 = vshrl.u32 %v6464_v8, %v2027_v42 }
 0x1d2   :  { %v2033_v48 = vshrl.u32 %v6465_v10, %v2027_v42  ;;  %v2039_v21 = vshrl.u32 %v6467_v14, %v2027_v42  ;;  %v2036_v61 = vshrl.u32 %v6466_v12, %v2027_v42  ;;  %vm5104_vm10 = vcmp.eq.s32.totalorder %v7630_v17, 0 }
 0x1d3   :  { %v5087_v7 = vadd.f32 0.041655596, %v5086_v24  ;;  %v5094_v1 = vadd.f32 0.008332121, %v5093_v5  ;;  %v718_v55 = vshll.u32 %v717_v0, 30  ;;  %v741_v47 = vsub.s32 4, %v717_v0 }
 0x1d4   :  { %v7656_v26 = vor.u32 %v2030_v15, %v2029_v46  ;;  %v7663_v50 = vor.u32 %v2033_v48, %v2032_v39  ;;  %v2040_v41 = vor.u32 %v2039_v21, %v2038_v2  ;;  %v2041_v4 = vshll.u32 %v6467_v14, %v2026_v28 }
 0x1d5   :  { %v5088_v18 = vmul.f32 %v5087_v7, %v5085_v11  ;;  %v5095_v13 = vmul.f32 %v5094_v1, %v5085_v11  ;;  %v7651_v37 = vsub.s32 %v715_v32, %v718_v55  ;;  %v2042_v31 = vshrl.u32 %v6468_v23, %v2027_v42 }
 0x1d6   :  { %vm5103_vm13 = vcmp.lt.s32.totalorder %v7630_v17, 2  ;;  %vm2044_vm12 = vcmp.lt.s32.totalorder %v7653_v38, 1  ;;  %vm5100_vm14 = vweird.f32 %v7375_v44  ;;  %v2037_v34 = vor.u32 %v2036_v61, %v2035_v30 }
 0x1d7   :  { %v5089_v22 = vadd.f32 -0.4999988, %v5088_v18  ;;  %v5096_v57 = vadd.f32 -0.16666654, %v5095_v13  ;;  %vm720_vm11 = vcmp.lt.s32.totalorder %v7651_v37, 0  ;;  %v721_v54 = vsub.s32 0, %v7651_v37 }
 0x1d8   :  { %vm2047_vm15 = vcmp.lt.s32.totalorder %v7653_v38, 4  ;;  %v6354_v19 = vadd.s32 4294967169, %v3566_v9  ;;  %vm2046_vm1 = vcmp.lt.s32.totalorder %v7653_v38, 3  ;;  %v3570_v35 = vor.u32 8388608, %v7641_v25 }
 0x1d9   :  { %v5090_v51 = vmul.f32 %v5089_v22, %v5085_v11  ;;  %v5097_v40 = vmul.f32 %v5096_v57, %v5085_v11  ;;  %v722_v52 = vsel %vm720_vm11, %v721_v54, %v7651_v37  ;;  %vm7676_vm0 = vcmp.le.f32.partialorder %v617_v49, 0.7853982 }
 0x1da   :  { %v723_v33 = vclz %v722_v52  ;;  %v2028_v11 = vshrl.u32 %v6463_v6, %v2027_v42  ;;  %v2043_v53 = vor.u32 %v2042_v31, %v2041_v4  ;;  %v2052_v24 = vsel %vm2044_vm12, %v7656_v26, %v7663_v50 }
 0x1db   :  { %v5091_v45 = vadd.f32 1.0, %v5090_v51  ;;  %v5098_v32 = vadd.f32 1.0, %v5097_v40  ;;  %v7688_v46 = vsel %vm619_vm8, %v741_v47, %v717_v0  ;;  %v2053_v49 = vsel %vm2047_vm15, %v2040_v41, 920167782 }
 0x1dc   :  { %v6298_v28 = vadd.s32 4294967294, %v723_v33  ;;  %vm2045_vm3 = vcmp.lt.s32.totalorder %v7653_v38, 2  ;;  %v2054_v42 = vsel %vm2046_vm1, %v2037_v34, %v2053_v49  ;;  %v2056_v15 = vsel %vm2044_vm12, %v7663_v50, %v2037_v34 }
 0x1dd   :  { %v5099_v5 = vmul.f32 %v5098_v32, %v7623_v29  ;;  %v5108_v9 = vxor.u32 2147483648, %v5091_v45  ;;  %v2055_v0 = vsel %vm2045_vm3, %v2052_v24, %v2054_v42  ;;  %v2057_v2 = vsel %vm2047_vm15, %v2043_v53, 1326507024 }
 0x1de   :  { %vm6299_vm2 = vcmp.lt.s32.totalorder %v6298_v28, 0  ;;  %v2058_v18 = vsel %vm2046_vm1, %v2040_v41, %v2057_v2  ;;  %v2085_v13 = vand.u32 65535, %v2055_v0  ;;  %v2086_v47 = vshrl.u32 %v2055_v0, 16 }
 0x1df   :  { %v5105_v7 = vxor.u32 2147483648, %v5099_v5  ;;  %v5109_v29 = vsel %vm5107_vm9, %v5108_v9, %v5099_v5  ;;  %v726_v1 = vsel %vm6299_vm2, 0, %v6298_v28  ;;  %v3572_v31 = vadd.s32 1, %v6354_v19 }
 0x1e0   :  { %v727_v55 = vsub.s32 32, %v726_v1  ;;  %v728_v39 = vshll.u32 %v7651_v37, %v726_v1  ;;  %v731_v48 = vsub.s32 4294967266, %v726_v1  ;;  %v2059_v37 = vsel %vm2045_vm3, %v2056_v15, %v2058_v18 }
 0x1e1   :  { %v5106_v21 = vsel %vm5104_vm10, %v5091_v45, %v5105_v7  ;;  %v2063_v54 = vand.u32 65535, %v2059_v37  ;;  %v2064_v4 = vshrl.u32 %v2059_v37, 16  ;;  %v2088_v40 = vmul.u32 %v2086_v47, %v7637_v20 }
 0x1e2   :  { %v5110_v30 = vsel %vm5103_vm13, %v5106_v21, %v5109_v29  ;;  %v729_v61 = vshrl.u32 %v7632_v63, %v727_v55  ;;  %v732_v22 = vadd.s32 127, %v731_v48  ;;  %v2089_v17 = vmul.u32 %v2085_v13, %v7644_v56 }
 0x1e3   :  { %v5111_v57 = vsel %vm5100_vm14, nan, %v5110_v30  ;;  %v744_v63 = vsel %vm7676_vm0, 0, %v7688_v46  ;;  %v2048_v52 = vsel %vm2044_vm12, %v2028_v11, %v7656_v26  ;;  %v2066_v44 = vmul.u32 %v2064_v4, %v7637_v20 }
 0x1e4   :  { %6227 = vst [vmem:[#allocation2 + $0xf0] sm:$0xff] %v5111_v57  ;;  %v730_v51 = vor.u32 %v729_v61, %v728_v39  ;;  %v733_v41 = vshll.u32 %v732_v22, 23  ;;  %v2067_v33 = vmul.u32 %v2063_v54, %v7644_v56  ;;  %v2049_v45 = vsel %vm2047_vm15, %v2037_v34, 2102212464 }
 0x1e5   :  { %v2087_v32 = vmul.u32 %v2085_v13, %v7637_v20  ;;  %v2091_v28 = vshll.u32 %v2088_v40, 16  ;;  %v2065_v24 = vmul.u32 %v2063_v54, %v7637_v20  ;;  %v2068_v5 = vmul.u32 %v2064_v4, %v7644_v56 }
 0x1e6   :  { %v734_v19 = vor.u32 4788187, %v733_v41  ;;  %v737_v53 = vcvt.s32.f32 %v730_v51  ;;  %v2069_v9 = vshll.u32 %v2066_v44, 16  ;;  %v2071_v49 = vshll.u32 %v2067_v33, 16 }
 0x1e7   :  { %v2090_v26 = vmul.u32 %v2086_v47, %v7644_v56  ;;  %v2093_v11 = vshll.u32 %v2089_v17, 16  ;;  %vm2095_vm4 = vc.u32 %v2087_v32, %v2091_v28  ;;  %v2097_v15 = vadd.s32 %v2091_v28, %v2087_v32 }
 0x1e8   :  { %v735_v46 = vand.u32 2147483647, %v734_v19  ;;  %vm2073_vm5 = vc.u32 %v2065_v24, %v2069_v9  ;;  %v2075_v42 = vadd.s32 %v2069_v9, %v2065_v24  ;;  %v2050_v34 = vsel %vm2046_vm1, %v7663_v50, %v2049_v45 }
 0x1e9   :  { %v2074_v29 = vsel %vm2073_vm5, 1, %v6469_v27  ;;  %v2096_v20 = vsel %vm2095_vm4, 1, %v6469_v27  ;;  %vm2099_vm7 = vc.u32 %v2097_v15, %v2093_v11  ;;  %v2070_v56 = vshrl.u32 %v2066_v44, 16 }
 0x1ea   :  { %v738_v7 = vmul.f32 %v737_v53, %v735_v46  ;;  %v2076_v1 = vadd.s32 %v2074_v29, %v2068_v5  ;;  %vm2077_vm6 = vc.u32 %v2075_v42, %v2071_v49  ;;  %v2098_v0 = vadd.s32 %v2096_v20, %v2090_v26 }
 0x1eb   :  { %v2078_v39 = vsel %vm2077_vm6, 1, %v6469_v27  ;;  %v2100_v48 = vsel %vm2099_vm7, 1, %v6469_v27  ;;  %v2092_v21 = vshrl.u32 %v2088_v40, 16  ;;  %vm3573_vm9 = vcmp.gt.s32.totalorder %v3572_v31, 0 }
 0x1ec   :  { %v739_v55 = vxor.u32 2147483648, %v738_v7  ;;  %v2080_v2 = vadd.s32 %v2078_v39, %v2076_v1  ;;  %v2102_v18 = vadd.s32 %v2100_v48, %v2098_v0  ;;  %v761_v13 = vadd.s32 3, %v744_v63 }
 0x1ed   :  { %v2072_v47 = vshrl.u32 %v2067_v33, 16  ;;  %v3574_v30 = vsel %vm3573_vm9, %v3572_v31, 0  ;;  %v2094_v37 = vshrl.u32 %v2089_v17, 16  ;;  %v2051_v4 = vsel %vm2045_vm3, %v2048_v52, %v2050_v34 }
 0x1ee   :  { %v740_v50 = vsel %vm619_vm8, %v739_v55, %v738_v7  ;;  %v2081_v22 = vadd.s32 %v2080_v2, %v2070_v56  ;;  %v2103_v57 = vadd.s32 %v2102_v18, %v2092_v21  ;;  %v3576_v51 = vand.u32 31, %v3574_v30 }
 0x1ef   :  { %v743_v61 = vsel %vm7676_vm0, %v7398_v60, %v740_v50  ;;  %v7748_v40 = vadd.s32 %v2097_v15, %v2093_v11  ;;  %v7750_v31 = vand.u32 3, %v761_v13  ;;  %v2105_v3 = vmul.u32 %v7625_v43, %v2051_v4 }
 0x1f0   :  { %v745_v54 = vmul.f32 %v743_v61, %v743_v61  ;;  %v7746_v41 = vadd.s32 %v2081_v22, %v2072_v47  ;;  %v2104_v44 = vadd.s32 %v2103_v57, %v2094_v37  ;;  %v7752_v19 = vsub.s32 32, %v3576_v51 }
 0x1f1   :  { %v7759_v38 = vshll.u32 %v3570_v35, 8  ;;  %v7761_v32 = vshrl.u32 %v3574_v30, 5  ;;  %v3579_v24 = vshll.u32 %v6463_v6, %v3576_v51  ;;  %v3582_v46 = vshll.u32 %v6464_v8, %v3576_v51 }
 0x1f2   :  { %v746_v63 = vmul.f32 -0.001358992, %v745_v54  ;;  %v753_v33 = vmul.f32 -0.00019511016, %v745_v54  ;;  %vm2107_vm8 = vc.u32 %v7746_v41, %v7748_v40  ;;  %v2108_v17 = vadd.s32 1, %v2104_v44 }
 0x1f3   :  { %v3580_v28 = vshrl.u32 %v6464_v8, %v7752_v19  ;;  %v3583_v43 = vshrl.u32 %v6465_v10, %v7752_v19  ;;  %v3586_v5 = vshrl.u32 %v6466_v12, %v7752_v19  ;;  %v3585_v26 = vshll.u32 %v6465_v10, %v3576_v51 }
 0x1f4   :  { %v747_v52 = vadd.f32 0.041655596, %v746_v63  ;;  %v754_v45 = vadd.f32 0.008332121, %v753_v33  ;;  %v2109_v53 = vsel %vm2107_vm8, %v2108_v17, %v2104_v44  ;;  %v3588_v11 = vshll.u32 %v6466_v12, %v3576_v51 }
 0x1f5   :  { %v2110_v35 = vadd.s32 %v2109_v53, %v2105_v3  ;;  %v7771_v49 = vor.u32 %v3580_v28, %v3579_v24  ;;  %v3589_v42 = vshrl.u32 %v6467_v14, %v7752_v19  ;;  %v7777_v29 = vor.u32 %v3583_v43, %v3582_v46 }
 0x1f6   :  { %v748_v9 = vmul.f32 %v747_v52, %v745_v54  ;;  %v755_v25 = vmul.f32 %v754_v45, %v745_v54  ;;  %v7779_v20 = vor.u32 %v3586_v5, %v3585_v26  ;;  %v3591_v0 = vshll.u32 %v6467_v14, %v3576_v51  ;;  %v286_v5 = vpop.f32.mrf.mxu3 }
 0x1f7   :  { %v2111_v34 = vadd.s32 536870912, %v2110_v35  ;;  %v3590_v1 = vor.u32 %v3589_v42, %v3588_v11  ;;  %v3592_v55 = vshrl.u32 %v6468_v23, %v7752_v19  ;;  %vm3597_vm11 = vcmp.lt.s32.totalorder %v7761_v32, 4 }
 0x1f8   :  { %v749_v15 = vadd.f32 -0.4999988, %v748_v9  ;;  %v756_v7 = vadd.f32 -0.16666654, %v755_v25  ;;  %vm3594_vm10 = vcmp.lt.s32.totalorder %v7761_v32, 1  ;;  %vm3596_vm13 = vcmp.lt.s32.totalorder %v7761_v32, 3 }
 0x1f9   :  { %v7784_v48 = vshrl.u32 %v2111_v34, 30  ;;  %v3593_v2 = vor.u32 %v3592_v55, %v3591_v0  ;;  %v3603_v21 = vsel %vm3597_vm11, %v3590_v1, 920167782  ;;  %v3602_v47 = vsel %vm3594_vm10, %v7771_v49, %v7777_v29 }
 0x1fa   :  { %v750_v56 = vmul.f32 %v749_v15, %v745_v54  ;;  %v757_v39 = vmul.f32 %v756_v7, %v745_v54  ;;  %vm763_vm12 = vcmp.lt.s32.totalorder %v7750_v31, 2  ;;  %vm3595_vm14 = vcmp.lt.s32.totalorder %v7761_v32, 2 }
 0x1fb   :  { %v2113_v13 = vshll.u32 %v7784_v48, 30  ;;  %v3604_v30 = vsel %vm3596_vm13, %v7779_v20, %v3603_v21  ;;  %v3607_v22 = vsel %vm3597_vm11, %v3593_v2, 1326507024  ;;  %v3606_v4 = vsel %vm3594_vm10, %v7777_v29, %v7779_v20 }
 0x1fc   :  { %v751_v18 = vadd.f32 1.0, %v750_v56  ;;  %v758_v50 = vadd.f32 1.0, %v757_v39  ;;  %vm764_vm15 = vcmp.eq.s32.totalorder %v7750_v31, 0  ;;  %vm767_vm1 = vcmp.eq.s32.totalorder %v7750_v31, 2 }
 0x1fd   :  { %v2114_v54 = vsub.s32 %v2110_v35, %v2113_v13  ;;  %v3605_v51 = vsel %vm3595_vm14, %v3602_v47, %v3604_v30  ;;  %v3608_v44 = vsel %vm3596_vm13, %v3590_v1, %v3607_v22  ;;  %v3611_v33 = vand.u32 65535, %v7759_v38 }
 0x1fe   :  { %v759_v37 = vmul.f32 %v758_v50, %v743_v61  ;;  %v768_v57 = vxor.u32 2147483648, %v751_v18  ;;  %v3609_v17 = vsel %vm3595_vm14, %v3606_v4, %v3608_v44  ;;  %v3612_v52 = vshrl.u32 %v7759_v38, 16 }
 0x1ff   :  { %vm2115_vm0 = vcmp.lt.s32.totalorder %v2114_v54, 0  ;;  %v2116_v61 = vsub.s32 0, %v2114_v54  ;;  %v3635_v45 = vand.u32 65535, %v3605_v51  ;;  %v3613_v24 = vand.u32 65535, %v3609_v17 }
 0x200   :  { %v765_v63 = vxor.u32 2147483648, %v759_v37  ;;  %v769_v3 = vsel %vm767_vm1, %v768_v57, %v759_v37  ;;  %v3614_v43 = vshrl.u32 %v3609_v17, 16  ;;  %vm760_vm2 = vweird.f32 %v7398_v60 }
 0x201   :  { %v2117_v53 = vsel %vm2115_vm0, %v2116_v61, %v2114_v54  ;;  %v3636_v35 = vshrl.u32 %v3605_v51, 16  ;;  %v3617_v11 = vmul.u32 %v3613_v24, %v3612_v52  ;;  %v2106_v42 = vadd.s32 %v7748_v40, %v7746_v41 }
 0x202   :  { %v766_v28 = vsel %vm764_vm15, %v751_v18, %v765_v63  ;;  %v2118_v25 = vclz %v2117_v53  ;;  %v3616_v26 = vmul.u32 %v3614_v43, %v3611_v33  ;;  %v7823_v7 = vadd.f32 %v7587_v59, %v286_v5 }
 0x203   :  { %v770_v9 = vsel %vm763_vm12, %v766_v28, %v769_v3  ;;  %v3578_v34 = vshrl.u32 %v6463_v6, %v7752_v19  ;;  %v3615_v60 = vmul.u32 %v3613_v24, %v3611_v33  ;;  %v3637_v31 = vmul.u32 %v3635_v45, %v3611_v33 }
 0x204   :  { %v771_v46 = vsel %vm760_vm2, nan, %v770_v9  ;;  %v6325_v15 = vadd.s32 4294967294, %v2118_v25  ;;  %v3619_v1 = vshll.u32 %v3616_v26, 16  ;;  %v3618_v0 = vmul.u32 %v3614_v43, %v3612_v52 }
 0x205   :  { %6199 = vst [vmem:[#allocation2 + $0x10] sm:$0xff] %v771_v46  ;;  %v3621_v55 = vshll.u32 %v3617_v11, 16  ;;  %v3638_v56 = vmul.u32 %v3636_v35, %v3611_v33  ;;  %v3639_v21 = vmul.u32 %v3635_v45, %v3612_v52  ;;  %vm2014_vm4 = vcmp.lt.s32.totalorder %v7590_v58, 0 }
 0x206   :  { %vm6326_vm3 = vcmp.lt.s32.totalorder %v6325_v15, 0  ;;  %vm3623_vm5 = vc.u32 %v3615_v60, %v3619_v1  ;;  %v3625_v2 = vadd.s32 %v3619_v1, %v3615_v60  ;;  %v3620_v18 = vshrl.u32 %v3616_v26, 16 }
 0x207   :  { %v2121_v39 = vsel %vm6326_vm3, 0, %v6325_v15  ;;  %v3624_v50 = vsel %vm3623_vm5, 1, %v6469_v27  ;;  %v3640_v19 = vmul.u32 %v3636_v35, %v3612_v52  ;;  %v3641_v47 = vshll.u32 %v3638_v56, 16 }
 0x208   :  { %v2122_v41 = vsub.s32 32, %v2121_v39  ;;  %v2126_v40 = vsub.s32 4294967266, %v2121_v39  ;;  %v3626_v13 = vadd.s32 %v3624_v50, %v3618_v0  ;;  %vm3627_vm6 = vc.u32 %v3625_v2, %v3621_v55 }
 0x209   :  { %v2123_v30 = vshll.u32 %v2114_v54, %v2121_v39  ;;  %v3628_v57 = vsel %vm3627_vm6, 1, %v6469_v27  ;;  %v3643_v51 = vshll.u32 %v3639_v21, 16  ;;  %vm3645_vm7 = vc.u32 %v3637_v31, %v3641_v47 }
 0x20a   :  { %v2124_v22 = vshrl.u32 %v2106_v42, %v2122_v41  ;;  %v2127_v37 = vadd.s32 127, %v2126_v40  ;;  %v3630_v4 = vadd.s32 %v3628_v57, %v3626_v13  ;;  %v3647_v44 = vadd.s32 %v3641_v47, %v3637_v31  ;;  %v202_v41 = vpop.f32.mrf.mxu0 }
 0x20b   :  { %v3599_v33 = vsel %vm3597_vm11, %v7779_v20, 2102212464  ;;  %v3646_v3 = vsel %vm3645_vm7, 1, %v6469_v27  ;;  %v2136_v17 = vsub.s32 4, %v7784_v48  ;;  %v3598_v28 = vsel %vm3594_vm10, %v3578_v34, %v7771_v49 }
 0x20c   :  { %v2125_v63 = vor.u32 %v2124_v22, %v2123_v30  ;;  %v2128_v61 = vshll.u32 %v2127_v37, 23  ;;  %v3631_v52 = vadd.s32 %v3630_v4, %v3620_v18  ;;  %v3648_v54 = vadd.s32 %v3646_v3, %v3640_v19 }
 0x20d   :  { %vm3649_vm9 = vc.u32 %v3647_v44, %v3643_v51  ;;  %v3622_v53 = vshrl.u32 %v3617_v11, 16  ;;  %v3600_v43 = vsel %vm3596_vm13, %v7777_v29, %v3599_v33  ;;  %v3642_v20 = vshrl.u32 %v3638_v56, 16 }
 0x20e   :  { %v2129_v45 = vor.u32 4788187, %v2128_v61  ;;  %v3650_v24 = vsel %vm3649_vm9, 1, %v6469_v27  ;;  %v5115_v9 = vand.u32 2139095040, %v7823_v7  ;;  %v2132_v35 = vcvt.s32.f32 %v2125_v63 }
 0x20f   :  { %v3652_v5 = vadd.s32 %v3650_v24, %v3648_v54  ;;  %v3632_v46 = vadd.s32 %v3631_v52, %v3622_v53  ;;  %v5112_v26 = vand.u32 2147483647, %v7823_v7  ;;  %v2137_v49 = vsel %vm2014_vm4, %v2136_v17, %v7784_v48 }
 0x210   :  { %v2130_v25 = vand.u32 2147483647, %v2129_v45  ;;  %v3644_v11 = vshrl.u32 %v3639_v21, 16  ;;  %v5116_v15 = vshrl.u32 %v5115_v9, 23  ;;  %v3651_v60 = vadd.s32 %v3647_v44, %v3643_v51 }
 0x211   :  { %v3653_v42 = vadd.s32 %v3652_v5, %v3642_v20  ;;  %vm2013_vm8 = vcmp.le.f32.partialorder %v2012_v62, 0.7853982  ;;  %v3601_v29 = vsel %vm3595_vm14, %v3598_v28, %v3600_v43  ;;  %v5119_v56 = vand.u32 8388607, %v5112_v26 }
 0x212   :  { %v2133_v34 = vmul.f32 %v2132_v35, %v2130_v25  ;;  %v6384_v31 = vadd.s32 4294967169, %v5116_v15  ;;  %v2139_v55 = vsel %vm2013_vm8, 0, %v2137_v49  ;;  %vm3657_vm11 = vc.u32 %v3632_v46, %v3651_v60 }
 0x213   :  { %v3654_v1 = vadd.s32 %v3653_v42, %v3644_v11  ;;  %v3655_v21 = vmul.u32 %v7759_v38, %v3601_v29  ;;  %v2156_v32 = vadd.s32 3, %v2139_v55  ;;  %v5120_v13 = vor.u32 8388608, %v5119_v56 }
 0x214   :  { %v2134_v0 = vxor.u32 2147483648, %v2133_v34  ;;  %v5122_v39 = vadd.s32 1, %v6384_v31  ;;  %v7858_v30 = vadd.f32 %v7587_v59, %v202_v41  ;;  %v7862_v38 = vadd.s32 %v3651_v60, %v3632_v46 }
 0x215   :  { %v3658_v48 = vadd.s32 1, %v3654_v1  ;;  %v7860_v4 = vand.u32 3, %v2156_v32  ;;  %v7866_v33 = vshll.u32 %v5120_v13, 8  ;;  %vm2155_vm1 = vweird.f32 %v7590_v58 }
 0x216   :  { %v2135_v2 = vsel %vm2014_vm4, %v2134_v0, %v2133_v34  ;;  %vm5123_vm10 = vcmp.gt.s32.totalorder %v5122_v39, 0  ;;  %v775_v52 = vand.u32 2139095040, %v7858_v30  ;;  %vm3564_vm5 = vcmp.lt.s32.totalorder %v7614_v36, 0 }
 0x217   :  { %v2138_v62 = vsel %vm2013_vm8, %v7590_v58, %v2135_v2  ;;  %v3659_v40 = vsel %vm3657_vm11, %v3658_v48, %v3654_v1  ;;  %v5124_v19 = vsel %vm5123_vm10, %v5122_v39, 0  ;;  %vm2162_vm13 = vcmp.eq.s32.totalorder %v7860_v4, 2 }
 0x218   :  { %v2140_v18 = vmul.f32 %v2138_v62, %v2138_v62  ;;  %v3660_v50 = vadd.s32 %v3659_v40, %v3655_v21  ;;  %v5126_v47 = vand.u32 31, %v5124_v19  ;;  %v7881_v46 = vshrl.u32 %v5124_v19, 5 }
 0x219   :  { %vm2159_vm12 = vcmp.eq.s32.totalorder %v7860_v4, 0  ;;  %v7888_v15 = vand.u32 65535, %v7866_v33  ;;  %vm2158_vm14 = vcmp.lt.s32.totalorder %v7860_v4, 2  ;;  %v5162_v21 = vshrl.u32 %v7866_v33, 16 }
 0x21a   :  { %v2141_v22 = vmul.f32 -0.001358992, %v2140_v18  ;;  %v2148_v37 = vmul.f32 -0.00019511016, %v2140_v18  ;;  %v3661_v57 = vadd.s32 536870912, %v3660_v50  ;;  %v5127_v51 = vsub.s32 32, %v5126_v47 }
 0x21b   :  { %v5129_v3 = vshll.u32 %v6463_v6, %v5126_v47  ;;  %v5132_v17 = vshll.u32 %v6464_v8, %v5126_v47  ;;  %v5135_v59 = vshll.u32 %v6465_v10, %v5126_v47  ;;  %v5138_v53 = vshll.u32 %v6466_v12, %v5126_v47 }
 0x21c   :  { %v2142_v44 = vadd.f32 0.041655596, %v2141_v22  ;;  %v2149_v63 = vadd.f32 0.008332121, %v2148_v37  ;;  %v7864_v61 = vshrl.u32 %v3661_v57, 30  ;;  %v5130_v24 = vshrl.u32 %v6464_v8, %v5127_v51 }
 0x21d   :  { %v5133_v43 = vshrl.u32 %v6465_v10, %v5127_v51  ;;  %v5136_v20 = vshrl.u32 %v6466_v12, %v5127_v51  ;;  %v5139_v5 = vshrl.u32 %v6467_v14, %v5127_v51  ;;  %v5128_v49 = vshrl.u32 %v6463_v6, %v5127_v51 }
 0x21e   :  { %v2143_v54 = vmul.f32 %v2142_v44, %v2140_v18  ;;  %v2150_v45 = vmul.f32 %v2149_v63, %v2140_v18  ;;  %v3663_v28 = vshll.u32 %v7864_v61, 30  ;;  %v5141_v11 = vshll.u32 %v6467_v14, %v5126_v47 }
 0x21f   :  { %v5142_v42 = vshrl.u32 %v6468_v23, %v5127_v51  ;;  %v5131_v1 = vor.u32 %v5130_v24, %v5129_v3  ;;  %v5134_v31 = vor.u32 %v5133_v43, %v5132_v17  ;;  %v5137_v0 = vor.u32 %v5136_v20, %v5135_v59 }
 0x220   :  { %v2144_v9 = vadd.f32 -0.4999988, %v2143_v54  ;;  %v2151_v25 = vadd.f32 -0.16666654, %v2150_v45  ;;  %v7879_v35 = vsub.s32 %v3660_v50, %v3663_v28  ;;  %v5140_v55 = vor.u32 %v5139_v5, %v5138_v53 }
 0x221   :  { %vm5144_vm0 = vcmp.lt.s32.totalorder %v7881_v46, 1  ;;  %vm5147_vm2 = vcmp.lt.s32.totalorder %v7881_v46, 4  ;;  %v776_v41 = vshrl.u32 %v775_v52, 23  ;;  %vm5146_vm3 = vcmp.lt.s32.totalorder %v7881_v46, 3 }
 0x222   :  { %v2145_v34 = vmul.f32 %v2144_v9, %v2140_v18  ;;  %v2152_v60 = vmul.f32 %v2151_v25, %v2140_v18  ;;  %vm3665_vm15 = vcmp.lt.s32.totalorder %v7879_v35, 0  ;;  %v3666_v29 = vsub.s32 0, %v7879_v35 }
 0x223   :  { %v5143_v18 = vor.u32 %v5142_v42, %v5141_v11  ;;  %v3686_v13 = vsub.s32 4, %v7864_v61  ;;  %vm5145_vm4 = vcmp.lt.s32.totalorder %v7881_v46, 2  ;;  %v5152_v19 = vsel %vm5144_vm0, %v5131_v1, %v5134_v31 }
 0x224   :  { %v2146_v56 = vadd.f32 1.0, %v2145_v34  ;;  %v2153_v48 = vadd.f32 1.0, %v2152_v60  ;;  %v3667_v39 = vsel %vm3665_vm15, %v3666_v29, %v7879_v35  ;;  %v5148_v22 = vsel %vm5144_vm0, %v5128_v49, %v5131_v1 }
 0x225   :  { %v3668_v2 = vclz %v3667_v39  ;;  %v5153_v37 = vsel %vm5147_vm2, %v5140_v55, 920167782  ;;  %v5156_v44 = vsel %vm5144_vm0, %v5134_v31, %v5137_v0  ;;  %v5157_v59 = vsel %vm5147_vm2, %v5143_v18, 1326507024 }
 0x226   :  { %v2154_v32 = vmul.f32 %v2153_v48, %v2138_v62  ;;  %v2163_v40 = vxor.u32 2147483648, %v2146_v56  ;;  %v5149_v62 = vsel %vm5147_vm2, %v5137_v0, 2102212464  ;;  %v5154_v51 = vsel %vm5146_vm3, %v5137_v0, %v5153_v37 }
 0x227   :  { %v6355_v50 = vadd.s32 4294967294, %v3668_v2  ;;  %v5155_v17 = vsel %vm5145_vm4, %v5152_v19, %v5154_v51  ;;  %v5150_v28 = vsel %vm5146_vm3, %v5134_v31, %v5149_v62  ;;  %v5158_v24 = vsel %vm5146_vm3, %v5140_v55, %v5157_v59 }
 0x228   :  { %v2160_v47 = vxor.u32 2147483648, %v2154_v32  ;;  %v2164_v57 = vsel %vm2162_vm13, %v2163_v40, %v2154_v32  ;;  %v5185_v43 = vand.u32 65535, %v5155_v17  ;;  %v5186_v20 = vshrl.u32 %v5155_v17, 16 }
 0x229   :  { %vm6356_vm6 = vcmp.lt.s32.totalorder %v6355_v50, 0  ;;  %v5159_v25 = vsel %vm5145_vm4, %v5156_v44, %v5158_v24  ;;  %v772_v58 = vand.u32 2147483647, %v7858_v30  ;;  %v6300_v1 = vadd.s32 4294967169, %v776_v41 }
 0x22a   :  { %v2161_v63 = vsel %vm2159_vm12, %v2146_v56, %v2160_v47  ;;  %v3671_v3 = vsel %vm6356_vm6, 0, %v6355_v50  ;;  %v5163_v49 = vand.u32 65535, %v5159_v25  ;;  %v5164_v11 = vshrl.u32 %v5159_v25, 16 }
 0x22b   :  { %v2165_v52 = vsel %vm2158_vm14, %v2161_v63, %v2164_v57  ;;  %v3672_v54 = vsub.s32 32, %v3671_v3  ;;  %v3676_v45 = vsub.s32 4294967266, %v3671_v3  ;;  %v3673_v5 = vshll.u32 %v7879_v35, %v3671_v3 }
 0x22c   :  { %v2166_v53 = vsel %vm2155_vm1, nan, %v2165_v52  ;;  %v5188_v42 = vmul.u32 %v5186_v20, %v7888_v15  ;;  %v5189_v29 = vmul.u32 %v5185_v43, %v5162_v21  ;;  %v7939_v35 = vsel %vm3564_vm5, %v3686_v13, %v7864_v61 }
 0x22d   :  { %6208 = vst [vmem:[#allocation2 + $0x58] sm:$0xff] %v2166_v53  ;;  %v3674_v9 = vshrl.u32 %v7862_v38, %v3672_v54  ;;  %v3677_v4 = vadd.s32 127, %v3676_v45  ;;  %v7943_v38 = vsel %vm5145_vm4, %v5148_v22, %v5150_v28  ;;  %v5166_v31 = vmul.u32 %v5164_v11, %v7888_v15 }
 0x22e   :  { %v5167_v0 = vmul.u32 %v5163_v49, %v5162_v21  ;;  %vm7948_vm7 = vcmp.le.f32.partialorder %v3562_v16, 0.7853982  ;;  %v5187_v48 = vmul.u32 %v5185_v43, %v7888_v15  ;;  %v5190_v39 = vmul.u32 %v5186_v20, %v5162_v21 }
 0x22f   :  { %v3675_v34 = vor.u32 %v3674_v9, %v3673_v5  ;;  %v3678_v60 = vshll.u32 %v3677_v4, 23  ;;  %v5191_v2 = vshll.u32 %v5188_v42, 16  ;;  %v5165_v41 = vmul.u32 %v5163_v49, %v7888_v15 }
 0x230   :  { %v5168_v46 = vmul.u32 %v5164_v11, %v5162_v21  ;;  %v5169_v32 = vshll.u32 %v5166_v31, 16  ;;  %v5171_v18 = vshll.u32 %v5167_v0, 16  ;;  %v5193_v50 = vshll.u32 %v5189_v29, 16 }
 0x231   :  { %v3679_v56 = vor.u32 4788187, %v3678_v60  ;;  %v3682_v61 = vcvt.s32.f32 %v3675_v34  ;;  %vm5195_vm9 = vc.u32 %v5187_v48, %v5191_v2  ;;  %v5197_v19 = vadd.s32 %v5191_v2, %v5187_v48 }
 0x232   :  { %vm5173_vm8 = vc.u32 %v5165_v41, %v5169_v32  ;;  %v5175_v13 = vadd.s32 %v5169_v32, %v5165_v41  ;;  %v5196_v16 = vsel %vm5195_vm9, 1, %v6469_v27  ;;  %v782_v37 = vadd.s32 1, %v6300_v1 }
 0x233   :  { %v3680_v40 = vand.u32 2147483647, %v3679_v56  ;;  %v5174_v22 = vsel %vm5173_vm8, 1, %v6469_v27  ;;  %v5198_v62 = vadd.s32 %v5196_v16, %v5190_v39  ;;  %v5192_v51 = vshrl.u32 %v5188_v42, 16 }
 0x234   :  { %v5176_v57 = vadd.s32 %v5174_v22, %v5168_v46  ;;  %vm5177_vm11 = vc.u32 %v5175_v13, %v5171_v18  ;;  %vm5199_vm10 = vc.u32 %v5197_v19, %v5193_v50  ;;  %vm783_vm13 = vcmp.gt.s32.totalorder %v782_v37, 0 }
 0x235   :  { %v3683_v47 = vmul.f32 %v3682_v61, %v3680_v40  ;;  %v5178_v21 = vsel %vm5177_vm11, 1, %v6469_v27  ;;  %v5200_v44 = vsel %vm5199_vm10, 1, %v6469_v27  ;;  %v5170_v63 = vshrl.u32 %v5166_v31, 16 }
 0x236   :  { %v5180_v3 = vadd.s32 %v5178_v21, %v5176_v57  ;;  %v5202_v17 = vadd.s32 %v5200_v44, %v5198_v62  ;;  %v784_v59 = vsel %vm783_vm13, %v782_v37, 0  ;;  %v5172_v54 = vshrl.u32 %v5167_v0, 16 }
 0x237   :  { %v3684_v15 = vxor.u32 2147483648, %v3683_v47  ;;  %v779_v45 = vand.u32 8388607, %v772_v58  ;;  %v786_v28 = vand.u32 31, %v784_v59  ;;  %v5194_v43 = vshrl.u32 %v5189_v29, 16 }
 0x238   :  { %v5181_v24 = vadd.s32 %v5180_v3, %v5170_v63  ;;  %v5203_v20 = vadd.s32 %v5202_v17, %v5192_v51  ;;  %v3689_v5 = vsel %vm7948_vm7, 0, %v7939_v35  ;;  %v5205_v4 = vmul.u32 %v7866_v33, %v7943_v38 }
 0x239   :  { %v3685_v52 = vsel %vm3564_vm5, %v3684_v15, %v3683_v47  ;;  %v7970_v25 = vsub.s32 32, %v786_v28  ;;  %v7974_v11 = vadd.s32 %v5197_v19, %v5193_v50  ;;  %v7976_v34 = vshrl.u32 %v784_v59, 5 }
 0x23a   :  { %v3688_v53 = vsel %vm7948_vm7, %v7614_v36, %v3685_v52  ;;  %v7972_v49 = vadd.s32 %v5181_v24, %v5172_v54  ;;  %v5204_v42 = vadd.s32 %v5203_v20, %v5194_v43  ;;  %v789_v1 = vshll.u32 %v6463_v6, %v786_v28 }
 0x23b   :  { %v3690_v9 = vmul.f32 %v3688_v53, %v3688_v53  ;;  %v792_v31 = vshll.u32 %v6464_v8, %v786_v28  ;;  %v793_v33 = vshrl.u32 %v6465_v10, %v7970_v25  ;;  %v798_v38 = vshll.u32 %v6466_v12, %v786_v28 }
 0x23c   :  { %vm5207_vm12 = vc.u32 %v7972_v49, %v7974_v11  ;;  %v5208_v35 = vadd.s32 1, %v5204_v42  ;;  %v795_v56 = vshll.u32 %v6465_v10, %v786_v28  ;;  %v796_v48 = vshrl.u32 %v6466_v12, %v7970_v25 }
 0x23d   :  { %v3691_v60 = vmul.f32 -0.001358992, %v3690_v9  ;;  %v3698_v29 = vmul.f32 -0.00019511016, %v3690_v9  ;;  %v790_v2 = vshrl.u32 %v6464_v8, %v7970_v25  ;;  %v799_v61 = vshrl.u32 %v6467_v14, %v7970_v25 }
 0x23e   :  { %v5209_v39 = vsel %vm5207_vm12, %v5208_v35, %v5204_v42  ;;  %v801_v41 = vshll.u32 %v6467_v14, %v786_v28  ;;  %v780_v18 = vor.u32 8388608, %v779_v45  ;;  %v3706_v50 = vadd.s32 3, %v3689_v5 }
 0x23f   :  { %v3692_v0 = vadd.f32 0.041655596, %v3691_v60  ;;  %v3699_v55 = vadd.f32 0.008332121, %v3698_v29  ;;  %v5210_v40 = vadd.s32 %v5209_v39, %v5205_v4  ;;  %v7993_v13 = vor.u32 %v793_v33, %v792_v31 }
 0x240   :  { %v800_v16 = vor.u32 %v799_v61, %v798_v38  ;;  %v802_v19 = vshrl.u32 %v6468_v23, %v7970_v25  ;;  %v797_v37 = vor.u32 %v796_v48, %v795_v56  ;;  %v7997_v57 = vor.u32 %v790_v2, %v789_v1  ;;  %v229_v61 = vpop.f32.mrf.mxu1 }
 0x241   :  { %v3693_v46 = vmul.f32 %v3692_v0, %v3690_v9  ;;  %v3700_v32 = vmul.f32 %v3699_v55, %v3690_v9  ;;  %v5211_v62 = vadd.s32 536870912, %v5210_v40  ;;  %vm804_vm14 = vcmp.lt.s32.totalorder %v7976_v34, 1 }
 0x242   :  { %v803_v51 = vor.u32 %v802_v19, %v801_v41  ;;  %vm807_vm15 = vcmp.lt.s32.totalorder %v7976_v34, 4  ;;  %vm806_vm1 = vcmp.lt.s32.totalorder %v7976_v34, 3  ;;  %vm805_vm0 = vcmp.lt.s32.totalorder %v7976_v34, 2 }
 0x243   :  { %v3694_v47 = vadd.f32 -0.4999988, %v3693_v46  ;;  %v3701_v22 = vadd.f32 -0.16666654, %v3700_v32  ;;  %v8001_v44 = vshrl.u32 %v5211_v62, 30  ;;  %v8009_v17 = vshll.u32 %v780_v18, 8 }
 0x244   :  { %v813_v63 = vsel %vm807_vm15, %v800_v16, 920167782  ;;  %v817_v3 = vsel %vm807_vm15, %v803_v51, 1326507024  ;;  %v816_v45 = vsel %vm804_vm14, %v7993_v13, %v797_v37  ;;  %v3707_v28 = vand.u32 3, %v3706_v50 }
 0x245   :  { %v3695_v15 = vmul.f32 %v3694_v47, %v3690_v9  ;;  %v3702_v21 = vmul.f32 %v3701_v22, %v3690_v9  ;;  %v5213_v54 = vshll.u32 %v8001_v44, 30  ;;  %v812_v24 = vsel %vm804_vm14, %v7997_v57, %v7993_v13 }
 0x246   :  { %v814_v43 = vsel %vm806_vm1, %v797_v37, %v813_v63  ;;  %v818_v20 = vsel %vm806_vm1, %v800_v16, %v817_v3  ;;  %vm3705_vm2 = vweird.f32 %v7614_v36  ;;  %v821_v60 = vand.u32 65535, %v8009_v17  ;;  %v8041_v36 = vld [vmem:[%s10726_s2] ss:$0 sm:$0xff] }
 0x247   :  { %v3696_v59 = vadd.f32 1.0, %v3695_v15  ;;  %v3703_v52 = vadd.f32 1.0, %v3702_v21  ;;  %v5214_v4 = vsub.s32 %v5210_v40, %v5213_v54  ;;  %v819_v42 = vsel %vm805_vm0, %v816_v45, %v818_v20 }
 0x248   :  { %v822_v29 = vshrl.u32 %v8009_v17, 16  ;;  %v815_v35 = vsel %vm805_vm0, %v812_v24, %v814_v43  ;;  %vm3709_vm5 = vcmp.eq.s32.totalorder %v3707_v28, 0  ;;  %vm3712_vm4 = vcmp.eq.s32.totalorder %v3707_v28, 2 }
 0x249   :  { %v3704_v5 = vmul.f32 %v3703_v52, %v3688_v53  ;;  %v3713_v9 = vxor.u32 2147483648, %v3696_v59  ;;  %vm5215_vm3 = vcmp.lt.s32.totalorder %v5214_v4, 0  ;;  %v5216_v31 = vsub.s32 0, %v5214_v4 }
 0x24a   :  { %v823_v53 = vand.u32 65535, %v819_v42  ;;  %v824_v33 = vshrl.u32 %v819_v42, 16  ;;  %vm3708_vm6 = vcmp.lt.s32.totalorder %v3707_v28, 2  ;;  %v845_v39 = vand.u32 65535, %v815_v35 }
 0x24b   :  { %v3710_v1 = vxor.u32 2147483648, %v3704_v5  ;;  %v3714_v0 = vsel %vm3712_vm4, %v3713_v9, %v3704_v5  ;;  %v5217_v55 = vsel %vm5215_vm3, %v5216_v31, %v5214_v4  ;;  %v846_v2 = vshrl.u32 %v815_v35, 16 }
 0x24c   :  { %v5218_v48 = vclz %v5217_v55  ;;  %v825_v46 = vmul.u32 %v823_v53, %v821_v60  ;;  %v826_v32 = vmul.u32 %v824_v33, %v821_v60  ;;  %v827_v40 = vmul.u32 %v823_v53, %v822_v29 }
 0x24d   :  { %v3711_v38 = vsel %vm3709_vm5, %v3696_v59, %v3710_v1  ;;  %v5206_v18 = vadd.s32 %v7974_v11, %v7972_v49  ;;  %v788_v16 = vshrl.u32 %v6463_v6, %v7970_v25  ;;  %v809_v19 = vsel %vm807_vm15, %v797_v37, 2102212464 }
 0x24e   :  { %v3715_v56 = vsel %vm3708_vm6, %v3711_v38, %v3714_v0  ;;  %v6385_v50 = vadd.s32 4294967294, %v5218_v48  ;;  %v829_v47 = vshll.u32 %v826_v32, 16  ;;  %v831_v22 = vshll.u32 %v827_v40, 16 }
 0x24f   :  { %v3716_v41 = vsel %vm3705_vm2, nan, %v3715_v56  ;;  %v8044_v62 = vadd.f32 %v8041_v36, %v229_v61  ;;  %v828_v51 = vmul.u32 %v824_v33, %v822_v29  ;;  %v848_v49 = vmul.u32 %v846_v2, %v821_v60 }
 0x250   :  { %6218 = vst [vmem:[#allocation2 + $0xa8] sm:$0xff] %v3716_v41  ;;  %vm6386_vm7 = vcmp.lt.s32.totalorder %v6385_v50, 0  ;;  %v849_v11 = vmul.u32 %v845_v39, %v822_v29  ;;  %vm5114_vm9 = vcmp.lt.s32.totalorder %v7823_v7, 0  ;;  %vm833_vm8 = vc.u32 %v825_v46, %v829_v47 }
 0x251   :  { %v5221_v25 = vsel %vm6386_vm7, 0, %v6385_v50  ;;  %v835_v15 = vadd.s32 %v829_v47, %v825_v46  ;;  %v847_v37 = vmul.u32 %v845_v39, %v821_v60  ;;  %v830_v3 = vshrl.u32 %v826_v32, 16 }
 0x252   :  { %v5222_v21 = vsub.s32 32, %v5221_v25  ;;  %v5226_v63 = vsub.s32 4294967266, %v5221_v25  ;;  %v834_v59 = vsel %vm833_vm8, 1, %v6469_v27  ;;  %v5223_v52 = vshll.u32 %v5214_v4, %v5221_v25 }
 0x253   :  { %v836_v54 = vadd.s32 %v834_v59, %v828_v51  ;;  %vm837_vm11 = vc.u32 %v835_v15, %v831_v22  ;;  %v851_v45 = vshll.u32 %v848_v49, 16  ;;  %v853_v20 = vshll.u32 %v849_v11, 16 }
 0x254   :  { %v5224_v28 = vshrl.u32 %v5206_v18, %v5222_v21  ;;  %v5227_v24 = vadd.s32 127, %v5226_v63  ;;  %v838_v43 = vsel %vm837_vm11, 1, %v6469_v27  ;;  %v850_v9 = vmul.u32 %v846_v2, %v822_v29 }
 0x255   :  { %v840_v5 = vadd.s32 %v838_v43, %v836_v54  ;;  %vm855_vm10 = vc.u32 %v847_v37, %v851_v45  ;;  %v857_v42 = vadd.s32 %v851_v45, %v847_v37  ;;  %v5236_v31 = vsub.s32 4, %v8001_v44 }
 0x256   :  { %v5225_v1 = vor.u32 %v5224_v28, %v5223_v52  ;;  %v5228_v60 = vshll.u32 %v5227_v24, 23  ;;  %v856_v35 = vsel %vm855_vm10, 1, %v6469_v27  ;;  %v2167_v33 = vand.u32 2147483647, %v8044_v62 }
 0x257   :  { %v841_v53 = vadd.s32 %v840_v5, %v830_v3  ;;  %v858_v4 = vadd.s32 %v856_v35, %v850_v9  ;;  %vm859_vm13 = vc.u32 %v857_v42, %v853_v20  ;;  %v808_v0 = vsel %vm804_vm14, %v788_v16, %v7997_v57 }
 0x258   :  { %v5229_v38 = vor.u32 4788187, %v5228_v60  ;;  %v832_v55 = vshrl.u32 %v827_v40, 16  ;;  %v860_v29 = vsel %vm859_vm13, 1, %v6469_v27  ;;  %v810_v56 = vsel %vm806_vm1, %v7993_v13, %v809_v19  ;;  %v259_v13 = vpop.f32.mrf.mxu2 }
 0x259   :  { %v852_v48 = vshrl.u32 %v848_v49, 16  ;;  %v862_v39 = vadd.s32 %v860_v29, %v858_v4  ;;  %v2170_v2 = vand.u32 2139095040, %v8044_v62  ;;  %v5232_v41 = vcvt.s32.f32 %v5225_v1 }
 0x25a   :  { %v5230_v61 = vand.u32 2147483647, %v5229_v38  ;;  %v5237_v46 = vsel %vm5114_vm9, %v5236_v31, %v8001_v44  ;;  %v842_v32 = vadd.s32 %v841_v53, %v832_v55  ;;  %v854_v18 = vshrl.u32 %v849_v11, 16 }
 0x25b   :  { %v863_v57 = vadd.s32 %v862_v39, %v852_v48  ;;  %v2171_v40 = vshrl.u32 %v2170_v2, 23  ;;  %v2174_v50 = vand.u32 8388607, %v2167_v33  ;;  %v861_v47 = vadd.s32 %v857_v42, %v853_v20 }
 0x25c   :  { %v5233_v16 = vmul.f32 %v5232_v41, %v5230_v61  ;;  %vm5113_vm12 = vcmp.le.f32.partialorder %v5112_v26, 0.7853982  ;;  %v811_v19 = vsel %vm805_vm0, %v808_v0, %v810_v56  ;;  %v8070_v37 = vadd.f32 %v8041_v36, %v259_v13 }
 0x25d   :  { %v864_v22 = vadd.s32 %v863_v57, %v854_v18  ;;  %v6327_v51 = vadd.s32 4294967169, %v2171_v40  ;;  %v5239_v44 = vsel %vm5113_vm12, 0, %v5237_v46  ;;  %vm867_vm14 = vc.u32 %v842_v32, %v861_v47 }
 0x25e   :  { %v5234_v49 = vxor.u32 2147483648, %v5233_v16  ;;  %v2175_v25 = vor.u32 8388608, %v2174_v50  ;;  %v865_v63 = vmul.u32 %v8009_v17, %v811_v19  ;;  %v5256_v34 = vadd.s32 3, %v5239_v44 }
 0x25f   :  { %v868_v11 = vadd.s32 1, %v864_v22  ;;  %v2177_v15 = vadd.s32 1, %v6327_v51  ;;  %v3720_v24 = vand.u32 2139095040, %v8070_v37  ;;  %v8081_v60 = vadd.s32 %v861_v47, %v842_v32 }
 0x260   :  { %v5235_v21 = vsel %vm5114_vm9, %v5234_v49, %v5233_v16  ;;  %v8076_v28 = vshll.u32 %v2175_v25, 8  ;;  %v8079_v9 = vand.u32 3, %v5256_v34  ;;  %v3717_v4 = vand.u32 2147483647, %v8070_v37 }
 0x261   :  { %v5238_v26 = vsel %vm5113_vm12, %v7823_v7, %v5235_v21  ;;  %v869_v3 = vsel %vm867_vm14, %v868_v11, %v864_v22  ;;  %vm2178_vm15 = vcmp.gt.s32.totalorder %v2177_v15, 0  ;;  %v3721_v38 = vshrl.u32 %v3720_v24, 23 }
 0x262   :  { %v5240_v59 = vmul.f32 %v5238_v26, %v5238_v26  ;;  %v870_v52 = vadd.s32 %v869_v3, %v865_v63  ;;  %v2179_v54 = vsel %vm2178_vm15, %v2177_v15, 0  ;;  %v8085_v53 = vand.u32 65535, %v8076_v28 }
 0x263   :  { %v2181_v45 = vand.u32 31, %v2179_v54  ;;  %vm774_vm1 = vcmp.lt.s32.totalorder %v7858_v30, 0  ;;  %vm5262_vm0 = vcmp.eq.s32.totalorder %v8079_v9, 2  ;;  %v8097_v18 = vshrl.u32 %v2179_v54, 5 }
 0x264   :  { %v5241_v43 = vmul.f32 -0.001358992, %v5240_v59  ;;  %v5248_v20 = vmul.f32 -0.00019511016, %v5240_v59  ;;  %v871_v5 = vadd.s32 536870912, %v870_v52  ;;  %vm5259_vm2 = vcmp.eq.s32.totalorder %v8079_v9, 0 }
 0x265   :  { %v2182_v42 = vsub.s32 32, %v2181_v45  ;;  %v2184_v35 = vshll.u32 %v6463_v6, %v2181_v45  ;;  %v2187_v56 = vshll.u32 %v6464_v8, %v2181_v45  ;;  %v2193_v2 = vshll.u32 %v6466_v12, %v2181_v45 }
 0x266   :  { %v5242_v17 = vadd.f32 0.041655596, %v5241_v43  ;;  %v5249_v1 = vadd.f32 0.008332121, %v5248_v20  ;;  %v872_v31 = vshrl.u32 %v871_v5, 30  ;;  %v2190_v57 = vshll.u32 %v6465_v10, %v2181_v45 }
 0x267   :  { %v2185_v48 = vshrl.u32 %v6464_v8, %v2182_v42  ;;  %v2188_v39 = vshrl.u32 %v6465_v10, %v2182_v42  ;;  %v2194_v61 = vshrl.u32 %v6467_v14, %v2182_v42  ;;  %v2191_v40 = vshrl.u32 %v6466_v12, %v2182_v42 }
 0x268   :  { %v5243_v0 = vmul.f32 %v5242_v17, %v5240_v59  ;;  %v5250_v55 = vmul.f32 %v5249_v1, %v5240_v59  ;;  %v873_v29 = vshll.u32 %v872_v31, 30  ;;  %v2196_v50 = vshll.u32 %v6467_v14, %v2181_v45 }
 0x269   :  { %v2197_v16 = vshrl.u32 %v6468_v23, %v2182_v42  ;;  %vm5258_vm3 = vcmp.lt.s32.totalorder %v8079_v9, 2  ;;  %vm5255_vm4 = vweird.f32 %v7823_v7  ;;  %v896_v22 = vsub.s32 4, %v872_v31 }
 0x26a   :  { %v5244_v41 = vadd.f32 -0.4999988, %v5243_v0  ;;  %v5251_v46 = vadd.f32 -0.16666654, %v5250_v55  ;;  %v8095_v32 = vsub.s32 %v870_v52, %v873_v29  ;;  %v2186_v51 = vor.u32 %v2185_v48, %v2184_v35 }
 0x26b   :  { %v2189_v49 = vor.u32 %v2188_v39, %v2187_v56  ;;  %v2195_v44 = vor.u32 %v2194_v61, %v2193_v2  ;;  %vm2199_vm6 = vcmp.lt.s32.totalorder %v8097_v18, 1  ;;  %v2192_v63 = vor.u32 %v2191_v40, %v2190_v57 }
 0x26c   :  { %v5245_v47 = vmul.f32 %v5244_v41, %v5240_v59  ;;  %v5252_v13 = vmul.f32 %v5251_v46, %v5240_v59  ;;  %vm875_vm5 = vcmp.lt.s32.totalorder %v8095_v32, 0  ;;  %v876_v19 = vsub.s32 0, %v8095_v32 }
 0x26d   :  { %vm2202_vm7 = vcmp.lt.s32.totalorder %v8097_v18, 4  ;;  %v2217_v34 = vshrl.u32 %v8076_v28, 16  ;;  %vm8114_vm9 = vcmp.le.f32.partialorder %v772_v58, 0.7853982  ;;  %v2198_v54 = vor.u32 %v2197_v16, %v2196_v50 }
 0x26e   :  { %v5246_v11 = vadd.f32 1.0, %v5245_v47  ;;  %v5253_v25 = vadd.f32 1.0, %v5252_v13  ;;  %v877_v15 = vsel %vm875_vm5, %v876_v19, %v8095_v32  ;;  %vm2201_vm8 = vcmp.lt.s32.totalorder %v8097_v18, 3 }
 0x26f   :  { %v878_v21 = vclz %v877_v15  ;;  %v2183_v24 = vshrl.u32 %v6463_v6, %v2182_v42  ;;  %v2207_v43 = vsel %vm2199_vm6, %v2186_v51, %v2189_v49  ;;  %v6357_v20 = vadd.s32 4294967169, %v3721_v38 }
 0x270   :  { %v5254_v3 = vmul.f32 %v5253_v25, %v5238_v26  ;;  %v5263_v59 = vxor.u32 2147483648, %v5246_v11  ;;  %v8124_v26 = vsel %vm774_vm1, %v896_v22, %v872_v31  ;;  %vm2200_vm11 = vcmp.lt.s32.totalorder %v8097_v18, 2 }
 0x271   :  { %v6301_v45 = vadd.s32 4294967294, %v878_v21  ;;  %v2208_v58 = vsel %vm2202_vm7, %v2195_v44, 920167782  ;;  %v2211_v1 = vsel %vm2199_vm6, %v2189_v49, %v2192_v63  ;;  %v2212_v0 = vsel %vm2202_vm7, %v2198_v54, 1326507024 }
 0x272   :  { %v5260_v5 = vxor.u32 2147483648, %v5254_v3  ;;  %v5264_v17 = vsel %vm5262_vm0, %v5263_v59, %v5254_v3  ;;  %v2209_v42 = vsel %vm2201_vm8, %v2192_v63, %v2208_v58  ;;  %v2204_v48 = vsel %vm2202_vm7, %v2192_v63, 2102212464 }
 0x273   :  { %vm6302_vm10 = vcmp.lt.s32.totalorder %v6301_v45, 0  ;;  %v2210_v38 = vsel %vm2200_vm11, %v2207_v43, %v2209_v42  ;;  %v2213_v2 = vsel %vm2201_vm8, %v2195_v44, %v2212_v0  ;;  %v3727_v7 = vadd.s32 1, %v6357_v20 }
 0x274   :  { %v5261_v35 = vsel %vm5259_vm2, %v5246_v11, %v5260_v5  ;;  %v881_v31 = vsel %vm6302_vm10, 0, %v6301_v45  ;;  %v2240_v61 = vand.u32 65535, %v2210_v38  ;;  %v2241_v41 = vshrl.u32 %v2210_v38, 16 }
 0x275   :  { %v5265_v55 = vsel %vm5258_vm3, %v5261_v35, %v5264_v17  ;;  %v882_v29 = vsub.s32 32, %v881_v31  ;;  %v886_v56 = vsub.s32 4294967266, %v881_v31  ;;  %v883_v46 = vshll.u32 %v8095_v32, %v881_v31 }
 0x276   :  { %v5266_v39 = vsel %vm5255_vm4, nan, %v5265_v55  ;;  %v2214_v40 = vsel %vm2200_vm11, %v2211_v1, %v2213_v2  ;;  %v2243_v47 = vmul.u32 %v2241_v41, %v8085_v53  ;;  %v899_v22 = vsel %vm8114_vm9, 0, %v8124_v26 }
 0x277   :  { %6228 = vst [vmem:[#allocation2 + $0xf8] sm:$0xff] %v5266_v39  ;;  %v884_v57 = vshrl.u32 %v8081_v60, %v882_v29  ;;  %v887_v9 = vadd.s32 127, %v886_v56  ;;  %v2218_v50 = vand.u32 65535, %v2214_v40  ;;  %v2219_v16 = vshrl.u32 %v2214_v40, 16 }
 0x278   :  { %v2244_v44 = vmul.u32 %v2240_v61, %v2217_v34  ;;  %v2203_v32 = vsel %vm2199_vm6, %v2183_v24, %v2186_v51  ;;  %v2205_v60 = vsel %vm2201_vm8, %v2189_v49, %v2204_v48  ;;  %v2242_v21 = vmul.u32 %v2240_v61, %v8085_v53 }
 0x279   :  { %v885_v13 = vor.u32 %v884_v57, %v883_v46  ;;  %v888_v19 = vshll.u32 %v887_v9, 23  ;;  %v2221_v11 = vmul.u32 %v2219_v16, %v8085_v53  ;;  %v2222_v25 = vmul.u32 %v2218_v50, %v2217_v34 }
 0x27a   :  { %v2245_v63 = vmul.u32 %v2241_v41, %v2217_v34  ;;  %v2246_v3 = vshll.u32 %v2243_v47, 16  ;;  %v2220_v54 = vmul.u32 %v2218_v50, %v8085_v53  ;;  %v2223_v45 = vmul.u32 %v2219_v16, %v2217_v34 }
 0x27b   :  { %v889_v15 = vor.u32 4788187, %v888_v19  ;;  %v892_v59 = vcvt.s32.f32 %v885_v13  ;;  %v2224_v43 = vshll.u32 %v2221_v11, 16  ;;  %v2226_v5 = vshll.u32 %v2222_v25, 16 }
 0x27c   :  { %v2248_v26 = vshll.u32 %v2244_v44, 16  ;;  %vm2250_vm13 = vc.u32 %v2242_v21, %v2246_v3  ;;  %v2252_v24 = vadd.s32 %v2246_v3, %v2242_v21  ;;  %vm3728_vm14 = vcmp.gt.s32.totalorder %v3727_v7, 0 }
 0x27d   :  { %v890_v20 = vand.u32 2147483647, %v889_v15  ;;  %vm2228_vm12 = vc.u32 %v2220_v54, %v2224_v43  ;;  %v2230_v51 = vadd.s32 %v2224_v43, %v2220_v54  ;;  %v2251_v49 = vsel %vm2250_vm13, 1, %v6469_v27 }
 0x27e   :  { %v2229_v17 = vsel %vm2228_vm12, 1, %v6469_v27  ;;  %v2253_v42 = vadd.s32 %v2251_v49, %v2245_v63  ;;  %v2247_v35 = vshrl.u32 %v2243_v47, 16  ;;  %vm2254_vm0 = vc.u32 %v2252_v24, %v2248_v26 }
 0x27f   :  { %v893_v58 = vmul.f32 %v892_v59, %v890_v20  ;;  %v2231_v1 = vadd.s32 %v2229_v17, %v2223_v45  ;;  %vm2232_vm15 = vc.u32 %v2230_v51, %v2226_v5  ;;  %v2255_v31 = vsel %vm2254_vm0, 1, %v6469_v27 }
 0x280   :  { %v2233_v34 = vsel %vm2232_vm15, 1, %v6469_v27  ;;  %v3729_v38 = vsel %vm3728_vm14, %v3727_v7, 0  ;;  %v2225_v0 = vshrl.u32 %v2221_v11, 16  ;;  %v2257_v29 = vadd.s32 %v2255_v31, %v2253_v42 }
 0x281   :  { %v894_v53 = vxor.u32 2147483648, %v893_v58  ;;  %v2235_v55 = vadd.s32 %v2233_v34, %v2231_v1  ;;  %v3731_v56 = vand.u32 31, %v3729_v38  ;;  %v2206_v39 = vsel %vm2200_vm11, %v2203_v32, %v2205_v60 }
 0x282   :  { %v2227_v2 = vshrl.u32 %v2222_v25, 16  ;;  %v2249_v61 = vshrl.u32 %v2244_v44, 16  ;;  %v2258_v57 = vadd.s32 %v2257_v29, %v2247_v35  ;;  %v916_v50 = vadd.s32 3, %v899_v22 }
 0x283   :  { %v895_v48 = vsel %vm774_vm1, %v894_v53, %v893_v58  ;;  %v2236_v46 = vadd.s32 %v2235_v55, %v2225_v0  ;;  %v8175_v9 = vsub.s32 32, %v3731_v56  ;;  %v3724_v16 = vand.u32 8388607, %v3717_v4 }
 0x284   :  { %v898_v41 = vsel %vm8114_vm9, %v7858_v30, %v895_v48  ;;  %v8181_v7 = vadd.s32 %v2252_v24, %v2248_v26  ;;  %v2259_v18 = vadd.s32 %v2258_v57, %v2249_v61  ;;  %v2260_v13 = vmul.u32 %v8076_v28, %v2206_v39 }
 0x285   :  { %v900_v40 = vmul.f32 %v898_v41, %v898_v41  ;;  %v8179_v47 = vadd.s32 %v2236_v46, %v2227_v2  ;;  %v8184_v52 = vshrl.u32 %v3729_v38, 5  ;;  %v3737_v32 = vshll.u32 %v6464_v8, %v3731_v56 }
 0x286   :  { %v2263_v22 = vadd.s32 1, %v2259_v18  ;;  %v3738_v60 = vshrl.u32 %v6465_v10, %v8175_v9  ;;  %v3741_v11 = vshrl.u32 %v6466_v12, %v8175_v9  ;;  %v3735_v28 = vshrl.u32 %v6464_v8, %v8175_v9 }
 0x287   :  { %v901_v19 = vmul.f32 -0.001358992, %v900_v40  ;;  %v908_v44 = vmul.f32 -0.00019511016, %v900_v40  ;;  %vm2262_vm1 = vc.u32 %v8179_v47, %v8181_v7  ;;  %v3740_v21 = vshll.u32 %v6465_v10, %v3731_v56 }
 0x288   :  { %v2264_v63 = vsel %vm2262_vm1, %v2263_v22, %v2259_v18  ;;  %v3743_v3 = vshll.u32 %v6466_v12, %v3731_v56  ;;  %v3744_v59 = vshrl.u32 %v6467_v14, %v8175_v9  ;;  %v3746_v54 = vshll.u32 %v6467_v14, %v3731_v56 }
 0x289   :  { %v902_v25 = vadd.f32 0.041655596, %v901_v19  ;;  %v909_v15 = vadd.f32 0.008332121, %v908_v44  ;;  %v2265_v20 = vadd.s32 %v2264_v63, %v2260_v13  ;;  %v3747_v5 = vshrl.u32 %v6468_v23, %v8175_v9 }
 0x28a   :  { %v3734_v26 = vshll.u32 %v6463_v6, %v3731_v56  ;;  %v8203_v51 = vor.u32 %v3738_v60, %v3737_v32  ;;  %v8205_v49 = vor.u32 %v3741_v11, %v3740_v21  ;;  %v3745_v24 = vor.u32 %v3744_v59, %v3743_v3  ;;  %v289_v21 = vpop.f32.mrf.mxu3 }
 0x28b   :  { %v903_v45 = vmul.f32 %v902_v25, %v900_v40  ;;  %v910_v43 = vmul.f32 %v909_v15, %v900_v40  ;;  %v2266_v42 = vadd.s32 536870912, %v2265_v20  ;;  %v3748_v1 = vor.u32 %v3747_v5, %v3746_v54 }
 0x28c   :  { %v917_v35 = vand.u32 3, %v916_v50  ;;  %v3725_v53 = vor.u32 8388608, %v3724_v16  ;;  %v8207_v34 = vor.u32 %v3735_v28, %v3734_v26  ;;  %vm3752_vm2 = vcmp.lt.s32.totalorder %v8184_v52, 4 }
 0x28d   :  { %v904_v58 = vadd.f32 -0.4999988, %v903_v45  ;;  %v911_v17 = vadd.f32 -0.16666654, %v910_v43  ;;  %v8209_v0 = vshrl.u32 %v2266_v42, 30  ;;  %vm3749_vm3 = vcmp.lt.s32.totalorder %v8184_v52, 1 }
 0x28e   :  { %vm3751_vm5 = vcmp.lt.s32.totalorder %v8184_v52, 3  ;;  %v3758_v55 = vsel %vm3752_vm2, %v3745_v24, 920167782  ;;  %v3762_v29 = vsel %vm3752_vm2, %v3748_v1, 1326507024  ;;  %v3761_v2 = vsel %vm3749_vm3, %v8203_v51, %v8205_v49 }
 0x28f   :  { %v905_v31 = vmul.f32 %v904_v58, %v900_v40  ;;  %v912_v38 = vmul.f32 %v911_v17, %v900_v40  ;;  %v2268_v39 = vshll.u32 %v8209_v0, 30  ;;  %v3757_v61 = vsel %vm3749_vm3, %v8207_v34, %v8203_v51 }
 0x290   :  { %v3759_v46 = vsel %vm3751_vm5, %v8205_v49, %v3758_v55  ;;  %v3763_v57 = vsel %vm3751_vm5, %v3745_v24, %v3762_v29  ;;  %v8232_v40 = vshll.u32 %v3725_v53, 8  ;;  %vm3750_vm4 = vcmp.lt.s32.totalorder %v8184_v52, 2 }
 0x291   :  { %v906_v56 = vadd.f32 1.0, %v905_v31  ;;  %v913_v48 = vadd.f32 1.0, %v912_v38  ;;  %v2269_v18 = vsub.s32 %v2265_v20, %v2268_v39  ;;  %vm918_vm6 = vcmp.lt.s32.totalorder %v917_v35, 2 }
 0x292   :  { %vm919_vm7 = vcmp.eq.s32.totalorder %v917_v35, 0  ;;  %v3764_v13 = vsel %vm3750_vm4, %v3761_v2, %v3763_v57  ;;  %v3760_v32 = vsel %vm3750_vm4, %v3757_v61, %v3759_v46  ;;  %vm922_vm8 = vcmp.eq.s32.totalorder %v917_v35, 2 }
 0x293   :  { %v914_v50 = vmul.f32 %v913_v48, %v898_v41  ;;  %v923_v16 = vxor.u32 2147483648, %v906_v56  ;;  %vm2270_vm9 = vcmp.lt.s32.totalorder %v2269_v18, 0  ;;  %v2271_v44 = vsub.s32 0, %v2269_v18 }
 0x294   :  { %v3766_v22 = vand.u32 65535, %v8232_v40  ;;  %v3768_v60 = vand.u32 65535, %v3764_v13  ;;  %v3769_v41 = vshrl.u32 %v3764_v13, 16  ;;  %v3767_v28 = vshrl.u32 %v8232_v40, 16 }
 0x295   :  { %v920_v19 = vxor.u32 2147483648, %v914_v50  ;;  %v924_v25 = vsel %vm922_vm8, %v923_v16, %v914_v50  ;;  %v2272_v15 = vsel %vm2270_vm9, %v2271_v44, %v2269_v18  ;;  %vm915_vm11 = vweird.f32 %v7858_v30 }
 0x296   :  { %v2273_v3 = vclz %v2272_v15  ;;  %v3791_v59 = vshrl.u32 %v3760_v32, 16  ;;  %v3771_v45 = vmul.u32 %v3769_v41, %v3766_v22  ;;  %v3772_v43 = vmul.u32 %v3768_v60, %v3767_v28 }
 0x297   :  { %v921_v11 = vsel %vm919_vm7, %v906_v56, %v920_v19  ;;  %v3790_v20 = vand.u32 65535, %v3760_v32  ;;  %v3733_v26 = vshrl.u32 %v6463_v6, %v8175_v9  ;;  %v8246_v24 = vadd.f32 %v8041_v36, %v289_v21 }
 0x298   :  { %v925_v63 = vsel %vm918_vm6, %v921_v11, %v924_v25  ;;  %v6328_v5 = vadd.s32 4294967294, %v2273_v3  ;;  %v2261_v58 = vadd.s32 %v8181_v7, %v8179_v47  ;;  %v3770_v30 = vmul.u32 %v3768_v60, %v3766_v22 }
 0x299   :  { %v926_v54 = vsel %vm915_vm11, nan, %v925_v63  ;;  %v3773_v17 = vmul.u32 %v3769_v41, %v3767_v28  ;;  %v3774_v42 = vshll.u32 %v3771_v45, 16  ;;  %v3775_v1 = vshrl.u32 %v3771_v45, 16 }
 0x29a   :  { %6200 = vst [vmem:[#allocation2 + $0x18] sm:$0xff] %v926_v54  ;;  %vm6329_vm10 = vcmp.lt.s32.totalorder %v6328_v5, 0  ;;  %v3776_v35 = vshll.u32 %v3772_v43, 16  ;;  %v3793_v53 = vmul.u32 %v3791_v59, %v3766_v22  ;;  %v3794_v55 = vmul.u32 %v3790_v20, %v3767_v28 }
 0x29b   :  { %v2276_v31 = vsel %vm6329_vm10, 0, %v6328_v5  ;;  %vm3778_vm13 = vc.u32 %v3770_v30, %v3774_v42  ;;  %v3780_v38 = vadd.s32 %v3774_v42, %v3770_v30  ;;  %vm2169_vm12 = vcmp.lt.s32.totalorder %v8044_v62, 0 }
 0x29c   :  { %v2277_v9 = vsub.s32 32, %v2276_v31  ;;  %v2281_v29 = vsub.s32 4294967266, %v2276_v31  ;;  %v3779_v56 = vsel %vm3778_vm13, 1, %v6469_v27  ;;  %v3792_v48 = vmul.u32 %v3790_v20, %v3766_v22 }
 0x29d   :  { %v3781_v39 = vadd.s32 %v3779_v56, %v3773_v17  ;;  %vm3782_vm14 = vc.u32 %v3780_v38, %v3776_v35  ;;  %v3795_v47 = vmul.u32 %v3791_v59, %v3767_v28  ;;  %v3796_v7 = vshll.u32 %v3793_v53, 16  ;;  %v205_v17 = vpop.f32.mrf.mxu0 }
 0x29e   :  { %v2278_v2 = vshll.u32 %v2269_v18, %v2276_v31  ;;  %v2279_v61 = vshrl.u32 %v2261_v58, %v2277_v9  ;;  %v2282_v46 = vadd.s32 127, %v2281_v29  ;;  %v3783_v57 = vsel %vm3782_vm14, 1, %v6469_v27 }
 0x29f   :  { %v3785_v50 = vadd.s32 %v3783_v57, %v3781_v39  ;;  %v3798_v16 = vshll.u32 %v3794_v55, 16  ;;  %vm3800_vm15 = vc.u32 %v3792_v48, %v3796_v7  ;;  %v3802_v13 = vadd.s32 %v3796_v7, %v3792_v48 }
 0x2a0   :  { %v2280_v19 = vor.u32 %v2279_v61, %v2278_v2  ;;  %v2283_v44 = vshll.u32 %v2282_v46, 23  ;;  %v3754_v32 = vsel %vm3752_vm2, %v8205_v49, 2102212464  ;;  %v3801_v22 = vsel %vm3800_vm15, 1, %v6469_v27 }
 0x2a1   :  { %v2291_v60 = vsub.s32 4, %v8209_v0  ;;  %v3786_v41 = vadd.s32 %v3785_v50, %v3775_v1  ;;  %v3803_v18 = vadd.s32 %v3801_v22, %v3795_v47  ;;  %vm3804_vm0 = vc.u32 %v3802_v13, %v3798_v16 }
 0x2a2   :  { %v2284_v11 = vor.u32 4788187, %v2283_v44  ;;  %v3753_v25 = vsel %vm3749_vm3, %v3733_v26, %v8207_v34  ;;  %v3777_v15 = vshrl.u32 %v3772_v43, 16  ;;  %v3805_v28 = vsel %vm3804_vm0, 1, %v6469_v27 }
 0x2a3   :  { %v3755_v21 = vsel %vm3751_vm5, %v8203_v51, %v3754_v32  ;;  %v3797_v49 = vshrl.u32 %v3793_v53, 16  ;;  %v3807_v63 = vadd.s32 %v3805_v28, %v3803_v18  ;;  %v5270_v3 = vand.u32 2139095040, %v8246_v24 }
 0x2a4   :  { %v2285_v59 = vand.u32 2147483647, %v2284_v11  ;;  %v2287_v54 = vcvt.s32.f32 %v2280_v19  ;;  %v3787_v45 = vadd.s32 %v3786_v41, %v3777_v15  ;;  %v5267_v20 = vand.u32 2147483647, %v8246_v24 }
 0x2a5   :  { %v2292_v34 = vsel %vm2169_vm12, %v2291_v60, %v8209_v0  ;;  %v3799_v43 = vshrl.u32 %v3794_v55, 16  ;;  %v3808_v5 = vadd.s32 %v3807_v63, %v3797_v49  ;;  %v5271_v26 = vshrl.u32 %v5270_v3, 23 }
 0x2a6   :  { %v2288_v58 = vmul.f32 %v2287_v54, %v2285_v59  ;;  %v3806_v30 = vadd.s32 %v3802_v13, %v3798_v16  ;;  %vm2168_vm1 = vcmp.le.f32.partialorder %v2167_v33, 0.7853982  ;;  %v3756_v51 = vsel %vm3750_vm4, %v3753_v25, %v3755_v21 }
 0x2a7   :  { %v3809_v42 = vadd.s32 %v3808_v5, %v3799_v43  ;;  %v6387_v1 = vadd.s32 4294967169, %v5271_v26  ;;  %v2294_v53 = vsel %vm2168_vm1, 0, %v2292_v34  ;;  %v5274_v0 = vand.u32 8388607, %v5267_v20 }
 0x2a8   :  { %v2289_v35 = vxor.u32 2147483648, %v2288_v58  ;;  %vm3812_vm2 = vc.u32 %v3787_v45, %v3806_v30  ;;  %v8277_v55 = vadd.f32 %v8041_v36, %v205_v17  ;;  %v3810_v33 = vmul.u32 %v8232_v40, %v3756_v51 }
 0x2a9   :  { %v3813_v31 = vadd.s32 1, %v3809_v42  ;;  %v5277_v38 = vadd.s32 1, %v6387_v1  ;;  %v2311_v29 = vadd.s32 3, %v2294_v53  ;;  %v5275_v47 = vor.u32 8388608, %v5274_v0 }
 0x2aa   :  { %v2290_v9 = vsel %vm2169_vm12, %v2289_v35, %v2288_v58  ;;  %v930_v61 = vand.u32 2139095040, %v8277_v55  ;;  %v8286_v16 = vadd.s32 %v3806_v30, %v3787_v45  ;;  %vm2310_vm9 = vweird.f32 %v8044_v62 }
 0x2ab   :  { %v2293_v52 = vsel %vm2168_vm1, %v8044_v62, %v2290_v9  ;;  %v3814_v56 = vsel %vm3812_vm2, %v3813_v31, %v3809_v42  ;;  %vm5278_vm3 = vcmp.gt.s32.totalorder %v5277_v38, 0  ;;  %v8284_v50 = vand.u32 3, %v2311_v29 }
 0x2ac   :  { %v2295_v48 = vmul.f32 %v2293_v52, %v2293_v52  ;;  %v3815_v39 = vadd.s32 %v3814_v56, %v3810_v33  ;;  %v5279_v7 = vsel %vm5278_vm3, %v5277_v38, 0  ;;  %v8290_v32 = vshll.u32 %v5275_v47, 8 }
 0x2ad   :  { %v5281_v2 = vand.u32 31, %v5279_v7  ;;  %v931_v18 = vshrl.u32 %v930_v61, 23  ;;  %vm2317_vm5 = vcmp.eq.s32.totalorder %v8284_v50, 2  ;;  %v8304_v34 = vshrl.u32 %v5279_v7, 5 }
 0x2ae   :  { %v2296_v46 = vmul.f32 -0.001358992, %v2295_v48  ;;  %v2303_v36 = vmul.f32 -0.00019511016, %v2295_v48  ;;  %v3816_v57 = vadd.s32 536870912, %v3815_v39  ;;  %vm2314_vm4 = vcmp.eq.s32.totalorder %v8284_v50, 0 }
 0x2af   :  { %v5282_v40 = vsub.s32 32, %v5281_v2  ;;  %v5284_v22 = vshll.u32 %v6463_v6, %v5281_v2  ;;  %v5287_v60 = vshll.u32 %v6464_v8, %v5281_v2  ;;  %v5290_v41 = vshll.u32 %v6465_v10, %v5281_v2 }
 0x2b0   :  { %v2297_v13 = vadd.f32 0.041655596, %v2296_v46  ;;  %v2304_v19 = vadd.f32 0.008332121, %v2303_v36  ;;  %v8288_v44 = vshrl.u32 %v3816_v57, 30  ;;  %v5293_v28 = vshll.u32 %v6466_v12, %v5281_v2 }
 0x2b1   :  { %v5285_v21 = vshrl.u32 %v6464_v8, %v5282_v40  ;;  %v5288_v49 = vshrl.u32 %v6465_v10, %v5282_v40  ;;  %v5291_v63 = vshrl.u32 %v6466_v12, %v5282_v40  ;;  %v5294_v3 = vshrl.u32 %v6467_v14, %v5282_v40 }
 0x2b2   :  { %v2298_v11 = vmul.f32 %v2297_v13, %v2295_v48  ;;  %v2305_v25 = vmul.f32 %v2304_v19, %v2295_v48  ;;  %v3818_v15 = vshll.u32 %v8288_v44, 30  ;;  %v5283_v43 = vshrl.u32 %v6463_v6, %v5282_v40 }
 0x2b3   :  { %v5296_v5 = vshll.u32 %v6467_v14, %v5281_v2  ;;  %v5297_v26 = vshrl.u32 %v6468_v23, %v5282_v40  ;;  %v8311_v58 = vand.u32 65535, %v8290_v32  ;;  %vm2313_vm6 = vcmp.lt.s32.totalorder %v8284_v50, 2 }
 0x2b4   :  { %v2299_v59 = vadd.f32 -0.4999988, %v2298_v11  ;;  %v2306_v54 = vadd.f32 -0.16666654, %v2305_v25  ;;  %v8302_v45 = vsub.s32 %v3815_v39, %v3818_v15  ;;  %v5286_v42 = vor.u32 %v5285_v21, %v5284_v22 }
 0x2b5   :  { %v5289_v1 = vor.u32 %v5288_v49, %v5287_v60  ;;  %v5292_v35 = vor.u32 %v5291_v63, %v5290_v41  ;;  %v5295_v53 = vor.u32 %v5294_v3, %v5293_v28  ;;  %vm5299_vm8 = vcmp.lt.s32.totalorder %v8304_v34, 1 }
 0x2b6   :  { %v2300_v30 = vmul.f32 %v2299_v59, %v2295_v48  ;;  %v2307_v17 = vmul.f32 %v2306_v54, %v2295_v48  ;;  %vm3820_vm7 = vcmp.lt.s32.totalorder %v8302_v45, 0  ;;  %v3821_v51 = vsub.s32 0, %v8302_v45 }
 0x2b7   :  { %vm5302_vm11 = vcmp.lt.s32.totalorder %v8304_v34, 4  ;;  %v5317_v33 = vshrl.u32 %v8290_v32, 16  ;;  %v6303_v29 = vadd.s32 4294967169, %v931_v18  ;;  %v5298_v39 = vor.u32 %v5297_v26, %v5296_v5 }
 0x2b8   :  { %v2301_v0 = vadd.f32 1.0, %v2300_v30  ;;  %v2308_v31 = vadd.f32 1.0, %v2307_v17  ;;  %v3822_v38 = vsel %vm3820_vm7, %v3821_v51, %v8302_v45  ;;  %vm5301_vm10 = vcmp.lt.s32.totalorder %v8304_v34, 3 }
 0x2b9   :  { %v3823_v9 = vclz %v3822_v38  ;;  %vm3719_vm13 = vcmp.lt.s32.totalorder %v8070_v37, 0  ;;  %v3841_v7 = vsub.s32 4, %v8288_v44  ;;  %vm5300_vm12 = vcmp.lt.s32.totalorder %v8304_v34, 2 }
 0x2ba   :  { %v2309_v56 = vmul.f32 %v2308_v31, %v2293_v52  ;;  %v2318_v48 = vxor.u32 2147483648, %v2301_v0  ;;  %v5307_v2 = vsel %vm5299_vm8, %v5286_v42, %v5289_v1  ;;  %v5303_v46 = vsel %vm5299_vm8, %v5283_v43, %v5286_v42 }
 0x2bb   :  { %v6358_v47 = vadd.s32 4294967294, %v3823_v9  ;;  %v5304_v52 = vsel %vm5302_vm11, %v5292_v35, 2102212464  ;;  %v5308_v36 = vsel %vm5302_vm11, %v5295_v53, 920167782  ;;  %v5311_v13 = vsel %vm5299_vm8, %v5289_v1, %v5292_v35 }
 0x2bc   :  { %v2315_v61 = vxor.u32 2147483648, %v2309_v56  ;;  %v2319_v57 = vsel %vm2317_vm5, %v2318_v48, %v2309_v56  ;;  %v5309_v40 = vsel %vm5301_vm10, %v5292_v35, %v5308_v36  ;;  %v5312_v41 = vsel %vm5302_vm11, %v5298_v39, 1326507024 }
 0x2bd   :  { %vm6359_vm14 = vcmp.lt.s32.totalorder %v6358_v47, 0  ;;  %v5310_v60 = vsel %vm5300_vm12, %v5307_v2, %v5309_v40  ;;  %v5305_v15 = vsel %vm5301_vm10, %v5289_v1, %v5304_v52  ;;  %v5313_v21 = vsel %vm5301_vm10, %v5295_v53, %v5312_v41 }
 0x2be   :  { %v2316_v19 = vsel %vm2314_vm4, %v2301_v0, %v2315_v61  ;;  %v3826_v22 = vsel %vm6359_vm14, 0, %v6358_v47  ;;  %v5340_v49 = vand.u32 65535, %v5310_v60  ;;  %v5341_v63 = vshrl.u32 %v5310_v60, 16 }
 0x2bf   :  { %v2320_v18 = vsel %vm2313_vm6, %v2316_v19, %v2319_v57  ;;  %v3827_v11 = vsub.s32 32, %v3826_v22  ;;  %v3831_v25 = vsub.s32 4294967266, %v3826_v22  ;;  %v3828_v3 = vshll.u32 %v8302_v45, %v3826_v22 }
 0x2c0   :  { %v2321_v28 = vsel %vm2310_vm9, nan, %v2320_v18  ;;  %v5314_v54 = vsel %vm5300_vm12, %v5311_v13, %v5313_v21  ;;  %v5343_v26 = vmul.u32 %v5341_v63, %v8311_v58  ;;  %v927_v62 = vand.u32 2147483647, %v8277_v55 }
 0x2c1   :  { %6209 = vst [vmem:[#allocation2 + $0x60] sm:$0xff] %v2321_v28  ;;  %v3829_v59 = vshrl.u32 %v8286_v16, %v3827_v11  ;;  %v3832_v50 = vadd.s32 127, %v3831_v25  ;;  %v5318_v43 = vand.u32 65535, %v5314_v54  ;;  %v5319_v5 = vshrl.u32 %v5314_v54, 16 }
 0x2c2   :  { %v5344_v51 = vmul.u32 %v5340_v49, %v5317_v33  ;;  %v937_v42 = vadd.s32 1, %v6303_v29  ;;  %v8362_v45 = vsel %vm3719_vm13, %v3841_v7, %v8288_v44  ;;  %v8366_v16 = vsel %vm5300_vm12, %v5303_v46, %v5305_v15 }
 0x2c3   :  { %v3830_v30 = vor.u32 %v3829_v59, %v3828_v3  ;;  %v3833_v17 = vshll.u32 %v3832_v50, 23  ;;  %v5321_v1 = vmul.u32 %v5319_v5, %v8311_v58  ;;  %v5322_v35 = vmul.u32 %v5318_v43, %v5317_v33 }
 0x2c4   :  { %v5342_v0 = vmul.u32 %v5340_v49, %v8311_v58  ;;  %v5345_v31 = vmul.u32 %v5341_v63, %v5317_v33  ;;  %v5346_v38 = vshll.u32 %v5343_v26, 16  ;;  %v5320_v29 = vmul.u32 %v5318_v43, %v8311_v58 }
 0x2c5   :  { %v3834_v53 = vor.u32 4788187, %v3833_v17  ;;  %v3837_v9 = vcvt.s32.f32 %v3830_v30  ;;  %v5323_v56 = vmul.u32 %v5319_v5, %v5317_v33  ;;  %v5324_v48 = vshll.u32 %v5321_v1, 16 }
 0x2c6   :  { %v5326_v44 = vshll.u32 %v5322_v35, 16  ;;  %v5348_v47 = vshll.u32 %v5344_v51, 16  ;;  %vm5350_vm15 = vc.u32 %v5342_v0, %v5346_v38  ;;  %v5352_v2 = vadd.s32 %v5346_v38, %v5342_v0 }
 0x2c7   :  { %v3835_v39 = vand.u32 2147483647, %v3834_v53  ;;  %vm5328_vm0 = vc.u32 %v5320_v29, %v5324_v48  ;;  %v5330_v34 = vadd.s32 %v5324_v48, %v5320_v29  ;;  %v5351_v7 = vsel %vm5350_vm15, 1, %v6469_v27 }
 0x2c8   :  { %v5329_v46 = vsel %vm5328_vm0, 1, %v6469_v27  ;;  %v5353_v52 = vadd.s32 %v5351_v7, %v5345_v31  ;;  %vm938_vm1 = vcmp.gt.s32.totalorder %v937_v42, 0  ;;  %v5347_v57 = vshrl.u32 %v5343_v26, 16 }
 0x2c9   :  { %v3838_v61 = vmul.f32 %v3837_v9, %v3835_v39  ;;  %v5331_v36 = vadd.s32 %v5329_v46, %v5323_v56  ;;  %vm5332_vm2 = vc.u32 %v5330_v34, %v5326_v44  ;;  %vm5354_vm3 = vc.u32 %v5352_v2, %v5348_v47 }
 0x2ca   :  { %v5333_v33 = vsel %vm5332_vm2, 1, %v6469_v27  ;;  %v5355_v40 = vsel %vm5354_vm3, 1, %v6469_v27  ;;  %v939_v13 = vsel %vm938_vm1, %v937_v42, 0  ;;  %v5325_v19 = vshrl.u32 %v5321_v1, 16 }
 0x2cb   :  { %v3839_v58 = vxor.u32 2147483648, %v3838_v61  ;;  %v5335_v22 = vadd.s32 %v5333_v33, %v5331_v36  ;;  %v5357_v60 = vadd.s32 %v5355_v40, %v5353_v52  ;;  %v941_v41 = vand.u32 31, %v939_v13 }
 0x2cc   :  { %vm8377_vm5 = vcmp.le.f32.partialorder %v3717_v4, 0.7853982  ;;  %v5327_v25 = vshrl.u32 %v5322_v35, 16  ;;  %v5349_v15 = vshrl.u32 %v5344_v51, 16  ;;  %v5360_v59 = vmul.u32 %v8290_v32, %v8366_v16 }
 0x2cd   :  { %v3840_v11 = vsel %vm3719_vm13, %v3839_v58, %v3838_v61  ;;  %v5336_v21 = vadd.s32 %v5335_v22, %v5325_v19  ;;  %v5358_v49 = vadd.s32 %v5357_v60, %v5347_v57  ;;  %v8386_v63 = vsub.s32 32, %v941_v41 }
 0x2ce   :  { %v3843_v28 = vsel %vm8377_vm5, %v8070_v37, %v3840_v11  ;;  %v3844_v4 = vsel %vm8377_vm5, 0, %v8362_v45  ;;  %v934_v50 = vand.u32 8388607, %v927_v62  ;;  %v8397_v43 = vadd.s32 %v5352_v2, %v5348_v47 }
 0x2cf   :  { %v3845_v3 = vmul.f32 %v3843_v28, %v3843_v28  ;;  %v8395_v54 = vadd.s32 %v5336_v21, %v5327_v25  ;;  %v5359_v5 = vadd.s32 %v5358_v49, %v5349_v15  ;;  %v8399_v26 = vshrl.u32 %v939_v13, 5 }
 0x2d0   :  { %v947_v51 = vshll.u32 %v6464_v8, %v941_v41  ;;  %v950_v42 = vshll.u32 %v6465_v10, %v941_v41  ;;  %v948_v45 = vshrl.u32 %v6465_v10, %v8386_v63  ;;  %v951_v16 = vshrl.u32 %v6466_v12, %v8386_v63 }
 0x2d1   :  { %v3846_v30 = vmul.f32 -0.001358992, %v3845_v3  ;;  %v3853_v17 = vmul.f32 -0.00019511016, %v3845_v3  ;;  %vm5362_vm4 = vc.u32 %v8395_v54, %v8397_v43  ;;  %v5363_v32 = vadd.s32 1, %v5359_v5 }
 0x2d2   :  { %v944_v53 = vshll.u32 %v6463_v6, %v941_v41  ;;  %v945_v0 = vshrl.u32 %v6464_v8, %v8386_v63  ;;  %v953_v38 = vshll.u32 %v6466_v12, %v941_v41  ;;  %v954_v9 = vshrl.u32 %v6467_v14, %v8386_v63 }
 0x2d3   :  { %v3847_v1 = vadd.f32 0.041655596, %v3846_v30  ;;  %v3854_v35 = vadd.f32 0.008332121, %v3853_v17  ;;  %v5364_v31 = vsel %vm5362_vm4, %v5363_v32, %v5359_v5  ;;  %v956_v29 = vshll.u32 %v6467_v14, %v941_v41 }
 0x2d4   :  { %v5365_v39 = vadd.s32 %v5364_v31, %v5360_v59  ;;  %v957_v44 = vshrl.u32 %v6468_v23, %v8386_v63  ;;  %v935_v47 = vor.u32 8388608, %v934_v50  ;;  %v8418_v34 = vor.u32 %v948_v45, %v947_v51 }
 0x2d5   :  { %v3848_v56 = vmul.f32 %v3847_v1, %v3845_v3  ;;  %v3855_v48 = vmul.f32 %v3854_v35, %v3845_v3  ;;  %v952_v7 = vor.u32 %v951_v16, %v950_v42  ;;  %v955_v2 = vor.u32 %v954_v9, %v953_v38 }
 0x2d6   :  { %v5366_v52 = vadd.s32 536870912, %v5365_v39  ;;  %v958_v36 = vor.u32 %v957_v44, %v956_v29  ;;  %v3861_v57 = vadd.s32 3, %v3844_v4  ;;  %v8420_v58 = vor.u32 %v945_v0, %v944_v53  ;;  %v232_v53 = vpop.f32.mrf.mxu1 }
 0x2d7   :  { %v3849_v61 = vadd.f32 -0.4999988, %v3848_v56  ;;  %v3856_v46 = vadd.f32 -0.16666654, %v3855_v48  ;;  %vm959_vm6 = vcmp.lt.s32.totalorder %v8399_v26, 1  ;;  %vm962_vm7 = vcmp.lt.s32.totalorder %v8399_v26, 4 }
 0x2d8   :  { %v8424_v13 = vshrl.u32 %v5366_v52, 30  ;;  %vm961_vm9 = vcmp.lt.s32.totalorder %v8399_v26, 3  ;;  %vm960_vm8 = vcmp.lt.s32.totalorder %v8399_v26, 2  ;;  %v968_v19 = vsel %vm962_vm7, %v955_v2, 920167782 }
 0x2d9   :  { %v3850_v33 = vmul.f32 %v3849_v61, %v3845_v3  ;;  %v3857_v40 = vmul.f32 %v3856_v46, %v3845_v3  ;;  %v972_v22 = vsel %vm962_vm7, %v958_v36, 1326507024  ;;  %v8432_v60 = vshll.u32 %v935_v47, 8 }
 0x2da   :  { %v5368_v11 = vshll.u32 %v8424_v13, 30  ;;  %v971_v25 = vsel %vm959_vm6, %v8418_v34, %v952_v7  ;;  %v3862_v15 = vand.u32 3, %v3861_v57  ;;  %v967_v21 = vsel %vm959_vm6, %v8420_v58, %v8418_v34 }
 0x2db   :  { %v3851_v41 = vadd.f32 1.0, %v3850_v33  ;;  %v3858_v18 = vadd.f32 1.0, %v3857_v40  ;;  %v969_v49 = vsel %vm961_vm9, %v952_v7, %v968_v19  ;;  %v973_v4 = vsel %vm961_vm9, %v955_v2, %v972_v22  ;;  %v8460_v2 = vld [vmem:[%s10726_s2] ss:$0 sm:$0xff] }
 0x2dc   :  { %v5369_v50 = vsub.s32 %v5365_v39, %v5368_v11  ;;  %vm3860_vm11 = vweird.f32 %v8070_v37  ;;  %v974_v5 = vsel %vm960_vm8, %v971_v25, %v973_v4  ;;  %v976_v30 = vand.u32 65535, %v8432_v60 }
 0x2dd   :  { %v3859_v3 = vmul.f32 %v3858_v18, %v3843_v28  ;;  %v3868_v59 = vxor.u32 2147483648, %v3851_v41  ;;  %v977_v17 = vshrl.u32 %v8432_v60, 16  ;;  %v970_v32 = vsel %vm960_vm8, %v967_v21, %v969_v49 }
 0x2de   :  { %vm5370_vm10 = vcmp.lt.s32.totalorder %v5369_v50, 0  ;;  %v5371_v42 = vsub.s32 0, %v5369_v50  ;;  %vm3864_vm13 = vcmp.eq.s32.totalorder %v3862_v15, 0  ;;  %vm3867_vm12 = vcmp.eq.s32.totalorder %v3862_v15, 2 }
 0x2df   :  { %v3865_v51 = vxor.u32 2147483648, %v3859_v3  ;;  %v978_v28 = vand.u32 65535, %v974_v5  ;;  %v979_v45 = vshrl.u32 %v974_v5, 16  ;;  %vm3863_vm14 = vcmp.lt.s32.totalorder %v3862_v15, 2 }
 0x2e0   :  { %v3869_v1 = vsel %vm3867_vm12, %v3868_v59, %v3859_v3  ;;  %v5372_v35 = vsel %vm5370_vm10, %v5371_v42, %v5369_v50  ;;  %v1000_v38 = vand.u32 65535, %v970_v32  ;;  %v1001_v9 = vshrl.u32 %v970_v32, 16 }
 0x2e1   :  { %v3866_v16 = vsel %vm3864_vm13, %v3851_v41, %v3865_v51  ;;  %v5373_v31 = vclz %v5372_v35  ;;  %v980_v56 = vmul.u32 %v978_v28, %v976_v30  ;;  %v981_v48 = vmul.u32 %v979_v45, %v976_v30 }
 0x2e2   :  { %v3870_v0 = vsel %vm3863_vm14, %v3866_v16, %v3869_v1  ;;  %v982_v39 = vmul.u32 %v978_v28, %v977_v17  ;;  %v943_v47 = vshrl.u32 %v6463_v6, %v8386_v63  ;;  %v8463_v61 = vadd.f32 %v8460_v2, %v232_v53 }
 0x2e3   :  { %v3871_v29 = vsel %vm3860_vm11, nan, %v3870_v0  ;;  %v6388_v44 = vadd.s32 4294967294, %v5373_v31  ;;  %v5361_v37 = vadd.s32 %v8397_v43, %v8395_v54  ;;  %v964_v46 = vsel %vm962_vm7, %v952_v7, 2102212464 }
 0x2e4   :  { %6219 = vst [vmem:[#allocation2 + $0xb0] sm:$0xff] %v3871_v29  ;;  %v984_v52 = vshll.u32 %v981_v48, 16  ;;  %v986_v36 = vshll.u32 %v982_v39, 16  ;;  %v983_v57 = vmul.u32 %v979_v45, %v977_v17  ;;  %v1003_v33 = vmul.u32 %v1001_v9, %v976_v30 }
 0x2e5   :  { %vm6389_vm15 = vcmp.lt.s32.totalorder %v6388_v44, 0  ;;  %v1004_v63 = vmul.u32 %v1000_v38, %v977_v17  ;;  %vm5269_vm0 = vcmp.lt.s32.totalorder %v8246_v24, 0  ;;  %v1002_v22 = vmul.u32 %v1000_v38, %v976_v30 }
 0x2e6   :  { %v5376_v40 = vsel %vm6389_vm15, 0, %v6388_v44  ;;  %vm988_vm1 = vc.u32 %v980_v56, %v984_v52  ;;  %v990_v19 = vadd.s32 %v984_v52, %v980_v56  ;;  %v985_v11 = vshrl.u32 %v981_v48, 16 }
 0x2e7   :  { %v5377_v41 = vsub.s32 32, %v5376_v40  ;;  %v5381_v18 = vsub.s32 4294967266, %v5376_v40  ;;  %v989_v54 = vsel %vm988_vm1, 1, %v6469_v27  ;;  %v5378_v43 = vshll.u32 %v5369_v50, %v5376_v40 }
 0x2e8   :  { %v991_v25 = vadd.s32 %v989_v54, %v983_v57  ;;  %vm992_vm2 = vc.u32 %v990_v19, %v986_v36  ;;  %v1006_v7 = vshll.u32 %v1003_v33, 16  ;;  %v1008_v4 = vshll.u32 %v1004_v63, 16 }
 0x2e9   :  { %v5379_v15 = vshrl.u32 %v5361_v37, %v5377_v41  ;;  %v5382_v21 = vadd.s32 127, %v5381_v18  ;;  %v993_v49 = vsel %vm992_vm2, 1, %v6469_v27  ;;  %v1005_v59 = vmul.u32 %v1001_v9, %v977_v17 }
 0x2ea   :  { %v995_v3 = vadd.s32 %v993_v49, %v991_v25  ;;  %vm1010_vm3 = vc.u32 %v1002_v22, %v1006_v7  ;;  %v1012_v5 = vadd.s32 %v1006_v7, %v1002_v22  ;;  %v5391_v42 = vsub.s32 4, %v8424_v13 }
 0x2eb   :  { %v5380_v51 = vor.u32 %v5379_v15, %v5378_v43  ;;  %v5383_v30 = vshll.u32 %v5382_v21, 23  ;;  %v1011_v32 = vsel %vm1010_vm3, 1, %v6469_v27  ;;  %v2322_v45 = vand.u32 2147483647, %v8463_v61 }
 0x2ec   :  { %v996_v28 = vadd.s32 %v995_v3, %v985_v11  ;;  %v1013_v50 = vadd.s32 %v1011_v32, %v1005_v59  ;;  %vm1014_vm5 = vc.u32 %v1012_v5, %v1008_v4  ;;  %v963_v1 = vsel %vm959_vm6, %v943_v47, %v8420_v58 }
 0x2ed   :  { %v5384_v16 = vor.u32 4788187, %v5383_v30  ;;  %v987_v35 = vshrl.u32 %v982_v39, 16  ;;  %v1015_v17 = vsel %vm1014_vm5, 1, %v6469_v27  ;;  %v965_v53 = vsel %vm961_vm9, %v8418_v34, %v964_v46  ;;  %v262_v34 = vpop.f32.mrf.mxu2 }
 0x2ee   :  { %v1007_v0 = vshrl.u32 %v1003_v33, 16  ;;  %v1017_v31 = vadd.s32 %v1015_v17, %v1013_v50  ;;  %v2325_v38 = vand.u32 2139095040, %v8463_v61  ;;  %v5387_v29 = vcvt.s32.f32 %v5380_v51 }
 0x2ef   :  { %v5385_v9 = vand.u32 2147483647, %v5384_v16  ;;  %v5392_v56 = vsel %vm5269_vm0, %v5391_v42, %v8424_v13  ;;  %v997_v48 = vadd.s32 %v996_v28, %v987_v35  ;;  %v1009_v44 = vshrl.u32 %v1004_v63, 16 }
 0x2f0   :  { %v1018_v58 = vadd.s32 %v1017_v31, %v1007_v0  ;;  %v2326_v39 = vshrl.u32 %v2325_v38, 23  ;;  %v2329_v47 = vand.u32 8388607, %v2322_v45  ;;  %v1016_v52 = vadd.s32 %v1012_v5, %v1008_v4 }
 0x2f1   :  { %v5388_v37 = vmul.f32 %v5387_v29, %v5385_v9  ;;  %vm5268_vm4 = vcmp.le.f32.partialorder %v5267_v20, 0.7853982  ;;  %v966_v46 = vsel %vm960_vm8, %v963_v1, %v965_v53  ;;  %v8493_v22 = vadd.f32 %v8460_v2, %v262_v34 }
 0x2f2   :  { %v1019_v36 = vadd.s32 %v1018_v58, %v1009_v44  ;;  %v6330_v57 = vadd.s32 4294967169, %v2326_v39  ;;  %v5394_v13 = vsel %vm5268_vm4, 0, %v5392_v56  ;;  %vm1022_vm6 = vc.u32 %v997_v48, %v1016_v52 }
 0x2f3   :  { %v5389_v33 = vxor.u32 2147483648, %v5388_v37  ;;  %v2330_v40 = vor.u32 8388608, %v2329_v47  ;;  %v1020_v18 = vmul.u32 %v8432_v60, %v966_v46  ;;  %v5411_v26 = vadd.s32 3, %v5394_v13 }
 0x2f4   :  { %v1023_v63 = vadd.s32 1, %v1019_v36  ;;  %v2332_v19 = vadd.s32 1, %v6330_v57  ;;  %v3875_v21 = vand.u32 2139095040, %v8493_v22  ;;  %v8504_v30 = vadd.s32 %v1016_v52, %v997_v48 }
 0x2f5   :  { %v5390_v41 = vsel %vm5269_vm0, %v5389_v33, %v5388_v37  ;;  %v8499_v15 = vshll.u32 %v2330_v40, 8  ;;  %v8502_v59 = vand.u32 3, %v5411_v26  ;;  %v3872_v50 = vand.u32 2147483647, %v8493_v22 }
 0x2f6   :  { %v5393_v20 = vsel %vm5268_vm4, %v8246_v24, %v5390_v41  ;;  %v1024_v11 = vsel %vm1022_vm6, %v1023_v63, %v1019_v36  ;;  %vm2333_vm7 = vcmp.gt.s32.totalorder %v2332_v19, 0  ;;  %v3876_v16 = vshrl.u32 %v3875_v21, 23 }
 0x2f7   :  { %v5395_v54 = vmul.f32 %v5393_v20, %v5393_v20  ;;  %v1025_v43 = vadd.s32 %v1024_v11, %v1020_v18  ;;  %v2334_v25 = vsel %vm2333_vm7, %v2332_v19, 0  ;;  %v8508_v28 = vand.u32 65535, %v8499_v15 }
 0x2f8   :  { %v2336_v7 = vand.u32 31, %v2334_v25  ;;  %vm929_vm9 = vcmp.lt.s32.totalorder %v8277_v55, 0  ;;  %vm5417_vm8 = vcmp.eq.s32.totalorder %v8502_v59, 2  ;;  %v8520_v44 = vshrl.u32 %v2334_v25, 5 }
 0x2f9   :  { %v5396_v49 = vmul.f32 -0.001358992, %v5395_v54  ;;  %v5403_v4 = vmul.f32 -0.00019511016, %v5395_v54  ;;  %v1026_v3 = vadd.s32 536870912, %v1025_v43  ;;  %vm5414_vm11 = vcmp.eq.s32.totalorder %v8502_v59, 0 }
 0x2fa   :  { %v2337_v5 = vsub.s32 32, %v2336_v7  ;;  %v2339_v32 = vshll.u32 %v6463_v6, %v2336_v7  ;;  %v2342_v53 = vshll.u32 %v6464_v8, %v2336_v7  ;;  %v2348_v38 = vshll.u32 %v6466_v12, %v2336_v7 }
 0x2fb   :  { %v5397_v60 = vadd.f32 0.041655596, %v5396_v49  ;;  %v5404_v51 = vadd.f32 0.008332121, %v5403_v4  ;;  %v1027_v42 = vshrl.u32 %v1026_v3, 30  ;;  %v2345_v58 = vshll.u32 %v6465_v10, %v2336_v7 }
 0x2fc   :  { %v2340_v0 = vshrl.u32 %v6464_v8, %v2337_v5  ;;  %v2343_v31 = vshrl.u32 %v6465_v10, %v2337_v5  ;;  %v2349_v9 = vshrl.u32 %v6467_v14, %v2337_v5  ;;  %v2346_v39 = vshrl.u32 %v6466_v12, %v2337_v5 }
 0x2fd   :  { %v5398_v1 = vmul.f32 %v5397_v60, %v5395_v54  ;;  %v5405_v35 = vmul.f32 %v5404_v51, %v5395_v54  ;;  %v1028_v17 = vshll.u32 %v1027_v42, 30  ;;  %v2351_v47 = vshll.u32 %v6467_v14, %v2336_v7 }
 0x2fe   :  { %v2352_v37 = vshrl.u32 %v6468_v23, %v2337_v5  ;;  %vm5413_vm10 = vcmp.lt.s32.totalorder %v8502_v59, 2  ;;  %vm5410_vm12 = vweird.f32 %v8246_v24  ;;  %v1051_v36 = vsub.s32 4, %v1027_v42 }
 0x2ff   :  { %v5399_v29 = vadd.f32 -0.4999988, %v5398_v1  ;;  %v5406_v56 = vadd.f32 -0.16666654, %v5405_v35  ;;  %v8518_v48 = vsub.s32 %v1025_v43, %v1028_v17  ;;  %v2341_v57 = vor.u32 %v2340_v0, %v2339_v32 }
 0x300   :  { %v2344_v33 = vor.u32 %v2343_v31, %v2342_v53  ;;  %v2350_v13 = vor.u32 %v2349_v9, %v2348_v38  ;;  %vm2354_vm14 = vcmp.lt.s32.totalorder %v8520_v44, 1  ;;  %v2347_v18 = vor.u32 %v2346_v39, %v2345_v58 }
 0x301   :  { %v5400_v52 = vmul.f32 %v5399_v29, %v5395_v54  ;;  %v5407_v34 = vmul.f32 %v5406_v56, %v5395_v54  ;;  %vm1030_vm13 = vcmp.lt.s32.totalorder %v8518_v48, 0  ;;  %v1031_v46 = vsub.s32 0, %v8518_v48 }
 0x302   :  { %vm2357_vm15 = vcmp.lt.s32.totalorder %v8520_v44, 4  ;;  %v2372_v26 = vshrl.u32 %v8499_v15, 16  ;;  %vm8537_vm0 = vcmp.le.f32.partialorder %v927_v62, 0.7853982  ;;  %v2353_v25 = vor.u32 %v2352_v37, %v2351_v47 }
 0x303   :  { %v5401_v63 = vadd.f32 1.0, %v5400_v52  ;;  %v5408_v40 = vadd.f32 1.0, %v5407_v34  ;;  %v1032_v19 = vsel %vm1030_vm13, %v1031_v46, %v8518_v48  ;;  %vm2356_vm1 = vcmp.lt.s32.totalorder %v8520_v44, 3 }
 0x304   :  { %v1033_v41 = vclz %v1032_v19  ;;  %v2338_v21 = vshrl.u32 %v6463_v6, %v2337_v5  ;;  %v2362_v49 = vsel %vm2354_vm14, %v2341_v57, %v2344_v33  ;;  %v6360_v4 = vadd.s32 4294967169, %v3876_v16 }
 0x305   :  { %v5409_v11 = vmul.f32 %v5408_v40, %v5393_v20  ;;  %v5418_v54 = vxor.u32 2147483648, %v5401_v63  ;;  %v8547_v20 = vsel %vm929_vm9, %v1051_v36, %v1027_v42  ;;  %vm2355_vm2 = vcmp.lt.s32.totalorder %v8520_v44, 2 }
 0x306   :  { %v6304_v7 = vadd.s32 4294967294, %v1033_v41  ;;  %v2363_v62 = vsel %vm2357_vm15, %v2350_v13, 920167782  ;;  %v2366_v51 = vsel %vm2354_vm14, %v2344_v33, %v2347_v18  ;;  %v2367_v1 = vsel %vm2357_vm15, %v2353_v25, 1326507024 }
 0x307   :  { %v5415_v3 = vxor.u32 2147483648, %v5409_v11  ;;  %v5419_v60 = vsel %vm5417_vm8, %v5418_v54, %v5409_v11  ;;  %v2364_v5 = vsel %vm2356_vm1, %v2347_v18, %v2363_v62  ;;  %v2359_v0 = vsel %vm2357_vm15, %v2347_v18, 2102212464 }
 0x308   :  { %vm6305_vm3 = vcmp.lt.s32.totalorder %v6304_v7, 0  ;;  %v2365_v16 = vsel %vm2355_vm2, %v2362_v49, %v2364_v5  ;;  %v2368_v38 = vsel %vm2356_vm1, %v2350_v13, %v2367_v1  ;;  %v3882_v24 = vadd.s32 1, %v6360_v4 }
 0x309   :  { %v5416_v32 = vsel %vm5414_vm11, %v5401_v63, %v5415_v3  ;;  %v1036_v42 = vsel %vm6305_vm3, 0, %v6304_v7  ;;  %v2395_v9 = vand.u32 65535, %v2365_v16  ;;  %v2396_v29 = vshrl.u32 %v2365_v16, 16 }
 0x30a   :  { %v5420_v35 = vsel %vm5413_vm10, %v5416_v32, %v5419_v60  ;;  %v1037_v17 = vsub.s32 32, %v1036_v42  ;;  %v1041_v53 = vsub.s32 4294967266, %v1036_v42  ;;  %v1038_v56 = vshll.u32 %v8518_v48, %v1036_v42 }
 0x30b   :  { %v5421_v31 = vsel %vm5410_vm12, nan, %v5420_v35  ;;  %v2369_v39 = vsel %vm2355_vm2, %v2366_v51, %v2368_v38  ;;  %v2398_v52 = vmul.u32 %v2396_v29, %v8508_v28  ;;  %v1054_v36 = vsel %vm8537_vm0, 0, %v8547_v20 }
 0x30c   :  { %6229 = vst [vmem:[#allocation2 + $0x100] sm:$0xff] %v5421_v31  ;;  %v1039_v58 = vshrl.u32 %v8504_v30, %v1037_v17  ;;  %v1042_v59 = vadd.s32 127, %v1041_v53  ;;  %v2373_v47 = vand.u32 65535, %v2369_v39  ;;  %v2374_v37 = vshrl.u32 %v2369_v39, 16 }
 0x30d   :  { %v2399_v13 = vmul.u32 %v2395_v9, %v2372_v26  ;;  %v2358_v48 = vsel %vm2354_vm14, %v2338_v21, %v2341_v57  ;;  %v2360_v30 = vsel %vm2356_vm1, %v2344_v33, %v2359_v0  ;;  %v2397_v41 = vmul.u32 %v2395_v9, %v8508_v28 }
 0x30e   :  { %v1040_v34 = vor.u32 %v1039_v58, %v1038_v56  ;;  %v1043_v46 = vshll.u32 %v1042_v59, 23  ;;  %v2376_v63 = vmul.u32 %v2374_v37, %v8508_v28  ;;  %v2377_v40 = vmul.u32 %v2373_v47, %v2372_v26 }
 0x30f   :  { %v2400_v18 = vmul.u32 %v2396_v29, %v2372_v26  ;;  %v2401_v11 = vshll.u32 %v2398_v52, 16  ;;  %v2375_v25 = vmul.u32 %v2373_v47, %v8508_v28  ;;  %v2378_v7 = vmul.u32 %v2374_v37, %v2372_v26 }
 0x310   :  { %v1044_v19 = vor.u32 4788187, %v1043_v46  ;;  %v1047_v54 = vcvt.s32.f32 %v1040_v34  ;;  %v2379_v49 = vshll.u32 %v2376_v63, 16  ;;  %v2381_v3 = vshll.u32 %v2377_v40, 16 }
 0x311   :  { %v2403_v20 = vshll.u32 %v2399_v13, 16  ;;  %vm2405_vm5 = vc.u32 %v2397_v41, %v2401_v11  ;;  %v2407_v21 = vadd.s32 %v2401_v11, %v2397_v41  ;;  %vm3883_vm6 = vcmp.gt.s32.totalorder %v3882_v24, 0 }
 0x312   :  { %v1045_v4 = vand.u32 2147483647, %v1044_v19  ;;  %vm2383_vm4 = vc.u32 %v2375_v25, %v2379_v49  ;;  %v2385_v57 = vadd.s32 %v2379_v49, %v2375_v25  ;;  %v2406_v33 = vsel %vm2405_vm5, 1, %v6469_v27 }
 0x313   :  { %v2384_v60 = vsel %vm2383_vm4, 1, %v6469_v27  ;;  %v2408_v5 = vadd.s32 %v2406_v33, %v2400_v18  ;;  %v2402_v32 = vshrl.u32 %v2398_v52, 16  ;;  %vm2409_vm8 = vc.u32 %v2407_v21, %v2403_v20 }
 0x314   :  { %v1048_v62 = vmul.f32 %v1047_v54, %v1045_v4  ;;  %v2386_v51 = vadd.s32 %v2384_v60, %v2378_v7  ;;  %vm2387_vm7 = vc.u32 %v2385_v57, %v2381_v3  ;;  %v2410_v42 = vsel %vm2409_vm8, 1, %v6469_v27 }
 0x315   :  { %v2388_v26 = vsel %vm2387_vm7, 1, %v6469_v27  ;;  %v3884_v16 = vsel %vm3883_vm6, %v3882_v24, 0  ;;  %v2380_v1 = vshrl.u32 %v2376_v63, 16  ;;  %v2412_v17 = vadd.s32 %v2410_v42, %v2408_v5 }
 0x316   :  { %v1049_v28 = vxor.u32 2147483648, %v1048_v62  ;;  %v2390_v35 = vadd.s32 %v2388_v26, %v2386_v51  ;;  %v3886_v53 = vand.u32 31, %v3884_v16  ;;  %v2361_v31 = vsel %vm2355_vm2, %v2358_v48, %v2360_v30 }
 0x317   :  { %v2382_v38 = vshrl.u32 %v2377_v40, 16  ;;  %v2404_v9 = vshrl.u32 %v2399_v13, 16  ;;  %v2413_v58 = vadd.s32 %v2412_v17, %v2402_v32  ;;  %v1071_v47 = vadd.s32 3, %v1054_v36 }
 0x318   :  { %v1050_v0 = vsel %vm929_vm9, %v1049_v28, %v1048_v62  ;;  %v2391_v56 = vadd.s32 %v2390_v35, %v2380_v1  ;;  %v8598_v59 = vsub.s32 32, %v3886_v53  ;;  %v3879_v37 = vand.u32 8388607, %v3872_v50 }
 0x319   :  { %v1053_v29 = vsel %vm8537_vm0, %v8277_v55, %v1050_v0  ;;  %v8604_v24 = vadd.s32 %v2407_v21, %v2403_v20  ;;  %v2414_v44 = vadd.s32 %v2413_v58, %v2404_v9  ;;  %v2415_v34 = vmul.u32 %v8499_v15, %v2361_v31 }
 0x31a   :  { %v1055_v39 = vmul.f32 %v1053_v29, %v1053_v29  ;;  %v8602_v52 = vadd.s32 %v2391_v56, %v2382_v38  ;;  %v8607_v43 = vshrl.u32 %v3884_v16, 5  ;;  %v3892_v48 = vshll.u32 %v6464_v8, %v3886_v53 }
 0x31b   :  { %v2418_v36 = vadd.s32 1, %v2414_v44  ;;  %v3893_v30 = vshrl.u32 %v6465_v10, %v8598_v59  ;;  %v3896_v63 = vshrl.u32 %v6466_v12, %v8598_v59  ;;  %v3890_v15 = vshrl.u32 %v6464_v8, %v8598_v59 }
 0x31c   :  { %v1056_v46 = vmul.f32 -0.001358992, %v1055_v39  ;;  %v1063_v13 = vmul.f32 -0.00019511016, %v1055_v39  ;;  %vm2417_vm9 = vc.u32 %v8602_v52, %v8604_v24  ;;  %v3895_v41 = vshll.u32 %v6465_v10, %v3886_v53 }
 0x31d   :  { %v2419_v18 = vsel %vm2417_vm9, %v2418_v36, %v2414_v44  ;;  %v3898_v11 = vshll.u32 %v6466_v12, %v3886_v53  ;;  %v3899_v54 = vshrl.u32 %v6467_v14, %v8598_v59  ;;  %v3901_v25 = vshll.u32 %v6467_v14, %v3886_v53 }
 0x31e   :  { %v1057_v40 = vadd.f32 0.041655596, %v1056_v46  ;;  %v1064_v19 = vadd.f32 0.008332121, %v1063_v13  ;;  %v2420_v4 = vadd.s32 %v2419_v18, %v2415_v34  ;;  %v3902_v3 = vshrl.u32 %v6468_v23, %v8598_v59 }
 0x31f   :  { %v3889_v20 = vshll.u32 %v6463_v6, %v3886_v53  ;;  %v8626_v57 = vor.u32 %v3893_v30, %v3892_v48  ;;  %v8628_v33 = vor.u32 %v3896_v63, %v3895_v41  ;;  %v3900_v21 = vor.u32 %v3899_v54, %v3898_v11  ;;  %v292_v41 = vpop.f32.mrf.mxu3 }
 0x320   :  { %v1058_v7 = vmul.f32 %v1057_v40, %v1055_v39  ;;  %v1065_v49 = vmul.f32 %v1064_v19, %v1055_v39  ;;  %v2421_v5 = vadd.s32 536870912, %v2420_v4  ;;  %v3903_v51 = vor.u32 %v3902_v3, %v3901_v25 }
 0x321   :  { %v1072_v32 = vand.u32 3, %v1071_v47  ;;  %v3880_v28 = vor.u32 8388608, %v3879_v37  ;;  %v8630_v26 = vor.u32 %v3890_v15, %v3889_v20  ;;  %vm3907_vm11 = vcmp.lt.s32.totalorder %v8607_v43, 4 }
 0x322   :  { %v1059_v62 = vadd.f32 -0.4999988, %v1058_v7  ;;  %v1066_v60 = vadd.f32 -0.16666654, %v1065_v49  ;;  %v8632_v1 = vshrl.u32 %v2421_v5, 30  ;;  %vm3904_vm10 = vcmp.lt.s32.totalorder %v8607_v43, 1 }
 0x323   :  { %vm3906_vm13 = vcmp.lt.s32.totalorder %v8607_v43, 3  ;;  %v3913_v35 = vsel %vm3907_vm11, %v3900_v21, 920167782  ;;  %v3917_v17 = vsel %vm3907_vm11, %v3903_v51, 1326507024  ;;  %v3916_v38 = vsel %vm3904_vm10, %v8626_v57, %v8628_v33 }
 0x324   :  { %v1060_v42 = vmul.f32 %v1059_v62, %v1055_v39  ;;  %v1067_v16 = vmul.f32 %v1066_v60, %v1055_v39  ;;  %v2423_v31 = vshll.u32 %v8632_v1, 30  ;;  %v3912_v9 = vsel %vm3904_vm10, %v8630_v26, %v8626_v57 }
 0x325   :  { %v3914_v56 = vsel %vm3906_vm13, %v8628_v33, %v3913_v35  ;;  %v3918_v58 = vsel %vm3906_vm13, %v3900_v21, %v3917_v17  ;;  %v8655_v39 = vshll.u32 %v3880_v28, 8  ;;  %vm3905_vm12 = vcmp.lt.s32.totalorder %v8607_v43, 2 }
 0x326   :  { %v1061_v53 = vadd.f32 1.0, %v1060_v42  ;;  %v1068_v0 = vadd.f32 1.0, %v1067_v16  ;;  %v2424_v44 = vsub.s32 %v2420_v4, %v2423_v31  ;;  %vm1073_vm14 = vcmp.lt.s32.totalorder %v1072_v32, 2 }
 0x327   :  { %vm1074_vm15 = vcmp.eq.s32.totalorder %v1072_v32, 0  ;;  %v3919_v34 = vsel %vm3905_vm12, %v3916_v38, %v3918_v58  ;;  %v3915_v48 = vsel %vm3905_vm12, %v3912_v9, %v3914_v56  ;;  %vm1077_vm1 = vcmp.eq.s32.totalorder %v1072_v32, 2 }
 0x328   :  { %v1069_v47 = vmul.f32 %v1068_v0, %v1053_v29  ;;  %v1078_v37 = vxor.u32 2147483648, %v1061_v53  ;;  %vm2425_vm0 = vcmp.lt.s32.totalorder %v2424_v44, 0  ;;  %v2426_v13 = vsub.s32 0, %v2424_v44 }
 0x329   :  { %v3921_v36 = vand.u32 65535, %v8655_v39  ;;  %v3923_v30 = vand.u32 65535, %v3919_v34  ;;  %v3924_v29 = vshrl.u32 %v3919_v34, 16  ;;  %v3922_v15 = vshrl.u32 %v8655_v39, 16 }
 0x32a   :  { %v1075_v46 = vxor.u32 2147483648, %v1069_v47  ;;  %v1079_v40 = vsel %vm1077_vm1, %v1078_v37, %v1069_v47  ;;  %v2427_v19 = vsel %vm2425_vm0, %v2426_v13, %v2424_v44  ;;  %vm1070_vm2 = vweird.f32 %v8277_v55 }
 0x32b   :  { %v2428_v11 = vclz %v2427_v19  ;;  %v3946_v54 = vshrl.u32 %v3915_v48, 16  ;;  %v3926_v7 = vmul.u32 %v3924_v29, %v3921_v36  ;;  %v3927_v49 = vmul.u32 %v3923_v30, %v3922_v15 }
 0x32c   :  { %v1076_v63 = vsel %vm1074_vm15, %v1061_v53, %v1075_v46  ;;  %v3945_v4 = vand.u32 65535, %v3915_v48  ;;  %v3888_v20 = vshrl.u32 %v6463_v6, %v8598_v59  ;;  %v8669_v21 = vadd.f32 %v8460_v2, %v292_v41 }
 0x32d   :  { %v1080_v18 = vsel %vm1073_vm14, %v1076_v63, %v1079_v40  ;;  %v6331_v3 = vadd.s32 4294967294, %v2428_v11  ;;  %v2416_v62 = vadd.s32 %v8604_v24, %v8602_v52  ;;  %v3925_v55 = vmul.u32 %v3923_v30, %v3921_v36 }
 0x32e   :  { %v1081_v25 = vsel %vm1070_vm2, nan, %v1080_v18  ;;  %v3928_v60 = vmul.u32 %v3924_v29, %v3922_v15  ;;  %v3929_v5 = vshll.u32 %v3926_v7, 16  ;;  %v3930_v51 = vshrl.u32 %v3926_v7, 16 }
 0x32f   :  { %6201 = vst [vmem:[#allocation2 + $0x20] sm:$0xff] %v1081_v25  ;;  %vm6332_vm3 = vcmp.lt.s32.totalorder %v6331_v3, 0  ;;  %v3931_v32 = vshll.u32 %v3927_v49, 16  ;;  %v3948_v28 = vmul.u32 %v3946_v54, %v3921_v36  ;;  %v3949_v35 = vmul.u32 %v3945_v4, %v3922_v15 }
 0x330   :  { %v2431_v42 = vsel %vm6332_vm3, 0, %v6331_v3  ;;  %vm3933_vm5 = vc.u32 %v3925_v55, %v3929_v5  ;;  %v3935_v16 = vadd.s32 %v3929_v5, %v3925_v55  ;;  %vm2324_vm4 = vcmp.lt.s32.totalorder %v8463_v61, 0 }
 0x331   :  { %v2432_v59 = vsub.s32 32, %v2431_v42  ;;  %v2436_v17 = vsub.s32 4294967266, %v2431_v42  ;;  %v3934_v53 = vsel %vm3933_vm5, 1, %v6469_v27  ;;  %v3947_v0 = vmul.u32 %v3945_v4, %v3921_v36 }
 0x332   :  { %v3936_v31 = vadd.s32 %v3934_v53, %v3928_v60  ;;  %vm3937_vm6 = vc.u32 %v3935_v16, %v3931_v32  ;;  %v3950_v52 = vmul.u32 %v3946_v54, %v3922_v15  ;;  %v3951_v24 = vshll.u32 %v3948_v28, 16  ;;  %v208_v60 = vpop.f32.mrf.mxu0 }
 0x333   :  { %v2433_v38 = vshll.u32 %v2424_v44, %v2431_v42  ;;  %v2434_v9 = vshrl.u32 %v2416_v62, %v2432_v59  ;;  %v2437_v56 = vadd.s32 127, %v2436_v17  ;;  %v3938_v58 = vsel %vm3937_vm6, 1, %v6469_v27 }
 0x334   :  { %v3940_v47 = vadd.s32 %v3938_v58, %v3936_v31  ;;  %v3953_v37 = vshll.u32 %v3949_v35, 16  ;;  %vm3955_vm7 = vc.u32 %v3947_v0, %v3951_v24  ;;  %v3957_v34 = vadd.s32 %v3951_v24, %v3947_v0 }
 0x335   :  { %v2435_v46 = vor.u32 %v2434_v9, %v2433_v38  ;;  %v2438_v13 = vshll.u32 %v2437_v56, 23  ;;  %v3909_v48 = vsel %vm3907_vm11, %v8628_v33, 2102212464  ;;  %v3956_v36 = vsel %vm3955_vm7, 1, %v6469_v27 }
 0x336   :  { %v2446_v30 = vsub.s32 4, %v8632_v1  ;;  %v3941_v29 = vadd.s32 %v3940_v47, %v3930_v51  ;;  %v3958_v44 = vadd.s32 %v3956_v36, %v3950_v52  ;;  %vm3959_vm8 = vc.u32 %v3957_v34, %v3953_v37 }
 0x337   :  { %v2439_v63 = vor.u32 4788187, %v2438_v13  ;;  %v3908_v40 = vsel %vm3904_vm10, %v3888_v20, %v8630_v26  ;;  %v3932_v19 = vshrl.u32 %v3927_v49, 16  ;;  %v3960_v15 = vsel %vm3959_vm8, 1, %v6469_v27 }
 0x338   :  { %v3910_v41 = vsel %vm3906_vm13, %v8626_v57, %v3909_v48  ;;  %v3952_v33 = vshrl.u32 %v3948_v28, 16  ;;  %v3962_v18 = vadd.s32 %v3960_v15, %v3958_v44  ;;  %v5425_v11 = vand.u32 2139095040, %v8669_v21 }
 0x339   :  { %v2440_v54 = vand.u32 2147483647, %v2439_v63  ;;  %v2442_v25 = vcvt.s32.f32 %v2435_v46  ;;  %v3942_v7 = vadd.s32 %v3941_v29, %v3932_v19  ;;  %v5422_v4 = vand.u32 2147483647, %v8669_v21 }
 0x33a   :  { %v2447_v26 = vsel %vm2324_vm4, %v2446_v30, %v8632_v1  ;;  %v3954_v49 = vshrl.u32 %v3949_v35, 16  ;;  %v3963_v3 = vadd.s32 %v3962_v18, %v3952_v33  ;;  %v5426_v20 = vshrl.u32 %v5425_v11, 23 }
 0x33b   :  { %v2443_v62 = vmul.f32 %v2442_v25, %v2440_v54  ;;  %v3961_v55 = vadd.s32 %v3957_v34, %v3953_v37  ;;  %vm2323_vm9 = vcmp.le.f32.partialorder %v2322_v45, 0.7853982  ;;  %v3911_v57 = vsel %vm3905_vm12, %v3908_v40, %v3910_v41 }
 0x33c   :  { %v3964_v5 = vadd.s32 %v3963_v3, %v3954_v49  ;;  %v6390_v51 = vadd.s32 4294967169, %v5426_v20  ;;  %v2449_v28 = vsel %vm2323_vm9, 0, %v2447_v26  ;;  %v5429_v1 = vand.u32 8388607, %v5422_v4 }
 0x33d   :  { %v2444_v32 = vxor.u32 2147483648, %v2443_v62  ;;  %vm3967_vm11 = vc.u32 %v3942_v7, %v3961_v55  ;;  %v8700_v35 = vadd.f32 %v8460_v2, %v208_v60  ;;  %v3965_v45 = vmul.u32 %v8655_v39, %v3911_v57 }
 0x33e   :  { %v3968_v42 = vadd.s32 1, %v3964_v5  ;;  %v5432_v16 = vadd.s32 1, %v6390_v51  ;;  %v2466_v17 = vadd.s32 3, %v2449_v28  ;;  %v5430_v52 = vor.u32 8388608, %v5429_v1 }
 0x33f   :  { %v2445_v59 = vsel %vm2324_vm4, %v2444_v32, %v2443_v62  ;;  %v1085_v9 = vand.u32 2139095040, %v8700_v35  ;;  %v8709_v37 = vadd.s32 %v3961_v55, %v3942_v7  ;;  %vm2465_vm0 = vweird.f32 %v8463_v61 }
 0x340   :  { %v2448_v43 = vsel %vm2323_vm9, %v8463_v61, %v2445_v59  ;;  %v3969_v53 = vsel %vm3967_vm11, %v3968_v42, %v3964_v5  ;;  %vm5433_vm10 = vcmp.gt.s32.totalorder %v5432_v16, 0  ;;  %v8707_v47 = vand.u32 3, %v2466_v17 }
 0x341   :  { %v2450_v0 = vmul.f32 %v2448_v43, %v2448_v43  ;;  %v3970_v31 = vadd.s32 %v3969_v53, %v3965_v45  ;;  %v5434_v24 = vsel %vm5433_vm10, %v5432_v16, 0  ;;  %v8713_v48 = vshll.u32 %v5430_v52, 8 }
 0x342   :  { %v5436_v38 = vand.u32 31, %v5434_v24  ;;  %v1086_v44 = vshrl.u32 %v1085_v9, 23  ;;  %vm2472_vm13 = vcmp.eq.s32.totalorder %v8707_v47, 2  ;;  %v8727_v26 = vshrl.u32 %v5434_v24, 5 }
 0x343   :  { %v2451_v56 = vmul.f32 -0.001358992, %v2450_v0  ;;  %v2458_v2 = vmul.f32 -0.00019511016, %v2450_v0  ;;  %v3971_v58 = vadd.s32 536870912, %v3970_v31  ;;  %vm2469_vm12 = vcmp.eq.s32.totalorder %v8707_v47, 0 }
 0x344   :  { %v5437_v39 = vsub.s32 32, %v5436_v38  ;;  %v5439_v36 = vshll.u32 %v6463_v6, %v5436_v38  ;;  %v5442_v30 = vshll.u32 %v6464_v8, %v5436_v38  ;;  %v5445_v29 = vshll.u32 %v6465_v10, %v5436_v38 }
 0x345   :  { %v2452_v34 = vadd.f32 0.041655596, %v2451_v56  ;;  %v2459_v46 = vadd.f32 0.008332121, %v2458_v2  ;;  %v8711_v13 = vshrl.u32 %v3971_v58, 30  ;;  %v5448_v15 = vshll.u32 %v6466_v12, %v5436_v38 }
 0x346   :  { %v5440_v41 = vshrl.u32 %v6464_v8, %v5437_v39  ;;  %v5443_v33 = vshrl.u32 %v6465_v10, %v5437_v39  ;;  %v5446_v18 = vshrl.u32 %v6466_v12, %v5437_v39  ;;  %v5449_v11 = vshrl.u32 %v6467_v14, %v5437_v39 }
 0x347   :  { %v2453_v63 = vmul.f32 %v2452_v34, %v2450_v0  ;;  %v2460_v40 = vmul.f32 %v2459_v46, %v2450_v0  ;;  %v3973_v19 = vshll.u32 %v8711_v13, 30  ;;  %v5438_v49 = vshrl.u32 %v6463_v6, %v5437_v39 }
 0x348   :  { %v5451_v3 = vshll.u32 %v6467_v14, %v5436_v38  ;;  %v5452_v20 = vshrl.u32 %v6468_v23, %v5437_v39  ;;  %v8734_v62 = vand.u32 65535, %v8713_v48  ;;  %vm2468_vm14 = vcmp.lt.s32.totalorder %v8707_v47, 2 }
 0x349   :  { %v2454_v54 = vadd.f32 -0.4999988, %v2453_v63  ;;  %v2461_v25 = vadd.f32 -0.16666654, %v2460_v40  ;;  %v8725_v7 = vsub.s32 %v3970_v31, %v3973_v19  ;;  %v5441_v5 = vor.u32 %v5440_v41, %v5439_v36 }
 0x34a   :  { %v5444_v51 = vor.u32 %v5443_v33, %v5442_v30  ;;  %v5447_v32 = vor.u32 %v5446_v18, %v5445_v29  ;;  %v5450_v28 = vor.u32 %v5449_v11, %v5448_v15  ;;  %vm5454_vm1 = vcmp.lt.s32.totalorder %v8727_v26, 1 }
 0x34b   :  { %v2455_v55 = vmul.f32 %v2454_v54, %v2450_v0  ;;  %v2462_v60 = vmul.f32 %v2461_v25, %v2450_v0  ;;  %vm3975_vm15 = vcmp.lt.s32.totalorder %v8725_v7, 0  ;;  %v3976_v57 = vsub.s32 0, %v8725_v7 }
 0x34c   :  { %vm5457_vm2 = vcmp.lt.s32.totalorder %v8727_v26, 4  ;;  %v5472_v45 = vshrl.u32 %v8713_v48, 16  ;;  %v6306_v17 = vadd.s32 4294967169, %v1086_v44  ;;  %v5453_v31 = vor.u32 %v5452_v20, %v5451_v3 }
 0x34d   :  { %v2456_v1 = vadd.f32 1.0, %v2455_v55  ;;  %v2463_v42 = vadd.f32 1.0, %v2462_v60  ;;  %v3977_v16 = vsel %vm3975_vm15, %v3976_v57, %v8725_v7  ;;  %vm5456_vm3 = vcmp.lt.s32.totalorder %v8727_v26, 3 }
 0x34e   :  { %v3978_v59 = vclz %v3977_v16  ;;  %vm3874_vm5 = vcmp.lt.s32.totalorder %v8493_v22, 0  ;;  %v3996_v24 = vsub.s32 4, %v8711_v13  ;;  %vm5455_vm4 = vcmp.lt.s32.totalorder %v8727_v26, 2 }
 0x34f   :  { %v2464_v53 = vmul.f32 %v2463_v42, %v2448_v43  ;;  %v2473_v0 = vxor.u32 2147483648, %v2456_v1  ;;  %v5462_v38 = vsel %vm5454_vm1, %v5441_v5, %v5444_v51  ;;  %v5458_v56 = vsel %vm5454_vm1, %v5438_v49, %v5441_v5 }
 0x350   :  { %v6361_v52 = vadd.s32 4294967294, %v3978_v59  ;;  %v5459_v43 = vsel %vm5457_vm2, %v5447_v32, 2102212464  ;;  %v5463_v2 = vsel %vm5457_vm2, %v5450_v28, 920167782  ;;  %v5466_v34 = vsel %vm5454_vm1, %v5444_v51, %v5447_v32 }
 0x351   :  { %v2470_v9 = vxor.u32 2147483648, %v2464_v53  ;;  %v2474_v58 = vsel %vm2472_vm13, %v2473_v0, %v2464_v53  ;;  %v5464_v39 = vsel %vm5456_vm3, %v5447_v32, %v5463_v2  ;;  %v5467_v29 = vsel %vm5457_vm2, %v5453_v31, 1326507024 }
 0x352   :  { %vm6362_vm6 = vcmp.lt.s32.totalorder %v6361_v52, 0  ;;  %v5465_v30 = vsel %vm5455_vm4, %v5462_v38, %v5464_v39  ;;  %v5460_v19 = vsel %vm5456_vm3, %v5444_v51, %v5459_v43  ;;  %v5468_v41 = vsel %vm5456_vm3, %v5450_v28, %v5467_v29 }
 0x353   :  { %v2471_v46 = vsel %vm2469_vm12, %v2456_v1, %v2470_v9  ;;  %v3981_v36 = vsel %vm6362_vm6, 0, %v6361_v52  ;;  %v5495_v33 = vand.u32 65535, %v5465_v30  ;;  %v5496_v18 = vshrl.u32 %v5465_v30, 16 }
 0x354   :  { %v2475_v44 = vsel %vm2468_vm14, %v2471_v46, %v2474_v58  ;;  %v3982_v63 = vsub.s32 32, %v3981_v36  ;;  %v3986_v40 = vsub.s32 4294967266, %v3981_v36  ;;  %v3983_v11 = vshll.u32 %v8725_v7, %v3981_v36 }
 0x355   :  { %v2476_v15 = vsel %vm2465_vm0, nan, %v2475_v44  ;;  %v5469_v25 = vsel %vm5455_vm4, %v5466_v34, %v5468_v41  ;;  %v5498_v20 = vmul.u32 %v5496_v18, %v8734_v62  ;;  %v1082_v61 = vand.u32 2147483647, %v8700_v35 }
 0x356   :  { %6210 = vst [vmem:[#allocation2 + $0x68] sm:$0xff] %v2476_v15  ;;  %v3984_v54 = vshrl.u32 %v8709_v37, %v3982_v63  ;;  %v3987_v47 = vadd.s32 127, %v3986_v40  ;;  %v5473_v49 = vand.u32 65535, %v5469_v25  ;;  %v5474_v3 = vshrl.u32 %v5469_v25, 16 }
 0x357   :  { %v5499_v57 = vmul.u32 %v5495_v33, %v5472_v45  ;;  %v1092_v5 = vadd.s32 1, %v6306_v17  ;;  %v8785_v7 = vsel %vm3874_vm5, %v3996_v24, %v8711_v13  ;;  %v8789_v37 = vsel %vm5455_vm4, %v5458_v56, %v5460_v19 }
 0x358   :  { %v3985_v55 = vor.u32 %v3984_v54, %v3983_v11  ;;  %v3988_v60 = vshll.u32 %v3987_v47, 23  ;;  %v5476_v51 = vmul.u32 %v5474_v3, %v8734_v62  ;;  %v5477_v32 = vmul.u32 %v5473_v49, %v5472_v45 }
 0x359   :  { %v5497_v1 = vmul.u32 %v5495_v33, %v8734_v62  ;;  %v5500_v42 = vmul.u32 %v5496_v18, %v5472_v45  ;;  %v5501_v16 = vshll.u32 %v5498_v20, 16  ;;  %v5475_v17 = vmul.u32 %v5473_v49, %v8734_v62 }
 0x35a   :  { %v3989_v28 = vor.u32 4788187, %v3988_v60  ;;  %v3992_v59 = vcvt.s32.f32 %v3985_v55  ;;  %v5478_v53 = vmul.u32 %v5474_v3, %v5472_v45  ;;  %v5479_v0 = vshll.u32 %v5476_v51, 16 }
 0x35b   :  { %v5481_v13 = vshll.u32 %v5477_v32, 16  ;;  %v5503_v52 = vshll.u32 %v5499_v57, 16  ;;  %vm5505_vm7 = vc.u32 %v5497_v1, %v5501_v16  ;;  %v5507_v38 = vadd.s32 %v5501_v16, %v5497_v1 }
 0x35c   :  { %v3990_v31 = vand.u32 2147483647, %v3989_v28  ;;  %vm5483_vm8 = vc.u32 %v5475_v17, %v5479_v0  ;;  %v5485_v26 = vadd.s32 %v5479_v0, %v5475_v17  ;;  %v5506_v24 = vsel %vm5505_vm7, 1, %v6469_v27 }
 0x35d   :  { %v5484_v56 = vsel %vm5483_vm8, 1, %v6469_v27  ;;  %v5508_v43 = vadd.s32 %v5506_v24, %v5500_v42  ;;  %vm1093_vm9 = vcmp.gt.s32.totalorder %v1092_v5, 0  ;;  %v5502_v58 = vshrl.u32 %v5498_v20, 16 }
 0x35e   :  { %v3993_v9 = vmul.f32 %v3992_v59, %v3990_v31  ;;  %v5486_v2 = vadd.s32 %v5484_v56, %v5478_v53  ;;  %vm5487_vm11 = vc.u32 %v5485_v26, %v5481_v13  ;;  %vm5509_vm10 = vc.u32 %v5507_v38, %v5503_v52 }
 0x35f   :  { %v5488_v45 = vsel %vm5487_vm11, 1, %v6469_v27  ;;  %v5510_v39 = vsel %vm5509_vm10, 1, %v6469_v27  ;;  %v1094_v34 = vsel %vm1093_vm9, %v1092_v5, 0  ;;  %v5480_v46 = vshrl.u32 %v5476_v51, 16 }
 0x360   :  { %v3994_v62 = vxor.u32 2147483648, %v3993_v9  ;;  %v5490_v36 = vadd.s32 %v5488_v45, %v5486_v2  ;;  %v5512_v30 = vadd.s32 %v5510_v39, %v5508_v43  ;;  %v1096_v29 = vand.u32 31, %v1094_v34 }
 0x361   :  { %vm8800_vm13 = vcmp.le.f32.partialorder %v3872_v50, 0.7853982  ;;  %v5482_v40 = vshrl.u32 %v5477_v32, 16  ;;  %v5504_v19 = vshrl.u32 %v5499_v57, 16  ;;  %v5515_v54 = vmul.u32 %v8713_v48, %v8789_v37 }
 0x362   :  { %v3995_v63 = vsel %vm3874_vm5, %v3994_v62, %v3993_v9  ;;  %v5491_v41 = vadd.s32 %v5490_v36, %v5480_v46  ;;  %v5513_v33 = vadd.s32 %v5512_v30, %v5502_v58  ;;  %v8809_v18 = vsub.s32 32, %v1096_v29 }
 0x363   :  { %v3998_v15 = vsel %vm8800_vm13, %v8493_v22, %v3995_v63  ;;  %v3999_v50 = vsel %vm8800_vm13, 0, %v8785_v7  ;;  %v1089_v47 = vand.u32 8388607, %v1082_v61  ;;  %v8820_v49 = vadd.s32 %v5507_v38, %v5503_v52 }
 0x364   :  { %v4000_v11 = vmul.f32 %v3998_v15, %v3998_v15  ;;  %v8818_v25 = vadd.s32 %v5491_v41, %v5482_v40  ;;  %v5514_v3 = vadd.s32 %v5513_v33, %v5504_v19  ;;  %v8822_v20 = vshrl.u32 %v1094_v34, 5 }
 0x365   :  { %v1102_v57 = vshll.u32 %v6464_v8, %v1096_v29  ;;  %v1105_v5 = vshll.u32 %v6465_v10, %v1096_v29  ;;  %v1103_v7 = vshrl.u32 %v6465_v10, %v8809_v18  ;;  %v1106_v37 = vshrl.u32 %v6466_v12, %v8809_v18 }
 0x366   :  { %v4001_v55 = vmul.f32 -0.001358992, %v4000_v11  ;;  %v4008_v60 = vmul.f32 -0.00019511016, %v4000_v11  ;;  %vm5517_vm12 = vc.u32 %v8818_v25, %v8820_v49  ;;  %v5518_v48 = vadd.s32 1, %v5514_v3 }
 0x367   :  { %v1099_v28 = vshll.u32 %v6463_v6, %v1096_v29  ;;  %v1100_v1 = vshrl.u32 %v6464_v8, %v8809_v18  ;;  %v1108_v16 = vshll.u32 %v6466_v12, %v1096_v29  ;;  %v1109_v59 = vshrl.u32 %v6467_v14, %v8809_v18 }
 0x368   :  { %v4002_v51 = vadd.f32 0.041655596, %v4001_v55  ;;  %v4009_v32 = vadd.f32 0.008332121, %v4008_v60  ;;  %v5519_v42 = vsel %vm5517_vm12, %v5518_v48, %v5514_v3  ;;  %v1111_v17 = vshll.u32 %v6467_v14, %v1096_v29 }
 0x369   :  { %v5520_v31 = vadd.s32 %v5519_v42, %v5515_v54  ;;  %v1112_v13 = vshrl.u32 %v6468_v23, %v8809_v18  ;;  %v1090_v52 = vor.u32 8388608, %v1089_v47  ;;  %v8841_v26 = vor.u32 %v1103_v7, %v1102_v57 }
 0x36a   :  { %v4003_v53 = vmul.f32 %v4002_v51, %v4000_v11  ;;  %v4010_v0 = vmul.f32 %v4009_v32, %v4000_v11  ;;  %v1107_v24 = vor.u32 %v1106_v37, %v1105_v5  ;;  %v1110_v38 = vor.u32 %v1109_v59, %v1108_v16 }
 0x36b   :  { %v5521_v43 = vadd.s32 536870912, %v5520_v31  ;;  %v1113_v2 = vor.u32 %v1112_v13, %v1111_v17  ;;  %v4016_v58 = vadd.s32 3, %v3999_v50  ;;  %v8843_v62 = vor.u32 %v1100_v1, %v1099_v28  ;;  %v235_v28 = vpop.f32.mrf.mxu1 }
 0x36c   :  { %v4004_v9 = vadd.f32 -0.4999988, %v4003_v53  ;;  %v4011_v56 = vadd.f32 -0.16666654, %v4010_v0  ;;  %vm1114_vm14 = vcmp.lt.s32.totalorder %v8822_v20, 1  ;;  %vm1117_vm15 = vcmp.lt.s32.totalorder %v8822_v20, 4 }
 0x36d   :  { %v8847_v34 = vshrl.u32 %v5521_v43, 30  ;;  %vm1116_vm0 = vcmp.lt.s32.totalorder %v8822_v20, 3  ;;  %vm1115_vm1 = vcmp.lt.s32.totalorder %v8822_v20, 2  ;;  %v1123_v46 = vsel %vm1117_vm15, %v1110_v38, 920167782 }
 0x36e   :  { %v4005_v45 = vmul.f32 %v4004_v9, %v4000_v11  ;;  %v4012_v39 = vmul.f32 %v4011_v56, %v4000_v11  ;;  %v1127_v36 = vsel %vm1117_vm15, %v1113_v2, 1326507024  ;;  %v8855_v30 = vshll.u32 %v1090_v52, 8 }
 0x36f   :  { %v5523_v63 = vshll.u32 %v8847_v34, 30  ;;  %v1126_v40 = vsel %vm1114_vm14, %v8841_v26, %v1107_v24  ;;  %v4017_v19 = vand.u32 3, %v4016_v58  ;;  %v1122_v41 = vsel %vm1114_vm14, %v8843_v62, %v8841_v26 }
 0x370   :  { %v4006_v29 = vadd.f32 1.0, %v4005_v45  ;;  %v4013_v44 = vadd.f32 1.0, %v4012_v39  ;;  %v1124_v33 = vsel %vm1116_vm0, %v1107_v24, %v1123_v46  ;;  %v1128_v50 = vsel %vm1116_vm0, %v1110_v38, %v1127_v36  ;;  %v8883_v38 = vld [vmem:[%s10726_s2] ss:$0 sm:$0xff] }
 0x371   :  { %v5524_v47 = vsub.s32 %v5520_v31, %v5523_v63  ;;  %vm4015_vm2 = vweird.f32 %v8493_v22  ;;  %v1129_v3 = vsel %vm1115_vm1, %v1126_v40, %v1128_v50  ;;  %v1131_v55 = vand.u32 65535, %v8855_v30 }
 0x372   :  { %v4014_v11 = vmul.f32 %v4013_v44, %v3998_v15  ;;  %v4023_v54 = vxor.u32 2147483648, %v4006_v29  ;;  %v1132_v60 = vshrl.u32 %v8855_v30, 16  ;;  %v1125_v48 = vsel %vm1115_vm1, %v1122_v41, %v1124_v33 }
 0x373   :  { %vm5525_vm3 = vcmp.lt.s32.totalorder %v5524_v47, 0  ;;  %v5526_v5 = vsub.s32 0, %v5524_v47  ;;  %vm4019_vm5 = vcmp.eq.s32.totalorder %v4017_v19, 0  ;;  %vm4022_vm4 = vcmp.eq.s32.totalorder %v4017_v19, 2 }
 0x374   :  { %v4020_v57 = vxor.u32 2147483648, %v4014_v11  ;;  %v1133_v15 = vand.u32 65535, %v1129_v3  ;;  %v1134_v7 = vshrl.u32 %v1129_v3, 16  ;;  %vm4018_vm6 = vcmp.lt.s32.totalorder %v4017_v19, 2 }
 0x375   :  { %v4024_v51 = vsel %vm4022_vm4, %v4023_v54, %v4014_v11  ;;  %v5527_v32 = vsel %vm5525_vm3, %v5526_v5, %v5524_v47  ;;  %v1155_v16 = vand.u32 65535, %v1125_v48  ;;  %v1156_v59 = vshrl.u32 %v1125_v48, 16 }
 0x376   :  { %v4021_v37 = vsel %vm4019_vm5, %v4006_v29, %v4020_v57  ;;  %v5528_v42 = vclz %v5527_v32  ;;  %v1135_v53 = vmul.u32 %v1133_v15, %v1131_v55  ;;  %v1136_v0 = vmul.u32 %v1134_v7, %v1131_v55 }
 0x377   :  { %v4025_v1 = vsel %vm4018_vm6, %v4021_v37, %v4024_v51  ;;  %v1137_v31 = vmul.u32 %v1133_v15, %v1132_v60  ;;  %v1098_v52 = vshrl.u32 %v6463_v6, %v8809_v18  ;;  %v8886_v9 = vadd.f32 %v8883_v38, %v235_v28 }
 0x378   :  { %v4026_v17 = vsel %vm4015_vm2, nan, %v4025_v1  ;;  %v6391_v13 = vadd.s32 4294967294, %v5528_v42  ;;  %v5516_v22 = vadd.s32 %v8820_v49, %v8818_v25  ;;  %v1119_v56 = vsel %vm1117_vm15, %v1107_v24, 2102212464 }
 0x379   :  { %6220 = vst [vmem:[#allocation2 + $0xb8] sm:$0xff] %v4026_v17  ;;  %v1139_v43 = vshll.u32 %v1136_v0, 16  ;;  %v1141_v2 = vshll.u32 %v1137_v31, 16  ;;  %v1138_v58 = vmul.u32 %v1134_v7, %v1132_v60  ;;  %v1158_v45 = vmul.u32 %v1156_v59, %v1131_v55 }
 0x37a   :  { %vm6392_vm7 = vcmp.lt.s32.totalorder %v6391_v13, 0  ;;  %v1159_v18 = vmul.u32 %v1155_v16, %v1132_v60  ;;  %vm5424_vm8 = vcmp.lt.s32.totalorder %v8669_v21, 0  ;;  %v1157_v36 = vmul.u32 %v1155_v16, %v1131_v55 }
 0x37b   :  { %v5531_v39 = vsel %vm6392_vm7, 0, %v6391_v13  ;;  %vm1143_vm9 = vc.u32 %v1135_v53, %v1139_v43  ;;  %v1145_v46 = vadd.s32 %v1139_v43, %v1135_v53  ;;  %v1140_v63 = vshrl.u32 %v1136_v0, 16 }
 0x37c   :  { %v5532_v29 = vsub.s32 32, %v5531_v39  ;;  %v5536_v44 = vsub.s32 4294967266, %v5531_v39  ;;  %v1144_v25 = vsel %vm1143_vm9, 1, %v6469_v27  ;;  %v5533_v49 = vshll.u32 %v5524_v47, %v5531_v39 }
 0x37d   :  { %v1146_v40 = vadd.s32 %v1144_v25, %v1138_v58  ;;  %vm1147_vm11 = vc.u32 %v1145_v46, %v1141_v2  ;;  %v1161_v24 = vshll.u32 %v1158_v45, 16  ;;  %v1163_v50 = vshll.u32 %v1159_v18, 16 }
 0x37e   :  { %v5534_v19 = vshrl.u32 %v5516_v22, %v5532_v29  ;;  %v5537_v41 = vadd.s32 127, %v5536_v44  ;;  %v1148_v33 = vsel %vm1147_vm11, 1, %v6469_v27  ;;  %v1160_v54 = vmul.u32 %v1156_v59, %v1132_v60 }
 0x37f   :  { %v1150_v11 = vadd.s32 %v1148_v33, %v1146_v40  ;;  %vm1165_vm10 = vc.u32 %v1157_v36, %v1161_v24  ;;  %v1167_v3 = vadd.s32 %v1161_v24, %v1157_v36  ;;  %v5546_v5 = vsub.s32 4, %v8847_v34 }
 0x380   :  { %v5535_v57 = vor.u32 %v5534_v19, %v5533_v49  ;;  %v5538_v55 = vshll.u32 %v5537_v41, 23  ;;  %v1166_v48 = vsel %vm1165_vm10, 1, %v6469_v27  ;;  %v2477_v7 = vand.u32 2147483647, %v8886_v9 }
 0x381   :  { %v1151_v15 = vadd.s32 %v1150_v11, %v1140_v63  ;;  %v1168_v47 = vadd.s32 %v1166_v48, %v1160_v54  ;;  %vm1169_vm13 = vc.u32 %v1167_v3, %v1163_v50  ;;  %v1118_v51 = vsel %vm1114_vm14, %v1098_v52, %v8843_v62 }
 0x382   :  { %v5539_v37 = vor.u32 4788187, %v5538_v55  ;;  %v1142_v32 = vshrl.u32 %v1137_v31, 16  ;;  %v1170_v60 = vsel %vm1169_vm13, 1, %v6469_v27  ;;  %v1120_v28 = vsel %vm1116_vm0, %v8841_v26, %v1119_v56  ;;  %v265_v26 = vpop.f32.mrf.mxu2 }
 0x383   :  { %v1162_v1 = vshrl.u32 %v1158_v45, 16  ;;  %v1172_v42 = vadd.s32 %v1170_v60, %v1168_v47  ;;  %v2480_v16 = vand.u32 2139095040, %v8886_v9  ;;  %v5542_v17 = vcvt.s32.f32 %v5535_v57 }
 0x384   :  { %v5540_v59 = vand.u32 2147483647, %v5539_v37  ;;  %v5547_v53 = vsel %vm5424_vm8, %v5546_v5, %v8847_v34  ;;  %v1152_v0 = vadd.s32 %v1151_v15, %v1142_v32  ;;  %v1164_v13 = vshrl.u32 %v1159_v18, 16 }
 0x385   :  { %v1173_v62 = vadd.s32 %v1172_v42, %v1162_v1  ;;  %v2481_v31 = vshrl.u32 %v2480_v16, 23  ;;  %v2484_v52 = vand.u32 8388607, %v2477_v7  ;;  %v1171_v43 = vadd.s32 %v1167_v3, %v1163_v50 }
 0x386   :  { %v5543_v22 = vmul.f32 %v5542_v17, %v5540_v59  ;;  %vm5423_vm12 = vcmp.le.f32.partialorder %v5422_v4, 0.7853982  ;;  %v1121_v56 = vsel %vm1115_vm1, %v1118_v51, %v1120_v28  ;;  %v8916_v36 = vadd.f32 %v8883_v38, %v265_v26 }
 0x387   :  { %v1174_v2 = vadd.s32 %v1173_v62, %v1164_v13  ;;  %v6333_v58 = vadd.s32 4294967169, %v2481_v31  ;;  %v5549_v34 = vsel %vm5423_vm12, 0, %v5547_v53  ;;  %vm1177_vm14 = vc.u32 %v1152_v0, %v1171_v43 }
 0x388   :  { %v5544_v45 = vxor.u32 2147483648, %v5543_v22  ;;  %v2485_v39 = vor.u32 8388608, %v2484_v52  ;;  %v1175_v44 = vmul.u32 %v8855_v30, %v1121_v56  ;;  %v5566_v20 = vadd.s32 3, %v5549_v34 }
 0x389   :  { %v1178_v18 = vadd.s32 1, %v1174_v2  ;;  %v2487_v46 = vadd.s32 1, %v6333_v58  ;;  %v4030_v41 = vand.u32 2139095040, %v8916_v36  ;;  %v8927_v55 = vadd.s32 %v1171_v43, %v1152_v0 }
 0x38a   :  { %v5545_v29 = vsel %vm5424_vm8, %v5544_v45, %v5543_v22  ;;  %v8922_v19 = vshll.u32 %v2485_v39, 8  ;;  %v8925_v54 = vand.u32 3, %v5566_v20  ;;  %v4027_v47 = vand.u32 2147483647, %v8916_v36 }
 0x38b   :  { %v5548_v4 = vsel %vm5423_vm12, %v8669_v21, %v5545_v29  ;;  %v1179_v63 = vsel %vm1177_vm14, %v1178_v18, %v1174_v2  ;;  %vm2488_vm15 = vcmp.gt.s32.totalorder %v2487_v46, 0  ;;  %v4031_v37 = vshrl.u32 %v4030_v41, 23 }
 0x38c   :  { %v5550_v25 = vmul.f32 %v5548_v4, %v5548_v4  ;;  %v1180_v49 = vadd.s32 %v1179_v63, %v1175_v44  ;;  %v2489_v40 = vsel %vm2488_vm15, %v2487_v46, 0  ;;  %v8931_v15 = vand.u32 65535, %v8922_v19 }
 0x38d   :  { %v2491_v24 = vand.u32 31, %v2489_v40  ;;  %vm1084_vm0 = vcmp.lt.s32.totalorder %v8700_v35, 0  ;;  %vm5572_vm1 = vcmp.eq.s32.totalorder %v8925_v54, 2  ;;  %v8943_v13 = vshrl.u32 %v2489_v40, 5 }
 0x38e   :  { %v5551_v33 = vmul.f32 -0.001358992, %v5550_v25  ;;  %v5558_v50 = vmul.f32 -0.00019511016, %v5550_v25  ;;  %v1181_v11 = vadd.s32 536870912, %v1180_v49  ;;  %vm5569_vm2 = vcmp.eq.s32.totalorder %v8925_v54, 0 }
 0x38f   :  { %v2492_v3 = vsub.s32 32, %v2491_v24  ;;  %v2494_v48 = vshll.u32 %v6463_v6, %v2491_v24  ;;  %v2497_v28 = vshll.u32 %v6464_v8, %v2491_v24  ;;  %v2503_v16 = vshll.u32 %v6466_v12, %v2491_v24 }
 0x390   :  { %v5552_v30 = vadd.f32 0.041655596, %v5551_v33  ;;  %v5559_v57 = vadd.f32 0.008332121, %v5558_v50  ;;  %v1182_v5 = vshrl.u32 %v1181_v11, 30  ;;  %v2500_v62 = vshll.u32 %v6465_v10, %v2491_v24 }
 0x391   :  { %v2495_v1 = vshrl.u32 %v6464_v8, %v2492_v3  ;;  %v2498_v42 = vshrl.u32 %v6465_v10, %v2492_v3  ;;  %v2504_v59 = vshrl.u32 %v6467_v14, %v2492_v3  ;;  %v2501_v31 = vshrl.u32 %v6466_v12, %v2492_v3 }
 0x392   :  { %v5553_v51 = vmul.f32 %v5552_v30, %v5550_v25  ;;  %v5560_v32 = vmul.f32 %v5559_v57, %v5550_v25  ;;  %v1183_v60 = vshll.u32 %v1182_v5, 30  ;;  %v2506_v52 = vshll.u32 %v6467_v14, %v2491_v24 }
 0x393   :  { %v2507_v22 = vshrl.u32 %v6468_v23, %v2492_v3  ;;  %vm5568_vm3 = vcmp.lt.s32.totalorder %v8925_v54, 2  ;;  %vm5565_vm4 = vweird.f32 %v8669_v21  ;;  %v1206_v2 = vsub.s32 4, %v1182_v5 }
 0x394   :  { %v5554_v17 = vadd.f32 -0.4999988, %v5553_v51  ;;  %v5561_v53 = vadd.f32 -0.16666654, %v5560_v32  ;;  %v8941_v0 = vsub.s32 %v1180_v49, %v1183_v60  ;;  %v2496_v58 = vor.u32 %v2495_v1, %v2494_v48 }
 0x395   :  { %v2499_v45 = vor.u32 %v2498_v42, %v2497_v28  ;;  %v2505_v34 = vor.u32 %v2504_v59, %v2503_v16  ;;  %vm2509_vm6 = vcmp.lt.s32.totalorder %v8943_v13, 1  ;;  %v2502_v44 = vor.u32 %v2501_v31, %v2500_v62 }
 0x396   :  { %v5555_v43 = vmul.f32 %v5554_v17, %v5550_v25  ;;  %v5562_v26 = vmul.f32 %v5561_v53, %v5550_v25  ;;  %vm1185_vm5 = vcmp.lt.s32.totalorder %v8941_v0, 0  ;;  %v1186_v56 = vsub.s32 0, %v8941_v0 }
 0x397   :  { %vm2512_vm7 = vcmp.lt.s32.totalorder %v8943_v13, 4  ;;  %v2527_v20 = vshrl.u32 %v8922_v19, 16  ;;  %vm8960_vm8 = vcmp.le.f32.partialorder %v1082_v61, 0.7853982  ;;  %v2508_v40 = vor.u32 %v2507_v22, %v2506_v52 }
 0x398   :  { %v5556_v18 = vadd.f32 1.0, %v5555_v43  ;;  %v5563_v39 = vadd.f32 1.0, %v5562_v26  ;;  %v1187_v46 = vsel %vm1185_vm5, %v1186_v56, %v8941_v0  ;;  %vm2511_vm9 = vcmp.lt.s32.totalorder %v8943_v13, 3 }
 0x399   :  { %v1188_v29 = vclz %v1187_v46  ;;  %v2493_v41 = vshrl.u32 %v6463_v6, %v2492_v3  ;;  %v2517_v33 = vsel %vm2509_vm6, %v2496_v58, %v2499_v45  ;;  %v6363_v50 = vadd.s32 4294967169, %v4031_v37 }
 0x39a   :  { %v5564_v63 = vmul.f32 %v5563_v39, %v5548_v4  ;;  %v5573_v25 = vxor.u32 2147483648, %v5556_v18  ;;  %v8970_v4 = vsel %vm1084_vm0, %v1206_v2, %v1182_v5  ;;  %vm2510_vm11 = vcmp.lt.s32.totalorder %v8943_v13, 2 }
 0x39b   :  { %v6307_v24 = vadd.s32 4294967294, %v1188_v29  ;;  %v2518_v61 = vsel %vm2512_vm7, %v2505_v34, 920167782  ;;  %v2521_v57 = vsel %vm2509_vm6, %v2499_v45, %v2502_v44  ;;  %v2522_v51 = vsel %vm2512_vm7, %v2508_v40, 1326507024 }
 0x39c   :  { %v5570_v11 = vxor.u32 2147483648, %v5564_v63  ;;  %v5574_v30 = vsel %vm5572_vm1, %v5573_v25, %v5564_v63  ;;  %v2519_v3 = vsel %vm2511_vm9, %v2502_v44, %v2518_v61  ;;  %v2514_v1 = vsel %vm2512_vm7, %v2502_v44, 2102212464 }
 0x39d   :  { %vm6308_vm10 = vcmp.lt.s32.totalorder %v6307_v24, 0  ;;  %v2520_v37 = vsel %vm2510_vm11, %v2517_v33, %v2519_v3  ;;  %v2523_v16 = vsel %vm2511_vm9, %v2505_v34, %v2522_v51  ;;  %v4037_v21 = vadd.s32 1, %v6363_v50 }
 0x39e   :  { %v5571_v48 = vsel %vm5569_vm2, %v5556_v18, %v5570_v11  ;;  %v1191_v5 = vsel %vm6308_vm10, 0, %v6307_v24  ;;  %v2550_v59 = vand.u32 65535, %v2520_v37  ;;  %v2551_v17 = vshrl.u32 %v2520_v37, 16 }
 0x39f   :  { %v5575_v32 = vsel %vm5568_vm3, %v5571_v48, %v5574_v30  ;;  %v1192_v60 = vsub.s32 32, %v1191_v5  ;;  %v1196_v28 = vsub.s32 4294967266, %v1191_v5  ;;  %v1193_v53 = vshll.u32 %v8941_v0, %v1191_v5 }
 0x3a0   :  { %v5576_v42 = vsel %vm5565_vm4, nan, %v5575_v32  ;;  %v2524_v31 = vsel %vm2510_vm11, %v2521_v57, %v2523_v16  ;;  %v2553_v43 = vmul.u32 %v2551_v17, %v8931_v15  ;;  %v1209_v2 = vsel %vm8960_vm8, 0, %v8970_v4 }
 0x3a1   :  { %6230 = vst [vmem:[#allocation2 + $0x108] sm:$0xff] %v5576_v42  ;;  %v1194_v62 = vshrl.u32 %v8927_v55, %v1192_v60  ;;  %v1197_v54 = vadd.s32 127, %v1196_v28  ;;  %v2528_v52 = vand.u32 65535, %v2524_v31  ;;  %v2529_v22 = vshrl.u32 %v2524_v31, 16 }
 0x3a2   :  { %v2554_v34 = vmul.u32 %v2550_v59, %v2527_v20  ;;  %v2513_v0 = vsel %vm2509_vm6, %v2493_v41, %v2496_v58  ;;  %v2515_v55 = vsel %vm2511_vm9, %v2499_v45, %v2514_v1  ;;  %v2552_v29 = vmul.u32 %v2550_v59, %v8931_v15 }
 0x3a3   :  { %v1195_v26 = vor.u32 %v1194_v62, %v1193_v53  ;;  %v1198_v56 = vshll.u32 %v1197_v54, 23  ;;  %v2531_v18 = vmul.u32 %v2529_v22, %v8931_v15  ;;  %v2532_v39 = vmul.u32 %v2528_v52, %v2527_v20 }
 0x3a4   :  { %v2555_v44 = vmul.u32 %v2551_v17, %v2527_v20  ;;  %v2556_v63 = vshll.u32 %v2553_v43, 16  ;;  %v2530_v40 = vmul.u32 %v2528_v52, %v8931_v15  ;;  %v2533_v24 = vmul.u32 %v2529_v22, %v2527_v20 }
 0x3a5   :  { %v1199_v46 = vor.u32 4788187, %v1198_v56  ;;  %v1202_v25 = vcvt.s32.f32 %v1195_v26  ;;  %v2534_v33 = vshll.u32 %v2531_v18, 16  ;;  %v2536_v11 = vshll.u32 %v2532_v39, 16 }
 0x3a6   :  { %v2558_v4 = vshll.u32 %v2554_v34, 16  ;;  %vm2560_vm13 = vc.u32 %v2552_v29, %v2556_v63  ;;  %v2562_v41 = vadd.s32 %v2556_v63, %v2552_v29  ;;  %vm4038_vm14 = vcmp.gt.s32.totalorder %v4037_v21, 0 }
 0x3a7   :  { %v1200_v50 = vand.u32 2147483647, %v1199_v46  ;;  %vm2538_vm12 = vc.u32 %v2530_v40, %v2534_v33  ;;  %v2540_v58 = vadd.s32 %v2534_v33, %v2530_v40  ;;  %v2561_v45 = vsel %vm2560_vm13, 1, %v6469_v27 }
 0x3a8   :  { %v2539_v30 = vsel %vm2538_vm12, 1, %v6469_v27  ;;  %v2563_v3 = vadd.s32 %v2561_v45, %v2555_v44  ;;  %v2557_v48 = vshrl.u32 %v2553_v43, 16  ;;  %vm2564_vm1 = vc.u32 %v2562_v41, %v2558_v4 }
 0x3a9   :  { %v1203_v61 = vmul.f32 %v1202_v25, %v1200_v50  ;;  %v2541_v57 = vadd.s32 %v2539_v30, %v2533_v24  ;;  %vm2542_vm15 = vc.u32 %v2540_v58, %v2536_v11  ;;  %v2565_v5 = vsel %vm2564_vm1, 1, %v6469_v27 }
 0x3aa   :  { %v2543_v20 = vsel %vm2542_vm15, 1, %v6469_v27  ;;  %v4039_v37 = vsel %vm4038_vm14, %v4037_v21, 0  ;;  %v2535_v51 = vshrl.u32 %v2531_v18, 16  ;;  %v2567_v60 = vadd.s32 %v2565_v5, %v2563_v3 }
 0x3ab   :  { %v1204_v15 = vxor.u32 2147483648, %v1203_v61  ;;  %v2545_v32 = vadd.s32 %v2543_v20, %v2541_v57  ;;  %v4041_v28 = vand.u32 31, %v4039_v37  ;;  %v2516_v42 = vsel %vm2510_vm11, %v2513_v0, %v2515_v55 }
 0x3ac   :  { %v2537_v16 = vshrl.u32 %v2532_v39, 16  ;;  %v2559_v59 = vshrl.u32 %v2554_v34, 16  ;;  %v2568_v62 = vadd.s32 %v2567_v60, %v2557_v48  ;;  %v1226_v52 = vadd.s32 3, %v1209_v2 }
 0x3ad   :  { %v1205_v1 = vsel %vm1084_vm0, %v1204_v15, %v1203_v61  ;;  %v2546_v53 = vadd.s32 %v2545_v32, %v2535_v51  ;;  %v9021_v54 = vsub.s32 32, %v4041_v28  ;;  %v4034_v22 = vand.u32 8388607, %v4027_v47 }
 0x3ae   :  { %v1208_v17 = vsel %vm8960_vm8, %v8700_v35, %v1205_v1  ;;  %v9027_v21 = vadd.s32 %v2562_v41, %v2558_v4  ;;  %v2569_v13 = vadd.s32 %v2568_v62, %v2559_v59  ;;  %v2570_v26 = vmul.u32 %v8922_v19, %v2516_v42 }
 0x3af   :  { %v1210_v31 = vmul.f32 %v1208_v17, %v1208_v17  ;;  %v9025_v43 = vadd.s32 %v2546_v53, %v2537_v16  ;;  %v9030_v49 = vshrl.u32 %v4039_v37, 5  ;;  %v4047_v0 = vshll.u32 %v6464_v8, %v4041_v28 }
 0x3b0   :  { %v2573_v2 = vadd.s32 1, %v2569_v13  ;;  %v4048_v55 = vshrl.u32 %v6465_v10, %v9021_v54  ;;  %v4051_v18 = vshrl.u32 %v6466_v12, %v9021_v54  ;;  %v4045_v19 = vshrl.u32 %v6464_v8, %v9021_v54 }
 0x3b1   :  { %v1211_v56 = vmul.f32 -0.001358992, %v1210_v31  ;;  %v1218_v34 = vmul.f32 -0.00019511016, %v1210_v31  ;;  %vm2572_vm0 = vc.u32 %v9025_v43, %v9027_v21  ;;  %v4050_v29 = vshll.u32 %v6465_v10, %v4041_v28 }
 0x3b2   :  { %v2574_v44 = vsel %vm2572_vm0, %v2573_v2, %v2569_v13  ;;  %v4053_v63 = vshll.u32 %v6466_v12, %v4041_v28  ;;  %v4054_v25 = vshrl.u32 %v6467_v14, %v9021_v54  ;;  %v4056_v40 = vshll.u32 %v6467_v14, %v4041_v28 }
 0x3b3   :  { %v1212_v39 = vadd.f32 0.041655596, %v1211_v56  ;;  %v1219_v46 = vadd.f32 0.008332121, %v1218_v34  ;;  %v2575_v50 = vadd.s32 %v2574_v44, %v2570_v26  ;;  %v4057_v11 = vshrl.u32 %v6468_v23, %v9021_v54 }
 0x3b4   :  { %v4044_v4 = vshll.u32 %v6463_v6, %v4041_v28  ;;  %v9049_v58 = vor.u32 %v4048_v55, %v4047_v0  ;;  %v9051_v45 = vor.u32 %v4051_v18, %v4050_v29  ;;  %v4055_v41 = vor.u32 %v4054_v25, %v4053_v63  ;;  %v295_v29 = vpop.f32.mrf.mxu3 }
 0x3b5   :  { %v1213_v24 = vmul.f32 %v1212_v39, %v1210_v31  ;;  %v1220_v33 = vmul.f32 %v1219_v46, %v1210_v31  ;;  %v2576_v3 = vadd.s32 536870912, %v2575_v50  ;;  %v4058_v57 = vor.u32 %v4057_v11, %v4056_v40 }
 0x3b6   :  { %v1227_v48 = vand.u32 3, %v1226_v52  ;;  %v4035_v15 = vor.u32 8388608, %v4034_v22  ;;  %v9053_v20 = vor.u32 %v4045_v19, %v4044_v4  ;;  %vm4062_vm2 = vcmp.lt.s32.totalorder %v9030_v49, 4 }
 0x3b7   :  { %v1214_v61 = vadd.f32 -0.4999988, %v1213_v24  ;;  %v1221_v30 = vadd.f32 -0.16666654, %v1220_v33  ;;  %v9055_v51 = vshrl.u32 %v2576_v3, 30  ;;  %vm4059_vm3 = vcmp.lt.s32.totalorder %v9030_v49, 1 }
 0x3b8   :  { %vm4061_vm5 = vcmp.lt.s32.totalorder %v9030_v49, 3  ;;  %v4068_v32 = vsel %vm4062_vm2, %v4055_v41, 920167782  ;;  %v4072_v60 = vsel %vm4062_vm2, %v4058_v57, 1326507024  ;;  %v4071_v16 = vsel %vm4059_vm3, %v9049_v58, %v9051_v45 }
 0x3b9   :  { %v1215_v5 = vmul.f32 %v1214_v61, %v1210_v31  ;;  %v1222_v37 = vmul.f32 %v1221_v30, %v1210_v31  ;;  %v2578_v42 = vshll.u32 %v9055_v51, 30  ;;  %v4067_v59 = vsel %vm4059_vm3, %v9053_v20, %v9049_v58 }
 0x3ba   :  { %v4069_v53 = vsel %vm4061_vm5, %v9051_v45, %v4068_v32  ;;  %v4073_v62 = vsel %vm4061_vm5, %v4055_v41, %v4072_v60  ;;  %v9078_v31 = vshll.u32 %v4035_v15, 8  ;;  %vm4060_vm4 = vcmp.lt.s32.totalorder %v9030_v49, 2 }
 0x3bb   :  { %v1216_v28 = vadd.f32 1.0, %v1215_v5  ;;  %v1223_v1 = vadd.f32 1.0, %v1222_v37  ;;  %v2579_v13 = vsub.s32 %v2575_v50, %v2578_v42  ;;  %vm1228_vm6 = vcmp.lt.s32.totalorder %v1227_v48, 2 }
 0x3bc   :  { %vm1229_vm7 = vcmp.eq.s32.totalorder %v1227_v48, 0  ;;  %v4074_v26 = vsel %vm4060_vm4, %v4071_v16, %v4073_v62  ;;  %v4070_v0 = vsel %vm4060_vm4, %v4067_v59, %v4069_v53  ;;  %vm1232_vm9 = vcmp.eq.s32.totalorder %v1227_v48, 2 }
 0x3bd   :  { %v1224_v52 = vmul.f32 %v1223_v1, %v1208_v17  ;;  %v1233_v22 = vxor.u32 2147483648, %v1216_v28  ;;  %vm2580_vm8 = vcmp.lt.s32.totalorder %v2579_v13, 0  ;;  %v2581_v34 = vsub.s32 0, %v2579_v13 }
 0x3be   :  { %v4076_v2 = vand.u32 65535, %v9078_v31  ;;  %v4078_v55 = vand.u32 65535, %v4074_v26  ;;  %v4079_v17 = vshrl.u32 %v4074_v26, 16  ;;  %v4077_v19 = vshrl.u32 %v9078_v31, 16 }
 0x3bf   :  { %v1230_v56 = vxor.u32 2147483648, %v1224_v52  ;;  %v1234_v39 = vsel %vm1232_vm9, %v1233_v22, %v1224_v52  ;;  %v2582_v46 = vsel %vm2580_vm8, %v2581_v34, %v2579_v13  ;;  %vm1225_vm11 = vweird.f32 %v8700_v35 }
 0x3c0   :  { %v2583_v63 = vclz %v2582_v46  ;;  %v4101_v25 = vshrl.u32 %v4070_v0, 16  ;;  %v4081_v24 = vmul.u32 %v4079_v17, %v4076_v2  ;;  %v4082_v33 = vmul.u32 %v4078_v55, %v4077_v19 }
 0x3c1   :  { %v1231_v18 = vsel %vm1229_vm7, %v1216_v28, %v1230_v56  ;;  %v4100_v50 = vand.u32 65535, %v4070_v0  ;;  %v4043_v4 = vshrl.u32 %v6463_v6, %v9021_v54  ;;  %v9092_v41 = vadd.f32 %v8883_v38, %v295_v29 }
 0x3c2   :  { %v1235_v44 = vsel %vm1228_vm6, %v1231_v18, %v1234_v39  ;;  %v6334_v11 = vadd.s32 4294967294, %v2583_v63  ;;  %v2571_v61 = vadd.s32 %v9027_v21, %v9025_v43  ;;  %v4080_v35 = vmul.u32 %v4078_v55, %v4076_v2 }
 0x3c3   :  { %v1236_v40 = vsel %vm1225_vm11, nan, %v1235_v44  ;;  %v4083_v30 = vmul.u32 %v4079_v17, %v4077_v19  ;;  %v4084_v3 = vshll.u32 %v4081_v24, 16  ;;  %v4085_v57 = vshrl.u32 %v4081_v24, 16 }
 0x3c4   :  { %6202 = vst [vmem:[#allocation2 + $0x28] sm:$0xff] %v1236_v40  ;;  %vm6335_vm10 = vcmp.lt.s32.totalorder %v6334_v11, 0  ;;  %v4086_v48 = vshll.u32 %v4082_v33, 16  ;;  %v4103_v15 = vmul.u32 %v4101_v25, %v4076_v2  ;;  %v4104_v32 = vmul.u32 %v4100_v50, %v4077_v19 }
 0x3c5   :  { %v2586_v5 = vsel %vm6335_vm10, 0, %v6334_v11  ;;  %vm4088_vm13 = vc.u32 %v4080_v35, %v4084_v3  ;;  %v4090_v37 = vadd.s32 %v4084_v3, %v4080_v35  ;;  %vm2479_vm12 = vcmp.lt.s32.totalorder %v8886_v9, 0 }
 0x3c6   :  { %v2587_v54 = vsub.s32 32, %v2586_v5  ;;  %v2591_v60 = vsub.s32 4294967266, %v2586_v5  ;;  %v4089_v28 = vsel %vm4088_vm13, 1, %v6469_v27  ;;  %v4102_v1 = vmul.u32 %v4100_v50, %v4076_v2 }
 0x3c7   :  { %v4091_v42 = vadd.s32 %v4089_v28, %v4083_v30  ;;  %vm4092_vm14 = vc.u32 %v4090_v37, %v4086_v48  ;;  %v4105_v43 = vmul.u32 %v4101_v25, %v4077_v19  ;;  %v4106_v21 = vshll.u32 %v4103_v15, 16  ;;  %v211_v30 = vpop.f32.mrf.mxu0 }
 0x3c8   :  { %v2588_v16 = vshll.u32 %v2579_v13, %v2586_v5  ;;  %v2589_v59 = vshrl.u32 %v2571_v61, %v2587_v54  ;;  %v2592_v53 = vadd.s32 127, %v2591_v60  ;;  %v4093_v62 = vsel %vm4092_vm14, 1, %v6469_v27 }
 0x3c9   :  { %v4095_v52 = vadd.s32 %v4093_v62, %v4091_v42  ;;  %v4108_v22 = vshll.u32 %v4104_v32, 16  ;;  %vm4110_vm15 = vc.u32 %v4102_v1, %v4106_v21  ;;  %v4112_v26 = vadd.s32 %v4106_v21, %v4102_v1 }
 0x3ca   :  { %v2590_v56 = vor.u32 %v2589_v59, %v2588_v16  ;;  %v2593_v34 = vshll.u32 %v2592_v53, 23  ;;  %v4064_v0 = vsel %vm4062_vm2, %v9051_v45, 2102212464  ;;  %v4111_v2 = vsel %vm4110_vm15, 1, %v6469_v27 }
 0x3cb   :  { %v2601_v55 = vsub.s32 4, %v9055_v51  ;;  %v4096_v17 = vadd.s32 %v4095_v52, %v4085_v57  ;;  %v4113_v13 = vadd.s32 %v4111_v2, %v4105_v43  ;;  %vm4114_vm1 = vc.u32 %v4112_v26, %v4108_v22 }
 0x3cc   :  { %v2594_v18 = vor.u32 4788187, %v2593_v34  ;;  %v4063_v39 = vsel %vm4059_vm3, %v4043_v4, %v9053_v20  ;;  %v4087_v46 = vshrl.u32 %v4082_v33, 16  ;;  %v4115_v19 = vsel %vm4114_vm1, 1, %v6469_v27 }
 0x3cd   :  { %v4065_v29 = vsel %vm4061_vm5, %v9049_v58, %v4064_v0  ;;  %v4107_v45 = vshrl.u32 %v4103_v15, 16  ;;  %v4117_v44 = vadd.s32 %v4115_v19, %v4113_v13  ;;  %v5580_v63 = vand.u32 2139095040, %v9092_v41 }
 0x3ce   :  { %v2595_v25 = vand.u32 2147483647, %v2594_v18  ;;  %v2597_v40 = vcvt.s32.f32 %v2590_v56  ;;  %v4097_v24 = vadd.s32 %v4096_v17, %v4087_v46  ;;  %v5577_v50 = vand.u32 2147483647, %v9092_v41 }
 0x3cf   :  { %v2602_v20 = vsel %vm2479_vm12, %v2601_v55, %v9055_v51  ;;  %v4109_v33 = vshrl.u32 %v4104_v32, 16  ;;  %v4118_v11 = vadd.s32 %v4117_v44, %v4107_v45  ;;  %v5581_v4 = vshrl.u32 %v5580_v63, 23 }
 0x3d0   :  { %v2598_v61 = vmul.f32 %v2597_v40, %v2595_v25  ;;  %v4116_v35 = vadd.s32 %v4112_v26, %v4108_v22  ;;  %vm2478_vm0 = vcmp.le.f32.partialorder %v2477_v7, 0.7853982  ;;  %v4066_v58 = vsel %vm4060_vm4, %v4063_v39, %v4065_v29 }
 0x3d1   :  { %v4119_v3 = vadd.s32 %v4118_v11, %v4109_v33  ;;  %v6393_v57 = vadd.s32 4294967169, %v5581_v4  ;;  %v2604_v15 = vsel %vm2478_vm0, 0, %v2602_v20  ;;  %v5584_v51 = vand.u32 8388607, %v5577_v50 }
 0x3d2   :  { %v2599_v48 = vxor.u32 2147483648, %v2598_v61  ;;  %vm4122_vm2 = vc.u32 %v4097_v24, %v4116_v35  ;;  %v9123_v32 = vadd.f32 %v8883_v38, %v211_v30  ;;  %v4120_v7 = vmul.u32 %v9078_v31, %v4066_v58 }
 0x3d3   :  { %v4123_v5 = vadd.s32 1, %v4119_v3  ;;  %v5587_v37 = vadd.s32 1, %v6393_v57  ;;  %v2621_v60 = vadd.s32 3, %v2604_v15  ;;  %v5585_v43 = vor.u32 8388608, %v5584_v51 }
 0x3d4   :  { %v2600_v54 = vsel %vm2479_vm12, %v2599_v48, %v2598_v61  ;;  %v1240_v59 = vand.u32 2139095040, %v9123_v32  ;;  %v9132_v22 = vadd.s32 %v4116_v35, %v4097_v24  ;;  %vm2620_vm8 = vweird.f32 %v8886_v9 }
 0x3d5   :  { %v2603_v49 = vsel %vm2478_vm0, %v8886_v9, %v2600_v54  ;;  %v4124_v28 = vsel %vm4122_vm2, %v4123_v5, %v4119_v3  ;;  %vm5588_vm3 = vcmp.gt.s32.totalorder %v5587_v37, 0  ;;  %v9130_v52 = vand.u32 3, %v2621_v60 }
 0x3d6   :  { %v2605_v1 = vmul.f32 %v2603_v49, %v2603_v49  ;;  %v4125_v42 = vadd.s32 %v4124_v28, %v4120_v7  ;;  %v5589_v21 = vsel %vm5588_vm3, %v5587_v37, 0  ;;  %v9136_v0 = vshll.u32 %v5585_v43, 8 }
 0x3d7   :  { %v5591_v16 = vand.u32 31, %v5589_v21  ;;  %v1241_v13 = vshrl.u32 %v1240_v59, 23  ;;  %vm2627_vm5 = vcmp.eq.s32.totalorder %v9130_v52, 2  ;;  %v9150_v20 = vshrl.u32 %v5589_v21, 5 }
 0x3d8   :  { %v2606_v53 = vmul.f32 -0.001358992, %v2605_v1  ;;  %v2613_v38 = vmul.f32 -0.00019511016, %v2605_v1  ;;  %v4126_v62 = vadd.s32 536870912, %v4125_v42  ;;  %vm2624_vm4 = vcmp.eq.s32.totalorder %v9130_v52, 0 }
 0x3d9   :  { %v5592_v31 = vsub.s32 32, %v5591_v16  ;;  %v5594_v2 = vshll.u32 %v6463_v6, %v5591_v16  ;;  %v5597_v55 = vshll.u32 %v6464_v8, %v5591_v16  ;;  %v5600_v17 = vshll.u32 %v6465_v10, %v5591_v16 }
 0x3da   :  { %v2607_v26 = vadd.f32 0.041655596, %v2606_v53  ;;  %v2614_v56 = vadd.f32 0.008332121, %v2613_v38  ;;  %v9134_v34 = vshrl.u32 %v4126_v62, 30  ;;  %v5603_v19 = vshll.u32 %v6466_v12, %v5591_v16 }
 0x3db   :  { %v5595_v29 = vshrl.u32 %v6464_v8, %v5592_v31  ;;  %v5598_v45 = vshrl.u32 %v6465_v10, %v5592_v31  ;;  %v5601_v44 = vshrl.u32 %v6466_v12, %v5592_v31  ;;  %v5604_v63 = vshrl.u32 %v6467_v14, %v5592_v31 }
 0x3dc   :  { %v2608_v18 = vmul.f32 %v2607_v26, %v2605_v1  ;;  %v2615_v39 = vmul.f32 %v2614_v56, %v2605_v1  ;;  %v4128_v46 = vshll.u32 %v9134_v34, 30  ;;  %v5593_v33 = vshrl.u32 %v6463_v6, %v5592_v31 }
 0x3dd   :  { %v5606_v11 = vshll.u32 %v6467_v14, %v5591_v16  ;;  %v5607_v4 = vshrl.u32 %v6468_v23, %v5592_v31  ;;  %v9157_v61 = vand.u32 65535, %v9136_v0  ;;  %vm2623_vm6 = vcmp.lt.s32.totalorder %v9130_v52, 2 }
 0x3de   :  { %v2609_v25 = vadd.f32 -0.4999988, %v2608_v18  ;;  %v2616_v40 = vadd.f32 -0.16666654, %v2615_v39  ;;  %v9148_v24 = vsub.s32 %v4125_v42, %v4128_v46  ;;  %v5596_v3 = vor.u32 %v5595_v29, %v5594_v2 }
 0x3df   :  { %v5599_v57 = vor.u32 %v5598_v45, %v5597_v55  ;;  %v5602_v48 = vor.u32 %v5601_v44, %v5600_v17  ;;  %v5605_v15 = vor.u32 %v5604_v63, %v5603_v19  ;;  %vm5609_vm9 = vcmp.lt.s32.totalorder %v9150_v20, 1 }
 0x3e0   :  { %v2610_v35 = vmul.f32 %v2609_v25, %v2605_v1  ;;  %v2617_v30 = vmul.f32 %v2616_v40, %v2605_v1  ;;  %vm4130_vm7 = vcmp.lt.s32.totalorder %v9148_v24, 0  ;;  %v4131_v58 = vsub.s32 0, %v9148_v24 }
 0x3e1   :  { %vm5612_vm11 = vcmp.lt.s32.totalorder %v9150_v20, 4  ;;  %v5627_v7 = vshrl.u32 %v9136_v0, 16  ;;  %v6309_v60 = vadd.s32 4294967169, %v1241_v13  ;;  %v5608_v42 = vor.u32 %v5607_v4, %v5606_v11 }
 0x3e2   :  { %v2611_v51 = vadd.f32 1.0, %v2610_v35  ;;  %v2618_v5 = vadd.f32 1.0, %v2617_v30  ;;  %v4132_v37 = vsel %vm4130_vm7, %v4131_v58, %v9148_v24  ;;  %vm5611_vm10 = vcmp.lt.s32.totalorder %v9150_v20, 3 }
 0x3e3   :  { %v4133_v54 = vclz %v4132_v37  ;;  %vm4029_vm13 = vcmp.lt.s32.totalorder %v8916_v36, 0  ;;  %v4151_v21 = vsub.s32 4, %v9134_v34  ;;  %vm5610_vm12 = vcmp.lt.s32.totalorder %v9150_v20, 2 }
 0x3e4   :  { %v2619_v28 = vmul.f32 %v2618_v5, %v2603_v49  ;;  %v2628_v1 = vxor.u32 2147483648, %v2611_v51  ;;  %v5617_v16 = vsel %vm5609_vm9, %v5596_v3, %v5599_v57  ;;  %v5613_v53 = vsel %vm5609_vm9, %v5593_v33, %v5596_v3 }
 0x3e5   :  { %v6364_v43 = vadd.s32 4294967294, %v4133_v54  ;;  %v5614_v49 = vsel %vm5612_vm11, %v5602_v48, 2102212464  ;;  %v5618_v38 = vsel %vm5612_vm11, %v5605_v15, 920167782  ;;  %v5621_v26 = vsel %vm5609_vm9, %v5599_v57, %v5602_v48 }
 0x3e6   :  { %v2625_v59 = vxor.u32 2147483648, %v2619_v28  ;;  %v2629_v62 = vsel %vm2627_vm5, %v2628_v1, %v2619_v28  ;;  %v5619_v31 = vsel %vm5611_vm10, %v5602_v48, %v5618_v38  ;;  %v5622_v17 = vsel %vm5612_vm11, %v5608_v42, 1326507024 }
 0x3e7   :  { %vm6365_vm14 = vcmp.lt.s32.totalorder %v6364_v43, 0  ;;  %v5620_v55 = vsel %vm5610_vm12, %v5617_v16, %v5619_v31  ;;  %v5615_v46 = vsel %vm5611_vm10, %v5599_v57, %v5614_v49  ;;  %v5623_v29 = vsel %vm5611_vm10, %v5605_v15, %v5622_v17 }
 0x3e8   :  { %v2626_v56 = vsel %vm2624_vm4, %v2611_v51, %v2625_v59  ;;  %v4136_v2 = vsel %vm6365_vm14, 0, %v6364_v43  ;;  %v5650_v45 = vand.u32 65535, %v5620_v55  ;;  %v5651_v44 = vshrl.u32 %v5620_v55, 16 }
 0x3e9   :  { %v2630_v13 = vsel %vm2623_vm6, %v2626_v56, %v2629_v62  ;;  %v4137_v18 = vsub.s32 32, %v4136_v2  ;;  %v4141_v39 = vsub.s32 4294967266, %v4136_v2  ;;  %v4138_v63 = vshll.u32 %v9148_v24, %v4136_v2 }
 0x3ea   :  { %v2631_v19 = vsel %vm2620_vm8, nan, %v2630_v13  ;;  %v5624_v40 = vsel %vm5610_vm12, %v5621_v26, %v5623_v29  ;;  %v5653_v4 = vmul.u32 %v5651_v44, %v9157_v61  ;;  %v1237_v9 = vand.u32 2147483647, %v9123_v32 }
 0x3eb   :  { %6211 = vst [vmem:[#allocation2 + $0x70] sm:$0xff] %v2631_v19  ;;  %v4139_v25 = vshrl.u32 %v9132_v22, %v4137_v18  ;;  %v4142_v52 = vadd.s32 127, %v4141_v39  ;;  %v5628_v33 = vand.u32 65535, %v5624_v40  ;;  %v5629_v11 = vshrl.u32 %v5624_v40, 16 }
 0x3ec   :  { %v5654_v58 = vmul.u32 %v5650_v45, %v5627_v7  ;;  %v1247_v3 = vadd.s32 1, %v6309_v60  ;;  %v9208_v24 = vsel %vm4029_vm13, %v4151_v21, %v9134_v34  ;;  %v9212_v22 = vsel %vm5610_vm12, %v5613_v53, %v5615_v46 }
 0x3ed   :  { %v4140_v35 = vor.u32 %v4139_v25, %v4138_v63  ;;  %v4143_v30 = vshll.u32 %v4142_v52, 23  ;;  %v5631_v57 = vmul.u32 %v5629_v11, %v9157_v61  ;;  %v5632_v48 = vmul.u32 %v5628_v33, %v5627_v7 }
 0x3ee   :  { %v5652_v51 = vmul.u32 %v5650_v45, %v9157_v61  ;;  %v5655_v5 = vmul.u32 %v5651_v44, %v5627_v7  ;;  %v5656_v37 = vshll.u32 %v5653_v4, 16  ;;  %v5630_v60 = vmul.u32 %v5628_v33, %v9157_v61 }
 0x3ef   :  { %v4144_v15 = vor.u32 4788187, %v4143_v30  ;;  %v4147_v54 = vcvt.s32.f32 %v4140_v35  ;;  %v5633_v28 = vmul.u32 %v5629_v11, %v5627_v7  ;;  %v5634_v1 = vshll.u32 %v5631_v57, 16 }
 0x3f0   :  { %v5636_v34 = vshll.u32 %v5632_v48, 16  ;;  %v5658_v43 = vshll.u32 %v5654_v58, 16  ;;  %vm5660_vm15 = vc.u32 %v5652_v51, %v5656_v37  ;;  %v5662_v16 = vadd.s32 %v5656_v37, %v5652_v51 }
 0x3f1   :  { %v4145_v42 = vand.u32 2147483647, %v4144_v15  ;;  %vm5638_vm1 = vc.u32 %v5630_v60, %v5634_v1  ;;  %v5640_v20 = vadd.s32 %v5634_v1, %v5630_v60  ;;  %v5661_v21 = vsel %vm5660_vm15, 1, %v6469_v27 }
 0x3f2   :  { %v5639_v53 = vsel %vm5638_vm1, 1, %v6469_v27  ;;  %v5663_v49 = vadd.s32 %v5661_v21, %v5655_v5  ;;  %vm1248_vm0 = vcmp.gt.s32.totalorder %v1247_v3, 0  ;;  %v5657_v62 = vshrl.u32 %v5653_v4, 16 }
 0x3f3   :  { %v4148_v59 = vmul.f32 %v4147_v54, %v4145_v42  ;;  %v5641_v38 = vadd.s32 %v5639_v53, %v5633_v28  ;;  %vm5642_vm2 = vc.u32 %v5640_v20, %v5636_v34  ;;  %vm5664_vm3 = vc.u32 %v5662_v16, %v5658_v43 }
 0x3f4   :  { %v5643_v7 = vsel %vm5642_vm2, 1, %v6469_v27  ;;  %v5665_v31 = vsel %vm5664_vm3, 1, %v6469_v27  ;;  %v1249_v26 = vsel %vm1248_vm0, %v1247_v3, 0  ;;  %v5635_v56 = vshrl.u32 %v5631_v57, 16 }
 0x3f5   :  { %v4149_v61 = vxor.u32 2147483648, %v4148_v59  ;;  %v5645_v2 = vadd.s32 %v5643_v7, %v5641_v38  ;;  %v5667_v55 = vadd.s32 %v5665_v31, %v5663_v49  ;;  %v1251_v17 = vand.u32 31, %v1249_v26 }
 0x3f6   :  { %vm9223_vm5 = vcmp.le.f32.partialorder %v4027_v47, 0.7853982  ;;  %v5637_v39 = vshrl.u32 %v5632_v48, 16  ;;  %v5659_v46 = vshrl.u32 %v5654_v58, 16  ;;  %v5670_v25 = vmul.u32 %v9136_v0, %v9212_v22 }
 0x3f7   :  { %v4150_v18 = vsel %vm4029_vm13, %v4149_v61, %v4148_v59  ;;  %v5646_v29 = vadd.s32 %v5645_v2, %v5635_v56  ;;  %v5668_v45 = vadd.s32 %v5667_v55, %v5657_v62  ;;  %v9232_v44 = vsub.s32 32, %v1251_v17 }
 0x3f8   :  { %v4153_v19 = vsel %vm9223_vm5, %v8916_v36, %v4150_v18  ;;  %v4154_v47 = vsel %vm9223_vm5, 0, %v9208_v24  ;;  %v1244_v52 = vand.u32 8388607, %v1237_v9  ;;  %v9243_v33 = vadd.s32 %v5662_v16, %v5658_v43 }
 0x3f9   :  { %v4155_v63 = vmul.f32 %v4153_v19, %v4153_v19  ;;  %v9241_v40 = vadd.s32 %v5646_v29, %v5637_v39  ;;  %v5669_v11 = vadd.s32 %v5668_v45, %v5659_v46  ;;  %v9245_v4 = vshrl.u32 %v1249_v26, 5 }
 0x3fa   :  { %v1257_v58 = vshll.u32 %v6464_v8, %v1251_v17  ;;  %v1260_v3 = vshll.u32 %v6465_v10, %v1251_v17  ;;  %v1258_v24 = vshrl.u32 %v6465_v10, %v9232_v44  ;;  %v1261_v22 = vshrl.u32 %v6466_v12, %v9232_v44 }
 0x3fb   :  { %v4156_v35 = vmul.f32 -0.001358992, %v4155_v63  ;;  %v4163_v30 = vmul.f32 -0.00019511016, %v4155_v63  ;;  %vm5672_vm4 = vc.u32 %v9241_v40, %v9243_v33  ;;  %v5673_v0 = vadd.s32 1, %v5669_v11 }
 0x3fc   :  { %v1254_v15 = vshll.u32 %v6463_v6, %v1251_v17  ;;  %v1255_v51 = vshrl.u32 %v6464_v8, %v9232_v44  ;;  %v1263_v37 = vshll.u32 %v6466_v12, %v1251_v17  ;;  %v1264_v54 = vshrl.u32 %v6467_v14, %v9232_v44 }
 0x3fd   :  { %v4157_v57 = vadd.f32 0.041655596, %v4156_v35  ;;  %v4164_v48 = vadd.f32 0.008332121, %v4163_v30  ;;  %v5674_v5 = vsel %vm5672_vm4, %v5673_v0, %v5669_v11  ;;  %v1266_v60 = vshll.u32 %v6467_v14, %v1251_v17 }
 0x3fe   :  { %v5675_v42 = vadd.s32 %v5674_v5, %v5670_v25  ;;  %v1267_v34 = vshrl.u32 %v6468_v23, %v9232_v44  ;;  %v1245_v43 = vor.u32 8388608, %v1244_v52  ;;  %v9264_v20 = vor.u32 %v1258_v24, %v1257_v58 }
 0x3ff   :  { %v4158_v28 = vmul.f32 %v4157_v57, %v4155_v63  ;;  %v4165_v1 = vmul.f32 %v4164_v48, %v4155_v63  ;;  %v1262_v21 = vor.u32 %v1261_v22, %v1260_v3  ;;  %v1265_v16 = vor.u32 %v1264_v54, %v1263_v37 }
 0x400   :  { %v5676_v49 = vadd.s32 536870912, %v5675_v42  ;;  %v1268_v38 = vor.u32 %v1267_v34, %v1266_v60  ;;  %v4171_v62 = vadd.s32 3, %v4154_v47  ;;  %v9266_v61 = vor.u32 %v1255_v51, %v1254_v15  ;;  %v238_v15 = vpop.f32.mrf.mxu1 }
 0x401   :  { %v4159_v59 = vadd.f32 -0.4999988, %v4158_v28  ;;  %v4166_v53 = vadd.f32 -0.16666654, %v4165_v1  ;;  %vm1269_vm6 = vcmp.lt.s32.totalorder %v9245_v4, 1  ;;  %vm1272_vm7 = vcmp.lt.s32.totalorder %v9245_v4, 4 }
 0x402   :  { %v9270_v26 = vshrl.u32 %v5676_v49, 30  ;;  %vm1271_vm8 = vcmp.lt.s32.totalorder %v9245_v4, 3  ;;  %vm1270_vm9 = vcmp.lt.s32.totalorder %v9245_v4, 2  ;;  %v1278_v56 = vsel %vm1272_vm7, %v1265_v16, 920167782 }
 0x403   :  { %v4160_v7 = vmul.f32 %v4159_v59, %v4155_v63  ;;  %v4167_v31 = vmul.f32 %v4166_v53, %v4155_v63  ;;  %v1282_v2 = vsel %vm1272_vm7, %v1268_v38, 1326507024  ;;  %v9278_v55 = vshll.u32 %v1245_v43, 8 }
 0x404   :  { %v5678_v18 = vshll.u32 %v9270_v26, 30  ;;  %v1281_v39 = vsel %vm1269_vm6, %v9264_v20, %v1262_v21  ;;  %v4172_v46 = vand.u32 3, %v4171_v62  ;;  %v1277_v29 = vsel %vm1269_vm6, %v9266_v61, %v9264_v20 }
 0x405   :  { %v4161_v17 = vadd.f32 1.0, %v4160_v7  ;;  %v4168_v13 = vadd.f32 1.0, %v4167_v31  ;;  %v1279_v45 = vsel %vm1271_vm8, %v1262_v21, %v1278_v56  ;;  %v1283_v47 = vsel %vm1271_vm8, %v1265_v16, %v1282_v2  ;;  %v9306_v16 = vld [vmem:[%s10726_s2] ss:$0 sm:$0xff] }
 0x406   :  { %v5679_v52 = vsub.s32 %v5675_v42, %v5678_v18  ;;  %vm4170_vm11 = vweird.f32 %v8916_v36  ;;  %v1284_v11 = vsel %vm1270_vm9, %v1281_v39, %v1283_v47  ;;  %v1286_v35 = vand.u32 65535, %v9278_v55 }
 0x407   :  { %v4169_v63 = vmul.f32 %v4168_v13, %v4153_v19  ;;  %v4178_v25 = vxor.u32 2147483648, %v4161_v17  ;;  %v1287_v30 = vshrl.u32 %v9278_v55, 16  ;;  %v1280_v0 = vsel %vm1270_vm9, %v1277_v29, %v1279_v45 }
 0x408   :  { %vm5680_vm10 = vcmp.lt.s32.totalorder %v5679_v52, 0  ;;  %v5681_v3 = vsub.s32 0, %v5679_v52  ;;  %vm4174_vm13 = vcmp.eq.s32.totalorder %v4172_v46, 0  ;;  %vm4177_vm12 = vcmp.eq.s32.totalorder %v4172_v46, 2 }
 0x409   :  { %v4175_v58 = vxor.u32 2147483648, %v4169_v63  ;;  %v1288_v19 = vand.u32 65535, %v1284_v11  ;;  %v1289_v24 = vshrl.u32 %v1284_v11, 16  ;;  %vm4173_vm14 = vcmp.lt.s32.totalorder %v4172_v46, 2 }
 0x40a   :  { %v4179_v57 = vsel %vm4177_vm12, %v4178_v25, %v4169_v63  ;;  %v5682_v48 = vsel %vm5680_vm10, %v5681_v3, %v5679_v52  ;;  %v1310_v37 = vand.u32 65535, %v1280_v0  ;;  %v1311_v54 = vshrl.u32 %v1280_v0, 16 }
 0x40b   :  { %v4176_v22 = vsel %vm4174_vm13, %v4161_v17, %v4175_v58  ;;  %v5683_v5 = vclz %v5682_v48  ;;  %v1290_v28 = vmul.u32 %v1288_v19, %v1286_v35  ;;  %v1291_v1 = vmul.u32 %v1289_v24, %v1286_v35 }
 0x40c   :  { %v4180_v51 = vsel %vm4173_vm14, %v4176_v22, %v4179_v57  ;;  %v1292_v42 = vmul.u32 %v1288_v19, %v1287_v30  ;;  %v1253_v43 = vshrl.u32 %v6463_v6, %v9232_v44  ;;  %v9309_v59 = vadd.f32 %v9306_v16, %v238_v15 }
 0x40d   :  { %v4181_v60 = vsel %vm4170_vm11, nan, %v4180_v51  ;;  %v6394_v34 = vadd.s32 4294967294, %v5683_v5  ;;  %v5671_v36 = vadd.s32 %v9243_v33, %v9241_v40  ;;  %v1274_v53 = vsel %vm1272_vm7, %v1262_v21, 2102212464 }
 0x40e   :  { %6221 = vst [vmem:[#allocation2 + $0xc0] sm:$0xff] %v4181_v60  ;;  %v1294_v49 = vshll.u32 %v1291_v1, 16  ;;  %v1296_v38 = vshll.u32 %v1292_v42, 16  ;;  %v1293_v62 = vmul.u32 %v1289_v24, %v1287_v30  ;;  %v1313_v7 = vmul.u32 %v1311_v54, %v1286_v35 }
 0x40f   :  { %vm6395_vm15 = vcmp.lt.s32.totalorder %v6394_v34, 0  ;;  %v1314_v44 = vmul.u32 %v1310_v37, %v1287_v30  ;;  %vm5579_vm1 = vcmp.lt.s32.totalorder %v9092_v41, 0  ;;  %v1312_v2 = vmul.u32 %v1310_v37, %v1286_v35 }
 0x410   :  { %v5686_v31 = vsel %vm6395_vm15, 0, %v6394_v34  ;;  %vm1298_vm0 = vc.u32 %v1290_v28, %v1294_v49  ;;  %v1300_v56 = vadd.s32 %v1294_v49, %v1290_v28  ;;  %v1295_v18 = vshrl.u32 %v1291_v1, 16 }
 0x411   :  { %v5687_v17 = vsub.s32 32, %v5686_v31  ;;  %v5691_v13 = vsub.s32 4294967266, %v5686_v31  ;;  %v1299_v40 = vsel %vm1298_vm0, 1, %v6469_v27  ;;  %v5688_v33 = vshll.u32 %v5679_v52, %v5686_v31 }
 0x412   :  { %v1301_v39 = vadd.s32 %v1299_v40, %v1293_v62  ;;  %vm1302_vm2 = vc.u32 %v1300_v56, %v1296_v38  ;;  %v1316_v21 = vshll.u32 %v1313_v7, 16  ;;  %v1318_v47 = vshll.u32 %v1314_v44, 16 }
 0x413   :  { %v5689_v46 = vshrl.u32 %v5671_v36, %v5687_v17  ;;  %v5692_v29 = vadd.s32 127, %v5691_v13  ;;  %v1303_v45 = vsel %vm1302_vm2, 1, %v6469_v27  ;;  %v1315_v25 = vmul.u32 %v1311_v54, %v1287_v30 }
 0x414   :  { %v1305_v63 = vadd.s32 %v1303_v45, %v1301_v39  ;;  %vm1320_vm3 = vc.u32 %v1312_v2, %v1316_v21  ;;  %v1322_v11 = vadd.s32 %v1316_v21, %v1312_v2  ;;  %v5701_v3 = vsub.s32 4, %v9270_v26 }
 0x415   :  { %v5690_v58 = vor.u32 %v5689_v46, %v5688_v33  ;;  %v5693_v35 = vshll.u32 %v5692_v29, 23  ;;  %v1321_v0 = vsel %vm1320_vm3, 1, %v6469_v27  ;;  %v2632_v24 = vand.u32 2147483647, %v9309_v59 }
 0x416   :  { %v1306_v19 = vadd.s32 %v1305_v63, %v1295_v18  ;;  %v1323_v52 = vadd.s32 %v1321_v0, %v1315_v25  ;;  %vm1324_vm5 = vc.u32 %v1322_v11, %v1318_v47  ;;  %v1273_v57 = vsel %vm1269_vm6, %v1253_v43, %v9266_v61 }
 0x417   :  { %v5694_v22 = vor.u32 4788187, %v5693_v35  ;;  %v1297_v48 = vshrl.u32 %v1292_v42, 16  ;;  %v1325_v30 = vsel %vm1324_vm5, 1, %v6469_v27  ;;  %v1275_v15 = vsel %vm1271_vm8, %v9264_v20, %v1274_v53  ;;  %v268_v20 = vpop.f32.mrf.mxu2 }
 0x418   :  { %v1317_v51 = vshrl.u32 %v1313_v7, 16  ;;  %v1327_v5 = vadd.s32 %v1325_v30, %v1323_v52  ;;  %v2635_v37 = vand.u32 2139095040, %v9309_v59  ;;  %v5697_v60 = vcvt.s32.f32 %v5690_v58 }
 0x419   :  { %v5695_v54 = vand.u32 2147483647, %v5694_v22  ;;  %v5702_v28 = vsel %vm5579_vm1, %v5701_v3, %v9270_v26  ;;  %v1307_v1 = vadd.s32 %v1306_v19, %v1297_v48  ;;  %v1319_v34 = vshrl.u32 %v1314_v44, 16 }
 0x41a   :  { %v1328_v61 = vadd.s32 %v1327_v5, %v1317_v51  ;;  %v2636_v42 = vshrl.u32 %v2635_v37, 23  ;;  %v2639_v43 = vand.u32 8388607, %v2632_v24  ;;  %v1326_v49 = vadd.s32 %v1322_v11, %v1318_v47 }
 0x41b   :  { %v5698_v36 = vmul.f32 %v5697_v60, %v5695_v54  ;;  %vm5578_vm4 = vcmp.le.f32.partialorder %v5577_v50, 0.7853982  ;;  %v1276_v53 = vsel %vm1270_vm9, %v1273_v57, %v1275_v15  ;;  %v9339_v2 = vadd.f32 %v9306_v16, %v268_v20 }
 0x41c   :  { %v1329_v38 = vadd.s32 %v1328_v61, %v1319_v34  ;;  %v6336_v62 = vadd.s32 4294967169, %v2636_v42  ;;  %v5704_v26 = vsel %vm5578_vm4, 0, %v5702_v28  ;;  %vm1332_vm6 = vc.u32 %v1307_v1, %v1326_v49 }
 0x41d   :  { %v5699_v7 = vxor.u32 2147483648, %v5698_v36  ;;  %v2640_v31 = vor.u32 8388608, %v2639_v43  ;;  %v1330_v13 = vmul.u32 %v9278_v55, %v1276_v53  ;;  %v5721_v4 = vadd.s32 3, %v5704_v26 }
 0x41e   :  { %v1333_v44 = vadd.s32 1, %v1329_v38  ;;  %v2642_v56 = vadd.s32 1, %v6336_v62  ;;  %v4185_v29 = vand.u32 2139095040, %v9339_v2  ;;  %v9350_v35 = vadd.s32 %v1326_v49, %v1307_v1 }
 0x41f   :  { %v5700_v17 = vsel %vm5579_vm1, %v5699_v7, %v5698_v36  ;;  %v9345_v46 = vshll.u32 %v2640_v31, 8  ;;  %v9348_v25 = vand.u32 3, %v5721_v4  ;;  %v4182_v52 = vand.u32 2147483647, %v9339_v2 }
 0x420   :  { %v5703_v50 = vsel %vm5578_vm4, %v9092_v41, %v5700_v17  ;;  %v1334_v18 = vsel %vm1332_vm6, %v1333_v44, %v1329_v38  ;;  %vm2643_vm7 = vcmp.gt.s32.totalorder %v2642_v56, 0  ;;  %v4186_v22 = vshrl.u32 %v4185_v29, 23 }
 0x421   :  { %v5705_v40 = vmul.f32 %v5703_v50, %v5703_v50  ;;  %v1335_v33 = vadd.s32 %v1334_v18, %v1330_v13  ;;  %v2644_v39 = vsel %vm2643_vm7, %v2642_v56, 0  ;;  %v9354_v19 = vand.u32 65535, %v9345_v46 }
 0x422   :  { %v2646_v21 = vand.u32 31, %v2644_v39  ;;  %vm1239_vm8 = vcmp.lt.s32.totalorder %v9123_v32, 0  ;;  %vm5727_vm9 = vcmp.eq.s32.totalorder %v9348_v25, 2  ;;  %v9366_v34 = vshrl.u32 %v2644_v39, 5 }
 0x423   :  { %v5706_v45 = vmul.f32 -0.001358992, %v5705_v40  ;;  %v5713_v47 = vmul.f32 -0.00019511016, %v5705_v40  ;;  %v1336_v63 = vadd.s32 536870912, %v1335_v33  ;;  %vm5724_vm11 = vcmp.eq.s32.totalorder %v9348_v25, 0 }
 0x424   :  { %v2647_v11 = vsub.s32 32, %v2646_v21  ;;  %v2649_v0 = vshll.u32 %v6463_v6, %v2646_v21  ;;  %v2652_v15 = vshll.u32 %v6464_v8, %v2646_v21  ;;  %v2658_v37 = vshll.u32 %v6466_v12, %v2646_v21 }
 0x425   :  { %v5707_v55 = vadd.f32 0.041655596, %v5706_v45  ;;  %v5714_v58 = vadd.f32 0.008332121, %v5713_v47  ;;  %v1337_v3 = vshrl.u32 %v1336_v63, 30  ;;  %v2655_v61 = vshll.u32 %v6465_v10, %v2646_v21 }
 0x426   :  { %v2650_v51 = vshrl.u32 %v6464_v8, %v2647_v11  ;;  %v2653_v5 = vshrl.u32 %v6465_v10, %v2647_v11  ;;  %v2659_v54 = vshrl.u32 %v6467_v14, %v2647_v11  ;;  %v2656_v42 = vshrl.u32 %v6466_v12, %v2647_v11 }
 0x427   :  { %v5708_v57 = vmul.f32 %v5707_v55, %v5705_v40  ;;  %v5715_v48 = vmul.f32 %v5714_v58, %v5705_v40  ;;  %v1338_v30 = vshll.u32 %v1337_v3, 30  ;;  %v2661_v43 = vshll.u32 %v6467_v14, %v2646_v21 }
 0x428   :  { %v2662_v36 = vshrl.u32 %v6468_v23, %v2647_v11  ;;  %vm5723_vm10 = vcmp.lt.s32.totalorder %v9348_v25, 2  ;;  %vm5720_vm12 = vweird.f32 %v9092_v41  ;;  %v1361_v38 = vsub.s32 4, %v1337_v3 }
 0x429   :  { %v5709_v60 = vadd.f32 -0.4999988, %v5708_v57  ;;  %v5716_v28 = vadd.f32 -0.16666654, %v5715_v48  ;;  %v9364_v1 = vsub.s32 %v1335_v33, %v1338_v30  ;;  %v2651_v62 = vor.u32 %v2650_v51, %v2649_v0 }
 0x42a   :  { %v2654_v7 = vor.u32 %v2653_v5, %v2652_v15  ;;  %v2660_v26 = vor.u32 %v2659_v54, %v2658_v37  ;;  %vm2664_vm14 = vcmp.lt.s32.totalorder %v9366_v34, 1  ;;  %v2657_v13 = vor.u32 %v2656_v42, %v2655_v61 }
 0x42b   :  { %v5710_v49 = vmul.f32 %v5709_v60, %v5705_v40  ;;  %v5717_v20 = vmul.f32 %v5716_v28, %v5705_v40  ;;  %vm1340_vm13 = vcmp.lt.s32.totalorder %v9364_v1, 0  ;;  %v1341_v53 = vsub.s32 0, %v9364_v1 }
 0x42c   :  { %vm2667_vm15 = vcmp.lt.s32.totalorder %v9366_v34, 4  ;;  %v2682_v4 = vshrl.u32 %v9345_v46, 16  ;;  %vm9383_vm1 = vcmp.le.f32.partialorder %v1237_v9, 0.7853982  ;;  %v2663_v39 = vor.u32 %v2662_v36, %v2661_v43 }
 0x42d   :  { %v5711_v44 = vadd.f32 1.0, %v5710_v49  ;;  %v5718_v31 = vadd.f32 1.0, %v5717_v20  ;;  %v1342_v56 = vsel %vm1340_vm13, %v1341_v53, %v9364_v1  ;;  %vm2666_vm0 = vcmp.lt.s32.totalorder %v9366_v34, 3 }
 0x42e   :  { %v1343_v17 = vclz %v1342_v56  ;;  %v2648_v29 = vshrl.u32 %v6463_v6, %v2647_v11  ;;  %v2672_v45 = vsel %vm2664_vm14, %v2651_v62, %v2654_v7  ;;  %v6366_v47 = vadd.s32 4294967169, %v4186_v22 }
 0x42f   :  { %v5719_v18 = vmul.f32 %v5718_v31, %v5703_v50  ;;  %v5728_v40 = vxor.u32 2147483648, %v5711_v44  ;;  %v9393_v50 = vsel %vm1239_vm8, %v1361_v38, %v1337_v3  ;;  %vm2665_vm2 = vcmp.lt.s32.totalorder %v9366_v34, 2 }
 0x430   :  { %v6310_v21 = vadd.s32 4294967294, %v1343_v17  ;;  %v2673_v9 = vsel %vm2667_vm15, %v2660_v26, 920167782  ;;  %v2676_v58 = vsel %vm2664_vm14, %v2654_v7, %v2657_v13  ;;  %v2677_v57 = vsel %vm2667_vm15, %v2663_v39, 1326507024 }
 0x431   :  { %v5725_v63 = vxor.u32 2147483648, %v5719_v18  ;;  %v5729_v55 = vsel %vm5727_vm9, %v5728_v40, %v5719_v18  ;;  %v2674_v11 = vsel %vm2666_vm0, %v2657_v13, %v2673_v9  ;;  %v2669_v51 = vsel %vm2667_vm15, %v2657_v13, 2102212464 }
 0x432   :  { %vm6311_vm3 = vcmp.lt.s32.totalorder %v6310_v21, 0  ;;  %v2675_v22 = vsel %vm2665_vm2, %v2672_v45, %v2674_v11  ;;  %v2678_v37 = vsel %vm2666_vm0, %v2660_v26, %v2677_v57  ;;  %v4192_v41 = vadd.s32 1, %v6366_v47 }
 0x433   :  { %v5726_v0 = vsel %vm5724_vm11, %v5711_v44, %v5725_v63  ;;  %v1346_v3 = vsel %vm6311_vm3, 0, %v6310_v21  ;;  %v2705_v54 = vand.u32 65535, %v2675_v22  ;;  %v2706_v60 = vshrl.u32 %v2675_v22, 16 }
 0x434   :  { %v5730_v48 = vsel %vm5723_vm10, %v5726_v0, %v5729_v55  ;;  %v1347_v30 = vsub.s32 32, %v1346_v3  ;;  %v1351_v15 = vsub.s32 4294967266, %v1346_v3  ;;  %v1348_v28 = vshll.u32 %v9364_v1, %v1346_v3 }
 0x435   :  { %v5731_v5 = vsel %vm5720_vm12, nan, %v5730_v48  ;;  %v2679_v42 = vsel %vm2665_vm2, %v2676_v58, %v2678_v37  ;;  %v2708_v49 = vmul.u32 %v2706_v60, %v9354_v19  ;;  %v1364_v38 = vsel %vm9383_vm1, 0, %v9393_v50 }
 0x436   :  { %6231 = vst [vmem:[#allocation2 + $0x110] sm:$0xff] %v5731_v5  ;;  %v1349_v61 = vshrl.u32 %v9350_v35, %v1347_v30  ;;  %v1352_v25 = vadd.s32 127, %v1351_v15  ;;  %v2683_v43 = vand.u32 65535, %v2679_v42  ;;  %v2684_v36 = vshrl.u32 %v2679_v42, 16 }
 0x437   :  { %v2709_v26 = vmul.u32 %v2705_v54, %v2682_v4  ;;  %v2668_v1 = vsel %vm2664_vm14, %v2648_v29, %v2651_v62  ;;  %v2670_v35 = vsel %vm2666_vm0, %v2654_v7, %v2669_v51  ;;  %v2707_v17 = vmul.u32 %v2705_v54, %v9354_v19 }
 0x438   :  { %v1350_v20 = vor.u32 %v1349_v61, %v1348_v28  ;;  %v1353_v53 = vshll.u32 %v1352_v25, 23  ;;  %v2686_v44 = vmul.u32 %v2684_v36, %v9354_v19  ;;  %v2687_v31 = vmul.u32 %v2683_v43, %v2682_v4 }
 0x439   :  { %v2710_v13 = vmul.u32 %v2706_v60, %v2682_v4  ;;  %v2711_v18 = vshll.u32 %v2708_v49, 16  ;;  %v2685_v39 = vmul.u32 %v2683_v43, %v9354_v19  ;;  %v2688_v21 = vmul.u32 %v2684_v36, %v2682_v4 }
 0x43a   :  { %v1354_v56 = vor.u32 4788187, %v1353_v53  ;;  %v1357_v40 = vcvt.s32.f32 %v1350_v20  ;;  %v2689_v45 = vshll.u32 %v2686_v44, 16  ;;  %v2691_v63 = vshll.u32 %v2687_v31, 16 }
 0x43b   :  { %v2713_v50 = vshll.u32 %v2709_v26, 16  ;;  %vm2715_vm5 = vc.u32 %v2707_v17, %v2711_v18  ;;  %v2717_v29 = vadd.s32 %v2711_v18, %v2707_v17  ;;  %vm4193_vm6 = vcmp.gt.s32.totalorder %v4192_v41, 0 }
 0x43c   :  { %v1355_v47 = vand.u32 2147483647, %v1354_v56  ;;  %vm2693_vm4 = vc.u32 %v2685_v39, %v2689_v45  ;;  %v2695_v62 = vadd.s32 %v2689_v45, %v2685_v39  ;;  %v2716_v7 = vsel %vm2715_vm5, 1, %v6469_v27 }
 0x43d   :  { %v2694_v55 = vsel %vm2693_vm4, 1, %v6469_v27  ;;  %v2718_v11 = vadd.s32 %v2716_v7, %v2710_v13  ;;  %v2712_v0 = vshrl.u32 %v2708_v49, 16  ;;  %vm2719_vm9 = vc.u32 %v2717_v29, %v2713_v50 }
 0x43e   :  { %v1358_v9 = vmul.f32 %v1357_v40, %v1355_v47  ;;  %v2696_v58 = vadd.s32 %v2694_v55, %v2688_v21  ;;  %vm2697_vm7 = vc.u32 %v2695_v62, %v2691_v63  ;;  %v2720_v3 = vsel %vm2719_vm9, 1, %v6469_v27 }
 0x43f   :  { %v2698_v4 = vsel %vm2697_vm7, 1, %v6469_v27  ;;  %v4194_v22 = vsel %vm4193_vm6, %v4192_v41, 0  ;;  %v2690_v57 = vshrl.u32 %v2686_v44, 16  ;;  %v2722_v30 = vadd.s32 %v2720_v3, %v2718_v11 }
 0x440   :  { %v1359_v19 = vxor.u32 2147483648, %v1358_v9  ;;  %v2700_v48 = vadd.s32 %v2698_v4, %v2696_v58  ;;  %v4196_v15 = vand.u32 31, %v4194_v22  ;;  %v2671_v5 = vsel %vm2665_vm2, %v2668_v1, %v2670_v35 }
 0x441   :  { %v2692_v37 = vshrl.u32 %v2687_v31, 16  ;;  %v2714_v54 = vshrl.u32 %v2709_v26, 16  ;;  %v2723_v61 = vadd.s32 %v2722_v30, %v2712_v0  ;;  %v1381_v43 = vadd.s32 3, %v1364_v38 }
 0x442   :  { %v1360_v51 = vsel %vm1239_vm8, %v1359_v19, %v1358_v9  ;;  %v2701_v28 = vadd.s32 %v2700_v48, %v2690_v57  ;;  %v9444_v25 = vsub.s32 32, %v4196_v15  ;;  %v4189_v36 = vand.u32 8388607, %v4182_v52 }
 0x443   :  { %v1363_v60 = vsel %vm9383_vm1, %v9123_v32, %v1360_v51  ;;  %v9450_v41 = vadd.s32 %v2717_v29, %v2713_v50  ;;  %v2724_v34 = vadd.s32 %v2723_v61, %v2714_v54  ;;  %v2725_v20 = vmul.u32 %v9345_v46, %v2671_v5 }
 0x444   :  { %v1365_v42 = vmul.f32 %v1363_v60, %v1363_v60  ;;  %v9448_v49 = vadd.s32 %v2701_v28, %v2692_v37  ;;  %v9453_v33 = vshrl.u32 %v4194_v22, 5  ;;  %v4202_v1 = vshll.u32 %v6464_v8, %v4196_v15 }
 0x445   :  { %v2728_v38 = vadd.s32 1, %v2724_v34  ;;  %v4203_v35 = vshrl.u32 %v6465_v10, %v9444_v25  ;;  %v4206_v44 = vshrl.u32 %v6466_v12, %v9444_v25  ;;  %v4200_v46 = vshrl.u32 %v6464_v8, %v9444_v25 }
 0x446   :  { %v1366_v53 = vmul.f32 -0.001358992, %v1365_v42  ;;  %v1373_v26 = vmul.f32 -0.00019511016, %v1365_v42  ;;  %vm2727_vm8 = vc.u32 %v9448_v49, %v9450_v41  ;;  %v4205_v17 = vshll.u32 %v6465_v10, %v4196_v15 }
 0x447   :  { %v2729_v13 = vsel %vm2727_vm8, %v2728_v38, %v2724_v34  ;;  %v4208_v18 = vshll.u32 %v6466_v12, %v4196_v15  ;;  %v4209_v40 = vshrl.u32 %v6467_v14, %v9444_v25  ;;  %v4211_v39 = vshll.u32 %v6467_v14, %v4196_v15 }
 0x448   :  { %v1367_v31 = vadd.f32 0.041655596, %v1366_v53  ;;  %v1374_v56 = vadd.f32 0.008332121, %v1373_v26  ;;  %v2730_v47 = vadd.s32 %v2729_v13, %v2725_v20  ;;  %v4212_v63 = vshrl.u32 %v6468_v23, %v9444_v25 }
 0x449   :  { %v4199_v50 = vshll.u32 %v6463_v6, %v4196_v15  ;;  %v9472_v62 = vor.u32 %v4203_v35, %v4202_v1  ;;  %v9474_v7 = vor.u32 %v4206_v44, %v4205_v17  ;;  %v4210_v29 = vor.u32 %v4209_v40, %v4208_v18  ;;  %v298_v17 = vpop.f32.mrf.mxu3 }
 0x44a   :  { %v1368_v21 = vmul.f32 %v1367_v31, %v1365_v42  ;;  %v1375_v45 = vmul.f32 %v1374_v56, %v1365_v42  ;;  %v2731_v11 = vadd.s32 536870912, %v2730_v47  ;;  %v4213_v58 = vor.u32 %v4212_v63, %v4211_v39 }
 0x44b   :  { %v1382_v0 = vand.u32 3, %v1381_v43  ;;  %v4190_v19 = vor.u32 8388608, %v4189_v36  ;;  %v9476_v4 = vor.u32 %v4200_v46, %v4199_v50  ;;  %vm4217_vm11 = vcmp.lt.s32.totalorder %v9453_v33, 4 }
 0x44c   :  { %v1369_v9 = vadd.f32 -0.4999988, %v1368_v21  ;;  %v1376_v55 = vadd.f32 -0.16666654, %v1375_v45  ;;  %v9478_v57 = vshrl.u32 %v2731_v11, 30  ;;  %vm4214_vm10 = vcmp.lt.s32.totalorder %v9453_v33, 1 }
 0x44d   :  { %vm4216_vm13 = vcmp.lt.s32.totalorder %v9453_v33, 3  ;;  %v4223_v48 = vsel %vm4217_vm11, %v4210_v29, 920167782  ;;  %v4227_v30 = vsel %vm4217_vm11, %v4213_v58, 1326507024  ;;  %v4226_v37 = vsel %vm4214_vm10, %v9472_v62, %v9474_v7 }
 0x44e   :  { %v1370_v3 = vmul.f32 %v1369_v9, %v1365_v42  ;;  %v1377_v22 = vmul.f32 %v1376_v55, %v1365_v42  ;;  %v2733_v5 = vshll.u32 %v9478_v57, 30  ;;  %v4222_v54 = vsel %vm4214_vm10, %v9476_v4, %v9472_v62 }
 0x44f   :  { %v4224_v28 = vsel %vm4216_vm13, %v9474_v7, %v4223_v48  ;;  %v4228_v61 = vsel %vm4216_vm13, %v4210_v29, %v4227_v30  ;;  %v9501_v42 = vshll.u32 %v4190_v19, 8  ;;  %vm4215_vm12 = vcmp.lt.s32.totalorder %v9453_v33, 2 }
 0x450   :  { %v1371_v15 = vadd.f32 1.0, %v1370_v3  ;;  %v1378_v51 = vadd.f32 1.0, %v1377_v22  ;;  %v2734_v34 = vsub.s32 %v2730_v47, %v2733_v5  ;;  %vm1383_vm14 = vcmp.lt.s32.totalorder %v1382_v0, 2 }
 0x451   :  { %vm1384_vm15 = vcmp.eq.s32.totalorder %v1382_v0, 0  ;;  %v4229_v20 = vsel %vm4215_vm12, %v4226_v37, %v4228_v61  ;;  %v4225_v1 = vsel %vm4215_vm12, %v4222_v54, %v4224_v28  ;;  %vm1387_vm0 = vcmp.eq.s32.totalorder %v1382_v0, 2 }
 0x452   :  { %v1379_v43 = vmul.f32 %v1378_v51, %v1363_v60  ;;  %v1388_v36 = vxor.u32 2147483648, %v1371_v15  ;;  %vm2735_vm1 = vcmp.lt.s32.totalorder %v2734_v34, 0  ;;  %v2736_v26 = vsub.s32 0, %v2734_v34 }
 0x453   :  { %v4231_v38 = vand.u32 65535, %v9501_v42  ;;  %v4233_v35 = vand.u32 65535, %v4229_v20  ;;  %v4234_v60 = vshrl.u32 %v4229_v20, 16  ;;  %v4232_v46 = vshrl.u32 %v9501_v42, 16 }
 0x454   :  { %v1385_v53 = vxor.u32 2147483648, %v1379_v43  ;;  %v1389_v31 = vsel %vm1387_vm0, %v1388_v36, %v1379_v43  ;;  %v2737_v56 = vsel %vm2735_vm1, %v2736_v26, %v2734_v34  ;;  %vm1380_vm2 = vweird.f32 %v9123_v32 }
 0x455   :  { %v2738_v18 = vclz %v2737_v56  ;;  %v4256_v40 = vshrl.u32 %v4225_v1, 16  ;;  %v4236_v21 = vmul.u32 %v4234_v60, %v4231_v38  ;;  %v4237_v45 = vmul.u32 %v4233_v35, %v4232_v46 }
 0x456   :  { %v1386_v44 = vsel %vm1384_vm15, %v1371_v15, %v1385_v53  ;;  %v4255_v47 = vand.u32 65535, %v4225_v1  ;;  %v4198_v50 = vshrl.u32 %v6463_v6, %v9444_v25  ;;  %v9515_v29 = vadd.f32 %v9306_v16, %v298_v17 }
 0x457   :  { %v1390_v13 = vsel %vm1383_vm14, %v1386_v44, %v1389_v31  ;;  %v6337_v63 = vadd.s32 4294967294, %v2738_v18  ;;  %v2726_v9 = vadd.s32 %v9450_v41, %v9448_v49  ;;  %v4235_v32 = vmul.u32 %v4233_v35, %v4231_v38 }
 0x458   :  { %v1391_v39 = vsel %vm1380_vm2, nan, %v1390_v13  ;;  %v4238_v55 = vmul.u32 %v4234_v60, %v4232_v46  ;;  %v4239_v11 = vshll.u32 %v4236_v21, 16  ;;  %v4240_v58 = vshrl.u32 %v4236_v21, 16 }
 0x459   :  { %6203 = vst [vmem:[#allocation2 + $0x30] sm:$0xff] %v1391_v39  ;;  %vm6338_vm3 = vcmp.lt.s32.totalorder %v6337_v63, 0  ;;  %v4241_v0 = vshll.u32 %v4237_v45, 16  ;;  %v4258_v19 = vmul.u32 %v4256_v40, %v4231_v38  ;;  %v4259_v48 = vmul.u32 %v4255_v47, %v4232_v46 }
 0x45a   :  { %v2741_v3 = vsel %vm6338_vm3, 0, %v6337_v63  ;;  %vm4243_vm5 = vc.u32 %v4235_v32, %v4239_v11  ;;  %v4245_v22 = vadd.s32 %v4239_v11, %v4235_v32  ;;  %vm2634_vm4 = vcmp.lt.s32.totalorder %v9309_v59, 0 }
 0x45b   :  { %v2742_v25 = vsub.s32 32, %v2741_v3  ;;  %v2746_v30 = vsub.s32 4294967266, %v2741_v3  ;;  %v4244_v15 = vsel %vm4243_vm5, 1, %v6469_v27  ;;  %v4257_v51 = vmul.u32 %v4255_v47, %v4231_v38 }
 0x45c   :  { %v4246_v5 = vadd.s32 %v4244_v15, %v4238_v55  ;;  %vm4247_vm6 = vc.u32 %v4245_v22, %v4241_v0  ;;  %v4260_v49 = vmul.u32 %v4256_v40, %v4232_v46  ;;  %v4261_v41 = vshll.u32 %v4258_v19, 16  ;;  %v214_v55 = vpop.f32.mrf.mxu0 }
 0x45d   :  { %v2743_v37 = vshll.u32 %v2734_v34, %v2741_v3  ;;  %v2744_v54 = vshrl.u32 %v2726_v9, %v2742_v25  ;;  %v2747_v28 = vadd.s32 127, %v2746_v30  ;;  %v4248_v61 = vsel %vm4247_vm6, 1, %v6469_v27 }
 0x45e   :  { %v4250_v43 = vadd.s32 %v4248_v61, %v4246_v5  ;;  %v4263_v36 = vshll.u32 %v4259_v48, 16  ;;  %vm4265_vm7 = vc.u32 %v4257_v51, %v4261_v41  ;;  %v4267_v20 = vadd.s32 %v4261_v41, %v4257_v51 }
 0x45f   :  { %v2745_v53 = vor.u32 %v2744_v54, %v2743_v37  ;;  %v2748_v26 = vshll.u32 %v2747_v28, 23  ;;  %v4219_v1 = vsel %vm4217_vm11, %v9474_v7, 2102212464  ;;  %v4266_v38 = vsel %vm4265_vm7, 1, %v6469_v27 }
 0x460   :  { %v2756_v35 = vsub.s32 4, %v9478_v57  ;;  %v4251_v60 = vadd.s32 %v4250_v43, %v4240_v58  ;;  %v4268_v34 = vadd.s32 %v4266_v38, %v4260_v49  ;;  %vm4269_vm9 = vc.u32 %v4267_v20, %v4263_v36 }
 0x461   :  { %v2749_v44 = vor.u32 4788187, %v2748_v26  ;;  %v4218_v31 = vsel %vm4214_vm10, %v4198_v50, %v9476_v4  ;;  %v4242_v56 = vshrl.u32 %v4237_v45, 16  ;;  %v4270_v46 = vsel %vm4269_vm9, 1, %v6469_v27 }
 0x462   :  { %v4220_v17 = vsel %vm4216_vm13, %v9472_v62, %v4219_v1  ;;  %v4262_v7 = vshrl.u32 %v4258_v19, 16  ;;  %v4272_v13 = vadd.s32 %v4270_v46, %v4268_v34  ;;  %v5735_v18 = vand.u32 2139095040, %v9515_v29 }
 0x463   :  { %v2750_v40 = vand.u32 2147483647, %v2749_v44  ;;  %v2752_v39 = vcvt.s32.f32 %v2745_v53  ;;  %v4252_v21 = vadd.s32 %v4251_v60, %v4242_v56  ;;  %v5732_v47 = vand.u32 2147483647, %v9515_v29 }
 0x464   :  { %v2757_v4 = vsel %vm2634_vm4, %v2756_v35, %v9478_v57  ;;  %v4264_v45 = vshrl.u32 %v4259_v48, 16  ;;  %v4273_v63 = vadd.s32 %v4272_v13, %v4262_v7  ;;  %v5736_v50 = vshrl.u32 %v5735_v18, 23 }
 0x465   :  { %v2753_v9 = vmul.f32 %v2752_v39, %v2750_v40  ;;  %v4271_v32 = vadd.s32 %v4267_v20, %v4263_v36  ;;  %vm2633_vm8 = vcmp.le.f32.partialorder %v2632_v24, 0.7853982  ;;  %v4221_v62 = vsel %vm4215_vm12, %v4218_v31, %v4220_v17 }
 0x466   :  { %v4274_v11 = vadd.s32 %v4273_v63, %v4264_v45  ;;  %v6396_v58 = vadd.s32 4294967169, %v5736_v50  ;;  %v2759_v19 = vsel %vm2633_vm8, 0, %v2757_v4  ;;  %v5739_v57 = vand.u32 8388607, %v5732_v47 }
 0x467   :  { %v2754_v0 = vxor.u32 2147483648, %v2753_v9  ;;  %vm4277_vm11 = vc.u32 %v4252_v21, %v4271_v32  ;;  %v9546_v48 = vadd.f32 %v9306_v16, %v214_v55  ;;  %v4275_v24 = vmul.u32 %v9501_v42, %v4221_v62 }
 0x468   :  { %v4278_v3 = vadd.s32 1, %v4274_v11  ;;  %v5742_v22 = vadd.s32 1, %v6396_v58  ;;  %v2776_v30 = vadd.s32 3, %v2759_v19  ;;  %v5740_v49 = vor.u32 8388608, %v5739_v57 }
 0x469   :  { %v2755_v25 = vsel %vm2634_vm4, %v2754_v0, %v2753_v9  ;;  %v1395_v54 = vand.u32 2139095040, %v9546_v48  ;;  %v9555_v36 = vadd.s32 %v4271_v32, %v4252_v21  ;;  %vm2775_vm1 = vweird.f32 %v9309_v59 }
 0x46a   :  { %v2758_v33 = vsel %vm2633_vm8, %v9309_v59, %v2755_v25  ;;  %v4279_v15 = vsel %vm4277_vm11, %v4278_v3, %v4274_v11  ;;  %vm5743_vm10 = vcmp.gt.s32.totalorder %v5742_v22, 0  ;;  %v9553_v43 = vand.u32 3, %v2776_v30 }
 0x46b   :  { %v2760_v51 = vmul.f32 %v2758_v33, %v2758_v33  ;;  %v4280_v5 = vadd.s32 %v4279_v15, %v4275_v24  ;;  %v5744_v41 = vsel %vm5743_vm10, %v5742_v22, 0  ;;  %v9559_v1 = vshll.u32 %v5740_v49, 8 }
 0x46c   :  { %v5746_v37 = vand.u32 31, %v5744_v41  ;;  %v1396_v34 = vshrl.u32 %v1395_v54, 23  ;;  %vm2782_vm13 = vcmp.eq.s32.totalorder %v9553_v43, 2  ;;  %v9573_v4 = vshrl.u32 %v5744_v41, 5 }
 0x46d   :  { %v2761_v28 = vmul.f32 -0.001358992, %v2760_v51  ;;  %v2768_v16 = vmul.f32 -0.00019511016, %v2760_v51  ;;  %v4281_v61 = vadd.s32 536870912, %v4280_v5  ;;  %vm2779_vm12 = vcmp.eq.s32.totalorder %v9553_v43, 0 }
 0x46e   :  { %v5747_v42 = vsub.s32 32, %v5746_v37  ;;  %v5749_v38 = vshll.u32 %v6463_v6, %v5746_v37  ;;  %v5752_v35 = vshll.u32 %v6464_v8, %v5746_v37  ;;  %v5755_v60 = vshll.u32 %v6465_v10, %v5746_v37 }
 0x46f   :  { %v2762_v20 = vadd.f32 0.041655596, %v2761_v28  ;;  %v2769_v53 = vadd.f32 0.008332121, %v2768_v16  ;;  %v9557_v26 = vshrl.u32 %v4281_v61, 30  ;;  %v5758_v46 = vshll.u32 %v6466_v12, %v5746_v37 }
 0x470   :  { %v5750_v17 = vshrl.u32 %v6464_v8, %v5747_v42  ;;  %v5753_v7 = vshrl.u32 %v6465_v10, %v5747_v42  ;;  %v5756_v13 = vshrl.u32 %v6466_v12, %v5747_v42  ;;  %v5759_v18 = vshrl.u32 %v6467_v14, %v5747_v42 }
 0x471   :  { %v2763_v44 = vmul.f32 %v2762_v20, %v2760_v51  ;;  %v2770_v31 = vmul.f32 %v2769_v53, %v2760_v51  ;;  %v4283_v56 = vshll.u32 %v9557_v26, 30  ;;  %v5748_v45 = vshrl.u32 %v6463_v6, %v5747_v42 }
 0x472   :  { %v5761_v63 = vshll.u32 %v6467_v14, %v5746_v37  ;;  %v5762_v50 = vshrl.u32 %v6468_v23, %v5747_v42  ;;  %v9580_v9 = vand.u32 65535, %v9559_v1  ;;  %vm2778_vm14 = vcmp.lt.s32.totalorder %v9553_v43, 2 }
 0x473   :  { %v2764_v40 = vadd.f32 -0.4999988, %v2763_v44  ;;  %v2771_v39 = vadd.f32 -0.16666654, %v2770_v31  ;;  %v9571_v21 = vsub.s32 %v4280_v5, %v4283_v56  ;;  %v5751_v11 = vor.u32 %v5750_v17, %v5749_v38 }
 0x474   :  { %v5754_v58 = vor.u32 %v5753_v7, %v5752_v35  ;;  %v5757_v0 = vor.u32 %v5756_v13, %v5755_v60  ;;  %v5760_v19 = vor.u32 %v5759_v18, %v5758_v46  ;;  %vm5764_vm0 = vcmp.lt.s32.totalorder %v9573_v4, 1 }
 0x475   :  { %v2765_v32 = vmul.f32 %v2764_v40, %v2760_v51  ;;  %v2772_v55 = vmul.f32 %v2771_v39, %v2760_v51  ;;  %vm4285_vm15 = vcmp.lt.s32.totalorder %v9571_v21, 0  ;;  %v4286_v62 = vsub.s32 0, %v9571_v21 }
 0x476   :  { %vm5767_vm2 = vcmp.lt.s32.totalorder %v9573_v4, 4  ;;  %v5782_v24 = vshrl.u32 %v9559_v1, 16  ;;  %v6312_v30 = vadd.s32 4294967169, %v1396_v34  ;;  %v5763_v5 = vor.u32 %v5762_v50, %v5761_v63 }
 0x477   :  { %v2766_v57 = vadd.f32 1.0, %v2765_v32  ;;  %v2773_v3 = vadd.f32 1.0, %v2772_v55  ;;  %v4287_v22 = vsel %vm4285_vm15, %v4286_v62, %v9571_v21  ;;  %vm5766_vm3 = vcmp.lt.s32.totalorder %v9573_v4, 3 }
 0x478   :  { %v4288_v25 = vclz %v4287_v22  ;;  %vm4184_vm5 = vcmp.lt.s32.totalorder %v9339_v2, 0  ;;  %v4306_v41 = vsub.s32 4, %v9557_v26  ;;  %vm5765_vm4 = vcmp.lt.s32.totalorder %v9573_v4, 2 }
 0x479   :  { %v2774_v15 = vmul.f32 %v2773_v3, %v2758_v33  ;;  %v2783_v51 = vxor.u32 2147483648, %v2766_v57  ;;  %v5772_v37 = vsel %vm5764_vm0, %v5751_v11, %v5754_v58  ;;  %v5768_v28 = vsel %vm5764_vm0, %v5748_v45, %v5751_v11 }
 0x47a   :  { %v6367_v49 = vadd.s32 4294967294, %v4288_v25  ;;  %v5769_v33 = vsel %vm5767_vm2, %v5757_v0, 2102212464  ;;  %v5773_v16 = vsel %vm5767_vm2, %v5760_v19, 920167782  ;;  %v5776_v20 = vsel %vm5764_vm0, %v5754_v58, %v5757_v0 }
 0x47b   :  { %v2780_v54 = vxor.u32 2147483648, %v2774_v15  ;;  %v2784_v61 = vsel %vm2782_vm13, %v2783_v51, %v2774_v15  ;;  %v5774_v42 = vsel %vm5766_vm3, %v5757_v0, %v5773_v16  ;;  %v5777_v60 = vsel %vm5767_vm2, %v5763_v5, 1326507024 }
 0x47c   :  { %vm6368_vm6 = vcmp.lt.s32.totalorder %v6367_v49, 0  ;;  %v5775_v35 = vsel %vm5765_vm4, %v5772_v37, %v5774_v42  ;;  %v5770_v56 = vsel %vm5766_vm3, %v5754_v58, %v5769_v33  ;;  %v5778_v17 = vsel %vm5766_vm3, %v5760_v19, %v5777_v60 }
 0x47d   :  { %v2781_v53 = vsel %vm2779_vm12, %v2766_v57, %v2780_v54  ;;  %v4291_v38 = vsel %vm6368_vm6, 0, %v6367_v49  ;;  %v5805_v7 = vand.u32 65535, %v5775_v35  ;;  %v5806_v13 = vshrl.u32 %v5775_v35, 16 }
 0x47e   :  { %v2785_v34 = vsel %vm2778_vm14, %v2781_v53, %v2784_v61  ;;  %v4292_v44 = vsub.s32 32, %v4291_v38  ;;  %v4296_v31 = vsub.s32 4294967266, %v4291_v38  ;;  %v4293_v18 = vshll.u32 %v9571_v21, %v4291_v38 }
 0x47f   :  { %v2786_v46 = vsel %vm2775_vm1, nan, %v2785_v34  ;;  %v5779_v39 = vsel %vm5765_vm4, %v5776_v20, %v5778_v17  ;;  %v5808_v50 = vmul.u32 %v5806_v13, %v9580_v9  ;;  %v1392_v59 = vand.u32 2147483647, %v9546_v48 }
 0x480   :  { %6212 = vst [vmem:[#allocation2 + $0x78] sm:$0xff] %v2786_v46  ;;  %v4294_v40 = vshrl.u32 %v9555_v36, %v4292_v44  ;;  %v4297_v43 = vadd.s32 127, %v4296_v31  ;;  %v5783_v45 = vand.u32 65535, %v5779_v39  ;;  %v5784_v63 = vshrl.u32 %v5779_v39, 16 }
 0x481   :  { %v5809_v62 = vmul.u32 %v5805_v7, %v5782_v24  ;;  %v1402_v11 = vadd.s32 1, %v6312_v30  ;;  %v9631_v21 = vsel %vm4184_vm5, %v4306_v41, %v9557_v26  ;;  %v9635_v36 = vsel %vm5765_vm4, %v5768_v28, %v5770_v56 }
 0x482   :  { %v4295_v32 = vor.u32 %v4294_v40, %v4293_v18  ;;  %v4298_v55 = vshll.u32 %v4297_v43, 23  ;;  %v5786_v58 = vmul.u32 %v5784_v63, %v9580_v9  ;;  %v5787_v0 = vmul.u32 %v5783_v45, %v5782_v24 }
 0x483   :  { %v5807_v57 = vmul.u32 %v5805_v7, %v9580_v9  ;;  %v5810_v3 = vmul.u32 %v5806_v13, %v5782_v24  ;;  %v5811_v22 = vshll.u32 %v5808_v50, 16  ;;  %v5785_v30 = vmul.u32 %v5783_v45, %v9580_v9 }
 0x484   :  { %v4299_v19 = vor.u32 4788187, %v4298_v55  ;;  %v4302_v25 = vcvt.s32.f32 %v4295_v32  ;;  %v5788_v15 = vmul.u32 %v5784_v63, %v5782_v24  ;;  %v5789_v51 = vshll.u32 %v5786_v58, 16 }
 0x485   :  { %v5791_v26 = vshll.u32 %v5787_v0, 16  ;;  %v5813_v49 = vshll.u32 %v5809_v62, 16  ;;  %vm5815_vm7 = vc.u32 %v5807_v57, %v5811_v22  ;;  %v5817_v37 = vadd.s32 %v5811_v22, %v5807_v57 }
 0x486   :  { %v4300_v5 = vand.u32 2147483647, %v4299_v19  ;;  %vm5793_vm9 = vc.u32 %v5785_v30, %v5789_v51  ;;  %v5795_v4 = vadd.s32 %v5789_v51, %v5785_v30  ;;  %v5816_v41 = vsel %vm5815_vm7, 1, %v6469_v27 }
 0x487   :  { %v5794_v28 = vsel %vm5793_vm9, 1, %v6469_v27  ;;  %v5818_v33 = vadd.s32 %v5816_v41, %v5810_v3  ;;  %vm1403_vm8 = vcmp.gt.s32.totalorder %v1402_v11, 0  ;;  %v5812_v61 = vshrl.u32 %v5808_v50, 16 }
 0x488   :  { %v4303_v54 = vmul.f32 %v4302_v25, %v4300_v5  ;;  %v5796_v16 = vadd.s32 %v5794_v28, %v5788_v15  ;;  %vm5797_vm11 = vc.u32 %v5795_v4, %v5791_v26  ;;  %vm5819_vm10 = vc.u32 %v5817_v37, %v5813_v49 }
 0x489   :  { %v5798_v24 = vsel %vm5797_vm11, 1, %v6469_v27  ;;  %v5820_v42 = vsel %vm5819_vm10, 1, %v6469_v27  ;;  %v1404_v20 = vsel %vm1403_vm8, %v1402_v11, 0  ;;  %v5790_v53 = vshrl.u32 %v5786_v58, 16 }
 0x48a   :  { %v4304_v9 = vxor.u32 2147483648, %v4303_v54  ;;  %v5800_v38 = vadd.s32 %v5798_v24, %v5796_v16  ;;  %v5822_v35 = vadd.s32 %v5820_v42, %v5818_v33  ;;  %v1406_v60 = vand.u32 31, %v1404_v20 }
 0x48b   :  { %vm9646_vm13 = vcmp.le.f32.partialorder %v4182_v52, 0.7853982  ;;  %v5792_v31 = vshrl.u32 %v5787_v0, 16  ;;  %v5814_v56 = vshrl.u32 %v5809_v62, 16  ;;  %v5825_v40 = vmul.u32 %v9559_v1, %v9635_v36 }
 0x48c   :  { %v4305_v44 = vsel %vm4184_vm5, %v4304_v9, %v4303_v54  ;;  %v5801_v17 = vadd.s32 %v5800_v38, %v5790_v53  ;;  %v5823_v7 = vadd.s32 %v5822_v35, %v5812_v61  ;;  %v9655_v13 = vsub.s32 32, %v1406_v60 }
 0x48d   :  { %v4308_v46 = vsel %vm9646_vm13, %v9339_v2, %v4305_v44  ;;  %v4309_v52 = vsel %vm9646_vm13, 0, %v9631_v21  ;;  %v1399_v43 = vand.u32 8388607, %v1392_v59  ;;  %v9666_v45 = vadd.s32 %v5817_v37, %v5813_v49 }
 0x48e   :  { %v4310_v18 = vmul.f32 %v4308_v46, %v4308_v46  ;;  %v9664_v39 = vadd.s32 %v5801_v17, %v5792_v31  ;;  %v5824_v63 = vadd.s32 %v5823_v7, %v5814_v56  ;;  %v9668_v50 = vshrl.u32 %v1404_v20, 5 }
 0x48f   :  { %v1412_v62 = vshll.u32 %v6464_v8, %v1406_v60  ;;  %v1415_v11 = vshll.u32 %v6465_v10, %v1406_v60  ;;  %v1413_v21 = vshrl.u32 %v6465_v10, %v9655_v13  ;;  %v1416_v36 = vshrl.u32 %v6466_v12, %v9655_v13 }
 0x490   :  { %v4311_v32 = vmul.f32 -0.001358992, %v4310_v18  ;;  %v4318_v55 = vmul.f32 -0.00019511016, %v4310_v18  ;;  %vm5827_vm12 = vc.u32 %v9664_v39, %v9666_v45  ;;  %v5828_v1 = vadd.s32 1, %v5824_v63 }
 0x491   :  { %v1409_v19 = vshll.u32 %v6463_v6, %v1406_v60  ;;  %v1410_v57 = vshrl.u32 %v6464_v8, %v9655_v13  ;;  %v1418_v22 = vshll.u32 %v6466_v12, %v1406_v60  ;;  %v1419_v25 = vshrl.u32 %v6467_v14, %v9655_v13 }
 0x492   :  { %v4312_v58 = vadd.f32 0.041655596, %v4311_v32  ;;  %v4319_v0 = vadd.f32 0.008332121, %v4318_v55  ;;  %v5829_v3 = vsel %vm5827_vm12, %v5828_v1, %v5824_v63  ;;  %v1421_v30 = vshll.u32 %v6467_v14, %v1406_v60 }
 0x493   :  { %v5830_v5 = vadd.s32 %v5829_v3, %v5825_v40  ;;  %v1422_v26 = vshrl.u32 %v6468_v23, %v9655_v13  ;;  %v1400_v49 = vor.u32 8388608, %v1399_v43  ;;  %v9687_v4 = vor.u32 %v1413_v21, %v1412_v62 }
 0x494   :  { %v4313_v15 = vmul.f32 %v4312_v58, %v4310_v18  ;;  %v4320_v51 = vmul.f32 %v4319_v0, %v4310_v18  ;;  %v1417_v41 = vor.u32 %v1416_v36, %v1415_v11  ;;  %v1420_v37 = vor.u32 %v1419_v25, %v1418_v22 }
 0x495   :  { %v5831_v33 = vadd.s32 536870912, %v5830_v5  ;;  %v1423_v16 = vor.u32 %v1422_v26, %v1421_v30  ;;  %v4326_v61 = vadd.s32 3, %v4309_v52  ;;  %v9689_v9 = vor.u32 %v1410_v57, %v1409_v19  ;;  %v241_v19 = vpop.f32.mrf.mxu1 }
 0x496   :  { %v4314_v54 = vadd.f32 -0.4999988, %v4313_v15  ;;  %v4321_v28 = vadd.f32 -0.16666654, %v4320_v51  ;;  %vm1424_vm14 = vcmp.lt.s32.totalorder %v9668_v50, 1  ;;  %vm1427_vm15 = vcmp.lt.s32.totalorder %v9668_v50, 4 }
 0x497   :  { %v9693_v20 = vshrl.u32 %v5831_v33, 30  ;;  %vm1426_vm1 = vcmp.lt.s32.totalorder %v9668_v50, 3  ;;  %vm1425_vm0 = vcmp.lt.s32.totalorder %v9668_v50, 2  ;;  %v1433_v53 = vsel %vm1427_vm15, %v1420_v37, 920167782 }
 0x498   :  { %v4315_v24 = vmul.f32 %v4314_v54, %v4310_v18  ;;  %v4322_v42 = vmul.f32 %v4321_v28, %v4310_v18  ;;  %v1437_v38 = vsel %vm1427_vm15, %v1423_v16, 1326507024  ;;  %v9701_v35 = vshll.u32 %v1400_v49, 8 }
 0x499   :  { %v5833_v44 = vshll.u32 %v9693_v20, 30  ;;  %v1436_v31 = vsel %vm1424_vm14, %v9687_v4, %v1417_v41  ;;  %v4327_v56 = vand.u32 3, %v4326_v61  ;;  %v1432_v17 = vsel %vm1424_vm14, %v9689_v9, %v9687_v4 }
 0x49a   :  { %v4316_v60 = vadd.f32 1.0, %v4315_v24  ;;  %v4323_v34 = vadd.f32 1.0, %v4322_v42  ;;  %v1434_v7 = vsel %vm1426_vm1, %v1417_v41, %v1433_v53  ;;  %v1438_v52 = vsel %vm1426_vm1, %v1420_v37, %v1437_v38  ;;  %v9729_v37 = vld [vmem:[%s10726_s2] ss:$0 sm:$0xff] }
 0x49b   :  { %v5834_v43 = vsub.s32 %v5830_v5, %v5833_v44  ;;  %vm4325_vm2 = vweird.f32 %v9339_v2  ;;  %v1439_v63 = vsel %vm1425_vm0, %v1436_v31, %v1438_v52  ;;  %v1441_v32 = vand.u32 65535, %v9701_v35 }
 0x49c   :  { %v4324_v18 = vmul.f32 %v4323_v34, %v4308_v46  ;;  %v4333_v40 = vxor.u32 2147483648, %v4316_v60  ;;  %v1442_v55 = vshrl.u32 %v9701_v35, 16  ;;  %v1435_v1 = vsel %vm1425_vm0, %v1432_v17, %v1434_v7 }
 0x49d   :  { %vm5835_vm3 = vcmp.lt.s32.totalorder %v5834_v43, 0  ;;  %v5836_v11 = vsub.s32 0, %v5834_v43  ;;  %vm4329_vm5 = vcmp.eq.s32.totalorder %v4327_v56, 0  ;;  %vm4332_vm4 = vcmp.eq.s32.totalorder %v4327_v56, 2 }
 0x49e   :  { %v4330_v62 = vxor.u32 2147483648, %v4324_v18  ;;  %v1443_v46 = vand.u32 65535, %v1439_v63  ;;  %v1444_v21 = vshrl.u32 %v1439_v63, 16  ;;  %vm4328_vm6 = vcmp.lt.s32.totalorder %v4327_v56, 2 }
 0x49f   :  { %v4334_v58 = vsel %vm4332_vm4, %v4333_v40, %v4324_v18  ;;  %v5837_v0 = vsel %vm5835_vm3, %v5836_v11, %v5834_v43  ;;  %v1465_v22 = vand.u32 65535, %v1435_v1  ;;  %v1466_v25 = vshrl.u32 %v1435_v1, 16 }
 0x4a0   :  { %v4331_v36 = vsel %vm4329_vm5, %v4316_v60, %v4330_v62  ;;  %v5838_v3 = vclz %v5837_v0  ;;  %v1445_v15 = vmul.u32 %v1443_v46, %v1441_v32  ;;  %v1446_v51 = vmul.u32 %v1444_v21, %v1441_v32 }
 0x4a1   :  { %v4335_v57 = vsel %vm4328_vm6, %v4331_v36, %v4334_v58  ;;  %v1447_v5 = vmul.u32 %v1443_v46, %v1442_v55  ;;  %v1408_v49 = vshrl.u32 %v6463_v6, %v9655_v13  ;;  %v9732_v54 = vadd.f32 %v9729_v37, %v241_v19 }
 0x4a2   :  { %v4336_v30 = vsel %vm4325_vm2, nan, %v4335_v57  ;;  %v6397_v26 = vadd.s32 4294967294, %v5838_v3  ;;  %v5826_v2 = vadd.s32 %v9666_v45, %v9664_v39  ;;  %v1429_v28 = vsel %vm1427_vm15, %v1417_v41, 2102212464 }
 0x4a3   :  { %6222 = vst [vmem:[#allocation2 + $0xc8] sm:$0xff] %v4336_v30  ;;  %v1449_v33 = vshll.u32 %v1446_v51, 16  ;;  %v1451_v16 = vshll.u32 %v1447_v5, 16  ;;  %v1448_v61 = vmul.u32 %v1444_v21, %v1442_v55  ;;  %v1468_v24 = vmul.u32 %v1466_v25, %v1441_v32 }
 0x4a4   :  { %vm6398_vm7 = vcmp.lt.s32.totalorder %v6397_v26, 0  ;;  %v1469_v13 = vmul.u32 %v1465_v22, %v1442_v55  ;;  %vm5734_vm9 = vcmp.lt.s32.totalorder %v9515_v29, 0  ;;  %v1467_v38 = vmul.u32 %v1465_v22, %v1441_v32 }
 0x4a5   :  { %v5841_v42 = vsel %vm6398_vm7, 0, %v6397_v26  ;;  %vm1453_vm8 = vc.u32 %v1445_v15, %v1449_v33  ;;  %v1455_v53 = vadd.s32 %v1449_v33, %v1445_v15  ;;  %v1450_v44 = vshrl.u32 %v1446_v51, 16 }
 0x4a6   :  { %v5842_v60 = vsub.s32 32, %v5841_v42  ;;  %v5846_v34 = vsub.s32 4294967266, %v5841_v42  ;;  %v1454_v39 = vsel %vm1453_vm8, 1, %v6469_v27  ;;  %v5843_v45 = vshll.u32 %v5834_v43, %v5841_v42 }
 0x4a7   :  { %v1456_v31 = vadd.s32 %v1454_v39, %v1448_v61  ;;  %vm1457_vm11 = vc.u32 %v1455_v53, %v1451_v16  ;;  %v1471_v41 = vshll.u32 %v1468_v24, 16  ;;  %v1473_v52 = vshll.u32 %v1469_v13, 16 }
 0x4a8   :  { %v5844_v56 = vshrl.u32 %v5826_v2, %v5842_v60  ;;  %v5847_v17 = vadd.s32 127, %v5846_v34  ;;  %v1458_v7 = vsel %vm1457_vm11, 1, %v6469_v27  ;;  %v1470_v40 = vmul.u32 %v1466_v25, %v1442_v55 }
 0x4a9   :  { %v1460_v18 = vadd.s32 %v1458_v7, %v1456_v31  ;;  %vm1475_vm10 = vc.u32 %v1467_v38, %v1471_v41  ;;  %v1477_v63 = vadd.s32 %v1471_v41, %v1467_v38  ;;  %v5856_v11 = vsub.s32 4, %v9693_v20 }
 0x4aa   :  { %v5845_v62 = vor.u32 %v5844_v56, %v5843_v45  ;;  %v5848_v32 = vshll.u32 %v5847_v17, 23  ;;  %v1476_v1 = vsel %vm1475_vm10, 1, %v6469_v27  ;;  %v2787_v21 = vand.u32 2147483647, %v9732_v54 }
 0x4ab   :  { %v1461_v46 = vadd.s32 %v1460_v18, %v1450_v44  ;;  %v1478_v43 = vadd.s32 %v1476_v1, %v1470_v40  ;;  %vm1479_vm13 = vc.u32 %v1477_v63, %v1473_v52  ;;  %v1428_v58 = vsel %vm1424_vm14, %v1408_v49, %v9689_v9 }
 0x4ac   :  { %v5849_v36 = vor.u32 4788187, %v5848_v32  ;;  %v1452_v0 = vshrl.u32 %v1447_v5, 16  ;;  %v1480_v55 = vsel %vm1479_vm13, 1, %v6469_v27  ;;  %v1430_v19 = vsel %vm1426_vm1, %v9687_v4, %v1429_v28  ;;  %v271_v4 = vpop.f32.mrf.mxu2 }
 0x4ad   :  { %v1472_v57 = vshrl.u32 %v1468_v24, 16  ;;  %v1482_v3 = vadd.s32 %v1480_v55, %v1478_v43  ;;  %v2790_v22 = vand.u32 2139095040, %v9732_v54  ;;  %v5852_v30 = vcvt.s32.f32 %v5845_v62 }
 0x4ae   :  { %v5850_v25 = vand.u32 2147483647, %v5849_v36  ;;  %v5857_v15 = vsel %vm5734_vm9, %v5856_v11, %v9693_v20  ;;  %v1462_v51 = vadd.s32 %v1461_v46, %v1452_v0  ;;  %v1474_v26 = vshrl.u32 %v1469_v13, 16 }
 0x4af   :  { %v1483_v9 = vadd.s32 %v1482_v3, %v1472_v57  ;;  %v2791_v5 = vshrl.u32 %v2790_v22, 23  ;;  %v2794_v49 = vand.u32 8388607, %v2787_v21  ;;  %v1481_v33 = vadd.s32 %v1477_v63, %v1473_v52 }
 0x4b0   :  { %v5853_v2 = vmul.f32 %v5852_v30, %v5850_v25  ;;  %vm5733_vm12 = vcmp.le.f32.partialorder %v5732_v47, 0.7853982  ;;  %v1431_v28 = vsel %vm1425_vm0, %v1428_v58, %v1430_v19  ;;  %v9762_v38 = vadd.f32 %v9729_v37, %v271_v4 }
 0x4b1   :  { %v1484_v16 = vadd.s32 %v1483_v9, %v1474_v26  ;;  %v6339_v61 = vadd.s32 4294967169, %v2791_v5  ;;  %v5859_v20 = vsel %vm5733_vm12, 0, %v5857_v15  ;;  %vm1487_vm14 = vc.u32 %v1462_v51, %v1481_v33 }
 0x4b2   :  { %v5854_v24 = vxor.u32 2147483648, %v5853_v2  ;;  %v2795_v42 = vor.u32 8388608, %v2794_v49  ;;  %v1485_v34 = vmul.u32 %v9701_v35, %v1431_v28  ;;  %v5876_v50 = vadd.s32 3, %v5859_v20 }
 0x4b3   :  { %v1488_v13 = vadd.s32 1, %v1484_v16  ;;  %v2797_v53 = vadd.s32 1, %v6339_v61  ;;  %v4340_v17 = vand.u32 2139095040, %v9762_v38  ;;  %v9773_v32 = vadd.s32 %v1481_v33, %v1462_v51 }
 0x4b4   :  { %v5855_v60 = vsel %vm5734_vm9, %v5854_v24, %v5853_v2  ;;  %v9768_v56 = vshll.u32 %v2795_v42, 8  ;;  %v9771_v40 = vand.u32 3, %v5876_v50  ;;  %v4337_v43 = vand.u32 2147483647, %v9762_v38 }
 0x4b5   :  { %v5858_v47 = vsel %vm5733_vm12, %v9515_v29, %v5855_v60  ;;  %v1489_v44 = vsel %vm1487_vm14, %v1488_v13, %v1484_v16  ;;  %vm2798_vm15 = vcmp.gt.s32.totalorder %v2797_v53, 0  ;;  %v4341_v36 = vshrl.u32 %v4340_v17, 23 }
 0x4b6   :  { %v5860_v39 = vmul.f32 %v5858_v47, %v5858_v47  ;;  %v1490_v45 = vadd.s32 %v1489_v44, %v1485_v34  ;;  %v2799_v31 = vsel %vm2798_vm15, %v2797_v53, 0  ;;  %v9777_v46 = vand.u32 65535, %v9768_v56 }
 0x4b7   :  { %v2801_v41 = vand.u32 31, %v2799_v31  ;;  %vm1394_vm1 = vcmp.lt.s32.totalorder %v9546_v48, 0  ;;  %vm5882_vm0 = vcmp.eq.s32.totalorder %v9771_v40, 2  ;;  %v9789_v26 = vshrl.u32 %v2799_v31, 5 }
 0x4b8   :  { %v5861_v7 = vmul.f32 -0.001358992, %v5860_v39  ;;  %v5868_v52 = vmul.f32 -0.00019511016, %v5860_v39  ;;  %v1491_v18 = vadd.s32 536870912, %v1490_v45  ;;  %vm5879_vm2 = vcmp.eq.s32.totalorder %v9771_v40, 0 }
 0x4b9   :  { %v2802_v63 = vsub.s32 32, %v2801_v41  ;;  %v2804_v1 = vshll.u32 %v6463_v6, %v2801_v41  ;;  %v2807_v19 = vshll.u32 %v6464_v8, %v2801_v41  ;;  %v2813_v22 = vshll.u32 %v6466_v12, %v2801_v41 }
 0x4ba   :  { %v5862_v35 = vadd.f32 0.041655596, %v5861_v7  ;;  %v5869_v62 = vadd.f32 0.008332121, %v5868_v52  ;;  %v1492_v11 = vshrl.u32 %v1491_v18, 30  ;;  %v2810_v9 = vshll.u32 %v6465_v10, %v2801_v41 }
 0x4bb   :  { %v2805_v57 = vshrl.u32 %v6464_v8, %v2802_v63  ;;  %v2808_v3 = vshrl.u32 %v6465_v10, %v2802_v63  ;;  %v2814_v25 = vshrl.u32 %v6467_v14, %v2802_v63  ;;  %v2811_v5 = vshrl.u32 %v6466_v12, %v2802_v63 }
 0x4bc   :  { %v5863_v58 = vmul.f32 %v5862_v35, %v5860_v39  ;;  %v5870_v0 = vmul.f32 %v5869_v62, %v5860_v39  ;;  %v1493_v55 = vshll.u32 %v1492_v11, 30  ;;  %v2816_v49 = vshll.u32 %v6467_v14, %v2801_v41 }
 0x4bd   :  { %v2817_v2 = vshrl.u32 %v6468_v23, %v2802_v63  ;;  %vm5878_vm3 = vcmp.lt.s32.totalorder %v9771_v40, 2  ;;  %vm5875_vm4 = vweird.f32 %v9515_v29  ;;  %v1516_v16 = vsub.s32 4, %v1492_v11 }
 0x4be   :  { %v5864_v30 = vadd.f32 -0.4999988, %v5863_v58  ;;  %v5871_v15 = vadd.f32 -0.16666654, %v5870_v0  ;;  %v9787_v51 = vsub.s32 %v1490_v45, %v1493_v55  ;;  %v2806_v61 = vor.u32 %v2805_v57, %v2804_v1 }
 0x4bf   :  { %v2809_v24 = vor.u32 %v2808_v3, %v2807_v19  ;;  %v2815_v20 = vor.u32 %v2814_v25, %v2813_v22  ;;  %vm2819_vm6 = vcmp.lt.s32.totalorder %v9789_v26, 1  ;;  %v2812_v34 = vor.u32 %v2811_v5, %v2810_v9 }
 0x4c0   :  { %v5865_v33 = vmul.f32 %v5864_v30, %v5860_v39  ;;  %v5872_v4 = vmul.f32 %v5871_v15, %v5860_v39  ;;  %vm1495_vm5 = vcmp.lt.s32.totalorder %v9787_v51, 0  ;;  %v1496_v28 = vsub.s32 0, %v9787_v51 }
 0x4c1   :  { %vm2822_vm7 = vcmp.lt.s32.totalorder %v9789_v26, 4  ;;  %v2837_v50 = vshrl.u32 %v9768_v56, 16  ;;  %vm9806_vm9 = vcmp.le.f32.partialorder %v1392_v59, 0.7853982  ;;  %v2818_v31 = vor.u32 %v2817_v2, %v2816_v49 }
 0x4c2   :  { %v5866_v13 = vadd.f32 1.0, %v5865_v33  ;;  %v5873_v42 = vadd.f32 1.0, %v5872_v4  ;;  %v1497_v53 = vsel %vm1495_vm5, %v1496_v28, %v9787_v51  ;;  %vm2821_vm8 = vcmp.lt.s32.totalorder %v9789_v26, 3 }
 0x4c3   :  { %v1498_v60 = vclz %v1497_v53  ;;  %v2803_v17 = vshrl.u32 %v6463_v6, %v2802_v63  ;;  %v2827_v7 = vsel %vm2819_vm6, %v2806_v61, %v2809_v24  ;;  %v6369_v52 = vadd.s32 4294967169, %v4341_v36 }
 0x4c4   :  { %v5874_v44 = vmul.f32 %v5873_v42, %v5858_v47  ;;  %v5883_v39 = vxor.u32 2147483648, %v5866_v13  ;;  %v9816_v47 = vsel %vm1394_vm1, %v1516_v16, %v1492_v11  ;;  %vm2820_vm11 = vcmp.lt.s32.totalorder %v9789_v26, 2 }
 0x4c5   :  { %v6313_v41 = vadd.s32 4294967294, %v1498_v60  ;;  %v2828_v59 = vsel %vm2822_vm7, %v2815_v20, 920167782  ;;  %v2831_v62 = vsel %vm2819_vm6, %v2809_v24, %v2812_v34  ;;  %v2832_v58 = vsel %vm2822_vm7, %v2818_v31, 1326507024 }
 0x4c6   :  { %v5880_v18 = vxor.u32 2147483648, %v5874_v44  ;;  %v5884_v35 = vsel %vm5882_vm0, %v5883_v39, %v5874_v44  ;;  %v2829_v63 = vsel %vm2821_vm8, %v2812_v34, %v2828_v59  ;;  %v2824_v57 = vsel %vm2822_vm7, %v2812_v34, 2102212464 }
 0x4c7   :  { %vm6314_vm10 = vcmp.lt.s32.totalorder %v6313_v41, 0  ;;  %v2830_v36 = vsel %vm2820_vm11, %v2827_v7, %v2829_v63  ;;  %v2833_v22 = vsel %vm2821_vm8, %v2815_v20, %v2832_v58  ;;  %v4347_v29 = vadd.s32 1, %v6369_v52 }
 0x4c8   :  { %v5881_v1 = vsel %vm5879_vm2, %v5866_v13, %v5880_v18  ;;  %v1501_v11 = vsel %vm6314_vm10, 0, %v6313_v41  ;;  %v2860_v25 = vand.u32 65535, %v2830_v36  ;;  %v2861_v30 = vshrl.u32 %v2830_v36, 16 }
 0x4c9   :  { %v5885_v0 = vsel %vm5878_vm3, %v5881_v1, %v5884_v35  ;;  %v1502_v55 = vsub.s32 32, %v1501_v11  ;;  %v1506_v19 = vsub.s32 4294967266, %v1501_v11  ;;  %v1503_v15 = vshll.u32 %v9787_v51, %v1501_v11 }
 0x4ca   :  { %v5886_v3 = vsel %vm5875_vm4, nan, %v5885_v0  ;;  %v2834_v5 = vsel %vm2820_vm11, %v2831_v62, %v2833_v22  ;;  %v2863_v33 = vmul.u32 %v2861_v30, %v9777_v46  ;;  %v1519_v16 = vsel %vm9806_vm9, 0, %v9816_v47 }
 0x4cb   :  { %6232 = vst [vmem:[#allocation2 + $0x118] sm:$0xff] %v5886_v3  ;;  %v1504_v9 = vshrl.u32 %v9773_v32, %v1502_v55  ;;  %v1507_v40 = vadd.s32 127, %v1506_v19  ;;  %v2838_v49 = vand.u32 65535, %v2834_v5  ;;  %v2839_v2 = vshrl.u32 %v2834_v5, 16 }
 0x4cc   :  { %v2864_v20 = vmul.u32 %v2860_v25, %v2837_v50  ;;  %v2823_v51 = vsel %vm2819_vm6, %v2803_v17, %v2806_v61  ;;  %v2825_v32 = vsel %vm2821_vm8, %v2809_v24, %v2824_v57  ;;  %v2862_v60 = vmul.u32 %v2860_v25, %v9777_v46 }
 0x4cd   :  { %v1505_v4 = vor.u32 %v1504_v9, %v1503_v15  ;;  %v1508_v28 = vshll.u32 %v1507_v40, 23  ;;  %v2841_v13 = vmul.u32 %v2839_v2, %v9777_v46  ;;  %v2842_v42 = vmul.u32 %v2838_v49, %v2837_v50 }
 0x4ce   :  { %v2865_v34 = vmul.u32 %v2861_v30, %v2837_v50  ;;  %v2866_v44 = vshll.u32 %v2863_v33, 16  ;;  %v2840_v31 = vmul.u32 %v2838_v49, %v9777_v46  ;;  %v2843_v41 = vmul.u32 %v2839_v2, %v2837_v50 }
 0x4cf   :  { %v1509_v53 = vor.u32 4788187, %v1508_v28  ;;  %v1512_v39 = vcvt.s32.f32 %v1505_v4  ;;  %v2844_v7 = vshll.u32 %v2841_v13, 16  ;;  %v2846_v18 = vshll.u32 %v2842_v42, 16 }
 0x4d0   :  { %v2868_v47 = vshll.u32 %v2864_v20, 16  ;;  %vm2870_vm13 = vc.u32 %v2862_v60, %v2866_v44  ;;  %v2872_v17 = vadd.s32 %v2866_v44, %v2862_v60  ;;  %vm4348_vm14 = vcmp.gt.s32.totalorder %v4347_v29, 0 }
 0x4d1   :  { %v1510_v52 = vand.u32 2147483647, %v1509_v53  ;;  %vm2848_vm12 = vc.u32 %v2840_v31, %v2844_v7  ;;  %v2850_v61 = vadd.s32 %v2844_v7, %v2840_v31  ;;  %v2871_v24 = vsel %vm2870_vm13, 1, %v6469_v27 }
 0x4d2   :  { %v2849_v35 = vsel %vm2848_vm12, 1, %v6469_v27  ;;  %v2873_v63 = vadd.s32 %v2871_v24, %v2865_v34  ;;  %v2867_v1 = vshrl.u32 %v2863_v33, 16  ;;  %vm2874_vm0 = vc.u32 %v2872_v17, %v2868_v47 }
 0x4d3   :  { %v1513_v59 = vmul.f32 %v1512_v39, %v1510_v52  ;;  %v2851_v62 = vadd.s32 %v2849_v35, %v2843_v41  ;;  %vm2852_vm15 = vc.u32 %v2850_v61, %v2846_v18  ;;  %v2875_v11 = vsel %vm2874_vm0, 1, %v6469_v27 }
 0x4d4   :  { %v2853_v50 = vsel %vm2852_vm15, 1, %v6469_v27  ;;  %v4349_v36 = vsel %vm4348_vm14, %v4347_v29, 0  ;;  %v2845_v58 = vshrl.u32 %v2841_v13, 16  ;;  %v2877_v55 = vadd.s32 %v2875_v11, %v2873_v63 }
 0x4d5   :  { %v1514_v46 = vxor.u32 2147483648, %v1513_v59  ;;  %v2855_v0 = vadd.s32 %v2853_v50, %v2851_v62  ;;  %v4351_v19 = vand.u32 31, %v4349_v36  ;;  %v2826_v3 = vsel %vm2820_vm11, %v2823_v51, %v2825_v32 }
 0x4d6   :  { %v2847_v22 = vshrl.u32 %v2842_v42, 16  ;;  %v2869_v25 = vshrl.u32 %v2864_v20, 16  ;;  %v2878_v9 = vadd.s32 %v2877_v55, %v2867_v1  ;;  %v1536_v49 = vadd.s32 3, %v1519_v16 }
 0x4d7   :  { %v1515_v57 = vsel %vm1394_vm1, %v1514_v46, %v1513_v59  ;;  %v2856_v15 = vadd.s32 %v2855_v0, %v2845_v58  ;;  %v9867_v40 = vsub.s32 32, %v4351_v19  ;;  %v4344_v2 = vand.u32 8388607, %v4337_v43 }
 0x4d8   :  { %v1518_v30 = vsel %vm9806_vm9, %v9546_v48, %v1515_v57  ;;  %v9873_v29 = vadd.s32 %v2872_v17, %v2868_v47  ;;  %v2879_v26 = vadd.s32 %v2878_v9, %v2869_v25  ;;  %v2880_v4 = vmul.u32 %v9768_v56, %v2826_v3 }
 0x4d9   :  { %v1520_v5 = vmul.f32 %v1518_v30, %v1518_v30  ;;  %v9871_v33 = vadd.s32 %v2856_v15, %v2847_v22  ;;  %v9876_v45 = vshrl.u32 %v4349_v36, 5  ;;  %v4357_v51 = vshll.u32 %v6464_v8, %v4351_v19 }
 0x4da   :  { %v2883_v16 = vadd.s32 1, %v2879_v26  ;;  %v4358_v32 = vshrl.u32 %v6465_v10, %v9867_v40  ;;  %v4361_v13 = vshrl.u32 %v6466_v12, %v9867_v40  ;;  %v4355_v56 = vshrl.u32 %v6464_v8, %v9867_v40 }
 0x4db   :  { %v1521_v28 = vmul.f32 -0.001358992, %v1520_v5  ;;  %v1528_v20 = vmul.f32 -0.00019511016, %v1520_v5  ;;  %vm2882_vm1 = vc.u32 %v9871_v33, %v9873_v29  ;;  %v4360_v60 = vshll.u32 %v6465_v10, %v4351_v19 }
 0x4dc   :  { %v2884_v34 = vsel %vm2882_vm1, %v2883_v16, %v2879_v26  ;;  %v4363_v44 = vshll.u32 %v6466_v12, %v4351_v19  ;;  %v4364_v39 = vshrl.u32 %v6467_v14, %v9867_v40  ;;  %v4366_v31 = vshll.u32 %v6467_v14, %v4351_v19 }
 0x4dd   :  { %v1522_v42 = vadd.f32 0.041655596, %v1521_v28  ;;  %v1529_v53 = vadd.f32 0.008332121, %v1528_v20  ;;  %v2885_v52 = vadd.s32 %v2884_v34, %v2880_v4  ;;  %v4367_v18 = vshrl.u32 %v6468_v23, %v9867_v40 }
 0x4de   :  { %v4354_v47 = vshll.u32 %v6463_v6, %v4351_v19  ;;  %v9895_v61 = vor.u32 %v4358_v32, %v4357_v51  ;;  %v9897_v24 = vor.u32 %v4361_v13, %v4360_v60  ;;  %v4365_v17 = vor.u32 %v4364_v39, %v4363_v44  ;;  %v301_v60 = vpop.f32.mrf.mxu3 }
 0x4df   :  { %v1523_v41 = vmul.f32 %v1522_v42, %v1520_v5  ;;  %v1530_v7 = vmul.f32 %v1529_v53, %v1520_v5  ;;  %v2886_v63 = vadd.s32 536870912, %v2885_v52  ;;  %v4368_v62 = vor.u32 %v4367_v18, %v4366_v31 }
 0x4e0   :  { %v1537_v1 = vand.u32 3, %v1536_v49  ;;  %v4345_v46 = vor.u32 8388608, %v4344_v2  ;;  %v9899_v50 = vor.u32 %v4355_v56, %v4354_v47  ;;  %vm4372_vm2 = vcmp.lt.s32.totalorder %v9876_v45, 4 }
 0x4e1   :  { %v1524_v59 = vadd.f32 -0.4999988, %v1523_v41  ;;  %v1531_v35 = vadd.f32 -0.16666654, %v1530_v7  ;;  %v9901_v58 = vshrl.u32 %v2886_v63, 30  ;;  %vm4369_vm3 = vcmp.lt.s32.totalorder %v9876_v45, 1 }
 0x4e2   :  { %vm4371_vm5 = vcmp.lt.s32.totalorder %v9876_v45, 3  ;;  %v4378_v0 = vsel %vm4372_vm2, %v4365_v17, 920167782  ;;  %v4382_v55 = vsel %vm4372_vm2, %v4368_v62, 1326507024  ;;  %v4381_v22 = vsel %vm4369_vm3, %v9895_v61, %v9897_v24 }
 0x4e3   :  { %v1525_v11 = vmul.f32 %v1524_v59, %v1520_v5  ;;  %v1532_v36 = vmul.f32 %v1531_v35, %v1520_v5  ;;  %v2888_v3 = vshll.u32 %v9901_v58, 30  ;;  %v4377_v25 = vsel %vm4369_vm3, %v9899_v50, %v9895_v61 }
 0x4e4   :  { %v4379_v15 = vsel %vm4371_vm5, %v9897_v24, %v4378_v0  ;;  %v4383_v9 = vsel %vm4371_vm5, %v4365_v17, %v4382_v55  ;;  %v9924_v5 = vshll.u32 %v4345_v46, 8  ;;  %vm4370_vm4 = vcmp.lt.s32.totalorder %v9876_v45, 2 }
 0x4e5   :  { %v1526_v19 = vadd.f32 1.0, %v1525_v11  ;;  %v1533_v57 = vadd.f32 1.0, %v1532_v36  ;;  %v2889_v26 = vsub.s32 %v2885_v52, %v2888_v3  ;;  %vm1538_vm6 = vcmp.lt.s32.totalorder %v1537_v1, 2 }
 0x4e6   :  { %vm1539_vm7 = vcmp.eq.s32.totalorder %v1537_v1, 0  ;;  %v4384_v4 = vsel %vm4370_vm4, %v4381_v22, %v4383_v9  ;;  %v4380_v51 = vsel %vm4370_vm4, %v4377_v25, %v4379_v15  ;;  %vm1542_vm8 = vcmp.eq.s32.totalorder %v1537_v1, 2 }
 0x4e7   :  { %v1534_v49 = vmul.f32 %v1533_v57, %v1518_v30  ;;  %v1543_v2 = vxor.u32 2147483648, %v1526_v19  ;;  %vm2890_vm9 = vcmp.lt.s32.totalorder %v2889_v26, 0  ;;  %v2891_v20 = vsub.s32 0, %v2889_v26 }
 0x4e8   :  { %v4386_v16 = vand.u32 65535, %v9924_v5  ;;  %v4388_v32 = vand.u32 65535, %v4384_v4  ;;  %v4389_v30 = vshrl.u32 %v4384_v4, 16  ;;  %v4387_v56 = vshrl.u32 %v9924_v5, 16 }
 0x4e9   :  { %v1540_v28 = vxor.u32 2147483648, %v1534_v49  ;;  %v1544_v42 = vsel %vm1542_vm8, %v1543_v2, %v1534_v49  ;;  %v2892_v53 = vsel %vm2890_vm9, %v2891_v20, %v2889_v26  ;;  %vm1535_vm11 = vweird.f32 %v9546_v48 }
 0x4ea   :  { %v2893_v44 = vclz %v2892_v53  ;;  %v4411_v39 = vshrl.u32 %v4380_v51, 16  ;;  %v4391_v41 = vmul.u32 %v4389_v30, %v4386_v16  ;;  %v4392_v7 = vmul.u32 %v4388_v32, %v4387_v56 }
 0x4eb   :  { %v1541_v13 = vsel %vm1539_vm7, %v1526_v19, %v1540_v28  ;;  %v4410_v52 = vand.u32 65535, %v4380_v51  ;;  %v4353_v47 = vshrl.u32 %v6463_v6, %v9867_v40  ;;  %v9938_v17 = vadd.f32 %v9729_v37, %v301_v60 }
 0x4ec   :  { %v1545_v34 = vsel %vm1538_vm6, %v1541_v13, %v1544_v42  ;;  %v6340_v18 = vadd.s32 4294967294, %v2893_v44  ;;  %v2881_v59 = vadd.s32 %v9873_v29, %v9871_v33  ;;  %v4390_v48 = vmul.u32 %v4388_v32, %v4386_v16 }
 0x4ed   :  { %v1546_v31 = vsel %vm1535_vm11, nan, %v1545_v34  ;;  %v4393_v35 = vmul.u32 %v4389_v30, %v4387_v56  ;;  %v4394_v63 = vshll.u32 %v4391_v41, 16  ;;  %v4395_v62 = vshrl.u32 %v4391_v41, 16 }
 0x4ee   :  { %6204 = vst [vmem:[#allocation2 + $0x38] sm:$0xff] %v1546_v31  ;;  %vm6341_vm10 = vcmp.lt.s32.totalorder %v6340_v18, 0  ;;  %v4396_v1 = vshll.u32 %v4392_v7, 16  ;;  %v4413_v46 = vmul.u32 %v4411_v39, %v4386_v16  ;;  %v4414_v0 = vmul.u32 %v4410_v52, %v4387_v56 }
 0x4ef   :  { %v2896_v11 = vsel %vm6341_vm10, 0, %v6340_v18  ;;  %vm4398_vm13 = vc.u32 %v4390_v48, %v4394_v63  ;;  %v4400_v36 = vadd.s32 %v4394_v63, %v4390_v48  ;;  %vm2789_vm12 = vcmp.lt.s32.totalorder %v9732_v54, 0 }
 0x4f0   :  { %v2897_v40 = vsub.s32 32, %v2896_v11  ;;  %v2901_v55 = vsub.s32 4294967266, %v2896_v11  ;;  %v4399_v19 = vsel %vm4398_vm13, 1, %v6469_v27  ;;  %v4412_v57 = vmul.u32 %v4410_v52, %v4386_v16 }
 0x4f1   :  { %v4401_v3 = vadd.s32 %v4399_v19, %v4393_v35  ;;  %vm4402_vm14 = vc.u32 %v4400_v36, %v4396_v1  ;;  %v4415_v33 = vmul.u32 %v4411_v39, %v4387_v56  ;;  %v4416_v29 = vshll.u32 %v4413_v46, 16  ;;  %v217_v35 = vpop.f32.mrf.mxu0 }
 0x4f2   :  { %v2898_v22 = vshll.u32 %v2889_v26, %v2896_v11  ;;  %v2899_v25 = vshrl.u32 %v2881_v59, %v2897_v40  ;;  %v2902_v15 = vadd.s32 127, %v2901_v55  ;;  %v4403_v9 = vsel %vm4402_vm14, 1, %v6469_v27 }
 0x4f3   :  { %v4405_v49 = vadd.s32 %v4403_v9, %v4401_v3  ;;  %v4418_v2 = vshll.u32 %v4414_v0, 16  ;;  %vm4420_vm15 = vc.u32 %v4412_v57, %v4416_v29  ;;  %v4422_v4 = vadd.s32 %v4416_v29, %v4412_v57 }
 0x4f4   :  { %v2900_v28 = vor.u32 %v2899_v25, %v2898_v22  ;;  %v2903_v20 = vshll.u32 %v2902_v15, 23  ;;  %v4374_v51 = vsel %vm4372_vm2, %v9897_v24, 2102212464  ;;  %v4421_v16 = vsel %vm4420_vm15, 1, %v6469_v27 }
 0x4f5   :  { %v2911_v32 = vsub.s32 4, %v9901_v58  ;;  %v4406_v30 = vadd.s32 %v4405_v49, %v4395_v62  ;;  %v4423_v26 = vadd.s32 %v4421_v16, %v4415_v33  ;;  %vm4424_vm0 = vc.u32 %v4422_v4, %v4418_v2 }
 0x4f6   :  { %v2904_v13 = vor.u32 4788187, %v2903_v20  ;;  %v4373_v42 = vsel %vm4369_vm3, %v4353_v47, %v9899_v50  ;;  %v4397_v53 = vshrl.u32 %v4392_v7, 16  ;;  %v4425_v56 = vsel %vm4424_vm0, 1, %v6469_v27 }
 0x4f7   :  { %v4375_v60 = vsel %vm4371_vm5, %v9895_v61, %v4374_v51  ;;  %v4417_v24 = vshrl.u32 %v4413_v46, 16  ;;  %v4427_v34 = vadd.s32 %v4425_v56, %v4423_v26  ;;  %v5890_v44 = vand.u32 2139095040, %v9938_v17 }
 0x4f8   :  { %v2905_v39 = vand.u32 2147483647, %v2904_v13  ;;  %v2907_v31 = vcvt.s32.f32 %v2900_v28  ;;  %v4407_v41 = vadd.s32 %v4406_v30, %v4397_v53  ;;  %v5887_v52 = vand.u32 2147483647, %v9938_v17 }
 0x4f9   :  { %v2912_v50 = vsel %vm2789_vm12, %v2911_v32, %v9901_v58  ;;  %v4419_v7 = vshrl.u32 %v4414_v0, 16  ;;  %v4428_v18 = vadd.s32 %v4427_v34, %v4417_v24  ;;  %v5891_v47 = vshrl.u32 %v5890_v44, 23 }
 0x4fa   :  { %v2908_v59 = vmul.f32 %v2907_v31, %v2905_v39  ;;  %v4426_v48 = vadd.s32 %v4422_v4, %v4418_v2  ;;  %vm2788_vm1 = vcmp.le.f32.partialorder %v2787_v21, 0.7853982  ;;  %v4376_v61 = vsel %vm4370_vm4, %v4373_v42, %v4375_v60 }
 0x4fb   :  { %v4429_v63 = vadd.s32 %v4428_v18, %v4419_v7  ;;  %v6399_v62 = vadd.s32 4294967169, %v5891_v47  ;;  %v2914_v46 = vsel %vm2788_vm1, 0, %v2912_v50  ;;  %v5894_v58 = vand.u32 8388607, %v5887_v52 }
 0x4fc   :  { %v2909_v1 = vxor.u32 2147483648, %v2908_v59  ;;  %vm4432_vm2 = vc.u32 %v4407_v41, %v4426_v48  ;;  %v9969_v0 = vadd.f32 %v9729_v37, %v217_v35  ;;  %v4430_v21 = vmul.u32 %v9924_v5, %v4376_v61 }
 0x4fd   :  { %v4433_v11 = vadd.s32 1, %v4429_v63  ;;  %v5897_v36 = vadd.s32 1, %v6399_v62  ;;  %v2931_v55 = vadd.s32 3, %v2914_v46  ;;  %v5895_v33 = vor.u32 8388608, %v5894_v58 }
 0x4fe   :  { %v2910_v40 = vsel %vm2789_vm12, %v2909_v1, %v2908_v59  ;;  %v1550_v25 = vand.u32 2139095040, %v9969_v0  ;;  %v9978_v2 = vadd.s32 %v4426_v48, %v4407_v41  ;;  %vm2930_vm9 = vweird.f32 %v9732_v54 }
 0x4ff   :  { %v2913_v45 = vsel %vm2788_vm1, %v9732_v54, %v2910_v40  ;;  %v4434_v19 = vsel %vm4432_vm2, %v4433_v11, %v4429_v63  ;;  %vm5898_vm3 = vcmp.gt.s32.totalorder %v5897_v36, 0  ;;  %v9976_v49 = vand.u32 3, %v2931_v55 }
 0x500   :  { %v2915_v57 = vmul.f32 %v2913_v45, %v2913_v45  ;;  %v4435_v3 = vadd.s32 %v4434_v19, %v4430_v21  ;;  %v5899_v29 = vsel %vm5898_vm3, %v5897_v36, 0  ;;  %v9982_v51 = vshll.u32 %v5895_v33, 8 }
 0x501   :  { %v5901_v22 = vand.u32 31, %v5899_v29  ;;  %v1551_v26 = vshrl.u32 %v1550_v25, 23  ;;  %vm2937_vm5 = vcmp.eq.s32.totalorder %v9976_v49, 2  ;;  %v9996_v50 = vshrl.u32 %v5899_v29, 5 }
 0x502   :  { %v2916_v15 = vmul.f32 -0.001358992, %v2915_v57  ;;  %v2923_v37 = vmul.f32 -0.00019511016, %v2915_v57  ;;  %v4436_v9 = vadd.s32 536870912, %v4435_v3  ;;  %vm2934_vm4 = vcmp.eq.s32.totalorder %v9976_v49, 0 }
 0x503   :  { %v5902_v5 = vsub.s32 32, %v5901_v22  ;;  %v5904_v16 = vshll.u32 %v6463_v6, %v5901_v22  ;;  %v5907_v32 = vshll.u32 %v6464_v8, %v5901_v22  ;;  %v5910_v30 = vshll.u32 %v6465_v10, %v5901_v22 }
 0x504   :  { %v2917_v4 = vadd.f32 0.041655596, %v2916_v15  ;;  %v2924_v28 = vadd.f32 0.008332121, %v2923_v37  ;;  %v9980_v20 = vshrl.u32 %v4436_v9, 30  ;;  %v5913_v56 = vshll.u32 %v6466_v12, %v5901_v22 }
 0x505   :  { %v5905_v60 = vshrl.u32 %v6464_v8, %v5902_v5  ;;  %v5908_v24 = vshrl.u32 %v6465_v10, %v5902_v5  ;;  %v5911_v34 = vshrl.u32 %v6466_v12, %v5902_v5  ;;  %v5914_v44 = vshrl.u32 %v6467_v14, %v5902_v5 }
 0x506   :  { %v2918_v13 = vmul.f32 %v2917_v4, %v2915_v57  ;;  %v2925_v42 = vmul.f32 %v2924_v28, %v2915_v57  ;;  %v4438_v53 = vshll.u32 %v9980_v20, 30  ;;  %v5903_v7 = vshrl.u32 %v6463_v6, %v5902_v5 }
 0x507   :  { %v5916_v18 = vshll.u32 %v6467_v14, %v5901_v22  ;;  %v5917_v47 = vshrl.u32 %v6468_v23, %v5902_v5  ;;  %v10003_v59 = vand.u32 65535, %v9982_v51  ;;  %vm2933_vm6 = vcmp.lt.s32.totalorder %v9976_v49, 2 }
 0x508   :  { %v2919_v39 = vadd.f32 -0.4999988, %v2918_v13  ;;  %v2926_v31 = vadd.f32 -0.16666654, %v2925_v42  ;;  %v9994_v41 = vsub.s32 %v4435_v3, %v4438_v53  ;;  %v5906_v63 = vor.u32 %v5905_v60, %v5904_v16 }
 0x509   :  { %v5909_v62 = vor.u32 %v5908_v24, %v5907_v32  ;;  %v5912_v1 = vor.u32 %v5911_v34, %v5910_v30  ;;  %v5915_v46 = vor.u32 %v5914_v44, %v5913_v56  ;;  %vm5919_vm8 = vcmp.lt.s32.totalorder %v9996_v50, 1 }
 0x50a   :  { %v2920_v48 = vmul.f32 %v2919_v39, %v2915_v57  ;;  %v2927_v35 = vmul.f32 %v2926_v31, %v2915_v57  ;;  %vm4440_vm7 = vcmp.lt.s32.totalorder %v9994_v41, 0  ;;  %v4441_v61 = vsub.s32 0, %v9994_v41 }
 0x50b   :  { %vm5922_vm11 = vcmp.lt.s32.totalorder %v9996_v50, 4  ;;  %v5937_v21 = vshrl.u32 %v9982_v51, 16  ;;  %v6315_v55 = vadd.s32 4294967169, %v1551_v26  ;;  %v5918_v3 = vor.u32 %v5917_v47, %v5916_v18 }
 0x50c   :  { %v2921_v58 = vadd.f32 1.0, %v2920_v48  ;;  %v2928_v11 = vadd.f32 1.0, %v2927_v35  ;;  %v4442_v36 = vsel %vm4440_vm7, %v4441_v61, %v9994_v41  ;;  %vm5921_vm10 = vcmp.lt.s32.totalorder %v9996_v50, 3 }
 0x50d   :  { %v4443_v40 = vclz %v4442_v36  ;;  %vm4339_vm13 = vcmp.lt.s32.totalorder %v9762_v38, 0  ;;  %v4461_v29 = vsub.s32 4, %v9980_v20  ;;  %vm5920_vm12 = vcmp.lt.s32.totalorder %v9996_v50, 2 }
 0x50e   :  { %v2929_v19 = vmul.f32 %v2928_v11, %v2913_v45  ;;  %v2938_v57 = vxor.u32 2147483648, %v2921_v58  ;;  %v5927_v22 = vsel %vm5919_vm8, %v5906_v63, %v5909_v62  ;;  %v5923_v15 = vsel %vm5919_vm8, %v5903_v7, %v5906_v63 }
 0x50f   :  { %v6370_v33 = vadd.s32 4294967294, %v4443_v40  ;;  %v5924_v45 = vsel %vm5922_vm11, %v5912_v1, 2102212464  ;;  %v5928_v37 = vsel %vm5922_vm11, %v5915_v46, 920167782  ;;  %v5931_v4 = vsel %vm5919_vm8, %v5909_v62, %v5912_v1 }
 0x510   :  { %v2935_v25 = vxor.u32 2147483648, %v2929_v19  ;;  %v2939_v9 = vsel %vm2937_vm5, %v2938_v57, %v2929_v19  ;;  %v5929_v5 = vsel %vm5921_vm10, %v5912_v1, %v5928_v37  ;;  %v5932_v30 = vsel %vm5922_vm11, %v5918_v3, 1326507024 }
 0x511   :  { %vm6371_vm14 = vcmp.lt.s32.totalorder %v6370_v33, 0  ;;  %v5930_v32 = vsel %vm5920_vm12, %v5927_v22, %v5929_v5  ;;  %v5925_v53 = vsel %vm5921_vm10, %v5909_v62, %v5924_v45  ;;  %v5933_v60 = vsel %vm5921_vm10, %v5915_v46, %v5932_v30 }
 0x512   :  { %v2936_v28 = vsel %vm2934_vm4, %v2921_v58, %v2935_v25  ;;  %v4446_v16 = vsel %vm6371_vm14, 0, %v6370_v33  ;;  %v5960_v24 = vand.u32 65535, %v5930_v32  ;;  %v5961_v34 = vshrl.u32 %v5930_v32, 16 }
 0x513   :  { %v2940_v26 = vsel %vm2933_vm6, %v2936_v28, %v2939_v9  ;;  %v4447_v13 = vsub.s32 32, %v4446_v16  ;;  %v4451_v42 = vsub.s32 4294967266, %v4446_v16  ;;  %v4448_v44 = vshll.u32 %v9994_v41, %v4446_v16 }
 0x514   :  { %v2941_v56 = vsel %vm2930_vm9, nan, %v2940_v26  ;;  %v5934_v31 = vsel %vm5920_vm12, %v5931_v4, %v5933_v60  ;;  %v5963_v47 = vmul.u32 %v5961_v34, %v10003_v59  ;;  %v1547_v54 = vand.u32 2147483647, %v9969_v0 }
 0x515   :  { %6213 = vst [vmem:[#allocation2 + $0x80] sm:$0xff] %v2941_v56  ;;  %v4449_v39 = vshrl.u32 %v9978_v2, %v4447_v13  ;;  %v4452_v49 = vadd.s32 127, %v4451_v42  ;;  %v5938_v7 = vand.u32 65535, %v5934_v31  ;;  %v5939_v18 = vshrl.u32 %v5934_v31, 16 }
 0x516   :  { %v5964_v61 = vmul.u32 %v5960_v24, %v5937_v21  ;;  %v1557_v63 = vadd.s32 1, %v6315_v55  ;;  %v10054_v41 = vsel %vm4339_vm13, %v4461_v29, %v9980_v20  ;;  %v10058_v2 = vsel %vm5920_vm12, %v5923_v15, %v5925_v53 }
 0x517   :  { %v4450_v48 = vor.u32 %v4449_v39, %v4448_v44  ;;  %v4453_v35 = vshll.u32 %v4452_v49, 23  ;;  %v5941_v62 = vmul.u32 %v5939_v18, %v10003_v59  ;;  %v5942_v1 = vmul.u32 %v5938_v7, %v5937_v21 }
 0x518   :  { %v5962_v58 = vmul.u32 %v5960_v24, %v10003_v59  ;;  %v5965_v11 = vmul.u32 %v5961_v34, %v5937_v21  ;;  %v5966_v36 = vshll.u32 %v5963_v47, 16  ;;  %v5940_v55 = vmul.u32 %v5938_v7, %v10003_v59 }
 0x519   :  { %v4454_v46 = vor.u32 4788187, %v4453_v35  ;;  %v4457_v40 = vcvt.s32.f32 %v4450_v48  ;;  %v5943_v19 = vmul.u32 %v5939_v18, %v5937_v21  ;;  %v5944_v57 = vshll.u32 %v5941_v62, 16 }
 0x51a   :  { %v5946_v20 = vshll.u32 %v5942_v1, 16  ;;  %v5968_v33 = vshll.u32 %v5964_v61, 16  ;;  %vm5970_vm15 = vc.u32 %v5962_v58, %v5966_v36  ;;  %v5972_v22 = vadd.s32 %v5966_v36, %v5962_v58 }
 0x51b   :  { %v4455_v3 = vand.u32 2147483647, %v4454_v46  ;;  %vm5948_vm0 = vc.u32 %v5940_v55, %v5944_v57  ;;  %v5950_v50 = vadd.s32 %v5944_v57, %v5940_v55  ;;  %v5971_v29 = vsel %vm5970_vm15, 1, %v6469_v27 }
 0x51c   :  { %v5949_v15 = vsel %vm5948_vm0, 1, %v6469_v27  ;;  %v5973_v45 = vadd.s32 %v5971_v29, %v5965_v11  ;;  %vm1558_vm1 = vcmp.gt.s32.totalorder %v1557_v63, 0  ;;  %v5967_v9 = vshrl.u32 %v5963_v47, 16 }
 0x51d   :  { %v4458_v25 = vmul.f32 %v4457_v40, %v4455_v3  ;;  %v5951_v37 = vadd.s32 %v5949_v15, %v5943_v19  ;;  %vm5952_vm2 = vc.u32 %v5950_v50, %v5946_v20  ;;  %vm5974_vm3 = vc.u32 %v5972_v22, %v5968_v33 }
 0x51e   :  { %v5953_v21 = vsel %vm5952_vm2, 1, %v6469_v27  ;;  %v5975_v5 = vsel %vm5974_vm3, 1, %v6469_v27  ;;  %v1559_v4 = vsel %vm1558_vm1, %v1557_v63, 0  ;;  %v5945_v28 = vshrl.u32 %v5941_v62, 16 }
 0x51f   :  { %v4459_v59 = vxor.u32 2147483648, %v4458_v25  ;;  %v5955_v16 = vadd.s32 %v5953_v21, %v5951_v37  ;;  %v5977_v32 = vadd.s32 %v5975_v5, %v5973_v45  ;;  %v1561_v30 = vand.u32 31, %v1559_v4 }
 0x520   :  { %vm10069_vm5 = vcmp.le.f32.partialorder %v4337_v43, 0.7853982  ;;  %v5947_v42 = vshrl.u32 %v5942_v1, 16  ;;  %v5969_v53 = vshrl.u32 %v5964_v61, 16  ;;  %v5980_v39 = vmul.u32 %v9982_v51, %v10058_v2 }
 0x521   :  { %v4460_v13 = vsel %vm4339_vm13, %v4459_v59, %v4458_v25  ;;  %v5956_v60 = vadd.s32 %v5955_v16, %v5945_v28  ;;  %v5978_v24 = vadd.s32 %v5977_v32, %v5967_v9  ;;  %v10078_v34 = vsub.s32 32, %v1561_v30 }
 0x522   :  { %v4463_v56 = vsel %vm10069_vm5, %v9762_v38, %v4460_v13  ;;  %v4464_v43 = vsel %vm10069_vm5, 0, %v10054_v41  ;;  %v1554_v49 = vand.u32 8388607, %v1547_v54  ;;  %v10089_v7 = vadd.s32 %v5972_v22, %v5968_v33 }
 0x523   :  { %v4465_v44 = vmul.f32 %v4463_v56, %v4463_v56  ;;  %v10087_v31 = vadd.s32 %v5956_v60, %v5947_v42  ;;  %v5979_v18 = vadd.s32 %v5978_v24, %v5969_v53  ;;  %v10091_v47 = vshrl.u32 %v1559_v4, 5 }
 0x524   :  { %v1567_v61 = vshll.u32 %v6464_v8, %v1561_v30  ;;  %v1570_v63 = vshll.u32 %v6465_v10, %v1561_v30  ;;  %v1568_v41 = vshrl.u32 %v6465_v10, %v10078_v34  ;;  %v1571_v2 = vshrl.u32 %v6466_v12, %v10078_v34 }
 0x525   :  { %v4466_v48 = vmul.f32 -0.001358992, %v4465_v44  ;;  %v4473_v35 = vmul.f32 -0.00019511016, %v4465_v44  ;;  %vm5982_vm4 = vc.u32 %v10087_v31, %v10089_v7  ;;  %v5983_v51 = vadd.s32 1, %v5979_v18 }
 0x526   :  { %v1564_v46 = vshll.u32 %v6463_v6, %v1561_v30  ;;  %v1565_v58 = vshrl.u32 %v6464_v8, %v10078_v34  ;;  %v1573_v36 = vshll.u32 %v6466_v12, %v1561_v30  ;;  %v1574_v40 = vshrl.u32 %v6467_v14, %v10078_v34 }
 0x527   :  { %v4467_v62 = vadd.f32 0.041655596, %v4466_v48  ;;  %v4474_v1 = vadd.f32 0.008332121, %v4473_v35  ;;  %v5984_v11 = vsel %vm5982_vm4, %v5983_v51, %v5979_v18  ;;  %v1576_v55 = vshll.u32 %v6467_v14, %v1561_v30 }
 0x528   :  { %v5985_v3 = vadd.s32 %v5984_v11, %v5980_v39  ;;  %v1577_v20 = vshrl.u32 %v6468_v23, %v10078_v34  ;;  %v1555_v33 = vor.u32 8388608, %v1554_v49  ;;  %v10110_v50 = vor.u32 %v1568_v41, %v1567_v61 }
 0x529   :  { %v4468_v19 = vmul.f32 %v4467_v62, %v4465_v44  ;;  %v4475_v57 = vmul.f32 %v4474_v1, %v4465_v44  ;;  %v1572_v29 = vor.u32 %v1571_v2, %v1570_v63  ;;  %v1575_v22 = vor.u32 %v1574_v40, %v1573_v36 }
 0x52a   :  { %v5986_v45 = vadd.s32 536870912, %v5985_v3  ;;  %v1578_v37 = vor.u32 %v1577_v20, %v1576_v55  ;;  %v4481_v9 = vadd.s32 3, %v4464_v43  ;;  %v10112_v59 = vor.u32 %v1565_v58, %v1564_v46  ;;  %v244_v46 = vpop.f32.mrf.mxu1 }
 0x52b   :  { %v4469_v25 = vadd.f32 -0.4999988, %v4468_v19  ;;  %v4476_v15 = vadd.f32 -0.16666654, %v4475_v57  ;;  %vm1579_vm6 = vcmp.lt.s32.totalorder %v10091_v47, 1  ;;  %vm1582_vm7 = vcmp.lt.s32.totalorder %v10091_v47, 4 }
 0x52c   :  { %v10116_v4 = vshrl.u32 %v5986_v45, 30  ;;  %vm1581_vm9 = vcmp.lt.s32.totalorder %v10091_v47, 3  ;;  %vm1580_vm8 = vcmp.lt.s32.totalorder %v10091_v47, 2  ;;  %v1588_v28 = vsel %vm1582_vm7, %v1575_v22, 920167782 }
 0x52d   :  { %v4470_v21 = vmul.f32 %v4469_v25, %v4465_v44  ;;  %v4477_v5 = vmul.f32 %v4476_v15, %v4465_v44  ;;  %v1592_v16 = vsel %vm1582_vm7, %v1578_v37, 1326507024  ;;  %v10124_v32 = vshll.u32 %v1555_v33, 8 }
 0x52e   :  { %v5988_v13 = vshll.u32 %v10116_v4, 30  ;;  %v1591_v42 = vsel %vm1579_vm6, %v10110_v50, %v1572_v29  ;;  %v4482_v53 = vand.u32 3, %v4481_v9  ;;  %v1587_v60 = vsel %vm1579_vm6, %v10112_v59, %v10110_v50 }
 0x52f   :  { %v4471_v30 = vadd.f32 1.0, %v4470_v21  ;;  %v4478_v26 = vadd.f32 1.0, %v4477_v5  ;;  %v1589_v24 = vsel %vm1581_vm9, %v1572_v29, %v1588_v28  ;;  %v1593_v43 = vsel %vm1581_vm9, %v1575_v22, %v1592_v16  ;;  %v10152_v22 = vld [vmem:[%s10726_s2] ss:$0 sm:$0xff] }
 0x530   :  { %v5989_v49 = vsub.s32 %v5985_v3, %v5988_v13  ;;  %vm4480_vm11 = vweird.f32 %v9762_v38  ;;  %v1594_v18 = vsel %vm1580_vm8, %v1591_v42, %v1593_v43  ;;  %v1596_v48 = vand.u32 65535, %v10124_v32 }
 0x531   :  { %v4479_v44 = vmul.f32 %v4478_v26, %v4463_v56  ;;  %v4488_v39 = vxor.u32 2147483648, %v4471_v30  ;;  %v1597_v35 = vshrl.u32 %v10124_v32, 16  ;;  %v1590_v51 = vsel %vm1580_vm8, %v1587_v60, %v1589_v24 }
 0x532   :  { %vm5990_vm10 = vcmp.lt.s32.totalorder %v5989_v49, 0  ;;  %v5991_v63 = vsub.s32 0, %v5989_v49  ;;  %vm4484_vm13 = vcmp.eq.s32.totalorder %v4482_v53, 0  ;;  %vm4487_vm12 = vcmp.eq.s32.totalorder %v4482_v53, 2 }
 0x533   :  { %v4485_v61 = vxor.u32 2147483648, %v4479_v44  ;;  %v1598_v56 = vand.u32 65535, %v1594_v18  ;;  %v1599_v41 = vshrl.u32 %v1594_v18, 16  ;;  %vm4483_vm14 = vcmp.lt.s32.totalorder %v4482_v53, 2 }
 0x534   :  { %v4489_v62 = vsel %vm4487_vm12, %v4488_v39, %v4479_v44  ;;  %v5992_v1 = vsel %vm5990_vm10, %v5991_v63, %v5989_v49  ;;  %v1620_v36 = vand.u32 65535, %v1590_v51  ;;  %v1621_v40 = vshrl.u32 %v1590_v51, 16 }
 0x535   :  { %v4486_v2 = vsel %vm4484_vm13, %v4471_v30, %v4485_v61  ;;  %v5993_v11 = vclz %v5992_v1  ;;  %v1600_v19 = vmul.u32 %v1598_v56, %v1596_v48  ;;  %v1601_v57 = vmul.u32 %v1599_v41, %v1596_v48 }
 0x536   :  { %v4490_v58 = vsel %vm4483_vm14, %v4486_v2, %v4489_v62  ;;  %v1602_v3 = vmul.u32 %v1598_v56, %v1597_v35  ;;  %v1563_v33 = vshrl.u32 %v6463_v6, %v10078_v34  ;;  %v10155_v25 = vadd.f32 %v10152_v22, %v244_v46 }
 0x537   :  { %v4491_v55 = vsel %vm4480_vm11, nan, %v4490_v58  ;;  %v6400_v20 = vadd.s32 4294967294, %v5993_v11  ;;  %v5981_v38 = vadd.s32 %v10089_v7, %v10087_v31  ;;  %v1584_v15 = vsel %vm1582_vm7, %v1572_v29, 2102212464 }
 0x538   :  { %6223 = vst [vmem:[#allocation2 + $0xd0] sm:$0xff] %v4491_v55  ;;  %v1604_v45 = vshll.u32 %v1601_v57, 16  ;;  %v1606_v37 = vshll.u32 %v1602_v3, 16  ;;  %v1603_v9 = vmul.u32 %v1599_v41, %v1597_v35  ;;  %v1623_v21 = vmul.u32 %v1621_v40, %v1596_v48 }
 0x539   :  { %vm6401_vm15 = vcmp.lt.s32.totalorder %v6400_v20, 0  ;;  %v1624_v34 = vmul.u32 %v1620_v36, %v1597_v35  ;;  %vm5889_vm0 = vcmp.lt.s32.totalorder %v9938_v17, 0  ;;  %v1622_v16 = vmul.u32 %v1620_v36, %v1596_v48 }
 0x53a   :  { %v5996_v5 = vsel %vm6401_vm15, 0, %v6400_v20  ;;  %vm1608_vm1 = vc.u32 %v1600_v19, %v1604_v45  ;;  %v1610_v28 = vadd.s32 %v1604_v45, %v1600_v19  ;;  %v1605_v13 = vshrl.u32 %v1601_v57, 16 }
 0x53b   :  { %v5997_v30 = vsub.s32 32, %v5996_v5  ;;  %v6001_v26 = vsub.s32 4294967266, %v5996_v5  ;;  %v1609_v31 = vsel %vm1608_vm1, 1, %v6469_v27  ;;  %v5998_v7 = vshll.u32 %v5989_v49, %v5996_v5 }
 0x53c   :  { %v1611_v42 = vadd.s32 %v1609_v31, %v1603_v9  ;;  %vm1612_vm2 = vc.u32 %v1610_v28, %v1606_v37  ;;  %v1626_v29 = vshll.u32 %v1623_v21, 16  ;;  %v1628_v43 = vshll.u32 %v1624_v34, 16 }
 0x53d   :  { %v5999_v53 = vshrl.u32 %v5981_v38, %v5997_v30  ;;  %v6002_v60 = vadd.s32 127, %v6001_v26  ;;  %v1613_v24 = vsel %vm1612_vm2, 1, %v6469_v27  ;;  %v1625_v39 = vmul.u32 %v1621_v40, %v1597_v35 }
 0x53e   :  { %v1615_v44 = vadd.s32 %v1613_v24, %v1611_v42  ;;  %vm1630_vm3 = vc.u32 %v1622_v16, %v1626_v29  ;;  %v1632_v18 = vadd.s32 %v1626_v29, %v1622_v16  ;;  %v6011_v63 = vsub.s32 4, %v10116_v4 }
 0x53f   :  { %v6000_v61 = vor.u32 %v5999_v53, %v5998_v7  ;;  %v6003_v48 = vshll.u32 %v6002_v60, 23  ;;  %v1631_v51 = vsel %vm1630_vm3, 1, %v6469_v27  ;;  %v2942_v41 = vand.u32 2147483647, %v10155_v25 }
 0x540   :  { %v1616_v56 = vadd.s32 %v1615_v44, %v1605_v13  ;;  %v1633_v49 = vadd.s32 %v1631_v51, %v1625_v39  ;;  %vm1634_vm5 = vc.u32 %v1632_v18, %v1628_v43  ;;  %v1583_v62 = vsel %vm1579_vm6, %v1563_v33, %v10112_v59 }
 0x541   :  { %v6004_v2 = vor.u32 4788187, %v6003_v48  ;;  %v1607_v1 = vshrl.u32 %v1602_v3, 16  ;;  %v1635_v35 = vsel %vm1634_vm5, 1, %v6469_v27  ;;  %v1585_v46 = vsel %vm1581_vm9, %v10110_v50, %v1584_v15  ;;  %v274_v50 = vpop.f32.mrf.mxu2 }
 0x542   :  { %v1627_v58 = vshrl.u32 %v1623_v21, 16  ;;  %v1637_v11 = vadd.s32 %v1635_v35, %v1633_v49  ;;  %v2945_v36 = vand.u32 2139095040, %v10155_v25  ;;  %v6007_v55 = vcvt.s32.f32 %v6000_v61 }
 0x543   :  { %v6005_v40 = vand.u32 2147483647, %v6004_v2  ;;  %v6012_v19 = vsel %vm5889_vm0, %v6011_v63, %v10116_v4  ;;  %v1617_v57 = vadd.s32 %v1616_v56, %v1607_v1  ;;  %v1629_v20 = vshrl.u32 %v1624_v34, 16 }
 0x544   :  { %v1638_v59 = vadd.s32 %v1637_v11, %v1627_v58  ;;  %v2946_v3 = vshrl.u32 %v2945_v36, 23  ;;  %v2949_v33 = vand.u32 8388607, %v2942_v41  ;;  %v1636_v45 = vadd.s32 %v1632_v18, %v1628_v43 }
 0x545   :  { %v6008_v38 = vmul.f32 %v6007_v55, %v6005_v40  ;;  %vm5888_vm4 = vcmp.le.f32.partialorder %v5887_v52, 0.7853982  ;;  %v1586_v15 = vsel %vm1580_vm8, %v1583_v62, %v1585_v46  ;;  %v10185_v16 = vadd.f32 %v10152_v22, %v274_v50 }
 0x546   :  { %v1639_v37 = vadd.s32 %v1638_v59, %v1629_v20  ;;  %v6342_v9 = vadd.s32 4294967169, %v2946_v3  ;;  %v6014_v4 = vsel %vm5888_vm4, 0, %v6012_v19  ;;  %vm1642_vm6 = vc.u32 %v1617_v57, %v1636_v45 }
 0x547   :  { %v6009_v21 = vxor.u32 2147483648, %v6008_v38  ;;  %v2950_v5 = vor.u32 8388608, %v2949_v33  ;;  %v1640_v26 = vmul.u32 %v10124_v32, %v1586_v15  ;;  %v6031_v47 = vadd.s32 3, %v6014_v4 }
 0x548   :  { %v1643_v34 = vadd.s32 1, %v1639_v37  ;;  %v2952_v28 = vadd.s32 1, %v6342_v9  ;;  %v4495_v60 = vand.u32 2139095040, %v10185_v16  ;;  %v10196_v48 = vadd.s32 %v1636_v45, %v1617_v57 }
 0x549   :  { %v6010_v30 = vsel %vm5889_vm0, %v6009_v21, %v6008_v38  ;;  %v10191_v53 = vshll.u32 %v2950_v5, 8  ;;  %v10194_v39 = vand.u32 3, %v6031_v47  ;;  %v4492_v49 = vand.u32 2147483647, %v10185_v16 }
 0x54a   :  { %v6013_v52 = vsel %vm5888_vm4, %v9938_v17, %v6010_v30  ;;  %v1644_v13 = vsel %vm1642_vm6, %v1643_v34, %v1639_v37  ;;  %vm2953_vm7 = vcmp.gt.s32.totalorder %v2952_v28, 0  ;;  %v4496_v2 = vshrl.u32 %v4495_v60, 23 }
 0x54b   :  { %v6015_v31 = vmul.f32 %v6013_v52, %v6013_v52  ;;  %v1645_v7 = vadd.s32 %v1644_v13, %v1640_v26  ;;  %v2954_v42 = vsel %vm2953_vm7, %v2952_v28, 0  ;;  %v10200_v56 = vand.u32 65535, %v10191_v53 }
 0x54c   :  { %v2956_v29 = vand.u32 31, %v2954_v42  ;;  %vm1549_vm9 = vcmp.lt.s32.totalorder %v9969_v0, 0  ;;  %vm6037_vm8 = vcmp.eq.s32.totalorder %v10194_v39, 2  ;;  %v10212_v20 = vshrl.u32 %v2954_v42, 5 }
 0x54d   :  { %v6016_v24 = vmul.f32 -0.001358992, %v6015_v31  ;;  %v6023_v43 = vmul.f32 -0.00019511016, %v6015_v31  ;;  %v1646_v44 = vadd.s32 536870912, %v1645_v7  ;;  %vm6034_vm11 = vcmp.eq.s32.totalorder %v10194_v39, 0 }
 0x54e   :  { %v2957_v18 = vsub.s32 32, %v2956_v29  ;;  %v2959_v51 = vshll.u32 %v6463_v6, %v2956_v29  ;;  %v2962_v46 = vshll.u32 %v6464_v8, %v2956_v29  ;;  %v2968_v36 = vshll.u32 %v6466_v12, %v2956_v29 }
 0x54f   :  { %v6017_v32 = vadd.f32 0.041655596, %v6016_v24  ;;  %v6024_v61 = vadd.f32 0.008332121, %v6023_v43  ;;  %v1647_v63 = vshrl.u32 %v1646_v44, 30  ;;  %v2965_v59 = vshll.u32 %v6465_v10, %v2956_v29 }
 0x550   :  { %v2960_v58 = vshrl.u32 %v6464_v8, %v2957_v18  ;;  %v2963_v11 = vshrl.u32 %v6465_v10, %v2957_v18  ;;  %v2969_v40 = vshrl.u32 %v6467_v14, %v2957_v18  ;;  %v2966_v3 = vshrl.u32 %v6466_v12, %v2957_v18 }
 0x551   :  { %v6018_v62 = vmul.f32 %v6017_v32, %v6015_v31  ;;  %v6025_v1 = vmul.f32 %v6024_v61, %v6015_v31  ;;  %v1648_v35 = vshll.u32 %v1647_v63, 30  ;;  %v2971_v33 = vshll.u32 %v6467_v14, %v2956_v29 }
 0x552   :  { %v2972_v38 = vshrl.u32 %v6468_v23, %v2957_v18  ;;  %vm6033_vm10 = vcmp.lt.s32.totalorder %v10194_v39, 2  ;;  %vm6030_vm12 = vweird.f32 %v9938_v17  ;;  %v1671_v37 = vsub.s32 4, %v1647_v63 }
 0x553   :  { %v6019_v55 = vadd.f32 -0.4999988, %v6018_v62  ;;  %v6026_v19 = vadd.f32 -0.16666654, %v6025_v1  ;;  %v10210_v57 = vsub.s32 %v1645_v7, %v1648_v35  ;;  %v2961_v9 = vor.u32 %v2960_v58, %v2959_v51 }
 0x554   :  { %v2964_v21 = vor.u32 %v2963_v11, %v2962_v46  ;;  %v2970_v4 = vor.u32 %v2969_v40, %v2968_v36  ;;  %vm2974_vm14 = vcmp.lt.s32.totalorder %v10212_v20, 1  ;;  %v2967_v26 = vor.u32 %v2966_v3, %v2965_v59 }
 0x555   :  { %v6020_v45 = vmul.f32 %v6019_v55, %v6015_v31  ;;  %v6027_v50 = vmul.f32 %v6026_v19, %v6015_v31  ;;  %vm1650_vm13 = vcmp.lt.s32.totalorder %v10210_v57, 0  ;;  %v1651_v15 = vsub.s32 0, %v10210_v57 }
 0x556   :  { %vm2977_vm15 = vcmp.lt.s32.totalorder %v10212_v20, 4  ;;  %v2992_v47 = vshrl.u32 %v10191_v53, 16  ;;  %vm10229_vm0 = vcmp.le.f32.partialorder %v1547_v54, 0.7853982  ;;  %v2973_v42 = vor.u32 %v2972_v38, %v2971_v33 }
 0x557   :  { %v6021_v34 = vadd.f32 1.0, %v6020_v45  ;;  %v6028_v5 = vadd.f32 1.0, %v6027_v50  ;;  %v1652_v28 = vsel %vm1650_vm13, %v1651_v15, %v10210_v57  ;;  %vm2976_vm1 = vcmp.lt.s32.totalorder %v10212_v20, 3 }
 0x558   :  { %v1653_v30 = vclz %v1652_v28  ;;  %v2958_v60 = vshrl.u32 %v6463_v6, %v2957_v18  ;;  %v2982_v24 = vsel %vm2974_vm14, %v2961_v9, %v2964_v21  ;;  %v6372_v43 = vadd.s32 4294967169, %v4496_v2 }
 0x559   :  { %v6029_v13 = vmul.f32 %v6028_v5, %v6013_v52  ;;  %v6038_v31 = vxor.u32 2147483648, %v6021_v34  ;;  %v10239_v52 = vsel %vm1549_vm9, %v1671_v37, %v1647_v63  ;;  %vm2975_vm2 = vcmp.lt.s32.totalorder %v10212_v20, 2 }
 0x55a   :  { %v6316_v29 = vadd.s32 4294967294, %v1653_v30  ;;  %v2983_v54 = vsel %vm2977_vm15, %v2970_v4, 920167782  ;;  %v2986_v61 = vsel %vm2974_vm14, %v2964_v21, %v2967_v26  ;;  %v2987_v62 = vsel %vm2977_vm15, %v2973_v42, 1326507024 }
 0x55b   :  { %v6035_v44 = vxor.u32 2147483648, %v6029_v13  ;;  %v6039_v32 = vsel %vm6037_vm8, %v6038_v31, %v6029_v13  ;;  %v2984_v18 = vsel %vm2976_vm1, %v2967_v26, %v2983_v54  ;;  %v2979_v58 = vsel %vm2977_vm15, %v2967_v26, 2102212464 }
 0x55c   :  { %vm6317_vm3 = vcmp.lt.s32.totalorder %v6316_v29, 0  ;;  %v2985_v2 = vsel %vm2975_vm2, %v2982_v24, %v2984_v18  ;;  %v2988_v36 = vsel %vm2976_vm1, %v2970_v4, %v2987_v62  ;;  %v4502_v17 = vadd.s32 1, %v6372_v43 }
 0x55d   :  { %v6036_v51 = vsel %vm6034_vm11, %v6021_v34, %v6035_v44  ;;  %v1656_v63 = vsel %vm6317_vm3, 0, %v6316_v29  ;;  %v3015_v40 = vand.u32 65535, %v2985_v2  ;;  %v3016_v55 = vshrl.u32 %v2985_v2, 16 }
 0x55e   :  { %v6040_v1 = vsel %vm6033_vm10, %v6036_v51, %v6039_v32  ;;  %v1657_v35 = vsub.s32 32, %v1656_v63  ;;  %v1661_v46 = vsub.s32 4294967266, %v1656_v63  ;;  %v1658_v19 = vshll.u32 %v10210_v57, %v1656_v63 }
 0x55f   :  { %v6041_v11 = vsel %vm6030_vm12, nan, %v6040_v1  ;;  %v2989_v3 = vsel %vm2975_vm2, %v2986_v61, %v2988_v36  ;;  %v3018_v45 = vmul.u32 %v3016_v55, %v10200_v56  ;;  %v1674_v37 = vsel %vm10229_vm0, 0, %v10239_v52 }
 0x560   :  { %6233 = vst [vmem:[#allocation2 + $0x120] sm:$0xff] %v6041_v11  ;;  %v1659_v59 = vshrl.u32 %v10196_v48, %v1657_v35  ;;  %v1662_v39 = vadd.s32 127, %v1661_v46  ;;  %v2993_v33 = vand.u32 65535, %v2989_v3  ;;  %v2994_v38 = vshrl.u32 %v2989_v3, 16 }
 0x561   :  { %v3019_v4 = vmul.u32 %v3015_v40, %v2992_v47  ;;  %v2978_v57 = vsel %vm2974_vm14, %v2958_v60, %v2961_v9  ;;  %v2980_v48 = vsel %vm2976_vm1, %v2964_v21, %v2979_v58  ;;  %v3017_v30 = vmul.u32 %v3015_v40, %v10200_v56 }
 0x562   :  { %v1660_v50 = vor.u32 %v1659_v59, %v1658_v19  ;;  %v1663_v15 = vshll.u32 %v1662_v39, 23  ;;  %v2996_v34 = vmul.u32 %v2994_v38, %v10200_v56  ;;  %v2997_v5 = vmul.u32 %v2993_v33, %v2992_v47 }
 0x563   :  { %v3020_v26 = vmul.u32 %v3016_v55, %v2992_v47  ;;  %v3021_v13 = vshll.u32 %v3018_v45, 16  ;;  %v2995_v42 = vmul.u32 %v2993_v33, %v10200_v56  ;;  %v2998_v29 = vmul.u32 %v2994_v38, %v2992_v47 }
 0x564   :  { %v1664_v28 = vor.u32 4788187, %v1663_v15  ;;  %v1667_v31 = vcvt.s32.f32 %v1660_v50  ;;  %v2999_v24 = vshll.u32 %v2996_v34, 16  ;;  %v3001_v44 = vshll.u32 %v2997_v5, 16 }
 0x565   :  { %v3023_v52 = vshll.u32 %v3019_v4, 16  ;;  %vm3025_vm5 = vc.u32 %v3017_v30, %v3021_v13  ;;  %v3027_v60 = vadd.s32 %v3021_v13, %v3017_v30  ;;  %vm4503_vm6 = vcmp.gt.s32.totalorder %v4502_v17, 0 }
 0x566   :  { %v1665_v43 = vand.u32 2147483647, %v1664_v28  ;;  %vm3003_vm4 = vc.u32 %v2995_v42, %v2999_v24  ;;  %v3005_v9 = vadd.s32 %v2999_v24, %v2995_v42  ;;  %v3026_v21 = vsel %vm3025_vm5, 1, %v6469_v27 }
 0x567   :  { %v3004_v32 = vsel %vm3003_vm4, 1, %v6469_v27  ;;  %v3028_v18 = vadd.s32 %v3026_v21, %v3020_v26  ;;  %v3022_v51 = vshrl.u32 %v3018_v45, 16  ;;  %vm3029_vm8 = vc.u32 %v3027_v60, %v3023_v52 }
 0x568   :  { %v1668_v54 = vmul.f32 %v1667_v31, %v1665_v43  ;;  %v3006_v61 = vadd.s32 %v3004_v32, %v2998_v29  ;;  %vm3007_vm7 = vc.u32 %v3005_v9, %v3001_v44  ;;  %v3030_v63 = vsel %vm3029_vm8, 1, %v6469_v27 }
 0x569   :  { %v3008_v47 = vsel %vm3007_vm7, 1, %v6469_v27  ;;  %v4504_v2 = vsel %vm4503_vm6, %v4502_v17, 0  ;;  %v3000_v62 = vshrl.u32 %v2996_v34, 16  ;;  %v3032_v35 = vadd.s32 %v3030_v63, %v3028_v18 }
 0x56a   :  { %v1669_v56 = vxor.u32 2147483648, %v1668_v54  ;;  %v3010_v1 = vadd.s32 %v3008_v47, %v3006_v61  ;;  %v4506_v46 = vand.u32 31, %v4504_v2  ;;  %v2981_v11 = vsel %vm2975_vm2, %v2978_v57, %v2980_v48 }
 0x56b   :  { %v3002_v36 = vshrl.u32 %v2997_v5, 16  ;;  %v3024_v40 = vshrl.u32 %v3019_v4, 16  ;;  %v3033_v59 = vadd.s32 %v3032_v35, %v3022_v51  ;;  %v1691_v33 = vadd.s32 3, %v1674_v37 }
 0x56c   :  { %v1670_v58 = vsel %vm1549_vm9, %v1669_v56, %v1668_v54  ;;  %v3011_v19 = vadd.s32 %v3010_v1, %v3000_v62  ;;  %v10290_v39 = vsub.s32 32, %v4506_v46  ;;  %v4499_v38 = vand.u32 8388607, %v4492_v49 }
 0x56d   :  { %v1673_v55 = vsel %vm10229_vm0, %v9969_v0, %v1670_v58  ;;  %v10296_v17 = vadd.s32 %v3027_v60, %v3023_v52  ;;  %v3034_v20 = vadd.s32 %v3033_v59, %v3024_v40  ;;  %v3035_v50 = vmul.u32 %v10191_v53, %v2981_v11 }
 0x56e   :  { %v1675_v3 = vmul.f32 %v1673_v55, %v1673_v55  ;;  %v10294_v45 = vadd.s32 %v3011_v19, %v3002_v36  ;;  %v10299_v7 = vshrl.u32 %v4504_v2, 5  ;;  %v4512_v57 = vshll.u32 %v6464_v8, %v4506_v46 }
 0x56f   :  { %v3038_v37 = vadd.s32 1, %v3034_v20  ;;  %v4513_v48 = vshrl.u32 %v6465_v10, %v10290_v39  ;;  %v4516_v34 = vshrl.u32 %v6466_v12, %v10290_v39  ;;  %v4510_v53 = vshrl.u32 %v6464_v8, %v10290_v39 }
 0x570   :  { %v1676_v15 = vmul.f32 -0.001358992, %v1675_v3  ;;  %v1683_v4 = vmul.f32 -0.00019511016, %v1675_v3  ;;  %vm3037_vm9 = vc.u32 %v10294_v45, %v10296_v17  ;;  %v4515_v30 = vshll.u32 %v6465_v10, %v4506_v46 }
 0x571   :  { %v3039_v26 = vsel %vm3037_vm9, %v3038_v37, %v3034_v20  ;;  %v4518_v13 = vshll.u32 %v6466_v12, %v4506_v46  ;;  %v4519_v31 = vshrl.u32 %v6467_v14, %v10290_v39  ;;  %v4521_v42 = vshll.u32 %v6467_v14, %v4506_v46 }
 0x572   :  { %v1677_v5 = vadd.f32 0.041655596, %v1676_v15  ;;  %v1684_v28 = vadd.f32 0.008332121, %v1683_v4  ;;  %v3040_v43 = vadd.s32 %v3039_v26, %v3035_v50  ;;  %v4522_v44 = vshrl.u32 %v6468_v23, %v10290_v39 }
 0x573   :  { %v4509_v52 = vshll.u32 %v6463_v6, %v4506_v46  ;;  %v10318_v9 = vor.u32 %v4513_v48, %v4512_v57  ;;  %v10320_v21 = vor.u32 %v4516_v34, %v4515_v30  ;;  %v4520_v60 = vor.u32 %v4519_v31, %v4518_v13  ;;  %v304_v30 = vpop.f32.mrf.mxu3 }
 0x574   :  { %v1678_v29 = vmul.f32 %v1677_v5, %v1675_v3  ;;  %v1685_v24 = vmul.f32 %v1684_v28, %v1675_v3  ;;  %v3041_v18 = vadd.s32 536870912, %v3040_v43  ;;  %v4523_v61 = vor.u32 %v4522_v44, %v4521_v42 }
 0x575   :  { %v1692_v51 = vand.u32 3, %v1691_v33  ;;  %v4500_v56 = vor.u32 8388608, %v4499_v38  ;;  %v10322_v47 = vor.u32 %v4510_v53, %v4509_v52  ;;  %vm4527_vm11 = vcmp.lt.s32.totalorder %v10299_v7, 4 }
 0x576   :  { %v1679_v54 = vadd.f32 -0.4999988, %v1678_v29  ;;  %v1686_v32 = vadd.f32 -0.16666654, %v1685_v24  ;;  %v10324_v62 = vshrl.u32 %v3041_v18, 30  ;;  %vm4524_vm10 = vcmp.lt.s32.totalorder %v10299_v7, 1 }
 0x577   :  { %vm4526_vm13 = vcmp.lt.s32.totalorder %v10299_v7, 3  ;;  %v4533_v1 = vsel %vm4527_vm11, %v4520_v60, 920167782  ;;  %v4537_v35 = vsel %vm4527_vm11, %v4523_v61, 1326507024  ;;  %v4536_v36 = vsel %vm4524_vm10, %v10318_v9, %v10320_v21 }
 0x578   :  { %v1680_v63 = vmul.f32 %v1679_v54, %v1675_v3  ;;  %v1687_v2 = vmul.f32 %v1686_v32, %v1675_v3  ;;  %v3043_v11 = vshll.u32 %v10324_v62, 30  ;;  %v4532_v40 = vsel %vm4524_vm10, %v10322_v47, %v10318_v9 }
 0x579   :  { %v4534_v19 = vsel %vm4526_vm13, %v10320_v21, %v4533_v1  ;;  %v4538_v59 = vsel %vm4526_vm13, %v4520_v60, %v4537_v35  ;;  %v10347_v3 = vshll.u32 %v4500_v56, 8  ;;  %vm4525_vm12 = vcmp.lt.s32.totalorder %v10299_v7, 2 }
 0x57a   :  { %v1681_v46 = vadd.f32 1.0, %v1680_v63  ;;  %v1688_v58 = vadd.f32 1.0, %v1687_v2  ;;  %v3044_v20 = vsub.s32 %v3040_v43, %v3043_v11  ;;  %vm1693_vm14 = vcmp.lt.s32.totalorder %v1692_v51, 2 }
 0x57b   :  { %vm1694_vm15 = vcmp.eq.s32.totalorder %v1692_v51, 0  ;;  %v4539_v50 = vsel %vm4525_vm12, %v4536_v36, %v4538_v59  ;;  %v4535_v57 = vsel %vm4525_vm12, %v4532_v40, %v4534_v19  ;;  %vm1697_vm1 = vcmp.eq.s32.totalorder %v1692_v51, 2 }
 0x57c   :  { %v1689_v33 = vmul.f32 %v1688_v58, %v1673_v55  ;;  %v1698_v38 = vxor.u32 2147483648, %v1681_v46  ;;  %vm3045_vm0 = vcmp.lt.s32.totalorder %v3044_v20, 0  ;;  %v3046_v4 = vsub.s32 0, %v3044_v20 }
 0x57d   :  { %v4541_v37 = vand.u32 65535, %v10347_v3  ;;  %v4543_v48 = vand.u32 65535, %v4539_v50  ;;  %v4544_v55 = vshrl.u32 %v4539_v50, 16  ;;  %v4542_v53 = vshrl.u32 %v10347_v3, 16 }
 0x57e   :  { %v1695_v15 = vxor.u32 2147483648, %v1689_v33  ;;  %v1699_v5 = vsel %vm1697_vm1, %v1698_v38, %v1689_v33  ;;  %v3047_v28 = vsel %vm3045_vm0, %v3046_v4, %v3044_v20  ;;  %vm1690_vm2 = vweird.f32 %v9969_v0 }
 0x57f   :  { %v3048_v13 = vclz %v3047_v28  ;;  %v4566_v31 = vshrl.u32 %v4535_v57, 16  ;;  %v4546_v29 = vmul.u32 %v4544_v55, %v4541_v37  ;;  %v4547_v24 = vmul.u32 %v4543_v48, %v4542_v53 }
 0x580   :  { %v1696_v34 = vsel %vm1694_vm15, %v1681_v46, %v1695_v15  ;;  %v4565_v43 = vand.u32 65535, %v4535_v57  ;;  %v4508_v52 = vshrl.u32 %v6463_v6, %v10290_v39  ;;  %v10361_v60 = vadd.f32 %v10152_v22, %v304_v30 }
 0x581   :  { %v1700_v26 = vsel %vm1693_vm14, %v1696_v34, %v1699_v5  ;;  %v6343_v44 = vadd.s32 4294967294, %v3048_v13  ;;  %v3036_v54 = vadd.s32 %v10296_v17, %v10294_v45  ;;  %v4545_v0 = vmul.u32 %v4543_v48, %v4541_v37 }
 0x582   :  { %v1701_v42 = vsel %vm1690_vm2, nan, %v1700_v26  ;;  %v4548_v32 = vmul.u32 %v4544_v55, %v4542_v53  ;;  %v4549_v18 = vshll.u32 %v4546_v29, 16  ;;  %v4550_v61 = vshrl.u32 %v4546_v29, 16 }
 0x583   :  { %6205 = vst [vmem:[#allocation2 + $0x40] sm:$0xff] %v1701_v42  ;;  %vm6344_vm3 = vcmp.lt.s32.totalorder %v6343_v44, 0  ;;  %v4551_v51 = vshll.u32 %v4547_v24, 16  ;;  %v4568_v56 = vmul.u32 %v4566_v31, %v4541_v37  ;;  %v4569_v1 = vmul.u32 %v4565_v43, %v4542_v53 }
 0x584   :  { %v3051_v63 = vsel %vm6344_vm3, 0, %v6343_v44  ;;  %vm4553_vm5 = vc.u32 %v4545_v0, %v4549_v18  ;;  %v4555_v2 = vadd.s32 %v4549_v18, %v4545_v0  ;;  %vm2944_vm4 = vcmp.lt.s32.totalorder %v10155_v25, 0 }
 0x585   :  { %v3052_v39 = vsub.s32 32, %v3051_v63  ;;  %v3056_v35 = vsub.s32 4294967266, %v3051_v63  ;;  %v4554_v46 = vsel %vm4553_vm5, 1, %v6469_v27  ;;  %v4567_v58 = vmul.u32 %v4565_v43, %v4541_v37 }
 0x586   :  { %v4556_v11 = vadd.s32 %v4554_v46, %v4548_v32  ;;  %vm4557_vm6 = vc.u32 %v4555_v2, %v4551_v51  ;;  %v4570_v45 = vmul.u32 %v4566_v31, %v4542_v53  ;;  %v4571_v17 = vshll.u32 %v4568_v56, 16  ;;  %v247_v32 = vpop.f32.mrf.mxu1 }
 0x587   :  { %v3053_v36 = vshll.u32 %v3044_v20, %v3051_v63  ;;  %v3054_v40 = vshrl.u32 %v3036_v54, %v3052_v39  ;;  %v3057_v19 = vadd.s32 127, %v3056_v35  ;;  %v4558_v59 = vsel %vm4557_vm6, 1, %v6469_v27 }
 0x588   :  { %v4560_v33 = vadd.s32 %v4558_v59, %v4556_v11  ;;  %v4573_v38 = vshll.u32 %v4569_v1, 16  ;;  %vm4575_vm7 = vc.u32 %v4567_v58, %v4571_v17  ;;  %v4577_v50 = vadd.s32 %v4571_v17, %v4567_v58 }
 0x589   :  { %v3055_v15 = vor.u32 %v3054_v40, %v3053_v36  ;;  %v3058_v4 = vshll.u32 %v3057_v19, 23  ;;  %v4529_v57 = vsel %vm4527_vm11, %v10320_v21, 2102212464  ;;  %v4576_v37 = vsel %vm4575_vm7, 1, %v6469_v27 }
 0x58a   :  { %v3066_v48 = vsub.s32 4, %v10324_v62  ;;  %v4561_v55 = vadd.s32 %v4560_v33, %v4550_v61  ;;  %v4578_v20 = vadd.s32 %v4576_v37, %v4570_v45  ;;  %vm4579_vm8 = vc.u32 %v4577_v50, %v4573_v38 }
 0x58b   :  { %v3059_v34 = vor.u32 4788187, %v3058_v4  ;;  %v4528_v5 = vsel %vm4524_vm10, %v4508_v52, %v10322_v47  ;;  %v4552_v28 = vshrl.u32 %v4547_v24, 16  ;;  %v4580_v53 = vsel %vm4579_vm8, 1, %v6469_v27 }
 0x58c   :  { %v4530_v30 = vsel %vm4526_vm13, %v10318_v9, %v4529_v57  ;;  %v4572_v21 = vshrl.u32 %v4568_v56, 16  ;;  %v4582_v26 = vadd.s32 %v4580_v53, %v4578_v20  ;;  %v6045_v13 = vand.u32 2139095040, %v10361_v60 }
 0x58d   :  { %v3060_v31 = vand.u32 2147483647, %v3059_v34  ;;  %v3062_v42 = vcvt.s32.f32 %v3055_v15  ;;  %v4562_v29 = vadd.s32 %v4561_v55, %v4552_v28  ;;  %v6042_v43 = vand.u32 2147483647, %v10361_v60 }
 0x58e   :  { %v3067_v47 = vsel %vm2944_vm4, %v3066_v48, %v10324_v62  ;;  %v4574_v24 = vshrl.u32 %v4569_v1, 16  ;;  %v4583_v44 = vadd.s32 %v4582_v26, %v4572_v21  ;;  %v6046_v52 = vshrl.u32 %v6045_v13, 23 }
 0x58f   :  { %v3063_v54 = vmul.f32 %v3062_v42, %v3060_v31  ;;  %v4581_v0 = vadd.s32 %v4577_v50, %v4573_v38  ;;  %vm2943_vm9 = vcmp.le.f32.partialorder %v2942_v41, 0.7853982  ;;  %v4531_v9 = vsel %vm4525_vm12, %v4528_v5, %v4530_v30 }
 0x590   :  { %v4584_v18 = vadd.s32 %v4583_v44, %v4574_v24  ;;  %v6402_v61 = vadd.s32 4294967169, %v6046_v52  ;;  %v3069_v56 = vsel %vm2943_vm9, 0, %v3067_v47  ;;  %v6049_v62 = vand.u32 8388607, %v6042_v43 }
 0x591   :  { %v3064_v51 = vxor.u32 2147483648, %v3063_v54  ;;  %vm4587_vm11 = vc.u32 %v4562_v29, %v4581_v0  ;;  %v10392_v1 = vadd.f32 %v10152_v22, %v247_v32  ;;  %v4585_v41 = vmul.u32 %v10347_v3, %v4531_v9 }
 0x592   :  { %v4588_v63 = vadd.s32 1, %v4584_v18  ;;  %v6052_v2 = vadd.s32 1, %v6402_v61  ;;  %v3086_v35 = vadd.s32 3, %v3069_v56  ;;  %v6050_v45 = vor.u32 8388608, %v6049_v62 }
 0x593   :  { %v3065_v39 = vsel %vm2944_vm4, %v3064_v51, %v3063_v54  ;;  %v3100_v40 = vand.u32 2139095040, %v10392_v1  ;;  %v10401_v38 = vadd.s32 %v4581_v0, %v4562_v29  ;;  %vm3085_vm0 = vweird.f32 %v10155_v25 }
 0x594   :  { %v3068_v7 = vsel %vm2943_vm9, %v10155_v25, %v3065_v39  ;;  %v4589_v46 = vsel %vm4587_vm11, %v4588_v63, %v4584_v18  ;;  %vm6053_vm10 = vcmp.gt.s32.totalorder %v6052_v2, 0  ;;  %v10399_v33 = vand.u32 3, %v3086_v35 }
 0x595   :  { %v3070_v58 = vmul.f32 %v3068_v7, %v3068_v7  ;;  %v4590_v11 = vadd.s32 %v4589_v46, %v4585_v41  ;;  %v6054_v17 = vsel %vm6053_vm10, %v6052_v2, 0  ;;  %v10405_v57 = vshll.u32 %v6050_v45, 8 }
 0x596   :  { %v6056_v36 = vand.u32 31, %v6054_v17  ;;  %v3101_v20 = vshrl.u32 %v3100_v40, 23  ;;  %vm3092_vm13 = vcmp.eq.s32.totalorder %v10399_v33, 2  ;;  %v10419_v47 = vshrl.u32 %v6054_v17, 5 }
 0x597   :  { %v3071_v19 = vmul.f32 -0.001358992, %v3070_v58  ;;  %v3078_v22 = vmul.f32 -0.00019511016, %v3070_v58  ;;  %v4591_v59 = vadd.s32 536870912, %v4590_v11  ;;  %vm3089_vm12 = vcmp.eq.s32.totalorder %v10399_v33, 0 }
 0x598   :  { %v6057_v3 = vsub.s32 32, %v6056_v36  ;;  %v6059_v37 = vshll.u32 %v6463_v6, %v6056_v36  ;;  %v6062_v48 = vshll.u32 %v6464_v8, %v6056_v36  ;;  %v6065_v55 = vshll.u32 %v6465_v10, %v6056_v36 }
 0x599   :  { %v3072_v50 = vadd.f32 0.041655596, %v3071_v19  ;;  %v3079_v15 = vadd.f32 0.008332121, %v3078_v22  ;;  %v10403_v4 = vshrl.u32 %v4591_v59, 30  ;;  %v6068_v53 = vshll.u32 %v6466_v12, %v6056_v36 }
 0x59a   :  { %v6060_v30 = vshrl.u32 %v6464_v8, %v6057_v3  ;;  %v6063_v21 = vshrl.u32 %v6465_v10, %v6057_v3  ;;  %v6066_v26 = vshrl.u32 %v6466_v12, %v6057_v3  ;;  %v6069_v13 = vshrl.u32 %v6467_v14, %v6057_v3 }
 0x59b   :  { %v3073_v34 = vmul.f32 %v3072_v50, %v3070_v58  ;;  %v3080_v5 = vmul.f32 %v3079_v15, %v3070_v58  ;;  %v4593_v28 = vshll.u32 %v10403_v4, 30  ;;  %v6058_v24 = vshrl.u32 %v6463_v6, %v6057_v3 }
 0x59c   :  { %v6071_v44 = vshll.u32 %v6467_v14, %v6056_v36  ;;  %v6072_v52 = vshrl.u32 %v6468_v23, %v6057_v3  ;;  %v10426_v54 = vand.u32 65535, %v10405_v57  ;;  %vm3088_vm14 = vcmp.lt.s32.totalorder %v10399_v33, 2 }
 0x59d   :  { %v3074_v31 = vadd.f32 -0.4999988, %v3073_v34  ;;  %v3081_v42 = vadd.f32 -0.16666654, %v3080_v5  ;;  %v10417_v29 = vsub.s32 %v4590_v11, %v4593_v28  ;;  %v6061_v18 = vor.u32 %v6060_v30, %v6059_v37 }
 0x59e   :  { %v6064_v61 = vor.u32 %v6063_v21, %v6062_v48  ;;  %v6067_v51 = vor.u32 %v6066_v26, %v6065_v55  ;;  %v6070_v56 = vor.u32 %v6069_v13, %v6068_v53  ;;  %vm6074_vm1 = vcmp.lt.s32.totalorder %v10419_v47, 1 }
 0x59f   :  { %v3075_v0 = vmul.f32 %v3074_v31, %v3070_v58  ;;  %v3082_v32 = vmul.f32 %v3081_v42, %v3070_v58  ;;  %vm4595_vm15 = vcmp.lt.s32.totalorder %v10417_v29, 0  ;;  %v4596_v9 = vsub.s32 0, %v10417_v29 }
 0x5a0   :  { %vm6077_vm2 = vcmp.lt.s32.totalorder %v10419_v47, 4  ;;  %v6092_v41 = vshrl.u32 %v10405_v57, 16  ;;  %v6345_v35 = vadd.s32 4294967169, %v3101_v20  ;;  %v6073_v11 = vor.u32 %v6072_v52, %v6071_v44 }
 0x5a1   :  { %v3076_v62 = vadd.f32 1.0, %v3075_v0  ;;  %v3083_v63 = vadd.f32 1.0, %v3082_v32  ;;  %v4597_v2 = vsel %vm4595_vm15, %v4596_v9, %v10417_v29  ;;  %vm6076_vm3 = vcmp.lt.s32.totalorder %v10419_v47, 3 }
 0x5a2   :  { %v4598_v39 = vclz %v4597_v2  ;;  %vm4494_vm5 = vcmp.lt.s32.totalorder %v10185_v16, 0  ;;  %v4616_v17 = vsub.s32 4, %v10403_v4  ;;  %vm6075_vm4 = vcmp.lt.s32.totalorder %v10419_v47, 2 }
 0x5a3   :  { %v3084_v46 = vmul.f32 %v3083_v63, %v3068_v7  ;;  %v3093_v58 = vxor.u32 2147483648, %v3076_v62  ;;  %v6082_v36 = vsel %vm6074_vm1, %v6061_v18, %v6064_v61  ;;  %v6078_v19 = vsel %vm6074_vm1, %v6058_v24, %v6061_v18 }
 0x5a4   :  { %v6373_v45 = vadd.s32 4294967294, %v4598_v39  ;;  %v6079_v7 = vsel %vm6077_vm2, %v6067_v51, 2102212464  ;;  %v6083_v22 = vsel %vm6077_vm2, %v6070_v56, 920167782  ;;  %v6086_v50 = vsel %vm6074_vm1, %v6064_v61, %v6067_v51 }
 0x5a5   :  { %v3090_v40 = vxor.u32 2147483648, %v3084_v46  ;;  %v3094_v59 = vsel %vm3092_vm13, %v3093_v58, %v3084_v46  ;;  %v6084_v3 = vsel %vm6076_vm3, %v6067_v51, %v6083_v22  ;;  %v6087_v55 = vsel %vm6077_vm2, %v6073_v11, 1326507024 }
 0x5a6   :  { %vm6374_vm6 = vcmp.lt.s32.totalorder %v6373_v45, 0  ;;  %v6085_v48 = vsel %vm6075_vm4, %v6082_v36, %v6084_v3  ;;  %v6080_v28 = vsel %vm6076_vm3, %v6064_v61, %v6079_v7  ;;  %v6088_v30 = vsel %vm6076_vm3, %v6070_v56, %v6087_v55 }
 0x5a7   :  { %v3091_v15 = vsel %vm3089_vm12, %v3076_v62, %v3090_v40  ;;  %v4601_v37 = vsel %vm6374_vm6, 0, %v6373_v45  ;;  %v6115_v21 = vand.u32 65535, %v6085_v48  ;;  %v6116_v26 = vshrl.u32 %v6085_v48, 16 }
 0x5a8   :  { %v3095_v20 = vsel %vm3088_vm14, %v3091_v15, %v3094_v59  ;;  %v4602_v34 = vsub.s32 32, %v4601_v37  ;;  %v4606_v5 = vsub.s32 4294967266, %v4601_v37  ;;  %v4603_v13 = vshll.u32 %v10417_v29, %v4601_v37 }
 0x5a9   :  { %v3096_v53 = vsel %vm3085_vm0, nan, %v3095_v20  ;;  %v6089_v42 = vsel %vm6075_vm4, %v6086_v50, %v6088_v30  ;;  %v6118_v52 = vmul.u32 %v6116_v26, %v10426_v54  ;;  %v3097_v25 = vand.u32 2147483647, %v10392_v1 }
 0x5aa   :  { %6214 = vst [vmem:[#allocation2 + $0x88] sm:$0xff] %v3096_v53  ;;  %v4604_v31 = vshrl.u32 %v10401_v38, %v4602_v34  ;;  %v4607_v33 = vadd.s32 127, %v4606_v5  ;;  %v6093_v24 = vand.u32 65535, %v6089_v42  ;;  %v6094_v44 = vshrl.u32 %v6089_v42, 16 }
 0x5ab   :  { %v6119_v9 = vmul.u32 %v6115_v21, %v6092_v41  ;;  %v3107_v18 = vadd.s32 1, %v6345_v35  ;;  %v10477_v29 = vsel %vm4494_vm5, %v4616_v17, %v10403_v4  ;;  %v10481_v38 = vsel %vm6075_vm4, %v6078_v19, %v6080_v28 }
 0x5ac   :  { %v4605_v0 = vor.u32 %v4604_v31, %v4603_v13  ;;  %v4608_v32 = vshll.u32 %v4607_v33, 23  ;;  %v6096_v61 = vmul.u32 %v6094_v44, %v10426_v54  ;;  %v6097_v51 = vmul.u32 %v6093_v24, %v6092_v41 }
 0x5ad   :  { %v6117_v62 = vmul.u32 %v6115_v21, %v10426_v54  ;;  %v6120_v63 = vmul.u32 %v6116_v26, %v6092_v41  ;;  %v6121_v2 = vshll.u32 %v6118_v52, 16  ;;  %v6095_v35 = vmul.u32 %v6093_v24, %v10426_v54 }
 0x5ae   :  { %v4609_v56 = vor.u32 4788187, %v4608_v32  ;;  %v4612_v39 = vcvt.s32.f32 %v4605_v0  ;;  %v6098_v46 = vmul.u32 %v6094_v44, %v6092_v41  ;;  %v6099_v58 = vshll.u32 %v6096_v61, 16 }
 0x5af   :  { %v6101_v4 = vshll.u32 %v6097_v51, 16  ;;  %v6123_v45 = vshll.u32 %v6119_v9, 16  ;;  %vm6125_vm7 = vc.u32 %v6117_v62, %v6121_v2  ;;  %v6127_v36 = vadd.s32 %v6121_v2, %v6117_v62 }
 0x5b0   :  { %v4610_v11 = vand.u32 2147483647, %v4609_v56  ;;  %vm6103_vm8 = vc.u32 %v6095_v35, %v6099_v58  ;;  %v6105_v47 = vadd.s32 %v6099_v58, %v6095_v35  ;;  %v6126_v17 = vsel %vm6125_vm7, 1, %v6469_v27 }
 0x5b1   :  { %v6104_v19 = vsel %vm6103_vm8, 1, %v6469_v27  ;;  %v6128_v7 = vadd.s32 %v6126_v17, %v6120_v63  ;;  %vm3108_vm9 = vcmp.gt.s32.totalorder %v3107_v18, 0  ;;  %v6122_v59 = vshrl.u32 %v6118_v52, 16 }
 0x5b2   :  { %v4613_v40 = vmul.f32 %v4612_v39, %v4610_v11  ;;  %v6106_v22 = vadd.s32 %v6104_v19, %v6098_v46  ;;  %vm6107_vm11 = vc.u32 %v6105_v47, %v6101_v4  ;;  %vm6129_vm10 = vc.u32 %v6127_v36, %v6123_v45 }
 0x5b3   :  { %v6108_v41 = vsel %vm6107_vm11, 1, %v6469_v27  ;;  %v6130_v3 = vsel %vm6129_vm10, 1, %v6469_v27  ;;  %v3109_v50 = vsel %vm3108_vm9, %v3107_v18, 0  ;;  %v6100_v15 = vshrl.u32 %v6096_v61, 16 }
 0x5b4   :  { %v4614_v54 = vxor.u32 2147483648, %v4613_v40  ;;  %v6110_v37 = vadd.s32 %v6108_v41, %v6106_v22  ;;  %v6132_v48 = vadd.s32 %v6130_v3, %v6128_v7  ;;  %v3111_v55 = vand.u32 31, %v3109_v50 }
 0x5b5   :  { %vm10492_vm13 = vcmp.le.f32.partialorder %v4492_v49, 0.7853982  ;;  %v6102_v5 = vshrl.u32 %v6097_v51, 16  ;;  %v6124_v28 = vshrl.u32 %v6119_v9, 16  ;;  %v6135_v31 = vmul.u32 %v10405_v57, %v10481_v38 }
 0x5b6   :  { %v4615_v34 = vsel %vm4494_vm5, %v4614_v54, %v4613_v40  ;;  %v6111_v30 = vadd.s32 %v6110_v37, %v6100_v15  ;;  %v6133_v21 = vadd.s32 %v6132_v48, %v6122_v59  ;;  %v10501_v26 = vsub.s32 32, %v3111_v55 }
 0x5b7   :  { %v4618_v53 = vsel %vm10492_vm13, %v10185_v16, %v4615_v34  ;;  %v4619_v49 = vsel %vm10492_vm13, 0, %v10477_v29  ;;  %v3104_v33 = vand.u32 8388607, %v3097_v25  ;;  %v10512_v24 = vadd.s32 %v6127_v36, %v6123_v45 }
 0x5b8   :  { %v4620_v13 = vmul.f32 %v4618_v53, %v4618_v53  ;;  %v10510_v42 = vadd.s32 %v6111_v30, %v6102_v5  ;;  %v6134_v44 = vadd.s32 %v6133_v21, %v6124_v28  ;;  %v10514_v52 = vshrl.u32 %v3109_v50, 5 }
 0x5b9   :  { %v3117_v9 = vshll.u32 %v6464_v8, %v3111_v55  ;;  %v3120_v18 = vshll.u32 %v6465_v10, %v3111_v55  ;;  %v3118_v29 = vshrl.u32 %v6465_v10, %v10501_v26  ;;  %v3121_v38 = vshrl.u32 %v6466_v12, %v10501_v26 }
 0x5ba   :  { %v4621_v0 = vmul.f32 -0.001358992, %v4620_v13  ;;  %v4628_v32 = vmul.f32 -0.00019511016, %v4620_v13  ;;  %vm6137_vm12 = vc.u32 %v10510_v42, %v10512_v24  ;;  %v6138_v57 = vadd.s32 1, %v6134_v44 }
 0x5bb   :  { %v3114_v56 = vshll.u32 %v6463_v6, %v3111_v55  ;;  %v3115_v62 = vshrl.u32 %v6464_v8, %v10501_v26  ;;  %v3123_v2 = vshll.u32 %v6466_v12, %v3111_v55  ;;  %v3124_v39 = vshrl.u32 %v6467_v14, %v10501_v26 }
 0x5bc   :  { %v4622_v61 = vadd.f32 0.041655596, %v4621_v0  ;;  %v4629_v51 = vadd.f32 0.008332121, %v4628_v32  ;;  %v6139_v63 = vsel %vm6137_vm12, %v6138_v57, %v6134_v44  ;;  %v3126_v35 = vshll.u32 %v6467_v14, %v3111_v55 }
 0x5bd   :  { %v6140_v11 = vadd.s32 %v6139_v63, %v6135_v31  ;;  %v3127_v4 = vshrl.u32 %v6468_v23, %v10501_v26  ;;  %v4636_v45 = vadd.s32 3, %v4619_v49  ;;  %v10533_v47 = vor.u32 %v3118_v29, %v3117_v9 }
 0x5be   :  { %v4623_v46 = vmul.f32 %v4622_v61, %v4620_v13  ;;  %v4630_v58 = vmul.f32 %v4629_v51, %v4620_v13  ;;  %v10535_v17 = vor.u32 %v3121_v38, %v3120_v18  ;;  %v3125_v36 = vor.u32 %v3124_v39, %v3123_v2 }
 0x5bf   :  { %v6141_v7 = vadd.s32 536870912, %v6140_v11  ;;  %v3128_v22 = vor.u32 %v3127_v4, %v3126_v35  ;;  %v3105_v59 = vor.u32 8388608, %v3104_v33  ;;  %v10537_v54 = vor.u32 %v3115_v62, %v3114_v56  ;;  %v277_v56 = vpop.f32.mrf.mxu2 }
 0x5c0   :  { %v4624_v40 = vadd.f32 -0.4999988, %v4623_v46  ;;  %v4631_v19 = vadd.f32 -0.16666654, %v4630_v58  ;;  %vm3129_vm14 = vcmp.lt.s32.totalorder %v10514_v52, 1  ;;  %vm3132_vm15 = vcmp.lt.s32.totalorder %v10514_v52, 4 }
 0x5c1   :  { %v10541_v50 = vshrl.u32 %v6141_v7, 30  ;;  %vm3131_vm0 = vcmp.lt.s32.totalorder %v10514_v52, 3  ;;  %v4637_v15 = vand.u32 3, %v4636_v45  ;;  %v3138_v37 = vsel %vm3132_vm15, %v3125_v36, 920167782 }
 0x5c2   :  { %v4625_v41 = vmul.f32 %v4624_v40, %v4620_v13  ;;  %v4632_v3 = vmul.f32 %v4631_v19, %v4620_v13  ;;  %v3142_v48 = vsel %vm3132_vm15, %v3128_v22, 1326507024  ;;  %v3141_v5 = vsel %vm3129_vm14, %v10533_v47, %v10535_v17  ;;  %v6436_v45 = vld [vmem:[%s10726_s2] ss:$0 sm:$0xff]  ;;  %s6470_s2 = smov [#allocation2]  }
 0x5c3   :  { %v6143_v34 = vshll.u32 %v10541_v50, 30  ;;  %v3137_v28 = vsel %vm3129_vm14, %v10537_v54, %v10533_v47  ;;  %v3139_v30 = vsel %vm3131_vm0, %v10535_v17, %v3138_v37  ;;  %v3143_v21 = vsel %vm3131_vm0, %v3125_v36, %v3142_v48  ;;  %s6239_s30 = sshll.u32 %s6470_s2, 4  ;;  %s6240_s30 = int_to_ptr.vmem [resolvable:$true] %s6239_s30 }
 0x5c4   :  { %v4626_v55 = vadd.f32 1.0, %v4625_v41  ;;  %v4633_v20 = vadd.f32 1.0, %v4632_v3  ;;  %v10562_v49 = vshll.u32 %v3105_v59, 8  ;;  %vm3130_vm1 = vcmp.lt.s32.totalorder %v10514_v52, 2 }
 0x5c5   :  { %v6144_v33 = vsub.s32 %v6140_v11, %v6143_v34  ;;  %vm4638_vm2 = vcmp.lt.s32.totalorder %v4637_v15, 2  ;;  %vm4639_vm3 = vcmp.eq.s32.totalorder %v4637_v15, 0  ;;  %v3144_v44 = vsel %vm3130_vm1, %v3141_v5, %v3143_v21 }
 0x5c6   :  { %v4634_v13 = vmul.f32 %v4633_v20, %v4618_v53  ;;  %v4643_v31 = vxor.u32 2147483648, %v4626_v55  ;;  %v3140_v9 = vsel %vm3130_vm1, %v3137_v28, %v3139_v30  ;;  %vm4642_vm4 = vcmp.eq.s32.totalorder %v4637_v15, 2 }
 0x5c7   :  { %vm6145_vm5 = vcmp.lt.s32.totalorder %v6144_v33, 0  ;;  %v6146_v32 = vsub.s32 0, %v6144_v33  ;;  %v3146_v18 = vand.u32 65535, %v10562_v49  ;;  %v3148_v57 = vand.u32 65535, %v3144_v44 }
 0x5c8   :  { %v4640_v0 = vxor.u32 2147483648, %v4634_v13  ;;  %v3149_v53 = vshrl.u32 %v3144_v44, 16  ;;  %v4644_v38 = vsel %vm4642_vm4, %v4643_v31, %v4634_v13  ;;  %v3147_v51 = vshrl.u32 %v10562_v49, 16 }
 0x5c9   :  { %v6147_v61 = vsel %vm6145_vm5, %v6146_v32, %v6144_v33  ;;  %vm4635_vm6 = vweird.f32 %v10185_v16  ;;  %v3171_v2 = vshrl.u32 %v3140_v9, 16  ;;  %v3170_v58 = vand.u32 65535, %v3140_v9 }
 0x5ca   :  { %v4641_v29 = vsel %vm4639_vm3, %v4626_v55, %v4640_v0  ;;  %v6148_v63 = vclz %v6147_v61  ;;  %v3151_v35 = vmul.u32 %v3149_v53, %v3146_v18  ;;  %v3152_v46 = vmul.u32 %v3148_v57, %v3147_v51 }
 0x5cb   :  { %v4645_v62 = vsel %vm4638_vm2, %v4641_v29, %v4644_v38  ;;  %v3113_v4 = vshrl.u32 %v6463_v6, %v10501_v26  ;;  %v10578_v36 = vadd.f32 %v6436_v45, %v277_v56  ;;  %v6136_v16 = vadd.s32 %v10512_v24, %v10510_v42 }
 0x5cc   :  { %v4646_v39 = vsel %vm4635_vm6, nan, %v4645_v62  ;;  %v6403_v11 = vadd.s32 4294967294, %v6148_v63  ;;  %v3150_v40 = vmul.u32 %v3148_v57, %v3146_v18  ;;  %v3153_v19 = vmul.u32 %v3149_v53, %v3147_v51 }
 0x5cd   :  { %6224 = vst [vmem:[#allocation2 + $0xd8] sm:$0xff] %v4646_v39  ;;  %v3154_v7 = vshll.u32 %v3151_v35, 16  ;;  %v3155_v22 = vshrl.u32 %v3151_v35, 16  ;;  %v3156_v59 = vshll.u32 %v3152_v46, 16  ;;  %v3173_v41 = vmul.u32 %v3171_v2, %v3146_v18 }
 0x5ce   :  { %vm6404_vm7 = vcmp.lt.s32.totalorder %v6403_v11, 0  ;;  %v3174_v26 = vmul.u32 %v3170_v58, %v3147_v51  ;;  %v3172_v20 = vmul.u32 %v3170_v58, %v3146_v18  ;;  %v3175_v5 = vmul.u32 %v3171_v2, %v3147_v51 }
 0x5cf   :  { %v6151_v3 = vsel %vm6404_vm7, 0, %v6403_v11  ;;  %vm3158_vm8 = vc.u32 %v3150_v40, %v3154_v7  ;;  %v3160_v15 = vadd.s32 %v3154_v7, %v3150_v40  ;;  %v3176_v42 = vshll.u32 %v3173_v41, 16 }
 0x5d0   :  { %v6152_v37 = vsub.s32 32, %v6151_v3  ;;  %v6156_v48 = vsub.s32 4294967266, %v6151_v3  ;;  %v3159_v55 = vsel %vm3158_vm8, 1, %v6469_v27  ;;  %v6153_v24 = vshll.u32 %v6144_v33, %v6151_v3 }
 0x5d1   :  { %v3161_v34 = vadd.s32 %v3159_v55, %v3153_v19  ;;  %vm3162_vm9 = vc.u32 %v3160_v15, %v3156_v59  ;;  %v3178_v31 = vshll.u32 %v3174_v26, 16  ;;  %vm3180_vm11 = vc.u32 %v3172_v20, %v3176_v42 }
 0x5d2   :  { %v6154_v28 = vshrl.u32 %v6136_v16, %v6152_v37  ;;  %v6157_v30 = vadd.s32 127, %v6156_v48  ;;  %v3163_v21 = vsel %vm3162_vm9, 1, %v6469_v27  ;;  %v3182_v44 = vadd.s32 %v3176_v42, %v3172_v20 }
 0x5d3   :  { %v3165_v13 = vadd.s32 %v3163_v21, %v3161_v34  ;;  %v3181_v9 = vsel %vm3180_vm11, 1, %v6469_v27  ;;  %v3134_v18 = vsel %vm3132_vm15, %v10535_v17, 2102212464  ;;  %v3133_v29 = vsel %vm3129_vm14, %v3113_v4, %v10537_v54 }
 0x5d4   :  { %v6155_v0 = vor.u32 %v6154_v28, %v6153_v24  ;;  %v6158_v32 = vshll.u32 %v6157_v30, 23  ;;  %v3183_v53 = vadd.s32 %v3181_v9, %v3175_v5  ;;  %vm3184_vm10 = vc.u32 %v3182_v44, %v3178_v31 }
 0x5d5   :  { %v3166_v57 = vadd.s32 %v3165_v13, %v3155_v22  ;;  %v3157_v38 = vshrl.u32 %v3152_v46, 16  ;;  %v3185_v61 = vsel %vm3184_vm10, 1, %v6469_v27  ;;  %v6166_v51 = vsub.s32 4, %v10541_v50 }
 0x5d6   :  { %v6159_v33 = vor.u32 4788187, %v6158_v32  ;;  %v3177_v56 = vshrl.u32 %v3173_v41, 16  ;;  %v3187_v62 = vadd.s32 %v3185_v61, %v3183_v53  ;;  %v4650_v63 = vand.u32 2139095040, %v10578_v36 }
 0x5d7   :  { %v6162_v39 = vcvt.s32.f32 %v6155_v0  ;;  %v3135_v17 = vsel %vm3131_vm0, %v10533_v47, %v3134_v18  ;;  %v10597_v35 = vadd.s32 %v3166_v57, %v3157_v38  ;;  %v3179_v58 = vshrl.u32 %v3174_v26, 16 }
 0x5d8   :  { %v6160_v2 = vand.u32 2147483647, %v6159_v33  ;;  %v3188_v11 = vadd.s32 %v3187_v62, %v3177_v56  ;;  %v4651_v54 = vshrl.u32 %v4650_v63, 23  ;;  %vm6044_vm13 = vcmp.lt.s32.totalorder %v10361_v60, 0 }
 0x5d9   :  { %v10600_v4 = vadd.s32 %v3182_v44, %v3178_v31  ;;  %v4647_v45 = vand.u32 2147483647, %v10578_v36  ;;  %v6167_v16 = vsel %vm6044_vm13, %v6166_v51, %v10541_v50  ;;  %v3136_v40 = vsel %vm3130_vm1, %v3133_v29, %v3135_v17 }
 0x5da   :  { %v6163_v46 = vmul.f32 %v6162_v39, %v6160_v2  ;;  %v3189_v19 = vadd.s32 %v3188_v11, %v3179_v58  ;;  %v6375_v7 = vadd.s32 4294967169, %v4651_v54  ;;  %vm6043_vm14 = vcmp.le.f32.partialorder %v6042_v43, 0.7853982 }
 0x5db   :  { %vm3192_vm12 = vc.u32 %v10597_v35, %v10600_v4  ;;  %v6169_v3 = vsel %vm6043_vm14, 0, %v6167_v16  ;;  %v3190_v15 = vmul.u32 %v10562_v49, %v3136_v40  ;;  %v4654_v50 = vand.u32 8388607, %v4647_v45 }
 0x5dc   :  { %v6164_v47 = vxor.u32 2147483648, %v6163_v46  ;;  %v3193_v22 = vadd.s32 1, %v3189_v19  ;;  %v4657_v59 = vadd.s32 1, %v6375_v7  ;;  %v6186_v20 = vadd.s32 3, %v6169_v3 }
 0x5dd   :  { %v4655_v24 = vor.u32 8388608, %v4654_v50  ;;  %vm6185_vm3 = vweird.f32 %v10361_v60  ;;  %vm3099_vm11 = vcmp.lt.s32.totalorder %v10392_v1, 0  ;;  %vm10682_vm10 = vcmp.le.f32.partialorder %v3097_v25, 0.7853982 }
 0x5de   :  { %v6165_v41 = vsel %vm6044_vm13, %v6164_v47, %v6163_v46  ;;  %v3194_v26 = vsel %vm3192_vm12, %v3193_v22, %v3189_v19  ;;  %vm4658_vm15 = vcmp.gt.s32.totalorder %v4657_v59, 0  ;;  %v6187_v13 = vand.u32 3, %v6186_v20 }
 0x5df   :  { %v6168_v52 = vsel %vm6043_vm14, %v10361_v60, %v6165_v41  ;;  %v3195_v48 = vadd.s32 %v3194_v26, %v3190_v15  ;;  %v4659_v55 = vsel %vm4658_vm15, %v4657_v59, 0  ;;  %v10619_v32 = vshll.u32 %v4655_v24, 8 }
 0x5e0   :  { %v6170_v37 = vmul.f32 %v6168_v52, %v6168_v52  ;;  %v4661_v34 = vand.u32 31, %v4659_v55  ;;  %v10621_v9 = vshrl.u32 %v4659_v55, 5  ;;  %vm6189_vm0 = vcmp.eq.s32.totalorder %v6187_v13, 0 }
 0x5e1   :  { %v3196_v42 = vadd.s32 536870912, %v3195_v48  ;;  %vm6188_vm1 = vcmp.lt.s32.totalorder %v6187_v13, 2  ;;  %vm6192_vm5 = vcmp.eq.s32.totalorder %v6187_v13, 2 }
 0x5e2   :  { %v6171_v5 = vmul.f32 -0.001358992, %v6170_v37  ;;  %v6178_v43 = vmul.f32 -0.00019511016, %v6170_v37  ;;  %v10614_v28 = vsub.s32 32, %v4661_v34  ;;  %v4664_v61 = vshll.u32 %v6463_v6, %v4661_v34 }
 0x5e3   :  { %v10616_v21 = vshrl.u32 %v3196_v42, 30  ;;  %v4667_v51 = vshll.u32 %v6464_v8, %v4661_v34  ;;  %v4673_v62 = vshll.u32 %v6466_v12, %v4661_v34  ;;  %v4676_v40 = vshll.u32 %v6467_v14, %v4661_v34 }
 0x5e4   :  { %v6172_v30 = vadd.f32 0.041655596, %v6171_v5  ;;  %v6179_v49 = vadd.f32 0.008332121, %v6178_v43  ;;  %v4665_v18 = vshrl.u32 %v6464_v8, %v10614_v28  ;;  %v4668_v57 = vshrl.u32 %v6465_v10, %v10614_v28 }
 0x5e5   :  { %v3198_v0 = vshll.u32 %v10616_v21, 30  ;;  %v4674_v53 = vshrl.u32 %v6467_v14, %v10614_v28  ;;  %v4671_v56 = vshrl.u32 %v6466_v12, %v10614_v28  ;;  %v4677_v63 = vshrl.u32 %v6468_v23, %v10614_v28 }
 0x5e6   :  { %v6173_v31 = vmul.f32 %v6172_v30, %v6170_v37  ;;  %v6180_v44 = vmul.f32 %v6179_v49, %v6170_v37  ;;  %v10637_v58 = vor.u32 %v4665_v18, %v4664_v61  ;;  %v10639_v11 = vor.u32 %v4668_v57, %v4667_v51 }
 0x5e7   :  { %v3199_v38 = vsub.s32 %v3195_v48, %v3198_v0  ;;  %v4670_v8 = vshll.u32 %v6465_v10, %v4661_v34  ;;  %v4675_v54 = vor.u32 %v4674_v53, %v4673_v62  ;;  %v3191_v23 = vadd.s32 %v10600_v4, %v10597_v35 }
 0x5e8   :  { %v6174_v33 = vadd.f32 -0.4999988, %v6173_v31  ;;  %v6181_v29 = vadd.f32 -0.16666654, %v6180_v44  ;;  %v4678_v59 = vor.u32 %v4677_v63, %v4676_v40  ;;  %vm4679_vm4 = vcmp.lt.s32.totalorder %v10621_v9, 1 }
 0x5e9   :  { %vm3200_vm2 = vcmp.lt.s32.totalorder %v3199_v38, 0  ;;  %v3201_v17 = vsub.s32 0, %v3199_v38  ;;  %v10645_v7 = vor.u32 %v4671_v56, %v4670_v8  ;;  %vm4682_vm6 = vcmp.lt.s32.totalorder %v10621_v9, 4 }
 0x5ea   :  { %v6175_v2 = vmul.f32 %v6174_v33, %v6170_v37  ;;  %v6182_v39 = vmul.f32 %v6181_v29, %v6170_v37  ;;  %v4687_v10 = vsel %vm4679_vm4, %v10637_v58, %v10639_v11  ;;  %v4696_v14 = vand.u32 65535, %v10619_v32 }
 0x5eb   :  { %v3202_v12 = vsel %vm3200_vm2, %v3201_v17, %v3199_v38  ;;  %vm4680_vm7 = vcmp.lt.s32.totalorder %v10621_v9, 2  ;;  %vm4681_vm8 = vcmp.lt.s32.totalorder %v10621_v9, 3  ;;  %v4688_v35 = vsel %vm4682_vm6, %v4675_v54, 920167782 }
 0x5ec   :  { %v6176_v46 = vadd.f32 1.0, %v6175_v2  ;;  %v6183_v16 = vadd.f32 1.0, %v6182_v39  ;;  %v3203_v19 = vclz %v3202_v12  ;;  %v4689_v15 = vsel %vm4681_vm8, %v10645_v7, %v4688_v35 }
 0x5ed   :  { %v4691_v50 = vsel %vm4679_vm4, %v10639_v11, %v10645_v7  ;;  %v4690_v37 = vsel %vm4680_vm7, %v4687_v10, %v4689_v15  ;;  %v4692_v48 = vsel %vm4682_vm6, %v4678_v59, 1326507024  ;;  %v4697_v5 = vshrl.u32 %v10619_v32, 16 }
 0x5ee   :  { %v6184_v47 = vmul.f32 %v6183_v16, %v6168_v52  ;;  %v6193_v22 = vxor.u32 2147483648, %v6176_v46  ;;  %v6346_v41 = vadd.s32 4294967294, %v3203_v19  ;;  %v4693_v42 = vsel %vm4681_vm8, %v4675_v54, %v4692_v48 }
 0x5ef   :  { %v4720_v24 = vand.u32 65535, %v4690_v37  ;;  %v4721_v30 = vshrl.u32 %v4690_v37, 16  ;;  %v4694_v13 = vsel %vm4680_vm7, %v4691_v50, %v4693_v42  ;;  %v4663_v19 = vshrl.u32 %v6463_v6, %v10614_v28 }
 0x5f0   :  { %v6190_v3 = vxor.u32 2147483648, %v6184_v47  ;;  %v6194_v4 = vsel %vm6192_vm5, %v6193_v22, %v6184_v47  ;;  %vm6347_vm9 = vcmp.lt.s32.totalorder %v6346_v41, 0  ;;  %v4698_v0 = vand.u32 65535, %v4694_v13 }
 0x5f1   :  { %v3206_v26 = vsel %vm6347_vm9, 0, %v6346_v41  ;;  %v4699_v18 = vshrl.u32 %v4694_v13, 16  ;;  %v4723_v57 = vmul.u32 %v4721_v30, %v4696_v14  ;;  %v4724_v29 = vmul.u32 %v4720_v24, %v4697_v5 }
 0x5f2   :  { %v6191_v52 = vsel %vm6189_vm0, %v6176_v46, %v6190_v3  ;;  %v3207_v20 = vsub.s32 32, %v3206_v26  ;;  %v3211_v34 = vsub.s32 4294967266, %v3206_v26  ;;  %v3208_v49 = vshll.u32 %v3199_v38, %v3206_v26 }
 0x5f3   :  { %v6195_v55 = vsel %vm6188_vm1, %v6191_v52, %v6194_v4  ;;  %v4701_v60 = vmul.u32 %v4699_v18, %v4696_v14  ;;  %v4702_v61 = vmul.u32 %v4698_v0, %v4697_v5  ;;  %v4722_v56 = vmul.u32 %v4720_v24, %v4696_v14 }
 0x5f4   :  { %v6196_v43 = vsel %vm6185_vm3, nan, %v6195_v55  ;;  %v3209_v31 = vshrl.u32 %v3191_v23, %v3207_v20  ;;  %v3212_v44 = vadd.s32 127, %v3211_v34  ;;  %v4725_v62 = vmul.u32 %v4721_v30, %v4697_v5 }
 0x5f5   :  { %6234 = vst [vmem:[#allocation2 + $0x128] sm:$0xff] %v6196_v43  ;;  %v4726_v63 = vshll.u32 %v4723_v57, 16  ;;  %v4700_v39 = vmul.u32 %v4698_v0, %v4696_v14  ;;  %v4703_v17 = vmul.u32 %v4699_v18, %v4697_v5  ;;  %v4704_v8 = vshll.u32 %v4701_v60, 16 }
 0x5f6   :  { %v3210_v53 = vor.u32 %v3209_v31, %v3208_v49  ;;  %v3213_v33 = vshll.u32 %v3212_v44, 23  ;;  %v4706_v46 = vshll.u32 %v4702_v61, 16  ;;  %v4728_v16 = vshll.u32 %v4724_v29, 16 }
 0x5f7   :  { %vm4730_vm13 = vc.u32 %v4722_v56, %v4726_v63  ;;  %vm4708_vm12 = vc.u32 %v4700_v39, %v4704_v8  ;;  %v4710_v12 = vadd.s32 %v4704_v8, %v4700_v39  ;;  %v4732_v25 = vadd.s32 %v4726_v63, %v4722_v56 }
 0x5f8   :  { %v3214_v38 = vor.u32 4788187, %v3213_v33  ;;  %v3217_v2 = vcvt.s32.f32 %v3210_v53  ;;  %v4731_v40 = vsel %vm4730_vm13, 1, %v6469_v27  ;;  %v4709_v47 = vsel %vm4708_vm12, 1, %v6469_v27 }
 0x5f9   :  { %v4733_v22 = vadd.s32 %v4731_v40, %v4725_v62  ;;  %v4684_v59 = vsel %vm4682_vm6, %v10645_v7, 2102212464  ;;  %v4711_v41 = vadd.s32 %v4709_v47, %v4703_v17  ;;  %vm4712_vm14 = vc.u32 %v4710_v12, %v4706_v46 }
 0x5fa   :  { %v3215_v54 = vand.u32 2147483647, %v3214_v38  ;;  %vm4734_vm15 = vc.u32 %v4732_v25, %v4728_v16  ;;  %v3221_v14 = vsub.s32 4, %v10616_v21  ;;  %v4713_v3 = vsel %vm4712_vm14, 1, %v6469_v27 }
 0x5fb   :  { %v4735_v35 = vsel %vm4734_vm15, 1, %v6469_v27  ;;  %v4705_v4 = vshrl.u32 %v4701_v60, 16  ;;  %v4715_v15 = vadd.s32 %v4713_v3, %v4711_v41  ;;  %v4727_v6 = vshrl.u32 %v4723_v57, 16 }
 0x5fc   :  { %v3218_v23 = vmul.f32 %v3217_v2, %v3215_v54  ;;  %v4737_v28 = vadd.s32 %v4735_v35, %v4733_v22  ;;  %v4683_v7 = vsel %vm4679_vm4, %v4663_v19, %v10637_v58  ;;  %v4685_v52 = vsel %vm4681_vm8, %v10639_v11, %v4684_v59 }
 0x5fd   :  { %v4707_v26 = vshrl.u32 %v4702_v61, 16  ;;  %v4716_v37 = vadd.s32 %v4715_v15, %v4705_v4  ;;  %v4729_v48 = vshrl.u32 %v4724_v29, 16  ;;  %v4686_v34 = vsel %vm4680_vm7, %v4683_v7, %v4685_v52 }
 0x5fe   :  { %v3219_v10 = vxor.u32 2147483648, %v3218_v23  ;;  %v4738_v55 = vadd.s32 %v4737_v28, %v4727_v6  ;;  %v4736_v43 = vadd.s32 %v4732_v25, %v4728_v16  ;;  %v3222_v11 = vsel %vm3099_vm11, %v3221_v14, %v10616_v21 }
 0x5ff   :  { %v4717_v5 = vadd.s32 %v4716_v37, %v4707_v26  ;;  %v4740_v44 = vmul.u32 %v10619_v32, %v4686_v34  ;;  %v3224_v9 = vsel %vm10682_vm10, 0, %v3222_v11  ;;  %vm3240_vm4 = vweird.f32 %v10392_v1 }
 0x600   :  { %v3220_v50 = vsel %vm3099_vm11, %v3219_v10, %v3218_v23  ;;  %v4739_v42 = vadd.s32 %v4738_v55, %v4729_v48  ;;  %v3241_v60 = vadd.s32 3, %v3224_v9  ;;  %vm4649_vm7 = vcmp.lt.s32.totalorder %v10578_v36, 0 }
 0x601   :  { %v3223_v27 = vsel %vm10682_vm10, %v10392_v1, %v3220_v50  ;;  %vm4742_vm0 = vc.u32 %v4717_v5, %v4736_v43  ;;  %v4741_v47 = vadd.s32 %v4736_v43, %v4717_v5  ;;  %vm4648_vm8 = vcmp.le.f32.partialorder %v4647_v45, 0.7853982 }
 0x602   :  { %v3225_v20 = vmul.f32 %v3223_v27, %v3223_v27  ;;  %v4743_v30 = vadd.s32 1, %v4739_v42  ;;  %v3242_v2 = vand.u32 3, %v3241_v60  ;;  %vm4790_vm13 = vweird.f32 %v10578_v36 }
 0x604   :  { %v3226_v58 = vmul.f32 -0.001358992, %v3225_v20  ;;  %v3233_v24 = vmul.f32 -0.00019511016, %v3225_v20  ;;  %v4744_v13 = vsel %vm4742_vm0, %v4743_v30, %v4739_v42  ;;  %vm3244_vm2 = vcmp.eq.s32.totalorder %v3242_v2, 0 }
 0x605   :  { %v4745_v57 = vadd.s32 %v4744_v13, %v4740_v44  ;;  %vm3247_vm3 = vcmp.eq.s32.totalorder %v3242_v2, 2  ;;  %vm3243_vm5 = vcmp.lt.s32.totalorder %v3242_v2, 2 }
 0x606   :  { %v3227_v49 = vadd.f32 0.041655596, %v3226_v58  ;;  %v3234_v31 = vadd.f32 0.008332121, %v3233_v24 }
 0x607   :  { %v4746_v29 = vadd.s32 536870912, %v4745_v57 }
 0x608   :  { %v3228_v0 = vmul.f32 %v3227_v49, %v3225_v20  ;;  %v3235_v18 = vmul.f32 %v3234_v31, %v3225_v20 }
 0x609   :  { %v4747_v21 = vshrl.u32 %v4746_v29, 30 }
 0x60a   :  { %v3229_v53 = vadd.f32 -0.4999988, %v3228_v0  ;;  %v3236_v33 = vadd.f32 -0.16666654, %v3235_v18 }
 0x60b   :  { %v4748_v63 = vshll.u32 %v4747_v21, 30  ;;  %v4771_v7 = vsub.s32 4, %v4747_v21 }
 0x60c   :  { %v3230_v61 = vmul.f32 %v3229_v53, %v3225_v20  ;;  %v3237_v38 = vmul.f32 %v3236_v33, %v3225_v20 }
 0x60d   :  { %v4749_v17 = vsub.s32 %v4745_v57, %v4748_v63  ;;  %v4772_v48 = vsel %vm4649_vm7, %v4771_v7, %v4747_v21 }
 0x60e   :  { %v3231_v56 = vadd.f32 1.0, %v3230_v61  ;;  %v3238_v62 = vadd.f32 1.0, %v3237_v38  ;;  %v4774_v34 = vsel %vm4648_vm8, 0, %v4772_v48 }
 0x60f   :  { %vm4750_vm1 = vcmp.lt.s32.totalorder %v4749_v17, 0  ;;  %v4751_v51 = vsub.s32 0, %v4749_v17  ;;  %v4791_v24 = vadd.s32 3, %v4774_v34 }
 0x610   :  { %v3239_v39 = vmul.f32 %v3238_v62, %v3223_v27  ;;  %v3248_v32 = vxor.u32 2147483648, %v3231_v56 }
 0x611   :  { %v4752_v16 = vsel %vm4750_vm1, %v4751_v51, %v4749_v17  ;;  %v4792_v31 = vand.u32 3, %v4791_v24 }
 0x612   :  { %v3245_v8 = vxor.u32 2147483648, %v3239_v39  ;;  %v3249_v46 = vsel %vm3247_vm3, %v3248_v32, %v3239_v39  ;;  %v4753_v40 = vclz %v4752_v16 }
 0x613   :  { %vm4794_vm9 = vcmp.eq.s32.totalorder %v4792_v31, 0  ;;  %vm4797_vm11 = vcmp.eq.s32.totalorder %v4792_v31, 2  ;;  %vm4793_vm10 = vcmp.lt.s32.totalorder %v4792_v31, 2 }
 0x614   :  { %v3246_v54 = vsel %vm3244_vm2, %v3231_v56, %v3245_v8  ;;  %v6376_v23 = vadd.s32 4294967294, %v4753_v40 }
 0x615   :  { %v3250_v12 = vsel %vm3243_vm5, %v3246_v54, %v3249_v46 }
 0x616   :  { %v3251_v25 = vsel %vm3240_vm4, nan, %v3250_v12  ;;  %vm6377_vm6 = vcmp.lt.s32.totalorder %v6376_v23, 0 }
 0x617   :  { %6215 = vst [vmem:[#allocation2 + $0x90] sm:$0xff] %v3251_v25  ;;  %v4756_v19 = vsel %vm6377_vm6, 0, %v6376_v23 }
 0x618   :  { %v4757_v22 = vsub.s32 32, %v4756_v19  ;;  %v4761_v59 = vsub.s32 4294967266, %v4756_v19  ;;  %v4758_v41 = vshll.u32 %v4749_v17, %v4756_v19 }
 0x61a   :  { %v4759_v10 = vshrl.u32 %v4741_v47, %v4757_v22  ;;  %v4762_v14 = vadd.s32 127, %v4761_v59 }
 0x61c   :  { %v4760_v3 = vor.u32 %v4759_v10, %v4758_v41  ;;  %v4763_v35 = vshll.u32 %v4762_v14, 23 }
 0x61e   :  { %v4764_v4 = vor.u32 4788187, %v4763_v35  ;;  %v4767_v6 = vcvt.s32.f32 %v4760_v3 }
 0x620   :  { %v4765_v15 = vand.u32 2147483647, %v4764_v4 }
 0x622   :  { %v4768_v28 = vmul.f32 %v4767_v6, %v4765_v15 }
 0x624   :  { %v4769_v1 = vxor.u32 2147483648, %v4768_v28 }
 0x626   :  { %v4770_v50 = vsel %vm4649_vm7, %v4769_v1, %v4768_v28 }
 0x627   :  { %v4773_v52 = vsel %vm4648_vm8, %v10578_v36, %v4770_v50 }
 0x628   :  { %v4775_v26 = vmul.f32 %v4773_v52, %v4773_v52 }
 0x62a   :  { %v4776_v27 = vmul.f32 -0.001358992, %v4775_v26  ;;  %v4783_v37 = vmul.f32 -0.00019511016, %v4775_v26 }
 0x62c   :  { %v4777_v55 = vadd.f32 0.041655596, %v4776_v27  ;;  %v4784_v20 = vadd.f32 0.008332121, %v4783_v37 }
 0x62e   :  { %v4778_v5 = vmul.f32 %v4777_v55, %v4775_v26  ;;  %v4785_v43 = vmul.f32 %v4784_v20, %v4775_v26 }
 0x630   :  { %v4779_v42 = vadd.f32 -0.4999988, %v4778_v5  ;;  %v4786_v58 = vadd.f32 -0.16666654, %v4785_v43 }
 0x632   :  { %v4780_v11 = vmul.f32 %v4779_v42, %v4775_v26  ;;  %v4787_v30 = vmul.f32 %v4786_v58, %v4775_v26 }
 0x634   :  { %v4781_v49 = vadd.f32 1.0, %v4780_v11  ;;  %v4788_v45 = vadd.f32 1.0, %v4787_v30 }
 0x636   :  { %v4789_v44 = vmul.f32 %v4788_v45, %v4773_v52  ;;  %v4798_v13 = vxor.u32 2147483648, %v4781_v49 }
 0x638   :  { %v4795_v9 = vxor.u32 2147483648, %v4789_v44  ;;  %v4799_v18 = vsel %vm4797_vm11, %v4798_v13, %v4789_v44 }
 0x63a   :  { %v4796_v0 = vsel %vm4794_vm9, %v4781_v49, %v4795_v9 }
 0x63b   :  { %v4800_v57 = vsel %vm4793_vm10, %v4796_v0, %v4799_v18 }
 0x63c   :  { %v4801_v53 = vsel %vm4790_vm13, nan, %v4800_v57 }
 0x63d   :  { %6225 = vst [vmem:[#allocation2 + $0xe0] sm:$0xff] %v4801_v53 }
 0x63e   :  { %6247 = dma.vmem_to_hbm [thread:$0]  %s6240_s30, 4864, %s6242_s6, [#allocation3], %s6471_s7, %s6471_s7, %s6472_s8  }
 0x63f   :  { %6461 = dma.done.wait [#allocation3], 4864  }
 0x640   :  { %6462 = vsyncadd [#allocation3], 4294962432 }
 0x641   :  { %6252 = vsyncpa [#allocation3], 1 }

</bundles_post_ra>
